<compile_context>
chip_gen: v7x
topology: tpu7x:2x2x1
jax: 0.10.0
libtpu: 0.0.40
codegen_flags: <defaults>
</compile_context>

<pallas_src>
import functools

import jax
import jax.numpy as jnp
from jax.experimental import pallas as pl
from jax.experimental.pallas import tpu as pltpu


# ----------------------------------------------------------------------------
# Pallas kernels
# ----------------------------------------------------------------------------
def _fused_1x1_bn_relu_kernel(x_ref, w_ref, scale_ref, bias_ref,
                              o0_ref, o1_ref, o2_ref):
    """One matmul for the three 1x1 BasicConv2d branches that read x.

    x_ref:     (1, th, W, 192)  bf16
    w_ref:     (192, 208)       bf16   columns = [b0(96) | b1_0(48) | b2_0(64)]
    scale_ref: (1, 208) f32     gamma / sqrt(var + eps)   (folded BN)
    bias_ref:  (1, 208) f32     beta - mean * scale
    o0_ref:    (1, th, W, 96)   f32   (branch0 final output)
    o1_ref:    (1, th, W, 48)   bf16  (input to the 5x5 conv)
    o2_ref:    (1, th, W, 64)   bf16  (input to the first 3x3 conv)
    """
    _, th, W, Cin = x_ref.shape
    c0 = o0_ref.shape[3]
    c1 = o1_ref.shape[3]
    c2 = o2_ref.shape[3]

    x = x_ref[0].reshape(th * W, Cin)
    y = jnp.dot(x, w_ref[...], preferred_element_type=jnp.float32)
    y = y * scale_ref[0] + bias_ref[0]
    y = jnp.maximum(y, 0.0)

    o0_ref[0] = y[:, :c0].reshape(th, W, c0).astype(o0_ref.dtype)
    o1_ref[0] = y[:, c0:c0 + c1].reshape(th, W, c1).astype(o1_ref.dtype)
    o2_ref[0] = y[:, c0 + c1:c0 + c1 + c2].reshape(th, W, c2).astype(o2_ref.dtype)


def _conv_kxk_bn_relu_kernel(x_ref, w_ref, scale_ref, bias_ref, o_ref):
    """Fused KxK stride-1 'same' conv + folded-BN + ReLU for one batch element.

    'same' padding is built in VMEM (no HBM padded copy).

    x_ref:     (1, H, W, Cin)   bf16
    w_ref:     (K, K, Cin, Cout) bf16 (HWIO)
    scale_ref: (1, Cout) f32
    bias_ref:  (1, Cout) f32
    o_ref:     (1, H, W, Cout)
    """
    K = w_ref.shape[0]
    p = K // 2
    _, H, W, Cin = x_ref.shape
    Cout = o_ref.shape[3]

    x = x_ref[0]                                             # (H, W, Cin) bf16
    zr = jnp.zeros((p, W, Cin), x.dtype)
    xp = jnp.concatenate([zr, x, zr], axis=0)                # (H+2p, W, Cin)
    zc = jnp.zeros((H + 2 * p, p, Cin), x.dtype)
    xp = jnp.concatenate([zc, xp, zc], axis=1)               # (H+2p, W+2p, Cin)

    acc = jnp.zeros((H * W, Cout), jnp.float32)
    for kh in range(K):
        for kw in range(K):
            patch = xp[kh:kh + H, kw:kw + W, :].reshape(H * W, Cin)
            acc = acc + jnp.dot(patch, w_ref[kh, kw],
                                preferred_element_type=jnp.float32)

    y = acc * scale_ref[0] + bias_ref[0]
    y = jnp.maximum(y, 0.0)
    o_ref[0] = y.reshape(H, W, Cout).astype(o_ref.dtype)


def _pool_conv1x1_bn_relu_kernel(x_ref, inv_ref, w_ref, scale_ref, bias_ref,
                                 o_ref):
    """Fused AvgPool2d(3,1,1,count_include_pad=False) + 1x1 conv + BN + ReLU.

    x_ref:     (1, H, W, 192)   bf16
    inv_ref:   (H*W, 1)         f32   1 / (valid tap count) per position
    w_ref:     (192, 64)        bf16
    scale_ref: (1, 64) f32
    bias_ref:  (1, 64) f32
    o_ref:     (1, H, W, 64)    f32
    """
    _, H, W, C = x_ref.shape
    Cout = o_ref.shape[3]

    x = x_ref[0].astype(jnp.float32)                         # (H, W, C)
    # Separable 3x3 window sum: columns then rows (6 adds instead of 9).
    zc = jnp.zeros((H, 1, C), jnp.float32)
    xw = jnp.concatenate([zc, x, zc], axis=1)                # (H, W+2, C)
    sw = xw[:, 0:W, :] + xw[:, 1:W + 1, :] + xw[:, 2:W + 2, :]
    zr = jnp.zeros((1, W, C), jnp.float32)
    sh = jnp.concatenate([zr, sw, zr], axis=0)               # (H+2, W, C)
    s = sh[0:H, :, :] + sh[1:H + 1, :, :] + sh[2:H + 2, :, :]  # window sum

    # (sum * inv) @ W == (sum @ W) * inv  (inv is per-position scalar), so the
    # cheap per-position scaling is applied to the 64-ch matmul result.
    y = jnp.dot(s.reshape(H * W, C).astype(jnp.bfloat16), w_ref[...],
                preferred_element_type=jnp.float32)          # (H*W, Cout)
    y = y * inv_ref[...]
    y = y * scale_ref[0] + bias_ref[0]
    y = jnp.maximum(y, 0.0)
    o_ref[0] = y.reshape(H, W, Cout).astype(o_ref.dtype)


# ----------------------------------------------------------------------------
# Wrappers around pallas_call
# ----------------------------------------------------------------------------
def fused_1x1_bn_relu(x, w, scale, bias, *, th):
    N, H, W, Cin = x.shape
    Cout = w.shape[1]
    c0, c1, c2 = 96, 48, 64
    assert Cout == c0 + c1 + c2
    return pl.pallas_call(
        _fused_1x1_bn_relu_kernel,
        out_shape=(
            jax.ShapeDtypeStruct((N, H, W, c0), jnp.float32),
            jax.ShapeDtypeStruct((N, H, W, c1), jnp.bfloat16),
            jax.ShapeDtypeStruct((N, H, W, c2), jnp.bfloat16),
        ),
        grid=(N, H // th),
        in_specs=[
            pl.BlockSpec((1, th, W, Cin), lambda n, h: (n, h, 0, 0)),
            pl.BlockSpec((Cin, Cout), lambda n, h: (0, 0)),
            pl.BlockSpec((1, Cout), lambda n, h: (0, 0)),
            pl.BlockSpec((1, Cout), lambda n, h: (0, 0)),
        ],
        out_specs=(
            pl.BlockSpec((1, th, W, c0), lambda n, h: (n, h, 0, 0)),
            pl.BlockSpec((1, th, W, c1), lambda n, h: (n, h, 0, 0)),
            pl.BlockSpec((1, th, W, c2), lambda n, h: (n, h, 0, 0)),
        ),
        compiler_params=pltpu.CompilerParams(
            dimension_semantics=("parallel", "parallel")),
    )(x, w, scale, bias)


def conv_kxk_bn_relu(x, w, scale, bias, *, out_dtype):
    N, H, W, Cin = x.shape
    K = w.shape[0]
    Cout = w.shape[-1]
    return pl.pallas_call(
        _conv_kxk_bn_relu_kernel,
        out_shape=jax.ShapeDtypeStruct((N, H, W, Cout), out_dtype),
        grid=(N,),
        in_specs=[
            pl.BlockSpec((1, H, W, Cin), lambda n: (n, 0, 0, 0)),
            pl.BlockSpec((K, K, Cin, Cout), lambda n: (0, 0, 0, 0)),
            pl.BlockSpec((1, Cout), lambda n: (0, 0)),
            pl.BlockSpec((1, Cout), lambda n: (0, 0)),
        ],
        out_specs=pl.BlockSpec((1, H, W, Cout), lambda n: (n, 0, 0, 0)),
        compiler_params=pltpu.CompilerParams(
            dimension_semantics=("parallel",)),
    )(x, w, scale, bias)


def avgpool3_conv1x1_bn_relu(x, w, scale, bias):
    N, H, W, C = x.shape
    Cout = w.shape[-1]
    # valid-tap counts per output position (count_include_pad=False)
    ch = jnp.minimum(jnp.arange(H), 1) + 1 + jnp.minimum(H - 1 - jnp.arange(H), 1)
    cw = jnp.minimum(jnp.arange(W), 1) + 1 + jnp.minimum(W - 1 - jnp.arange(W), 1)
    inv = (1.0 / (ch[:, None] * cw[None, :]).astype(jnp.float32)).reshape(H * W, 1)
    return pl.pallas_call(
        _pool_conv1x1_bn_relu_kernel,
        out_shape=jax.ShapeDtypeStruct((N, H, W, Cout), jnp.float32),
        grid=(N,),
        in_specs=[
            pl.BlockSpec((1, H, W, C), lambda n: (n, 0, 0, 0)),
            pl.BlockSpec((H * W, 1), lambda n: (0, 0)),
            pl.BlockSpec((C, Cout), lambda n: (0, 0)),
            pl.BlockSpec((1, Cout), lambda n: (0, 0)),
            pl.BlockSpec((1, Cout), lambda n: (0, 0)),
        ],
        out_specs=pl.BlockSpec((1, H, W, Cout), lambda n: (n, 0, 0, 0)),
        compiler_params=pltpu.CompilerParams(
            dimension_semantics=("parallel",)),
    )(x, inv, w, scale, bias)


# ----------------------------------------------------------------------------
# Parameter construction (deterministic, synthetic), with BN folding and
# kernel-friendly packing (bf16 weights, channel padding for lane density).
# ----------------------------------------------------------------------------
_BN_EPS = 1e-3


def _make_basic_conv_params(key, cin, cout, k):
    kw_, kg, kb, km, kv = jax.random.split(key, 5)
    w = 0.05 * jax.random.normal(kw_, (k, k, cin, cout), jnp.float32)   # HWIO
    gamma = 1.0 + 0.1 * jax.random.normal(kg, (cout,), jnp.float32)
    beta = 0.1 * jax.random.normal(kb, (cout,), jnp.float32)
    running_mean = 0.1 * jax.random.normal(km, (cout,), jnp.float32)
    running_var = 1.0 + 0.1 * jnp.abs(jax.random.normal(kv, (cout,), jnp.float32))
    # Fold eval-mode BN into per-channel scale / bias.
    scale = gamma / jnp.sqrt(running_var + _BN_EPS)
    bias = beta - running_mean * scale
    return w, scale, bias


def make_mixed_5b_params(key):
    keys = jax.random.split(key, 7)
    raw = {
        "b0":   _make_basic_conv_params(keys[0], 192, 96, 1),
        "b1_0": _make_basic_conv_params(keys[1], 192, 48, 1),
        "b1_1": _make_basic_conv_params(keys[2], 48, 64, 5),
        "b2_0": _make_basic_conv_params(keys[3], 192, 64, 1),
        "b2_1": _make_basic_conv_params(keys[4], 64, 96, 3),
        "b2_2": _make_basic_conv_params(keys[5], 96, 96, 3),
        "b3":   _make_basic_conv_params(keys[6], 192, 64, 1),
    }

    # --- fused 1x1 (b0 | b1_0 | b2_0): (192, 96+48+64=208) -------------------
    w_f = jnp.concatenate(
        [raw["b0"][0][0, 0], raw["b1_0"][0][0, 0], raw["b2_0"][0][0, 0]], axis=-1)
    scale_f = jnp.concatenate([raw["b0"][1], raw["b1_0"][1], raw["b2_0"][1]])
    bias_f = jnp.concatenate([raw["b0"][2], raw["b1_0"][2], raw["b2_0"][2]])

    # --- b2_1: pad Cout 96 -> 128 (lane-dense store / next-conv load) --------
    w21, s21, bi21 = raw["b2_1"]
    w21 = jnp.pad(w21, ((0, 0), (0, 0), (0, 0), (0, 32)))
    s21 = jnp.pad(s21, (0, 32))
    bi21 = jnp.pad(bi21, (0, 32))

    # --- b2_2: pad Cin 96 -> 128 with zero rows (consumes padded b2_1) -------
    w22, s22, bi22 = raw["b2_2"]
    w22 = jnp.pad(w22, ((0, 0), (0, 0), (0, 32), (0, 0)))

    def pack(w, s, b):
        return (w.astype(jnp.bfloat16), s.reshape(1, -1).astype(jnp.float32),
                b.reshape(1, -1).astype(jnp.float32))

    return {
        "fused1x1": pack(w_f, scale_f, bias_f),
        "b1_1": pack(*raw["b1_1"]),
        "b2_1": pack(w21, s21, bi21),
        "b2_2": pack(w22, s22, bi22),
        "b3": pack(raw["b3"][0][0, 0], raw["b3"][1], raw["b3"][2]),
    }


# ----------------------------------------------------------------------------
# Mixed_5b forward
# ----------------------------------------------------------------------------
def mixed_5b_forward(x_nchw, params):
    # NCHW (PyTorch) -> NHWC bf16 (kernel layout / HBM residency)
    x = jnp.transpose(x_nchw, (0, 2, 3, 1)).astype(jnp.bfloat16)
    N, H, W, _ = x.shape
    th = 8 if (H % 8 == 0 and H > 8) else H

    # branch0 output + inputs for branch1 / branch2 in ONE pass over x.
    b0, b1_in, b2_in = fused_1x1_bn_relu(x, *params["fused1x1"], th=th)

    b1 = conv_kxk_bn_relu(b1_in, *params["b1_1"], out_dtype=jnp.float32)   # 5x5 -> 64

    b2 = conv_kxk_bn_relu(b2_in, *params["b2_1"], out_dtype=jnp.bfloat16)  # 3x3 -> 128 (96 + pad)
    b2 = conv_kxk_bn_relu(b2, *params["b2_2"], out_dtype=jnp.float32)      # 3x3 -> 96

    b3 = avgpool3_conv1x1_bn_relu(x, *params["b3"])                        # pool + 1x1 -> 64

    out = jnp.concatenate([b0, b1, b2, b3], axis=-1)   # (N, H, W, 320)
    # NHWC -> NCHW to match torch.cat(outputs, 1)
    return jnp.transpose(out, (0, 3, 1, 2))


# ----------------------------------------------------------------------------
# Main
# ----------------------------------------------------------------------------
if __name__ == "__main__":
    key = jax.random.PRNGKey(0)
    k_params, k_x = jax.random.split(key)

    params = make_mixed_5b_params(k_params)
    # Mixed_5b requires 192 input channels; small batch/spatial for the demo.
    x = jax.random.normal(k_x, (2, 192, 16, 16), jnp.float32)

    out = jax.jit(mixed_5b_forward)(x, params)
    out = jax.block_until_ready(out)

    assert out.shape == (2, 320, 16, 16), out.shape
    assert jnp.all(jnp.isfinite(out))
    print("KERNEL_OK")
</pallas_src>

<mosaic_0001>
module attributes {stable_mosaic.version = 11 : i64} {
  func.func @_conv_kxk_bn_relu_kernel(%arg0: i32, %arg1: memref<1x16x16x48xbf16, #tpu.memory_space<vmem>>, %arg2: memref<5x5x48x64xbf16, #tpu.memory_space<vmem>>, %arg3: memref<1x64xf32, #tpu.memory_space<vmem>>, %arg4: memref<1x64xf32, #tpu.memory_space<vmem>>, %arg5: memref<1x16x16x64xf32, #tpu.memory_space<vmem>>) attributes {dimension_semantics = [#tpu.dimension_semantics<parallel>], iteration_bounds = array<i64: 2>, scalar_prefetch = 0 : i64, scratch_operands = 0 : i64, tpu.core_type = #tpu.core_type<tc>, window_params = [{transform_indices = @transform_0, window_bounds = array<i64: 1, 16, 16, 48>}, {pipeline_mode = #tpu.pipeline_mode<synchronous>, transform_indices = @transform_1, window_bounds = array<i64: 5, 5, 48, 64>}, {pipeline_mode = #tpu.pipeline_mode<synchronous>, transform_indices = @transform_2, window_bounds = array<i64: 1, 64>}, {pipeline_mode = #tpu.pipeline_mode<synchronous>, transform_indices = @transform_3, window_bounds = array<i64: 1, 64>}, {transform_indices = @transform_4, window_bounds = array<i64: 1, 16, 16, 64>}]} {
    %c0 = arith.constant 0 : index
    %c0_0 = arith.constant 0 : index
    %c0_1 = arith.constant 0 : index
    %c0_2 = arith.constant 0 : index
    %0 = vector.load %arg1[%c0, %c0_0, %c0_1, %c0_2] : memref<1x16x16x48xbf16, #tpu.memory_space<vmem>>, vector<1x16x16x48xbf16>
    %1 = vector.shape_cast %0 : vector<1x16x16x48xbf16> to vector<16x16x48xbf16>
    %cst = arith.constant 0.000000e+00 : bf16
    %2 = vector.broadcast %cst : bf16 to vector<2x16x48xbf16>
    %3 = tpu.concatenate %2, %1, %2 in 0 : vector<2x16x48xbf16>, vector<16x16x48xbf16>, vector<2x16x48xbf16> -> vector<20x16x48xbf16>
    %cst_3 = arith.constant 0.000000e+00 : bf16
    %4 = vector.broadcast %cst_3 : bf16 to vector<20x2x48xbf16>
    %5 = tpu.concatenate %4, %3, %4 in 1 : vector<20x2x48xbf16>, vector<20x16x48xbf16>, vector<20x2x48xbf16> -> vector<20x20x48xbf16>
    %cst_4 = arith.constant 0.000000e+00 : f32
    %6 = vector.broadcast %cst_4 : f32 to vector<256x64xf32>
    %7 = vector.extract_strided_slice %5 {offsets = [0, 0, 0], sizes = [16, 16, 48], strides = [1, 1, 1]} : vector<20x20x48xbf16> to vector<16x16x48xbf16>
    %8 = vector.shape_cast %7 : vector<16x16x48xbf16> to vector<256x48xbf16>
    %c0_5 = arith.constant 0 : index
    %c0_6 = arith.constant 0 : index
    %c0_7 = arith.constant 0 : index
    %c0_8 = arith.constant 0 : index
    %9 = vector.load %arg2[%c0_5, %c0_6, %c0_7, %c0_8] : memref<5x5x48x64xbf16, #tpu.memory_space<vmem>>, vector<1x1x48x64xbf16>
    %10 = vector.shape_cast %9 : vector<1x1x48x64xbf16> to vector<48x64xbf16>
    %cst_9 = arith.constant dense<0.000000e+00> : vector<256x64xf32>
    %11 = tpu.matmul %8, %10, %cst_9 {dimension_numbers = #tpu.dot_dimension_numbers<[1], [0], [0], [1], [0, 0, 1, 1], [], []>} : vector<256x48xbf16>, vector<48x64xbf16>, vector<256x64xf32> -> vector<256x64xf32>
    %12 = arith.addf %6, %11 : vector<256x64xf32>
    %13 = vector.extract_strided_slice %5 {offsets = [0, 1, 0], sizes = [16, 16, 48], strides = [1, 1, 1]} : vector<20x20x48xbf16> to vector<16x16x48xbf16>
    %14 = vector.shape_cast %13 : vector<16x16x48xbf16> to vector<256x48xbf16>
    %c0_10 = arith.constant 0 : index
    %c1 = arith.constant 1 : index
    %c0_11 = arith.constant 0 : index
    %c0_12 = arith.constant 0 : index
    %15 = vector.load %arg2[%c0_10, %c1, %c0_11, %c0_12] : memref<5x5x48x64xbf16, #tpu.memory_space<vmem>>, vector<1x1x48x64xbf16>
    %16 = vector.shape_cast %15 : vector<1x1x48x64xbf16> to vector<48x64xbf16>
    %cst_13 = arith.constant dense<0.000000e+00> : vector<256x64xf32>
    %17 = tpu.matmul %14, %16, %cst_13 {dimension_numbers = #tpu.dot_dimension_numbers<[1], [0], [0], [1], [0, 0, 1, 1], [], []>} : vector<256x48xbf16>, vector<48x64xbf16>, vector<256x64xf32> -> vector<256x64xf32>
    %18 = arith.addf %12, %17 : vector<256x64xf32>
    %19 = vector.extract_strided_slice %5 {offsets = [0, 2, 0], sizes = [16, 16, 48], strides = [1, 1, 1]} : vector<20x20x48xbf16> to vector<16x16x48xbf16>
    %20 = vector.shape_cast %19 : vector<16x16x48xbf16> to vector<256x48xbf16>
    %c0_14 = arith.constant 0 : index
    %c2 = arith.constant 2 : index
    %c0_15 = arith.constant 0 : index
    %c0_16 = arith.constant 0 : index
    %21 = vector.load %arg2[%c0_14, %c2, %c0_15, %c0_16] : memref<5x5x48x64xbf16, #tpu.memory_space<vmem>>, vector<1x1x48x64xbf16>
    %22 = vector.shape_cast %21 : vector<1x1x48x64xbf16> to vector<48x64xbf16>
    %cst_17 = arith.constant dense<0.000000e+00> : vector<256x64xf32>
    %23 = tpu.matmul %20, %22, %cst_17 {dimension_numbers = #tpu.dot_dimension_numbers<[1], [0], [0], [1], [0, 0, 1, 1], [], []>} : vector<256x48xbf16>, vector<48x64xbf16>, vector<256x64xf32> -> vector<256x64xf32>
    %24 = arith.addf %18, %23 : vector<256x64xf32>
    %25 = vector.extract_strided_slice %5 {offsets = [0, 3, 0], sizes = [16, 16, 48], strides = [1, 1, 1]} : vector<20x20x48xbf16> to vector<16x16x48xbf16>
    %26 = vector.shape_cast %25 : vector<16x16x48xbf16> to vector<256x48xbf16>
    %c0_18 = arith.constant 0 : index
    %c3 = arith.constant 3 : index
    %c0_19 = arith.constant 0 : index
    %c0_20 = arith.constant 0 : index
    %27 = vector.load %arg2[%c0_18, %c3, %c0_19, %c0_20] : memref<5x5x48x64xbf16, #tpu.memory_space<vmem>>, vector<1x1x48x64xbf16>
    %28 = vector.shape_cast %27 : vector<1x1x48x64xbf16> to vector<48x64xbf16>
    %cst_21 = arith.constant dense<0.000000e+00> : vector<256x64xf32>
    %29 = tpu.matmul %26, %28, %cst_21 {dimension_numbers = #tpu.dot_dimension_numbers<[1], [0], [0], [1], [0, 0, 1, 1], [], []>} : vector<256x48xbf16>, vector<48x64xbf16>, vector<256x64xf32> -> vector<256x64xf32>
    %30 = arith.addf %24, %29 : vector<256x64xf32>
    %31 = vector.extract_strided_slice %5 {offsets = [0, 4, 0], sizes = [16, 16, 48], strides = [1, 1, 1]} : vector<20x20x48xbf16> to vector<16x16x48xbf16>
    %32 = vector.shape_cast %31 : vector<16x16x48xbf16> to vector<256x48xbf16>
    %c0_22 = arith.constant 0 : index
    %c4 = arith.constant 4 : index
    %c0_23 = arith.constant 0 : index
    %c0_24 = arith.constant 0 : index
    %33 = vector.load %arg2[%c0_22, %c4, %c0_23, %c0_24] : memref<5x5x48x64xbf16, #tpu.memory_space<vmem>>, vector<1x1x48x64xbf16>
    %34 = vector.shape_cast %33 : vector<1x1x48x64xbf16> to vector<48x64xbf16>
    %cst_25 = arith.constant dense<0.000000e+00> : vector<256x64xf32>
    %35 = tpu.matmul %32, %34, %cst_25 {dimension_numbers = #tpu.dot_dimension_numbers<[1], [0], [0], [1], [0, 0, 1, 1], [], []>} : vector<256x48xbf16>, vector<48x64xbf16>, vector<256x64xf32> -> vector<256x64xf32>
    %36 = arith.addf %30, %35 : vector<256x64xf32>
    %37 = vector.extract_strided_slice %5 {offsets = [1, 0, 0], sizes = [16, 16, 48], strides = [1, 1, 1]} : vector<20x20x48xbf16> to vector<16x16x48xbf16>
    %38 = vector.shape_cast %37 : vector<16x16x48xbf16> to vector<256x48xbf16>
    %c1_26 = arith.constant 1 : index
    %c0_27 = arith.constant 0 : index
    %c0_28 = arith.constant 0 : index
    %c0_29 = arith.constant 0 : index
    %39 = vector.load %arg2[%c1_26, %c0_27, %c0_28, %c0_29] : memref<5x5x48x64xbf16, #tpu.memory_space<vmem>>, vector<1x1x48x64xbf16>
    %40 = vector.shape_cast %39 : vector<1x1x48x64xbf16> to vector<48x64xbf16>
    %cst_30 = arith.constant dense<0.000000e+00> : vector<256x64xf32>
    %41 = tpu.matmul %38, %40, %cst_30 {dimension_numbers = #tpu.dot_dimension_numbers<[1], [0], [0], [1], [0, 0, 1, 1], [], []>} : vector<256x48xbf16>, vector<48x64xbf16>, vector<256x64xf32> -> vector<256x64xf32>
    %42 = arith.addf %36, %41 : vector<256x64xf32>
    %43 = vector.extract_strided_slice %5 {offsets = [1, 1, 0], sizes = [16, 16, 48], strides = [1, 1, 1]} : vector<20x20x48xbf16> to vector<16x16x48xbf16>
    %44 = vector.shape_cast %43 : vector<16x16x48xbf16> to vector<256x48xbf16>
    %c1_31 = arith.constant 1 : index
    %c1_32 = arith.constant 1 : index
    %c0_33 = arith.constant 0 : index
    %c0_34 = arith.constant 0 : index
    %45 = vector.load %arg2[%c1_31, %c1_32, %c0_33, %c0_34] : memref<5x5x48x64xbf16, #tpu.memory_space<vmem>>, vector<1x1x48x64xbf16>
    %46 = vector.shape_cast %45 : vector<1x1x48x64xbf16> to vector<48x64xbf16>
    %cst_35 = arith.constant dense<0.000000e+00> : vector<256x64xf32>
    %47 = tpu.matmul %44, %46, %cst_35 {dimension_numbers = #tpu.dot_dimension_numbers<[1], [0], [0], [1], [0, 0, 1, 1], [], []>} : vector<256x48xbf16>, vector<48x64xbf16>, vector<256x64xf32> -> vector<256x64xf32>
    %48 = arith.addf %42, %47 : vector<256x64xf32>
    %49 = vector.extract_strided_slice %5 {offsets = [1, 2, 0], sizes = [16, 16, 48], strides = [1, 1, 1]} : vector<20x20x48xbf16> to vector<16x16x48xbf16>
    %50 = vector.shape_cast %49 : vector<16x16x48xbf16> to vector<256x48xbf16>
    %c1_36 = arith.constant 1 : index
    %c2_37 = arith.constant 2 : index
    %c0_38 = arith.constant 0 : index
    %c0_39 = arith.constant 0 : index
    %51 = vector.load %arg2[%c1_36, %c2_37, %c0_38, %c0_39] : memref<5x5x48x64xbf16, #tpu.memory_space<vmem>>, vector<1x1x48x64xbf16>
    %52 = vector.shape_cast %51 : vector<1x1x48x64xbf16> to vector<48x64xbf16>
    %cst_40 = arith.constant dense<0.000000e+00> : vector<256x64xf32>
    %53 = tpu.matmul %50, %52, %cst_40 {dimension_numbers = #tpu.dot_dimension_numbers<[1], [0], [0], [1], [0, 0, 1, 1], [], []>} : vector<256x48xbf16>, vector<48x64xbf16>, vector<256x64xf32> -> vector<256x64xf32>
    %54 = arith.addf %48, %53 : vector<256x64xf32>
    %55 = vector.extract_strided_slice %5 {offsets = [1, 3, 0], sizes = [16, 16, 48], strides = [1, 1, 1]} : vector<20x20x48xbf16> to vector<16x16x48xbf16>
    %56 = vector.shape_cast %55 : vector<16x16x48xbf16> to vector<256x48xbf16>
    %c1_41 = arith.constant 1 : index
    %c3_42 = arith.constant 3 : index
    %c0_43 = arith.constant 0 : index
    %c0_44 = arith.constant 0 : index
    %57 = vector.load %arg2[%c1_41, %c3_42, %c0_43, %c0_44] : memref<5x5x48x64xbf16, #tpu.memory_space<vmem>>, vector<1x1x48x64xbf16>
    %58 = vector.shape_cast %57 : vector<1x1x48x64xbf16> to vector<48x64xbf16>
    %cst_45 = arith.constant dense<0.000000e+00> : vector<256x64xf32>
    %59 = tpu.matmul %56, %58, %cst_45 {dimension_numbers = #tpu.dot_dimension_numbers<[1], [0], [0], [1], [0, 0, 1, 1], [], []>} : vector<256x48xbf16>, vector<48x64xbf16>, vector<256x64xf32> -> vector<256x64xf32>
    %60 = arith.addf %54, %59 : vector<256x64xf32>
    %61 = vector.extract_strided_slice %5 {offsets = [1, 4, 0], sizes = [16, 16, 48], strides = [1, 1, 1]} : vector<20x20x48xbf16> to vector<16x16x48xbf16>
    %62 = vector.shape_cast %61 : vector<16x16x48xbf16> to vector<256x48xbf16>
    %c1_46 = arith.constant 1 : index
    %c4_47 = arith.constant 4 : index
    %c0_48 = arith.constant 0 : index
    %c0_49 = arith.constant 0 : index
    %63 = vector.load %arg2[%c1_46, %c4_47, %c0_48, %c0_49] : memref<5x5x48x64xbf16, #tpu.memory_space<vmem>>, vector<1x1x48x64xbf16>
    %64 = vector.shape_cast %63 : vector<1x1x48x64xbf16> to vector<48x64xbf16>
    %cst_50 = arith.constant dense<0.000000e+00> : vector<256x64xf32>
    %65 = tpu.matmul %62, %64, %cst_50 {dimension_numbers = #tpu.dot_dimension_numbers<[1], [0], [0], [1], [0, 0, 1, 1], [], []>} : vector<256x48xbf16>, vector<48x64xbf16>, vector<256x64xf32> -> vector<256x64xf32>
    %66 = arith.addf %60, %65 : vector<256x64xf32>
    %67 = vector.extract_strided_slice %5 {offsets = [2, 0, 0], sizes = [16, 16, 48], strides = [1, 1, 1]} : vector<20x20x48xbf16> to vector<16x16x48xbf16>
    %68 = vector.shape_cast %67 : vector<16x16x48xbf16> to vector<256x48xbf16>
    %c2_51 = arith.constant 2 : index
    %c0_52 = arith.constant 0 : index
    %c0_53 = arith.constant 0 : index
    %c0_54 = arith.constant 0 : index
    %69 = vector.load %arg2[%c2_51, %c0_52, %c0_53, %c0_54] : memref<5x5x48x64xbf16, #tpu.memory_space<vmem>>, vector<1x1x48x64xbf16>
    %70 = vector.shape_cast %69 : vector<1x1x48x64xbf16> to vector<48x64xbf16>
    %cst_55 = arith.constant dense<0.000000e+00> : vector<256x64xf32>
    %71 = tpu.matmul %68, %70, %cst_55 {dimension_numbers = #tpu.dot_dimension_numbers<[1], [0], [0], [1], [0, 0, 1, 1], [], []>} : vector<256x48xbf16>, vector<48x64xbf16>, vector<256x64xf32> -> vector<256x64xf32>
    %72 = arith.addf %66, %71 : vector<256x64xf32>
    %73 = vector.extract_strided_slice %5 {offsets = [2, 1, 0], sizes = [16, 16, 48], strides = [1, 1, 1]} : vector<20x20x48xbf16> to vector<16x16x48xbf16>
    %74 = vector.shape_cast %73 : vector<16x16x48xbf16> to vector<256x48xbf16>
    %c2_56 = arith.constant 2 : index
    %c1_57 = arith.constant 1 : index
    %c0_58 = arith.constant 0 : index
    %c0_59 = arith.constant 0 : index
    %75 = vector.load %arg2[%c2_56, %c1_57, %c0_58, %c0_59] : memref<5x5x48x64xbf16, #tpu.memory_space<vmem>>, vector<1x1x48x64xbf16>
    %76 = vector.shape_cast %75 : vector<1x1x48x64xbf16> to vector<48x64xbf16>
    %cst_60 = arith.constant dense<0.000000e+00> : vector<256x64xf32>
    %77 = tpu.matmul %74, %76, %cst_60 {dimension_numbers = #tpu.dot_dimension_numbers<[1], [0], [0], [1], [0, 0, 1, 1], [], []>} : vector<256x48xbf16>, vector<48x64xbf16>, vector<256x64xf32> -> vector<256x64xf32>
    %78 = arith.addf %72, %77 : vector<256x64xf32>
    %79 = vector.extract_strided_slice %5 {offsets = [2, 2, 0], sizes = [16, 16, 48], strides = [1, 1, 1]} : vector<20x20x48xbf16> to vector<16x16x48xbf16>
    %80 = vector.shape_cast %79 : vector<16x16x48xbf16> to vector<256x48xbf16>
    %c2_61 = arith.constant 2 : index
    %c2_62 = arith.constant 2 : index
    %c0_63 = arith.constant 0 : index
    %c0_64 = arith.constant 0 : index
    %81 = vector.load %arg2[%c2_61, %c2_62, %c0_63, %c0_64] : memref<5x5x48x64xbf16, #tpu.memory_space<vmem>>, vector<1x1x48x64xbf16>
    %82 = vector.shape_cast %81 : vector<1x1x48x64xbf16> to vector<48x64xbf16>
    %cst_65 = arith.constant dense<0.000000e+00> : vector<256x64xf32>
    %83 = tpu.matmul %80, %82, %cst_65 {dimension_numbers = #tpu.dot_dimension_numbers<[1], [0], [0], [1], [0, 0, 1, 1], [], []>} : vector<256x48xbf16>, vector<48x64xbf16>, vector<256x64xf32> -> vector<256x64xf32>
    %84 = arith.addf %78, %83 : vector<256x64xf32>
    %85 = vector.extract_strided_slice %5 {offsets = [2, 3, 0], sizes = [16, 16, 48], strides = [1, 1, 1]} : vector<20x20x48xbf16> to vector<16x16x48xbf16>
    %86 = vector.shape_cast %85 : vector<16x16x48xbf16> to vector<256x48xbf16>
    %c2_66 = arith.constant 2 : index
    %c3_67 = arith.constant 3 : index
    %c0_68 = arith.constant 0 : index
    %c0_69 = arith.constant 0 : index
    %87 = vector.load %arg2[%c2_66, %c3_67, %c0_68, %c0_69] : memref<5x5x48x64xbf16, #tpu.memory_space<vmem>>, vector<1x1x48x64xbf16>
    %88 = vector.shape_cast %87 : vector<1x1x48x64xbf16> to vector<48x64xbf16>
    %cst_70 = arith.constant dense<0.000000e+00> : vector<256x64xf32>
    %89 = tpu.matmul %86, %88, %cst_70 {dimension_numbers = #tpu.dot_dimension_numbers<[1], [0], [0], [1], [0, 0, 1, 1], [], []>} : vector<256x48xbf16>, vector<48x64xbf16>, vector<256x64xf32> -> vector<256x64xf32>
    %90 = arith.addf %84, %89 : vector<256x64xf32>
    %91 = vector.extract_strided_slice %5 {offsets = [2, 4, 0], sizes = [16, 16, 48], strides = [1, 1, 1]} : vector<20x20x48xbf16> to vector<16x16x48xbf16>
    %92 = vector.shape_cast %91 : vector<16x16x48xbf16> to vector<256x48xbf16>
    %c2_71 = arith.constant 2 : index
    %c4_72 = arith.constant 4 : index
    %c0_73 = arith.constant 0 : index
    %c0_74 = arith.constant 0 : index
    %93 = vector.load %arg2[%c2_71, %c4_72, %c0_73, %c0_74] : memref<5x5x48x64xbf16, #tpu.memory_space<vmem>>, vector<1x1x48x64xbf16>
    %94 = vector.shape_cast %93 : vector<1x1x48x64xbf16> to vector<48x64xbf16>
    %cst_75 = arith.constant dense<0.000000e+00> : vector<256x64xf32>
    %95 = tpu.matmul %92, %94, %cst_75 {dimension_numbers = #tpu.dot_dimension_numbers<[1], [0], [0], [1], [0, 0, 1, 1], [], []>} : vector<256x48xbf16>, vector<48x64xbf16>, vector<256x64xf32> -> vector<256x64xf32>
    %96 = arith.addf %90, %95 : vector<256x64xf32>
    %97 = vector.extract_strided_slice %5 {offsets = [3, 0, 0], sizes = [16, 16, 48], strides = [1, 1, 1]} : vector<20x20x48xbf16> to vector<16x16x48xbf16>
    %98 = vector.shape_cast %97 : vector<16x16x48xbf16> to vector<256x48xbf16>
    %c3_76 = arith.constant 3 : index
    %c0_77 = arith.constant 0 : index
    %c0_78 = arith.constant 0 : index
    %c0_79 = arith.constant 0 : index
    %99 = vector.load %arg2[%c3_76, %c0_77, %c0_78, %c0_79] : memref<5x5x48x64xbf16, #tpu.memory_space<vmem>>, vector<1x1x48x64xbf16>
    %100 = vector.shape_cast %99 : vector<1x1x48x64xbf16> to vector<48x64xbf16>
    %cst_80 = arith.constant dense<0.000000e+00> : vector<256x64xf32>
    %101 = tpu.matmul %98, %100, %cst_80 {dimension_numbers = #tpu.dot_dimension_numbers<[1], [0], [0], [1], [0, 0, 1, 1], [], []>} : vector<256x48xbf16>, vector<48x64xbf16>, vector<256x64xf32> -> vector<256x64xf32>
    %102 = arith.addf %96, %101 : vector<256x64xf32>
    %103 = vector.extract_strided_slice %5 {offsets = [3, 1, 0], sizes = [16, 16, 48], strides = [1, 1, 1]} : vector<20x20x48xbf16> to vector<16x16x48xbf16>
    %104 = vector.shape_cast %103 : vector<16x16x48xbf16> to vector<256x48xbf16>
    %c3_81 = arith.constant 3 : index
    %c1_82 = arith.constant 1 : index
    %c0_83 = arith.constant 0 : index
    %c0_84 = arith.constant 0 : index
    %105 = vector.load %arg2[%c3_81, %c1_82, %c0_83, %c0_84] : memref<5x5x48x64xbf16, #tpu.memory_space<vmem>>, vector<1x1x48x64xbf16>
    %106 = vector.shape_cast %105 : vector<1x1x48x64xbf16> to vector<48x64xbf16>
    %cst_85 = arith.constant dense<0.000000e+00> : vector<256x64xf32>
    %107 = tpu.matmul %104, %106, %cst_85 {dimension_numbers = #tpu.dot_dimension_numbers<[1], [0], [0], [1], [0, 0, 1, 1], [], []>} : vector<256x48xbf16>, vector<48x64xbf16>, vector<256x64xf32> -> vector<256x64xf32>
    %108 = arith.addf %102, %107 : vector<256x64xf32>
    %109 = vector.extract_strided_slice %5 {offsets = [3, 2, 0], sizes = [16, 16, 48], strides = [1, 1, 1]} : vector<20x20x48xbf16> to vector<16x16x48xbf16>
    %110 = vector.shape_cast %109 : vector<16x16x48xbf16> to vector<256x48xbf16>
    %c3_86 = arith.constant 3 : index
    %c2_87 = arith.constant 2 : index
    %c0_88 = arith.constant 0 : index
    %c0_89 = arith.constant 0 : index
    %111 = vector.load %arg2[%c3_86, %c2_87, %c0_88, %c0_89] : memref<5x5x48x64xbf16, #tpu.memory_space<vmem>>, vector<1x1x48x64xbf16>
    %112 = vector.shape_cast %111 : vector<1x1x48x64xbf16> to vector<48x64xbf16>
    %cst_90 = arith.constant dense<0.000000e+00> : vector<256x64xf32>
    %113 = tpu.matmul %110, %112, %cst_90 {dimension_numbers = #tpu.dot_dimension_numbers<[1], [0], [0], [1], [0, 0, 1, 1], [], []>} : vector<256x48xbf16>, vector<48x64xbf16>, vector<256x64xf32> -> vector<256x64xf32>
    %114 = arith.addf %108, %113 : vector<256x64xf32>
    %115 = vector.extract_strided_slice %5 {offsets = [3, 3, 0], sizes = [16, 16, 48], strides = [1, 1, 1]} : vector<20x20x48xbf16> to vector<16x16x48xbf16>
    %116 = vector.shape_cast %115 : vector<16x16x48xbf16> to vector<256x48xbf16>
    %c3_91 = arith.constant 3 : index
    %c3_92 = arith.constant 3 : index
    %c0_93 = arith.constant 0 : index
    %c0_94 = arith.constant 0 : index
    %117 = vector.load %arg2[%c3_91, %c3_92, %c0_93, %c0_94] : memref<5x5x48x64xbf16, #tpu.memory_space<vmem>>, vector<1x1x48x64xbf16>
    %118 = vector.shape_cast %117 : vector<1x1x48x64xbf16> to vector<48x64xbf16>
    %cst_95 = arith.constant dense<0.000000e+00> : vector<256x64xf32>
    %119 = tpu.matmul %116, %118, %cst_95 {dimension_numbers = #tpu.dot_dimension_numbers<[1], [0], [0], [1], [0, 0, 1, 1], [], []>} : vector<256x48xbf16>, vector<48x64xbf16>, vector<256x64xf32> -> vector<256x64xf32>
    %120 = arith.addf %114, %119 : vector<256x64xf32>
    %121 = vector.extract_strided_slice %5 {offsets = [3, 4, 0], sizes = [16, 16, 48], strides = [1, 1, 1]} : vector<20x20x48xbf16> to vector<16x16x48xbf16>
    %122 = vector.shape_cast %121 : vector<16x16x48xbf16> to vector<256x48xbf16>
    %c3_96 = arith.constant 3 : index
    %c4_97 = arith.constant 4 : index
    %c0_98 = arith.constant 0 : index
    %c0_99 = arith.constant 0 : index
    %123 = vector.load %arg2[%c3_96, %c4_97, %c0_98, %c0_99] : memref<5x5x48x64xbf16, #tpu.memory_space<vmem>>, vector<1x1x48x64xbf16>
    %124 = vector.shape_cast %123 : vector<1x1x48x64xbf16> to vector<48x64xbf16>
    %cst_100 = arith.constant dense<0.000000e+00> : vector<256x64xf32>
    %125 = tpu.matmul %122, %124, %cst_100 {dimension_numbers = #tpu.dot_dimension_numbers<[1], [0], [0], [1], [0, 0, 1, 1], [], []>} : vector<256x48xbf16>, vector<48x64xbf16>, vector<256x64xf32> -> vector<256x64xf32>
    %126 = arith.addf %120, %125 : vector<256x64xf32>
    %127 = vector.extract_strided_slice %5 {offsets = [4, 0, 0], sizes = [16, 16, 48], strides = [1, 1, 1]} : vector<20x20x48xbf16> to vector<16x16x48xbf16>
    %128 = vector.shape_cast %127 : vector<16x16x48xbf16> to vector<256x48xbf16>
    %c4_101 = arith.constant 4 : index
    %c0_102 = arith.constant 0 : index
    %c0_103 = arith.constant 0 : index
    %c0_104 = arith.constant 0 : index
    %129 = vector.load %arg2[%c4_101, %c0_102, %c0_103, %c0_104] : memref<5x5x48x64xbf16, #tpu.memory_space<vmem>>, vector<1x1x48x64xbf16>
    %130 = vector.shape_cast %129 : vector<1x1x48x64xbf16> to vector<48x64xbf16>
    %cst_105 = arith.constant dense<0.000000e+00> : vector<256x64xf32>
    %131 = tpu.matmul %128, %130, %cst_105 {dimension_numbers = #tpu.dot_dimension_numbers<[1], [0], [0], [1], [0, 0, 1, 1], [], []>} : vector<256x48xbf16>, vector<48x64xbf16>, vector<256x64xf32> -> vector<256x64xf32>
    %132 = arith.addf %126, %131 : vector<256x64xf32>
    %133 = vector.extract_strided_slice %5 {offsets = [4, 1, 0], sizes = [16, 16, 48], strides = [1, 1, 1]} : vector<20x20x48xbf16> to vector<16x16x48xbf16>
    %134 = vector.shape_cast %133 : vector<16x16x48xbf16> to vector<256x48xbf16>
    %c4_106 = arith.constant 4 : index
    %c1_107 = arith.constant 1 : index
    %c0_108 = arith.constant 0 : index
    %c0_109 = arith.constant 0 : index
    %135 = vector.load %arg2[%c4_106, %c1_107, %c0_108, %c0_109] : memref<5x5x48x64xbf16, #tpu.memory_space<vmem>>, vector<1x1x48x64xbf16>
    %136 = vector.shape_cast %135 : vector<1x1x48x64xbf16> to vector<48x64xbf16>
    %cst_110 = arith.constant dense<0.000000e+00> : vector<256x64xf32>
    %137 = tpu.matmul %134, %136, %cst_110 {dimension_numbers = #tpu.dot_dimension_numbers<[1], [0], [0], [1], [0, 0, 1, 1], [], []>} : vector<256x48xbf16>, vector<48x64xbf16>, vector<256x64xf32> -> vector<256x64xf32>
    %138 = arith.addf %132, %137 : vector<256x64xf32>
    %139 = vector.extract_strided_slice %5 {offsets = [4, 2, 0], sizes = [16, 16, 48], strides = [1, 1, 1]} : vector<20x20x48xbf16> to vector<16x16x48xbf16>
    %140 = vector.shape_cast %139 : vector<16x16x48xbf16> to vector<256x48xbf16>
    %c4_111 = arith.constant 4 : index
    %c2_112 = arith.constant 2 : index
    %c0_113 = arith.constant 0 : index
    %c0_114 = arith.constant 0 : index
    %141 = vector.load %arg2[%c4_111, %c2_112, %c0_113, %c0_114] : memref<5x5x48x64xbf16, #tpu.memory_space<vmem>>, vector<1x1x48x64xbf16>
    %142 = vector.shape_cast %141 : vector<1x1x48x64xbf16> to vector<48x64xbf16>
    %cst_115 = arith.constant dense<0.000000e+00> : vector<256x64xf32>
    %143 = tpu.matmul %140, %142, %cst_115 {dimension_numbers = #tpu.dot_dimension_numbers<[1], [0], [0], [1], [0, 0, 1, 1], [], []>} : vector<256x48xbf16>, vector<48x64xbf16>, vector<256x64xf32> -> vector<256x64xf32>
    %144 = arith.addf %138, %143 : vector<256x64xf32>
    %145 = vector.extract_strided_slice %5 {offsets = [4, 3, 0], sizes = [16, 16, 48], strides = [1, 1, 1]} : vector<20x20x48xbf16> to vector<16x16x48xbf16>
    %146 = vector.shape_cast %145 : vector<16x16x48xbf16> to vector<256x48xbf16>
    %c4_116 = arith.constant 4 : index
    %c3_117 = arith.constant 3 : index
    %c0_118 = arith.constant 0 : index
    %c0_119 = arith.constant 0 : index
    %147 = vector.load %arg2[%c4_116, %c3_117, %c0_118, %c0_119] : memref<5x5x48x64xbf16, #tpu.memory_space<vmem>>, vector<1x1x48x64xbf16>
    %148 = vector.shape_cast %147 : vector<1x1x48x64xbf16> to vector<48x64xbf16>
    %cst_120 = arith.constant dense<0.000000e+00> : vector<256x64xf32>
    %149 = tpu.matmul %146, %148, %cst_120 {dimension_numbers = #tpu.dot_dimension_numbers<[1], [0], [0], [1], [0, 0, 1, 1], [], []>} : vector<256x48xbf16>, vector<48x64xbf16>, vector<256x64xf32> -> vector<256x64xf32>
    %150 = arith.addf %144, %149 : vector<256x64xf32>
    %151 = vector.extract_strided_slice %5 {offsets = [4, 4, 0], sizes = [16, 16, 48], strides = [1, 1, 1]} : vector<20x20x48xbf16> to vector<16x16x48xbf16>
    %152 = vector.shape_cast %151 : vector<16x16x48xbf16> to vector<256x48xbf16>
    %c4_121 = arith.constant 4 : index
    %c4_122 = arith.constant 4 : index
    %c0_123 = arith.constant 0 : index
    %c0_124 = arith.constant 0 : index
    %153 = vector.load %arg2[%c4_121, %c4_122, %c0_123, %c0_124] : memref<5x5x48x64xbf16, #tpu.memory_space<vmem>>, vector<1x1x48x64xbf16>
    %154 = vector.shape_cast %153 : vector<1x1x48x64xbf16> to vector<48x64xbf16>
    %cst_125 = arith.constant dense<0.000000e+00> : vector<256x64xf32>
    %155 = tpu.matmul %152, %154, %cst_125 {dimension_numbers = #tpu.dot_dimension_numbers<[1], [0], [0], [1], [0, 0, 1, 1], [], []>} : vector<256x48xbf16>, vector<48x64xbf16>, vector<256x64xf32> -> vector<256x64xf32>
    %156 = arith.addf %150, %155 : vector<256x64xf32>
    %c0_126 = arith.constant 0 : index
    %c0_127 = arith.constant 0 : index
    %157 = vector.load %arg3[%c0_126, %c0_127] : memref<1x64xf32, #tpu.memory_space<vmem>>, vector<1x64xf32>
    %158 = vector.shape_cast %157 : vector<1x64xf32> to vector<64xf32>
    %159 = vector.shape_cast %158 : vector<64xf32> to vector<1x64xf32>
    %160 = vector.broadcast %159 : vector<1x64xf32> to vector<256x64xf32>
    %161 = arith.mulf %156, %160 : vector<256x64xf32>
    %c0_128 = arith.constant 0 : index
    %c0_129 = arith.constant 0 : index
    %162 = vector.load %arg4[%c0_128, %c0_129] : memref<1x64xf32, #tpu.memory_space<vmem>>, vector<1x64xf32>
    %163 = vector.shape_cast %162 : vector<1x64xf32> to vector<64xf32>
    %164 = vector.shape_cast %163 : vector<64xf32> to vector<1x64xf32>
    %165 = vector.broadcast %164 : vector<1x64xf32> to vector<256x64xf32>
    %166 = arith.addf %161, %165 : vector<256x64xf32>
    %cst_130 = arith.constant 0.000000e+00 : f32
    %167 = vector.broadcast %cst_130 : f32 to vector<256x64xf32>
    %168 = arith.maximumf %166, %167 : vector<256x64xf32>
    %169 = vector.shape_cast %168 : vector<256x64xf32> to vector<16x16x64xf32>
    %c0_131 = arith.constant 0 : index
    %c0_132 = arith.constant 0 : index
    %c0_133 = arith.constant 0 : index
    %c0_134 = arith.constant 0 : index
    %170 = vector.load %arg5[%c0_131, %c0_132, %c0_133, %c0_134] : memref<1x16x16x64xf32, #tpu.memory_space<vmem>>, vector<1x16x16x64xf32>
    %171 = vector.shape_cast %170 : vector<1x16x16x64xf32> to vector<16x16x64xf32>
    %172 = vector.shape_cast %169 : vector<16x16x64xf32> to vector<1x16x16x64xf32>
    tpu.vector_store %arg5[%c0_131, %c0_132, %c0_133, %c0_134], %172 {strides = array<i32>} : memref<1x16x16x64xf32, #tpu.memory_space<vmem>>, vector<1x16x16x64xf32>,
    return
  }
  func.func @transform_0(%arg0: i32) -> (i32, i32, i32, i32) {
    %c0_i32 = arith.constant 0 : i32
    %c0_i32_0 = arith.constant 0 : i32
    %c0_i32_1 = arith.constant 0 : i32
    %c0_i32_2 = arith.constant 0 : i32
    return %arg0, %c0_i32, %c0_i32_0, %c0_i32_1 : i32, i32, i32, i32
  }
  func.func @transform_1(%arg0: i32) -> (i32, i32, i32, i32) {
    %c0_i32 = arith.constant 0 : i32
    %c0_i32_0 = arith.constant 0 : i32
    %c0_i32_1 = arith.constant 0 : i32
    %c0_i32_2 = arith.constant 0 : i32
    %c0_i32_3 = arith.constant 0 : i32
    return %c0_i32, %c0_i32_0, %c0_i32_1, %c0_i32_2 : i32, i32, i32, i32
  }
  func.func @transform_2(%arg0: i32) -> (i32, i32) {
    %c0_i32 = arith.constant 0 : i32
    %c0_i32_0 = arith.constant 0 : i32
    %c0_i32_1 = arith.constant 0 : i32
    return %c0_i32, %c0_i32_0 : i32, i32
  }
  func.func @transform_3(%arg0: i32) -> (i32, i32) {
    %c0_i32 = arith.constant 0 : i32
    %c0_i32_0 = arith.constant 0 : i32
    %c0_i32_1 = arith.constant 0 : i32
    return %c0_i32, %c0_i32_0 : i32, i32
  }
  func.func @transform_4(%arg0: i32) -> (i32, i32, i32, i32) {
    %c0_i32 = arith.constant 0 : i32
    %c0_i32_0 = arith.constant 0 : i32
    %c0_i32_1 = arith.constant 0 : i32
    %c0_i32_2 = arith.constant 0 : i32
    return %arg0, %c0_i32, %c0_i32_0, %c0_i32_1 : i32, i32, i32, i32
  }
}

module attributes {stable_mosaic.version = 11 : i64} {
  func.func @_pool_conv1x1_bn_relu_kernel(%arg0: i32, %arg1: memref<1x16x16x192xbf16, #tpu.memory_space<vmem>>, %arg2: memref<256x1xf32, #tpu.memory_space<vmem>>, %arg3: memref<192x64xbf16, #tpu.memory_space<vmem>>, %arg4: memref<1x64xf32, #tpu.memory_space<vmem>>, %arg5: memref<1x64xf32, #tpu.memory_space<vmem>>, %arg6: memref<1x16x16x64xf32, #tpu.memory_space<vmem>>) attributes {dimension_semantics = [#tpu.dimension_semantics<parallel>], iteration_bounds = array<i64: 2>, scalar_prefetch = 0 : i64, scratch_operands = 0 : i64, tpu.core_type = #tpu.core_type<tc>, window_params = [{transform_indices = @transform_0, window_bounds = array<i64: 1, 16, 16, 192>}, {pipeline_mode = #tpu.pipeline_mode<synchronous>, transform_indices = @transform_1, window_bounds = array<i64: 256, 1>}, {pipeline_mode = #tpu.pipeline_mode<synchronous>, transform_indices = @transform_2, window_bounds = array<i64: 192, 64>}, {pipeline_mode = #tpu.pipeline_mode<synchronous>, transform_indices = @transform_3, window_bounds = array<i64: 1, 64>}, {pipeline_mode = #tpu.pipeline_mode<synchronous>, transform_indices = @transform_4, window_bounds = array<i64: 1, 64>}, {transform_indices = @transform_5, window_bounds = array<i64: 1, 16, 16, 64>}]} {
    %c0 = arith.constant 0 : index
    %c0_0 = arith.constant 0 : index
    %c0_1 = arith.constant 0 : index
    %c0_2 = arith.constant 0 : index
    %0 = vector.load %arg1[%c0, %c0_0, %c0_1, %c0_2] : memref<1x16x16x192xbf16, #tpu.memory_space<vmem>>, vector<1x16x16x192xbf16>
    %1 = vector.shape_cast %0 : vector<1x16x16x192xbf16> to vector<16x16x192xbf16>
    %2 = arith.extf %1 : vector<16x16x192xbf16> to vector<16x16x192xf32>
    %cst = arith.constant 0.000000e+00 : f32
    %3 = vector.broadcast %cst : f32 to vector<16x1x192xf32>
    %4 = tpu.concatenate %3, %2, %3 in 1 : vector<16x1x192xf32>, vector<16x16x192xf32>, vector<16x1x192xf32> -> vector<16x18x192xf32>
    %5 = vector.extract_strided_slice %4 {offsets = [0, 0, 0], sizes = [16, 16, 192], strides = [1, 1, 1]} : vector<16x18x192xf32> to vector<16x16x192xf32>
    %6 = vector.extract_strided_slice %4 {offsets = [0, 1, 0], sizes = [16, 16, 192], strides = [1, 1, 1]} : vector<16x18x192xf32> to vector<16x16x192xf32>
    %7 = arith.addf %5, %6 : vector<16x16x192xf32>
    %8 = vector.extract_strided_slice %4 {offsets = [0, 2, 0], sizes = [16, 16, 192], strides = [1, 1, 1]} : vector<16x18x192xf32> to vector<16x16x192xf32>
    %9 = arith.addf %7, %8 : vector<16x16x192xf32>
    %cst_3 = arith.constant 0.000000e+00 : f32
    %10 = vector.broadcast %cst_3 : f32 to vector<1x16x192xf32>
    %11 = tpu.concatenate %10, %9, %10 in 0 : vector<1x16x192xf32>, vector<16x16x192xf32>, vector<1x16x192xf32> -> vector<18x16x192xf32>
    %12 = vector.extract_strided_slice %11 {offsets = [0, 0, 0], sizes = [16, 16, 192], strides = [1, 1, 1]} : vector<18x16x192xf32> to vector<16x16x192xf32>
    %13 = vector.extract_strided_slice %11 {offsets = [1, 0, 0], sizes = [16, 16, 192], strides = [1, 1, 1]} : vector<18x16x192xf32> to vector<16x16x192xf32>
    %14 = arith.addf %12, %13 : vector<16x16x192xf32>
    %15 = vector.extract_strided_slice %11 {offsets = [2, 0, 0], sizes = [16, 16, 192], strides = [1, 1, 1]} : vector<18x16x192xf32> to vector<16x16x192xf32>
    %16 = arith.addf %14, %15 : vector<16x16x192xf32>
    %17 = vector.shape_cast %16 : vector<16x16x192xf32> to vector<256x192xf32>
    %18 = arith.truncf %17 : vector<256x192xf32> to vector<256x192xbf16>
    %c0_4 = arith.constant 0 : index
    %c0_5 = arith.constant 0 : index
    %19 = vector.load %arg3[%c0_4, %c0_5] : memref<192x64xbf16, #tpu.memory_space<vmem>>, vector<192x64xbf16>
    %cst_6 = arith.constant dense<0.000000e+00> : vector<256x64xf32>
    %20 = tpu.matmul %18, %19, %cst_6 {dimension_numbers = #tpu.dot_dimension_numbers<[1], [0], [0], [1], [0, 0, 1, 1], [], []>} : vector<256x192xbf16>, vector<192x64xbf16>, vector<256x64xf32> -> vector<256x64xf32>
    %c0_7 = arith.constant 0 : index
    %c0_8 = arith.constant 0 : index
    %21 = vector.load %arg2[%c0_7, %c0_8] : memref<256x1xf32, #tpu.memory_space<vmem>>, vector<256x1xf32>
    %22 = vector.broadcast %21 : vector<256x1xf32> to vector<256x64xf32>
    %23 = arith.mulf %20, %22 : vector<256x64xf32>
    %c0_9 = arith.constant 0 : index
    %c0_10 = arith.constant 0 : index
    %24 = vector.load %arg4[%c0_9, %c0_10] : memref<1x64xf32, #tpu.memory_space<vmem>>, vector<1x64xf32>
    %25 = vector.shape_cast %24 : vector<1x64xf32> to vector<64xf32>
    %26 = vector.shape_cast %25 : vector<64xf32> to vector<1x64xf32>
    %27 = vector.broadcast %26 : vector<1x64xf32> to vector<256x64xf32>
    %28 = arith.mulf %23, %27 : vector<256x64xf32>
    %c0_11 = arith.constant 0 : index
    %c0_12 = arith.constant 0 : index
    %29 = vector.load %arg5[%c0_11, %c0_12] : memref<1x64xf32, #tpu.memory_space<vmem>>, vector<1x64xf32>
    %30 = vector.shape_cast %29 : vector<1x64xf32> to vector<64xf32>
    %31 = vector.shape_cast %30 : vector<64xf32> to vector<1x64xf32>
    %32 = vector.broadcast %31 : vector<1x64xf32> to vector<256x64xf32>
    %33 = arith.addf %28, %32 : vector<256x64xf32>
    %cst_13 = arith.constant 0.000000e+00 : f32
    %34 = vector.broadcast %cst_13 : f32 to vector<256x64xf32>
    %35 = arith.maximumf %33, %34 : vector<256x64xf32>
    %36 = vector.shape_cast %35 : vector<256x64xf32> to vector<16x16x64xf32>
    %c0_14 = arith.constant 0 : index
    %c0_15 = arith.constant 0 : index
    %c0_16 = arith.constant 0 : index
    %c0_17 = arith.constant 0 : index
    %37 = vector.load %arg6[%c0_14, %c0_15, %c0_16, %c0_17] : memref<1x16x16x64xf32, #tpu.memory_space<vmem>>, vector<1x16x16x64xf32>
    %38 = vector.shape_cast %37 : vector<1x16x16x64xf32> to vector<16x16x64xf32>
    %39 = vector.shape_cast %36 : vector<16x16x64xf32> to vector<1x16x16x64xf32>
    tpu.vector_store %arg6[%c0_14, %c0_15, %c0_16, %c0_17], %39 {strides = array<i32>} : memref<1x16x16x64xf32, #tpu.memory_space<vmem>>, vector<1x16x16x64xf32>,
    return
  }
  func.func @transform_0(%arg0: i32) -> (i32, i32, i32, i32) {
    %c0_i32 = arith.constant 0 : i32
    %c0_i32_0 = arith.constant 0 : i32
    %c0_i32_1 = arith.constant 0 : i32
    %c0_i32_2 = arith.constant 0 : i32
    return %arg0, %c0_i32, %c0_i32_0, %c0_i32_1 : i32, i32, i32, i32
  }
  func.func @transform_1(%arg0: i32) -> (i32, i32) {
    %c0_i32 = arith.constant 0 : i32
    %c0_i32_0 = arith.constant 0 : i32
    %c0_i32_1 = arith.constant 0 : i32
    return %c0_i32, %c0_i32_0 : i32, i32
  }
  func.func @transform_2(%arg0: i32) -> (i32, i32) {
    %c0_i32 = arith.constant 0 : i32
    %c0_i32_0 = arith.constant 0 : i32
    %c0_i32_1 = arith.constant 0 : i32
    return %c0_i32, %c0_i32_0 : i32, i32
  }
  func.func @transform_3(%arg0: i32) -> (i32, i32) {
    %c0_i32 = arith.constant 0 : i32
    %c0_i32_0 = arith.constant 0 : i32
    %c0_i32_1 = arith.constant 0 : i32
    return %c0_i32, %c0_i32_0 : i32, i32
  }
  func.func @transform_4(%arg0: i32) -> (i32, i32) {
    %c0_i32 = arith.constant 0 : i32
    %c0_i32_0 = arith.constant 0 : i32
    %c0_i32_1 = arith.constant 0 : i32
    return %c0_i32, %c0_i32_0 : i32, i32
  }
  func.func @transform_5(%arg0: i32) -> (i32, i32, i32, i32) {
    %c0_i32 = arith.constant 0 : i32
    %c0_i32_0 = arith.constant 0 : i32
    %c0_i32_1 = arith.constant 0 : i32
    %c0_i32_2 = arith.constant 0 : i32
    return %arg0, %c0_i32, %c0_i32_0, %c0_i32_1 : i32, i32, i32, i32
  }
}

module attributes {stable_mosaic.version = 11 : i64} {
  func.func @_fused_1x1_bn_relu_kernel(%arg0: i32, %arg1: i32, %arg2: memref<1x8x16x192xbf16, #tpu.memory_space<vmem>>, %arg3: memref<192x208xbf16, #tpu.memory_space<vmem>>, %arg4: memref<1x208xf32, #tpu.memory_space<vmem>>, %arg5: memref<1x208xf32, #tpu.memory_space<vmem>>, %arg6: memref<1x8x16x96xf32, #tpu.memory_space<vmem>>, %arg7: memref<1x8x16x48xbf16, #tpu.memory_space<vmem>>, %arg8: memref<1x8x16x64xbf16, #tpu.memory_space<vmem>>) attributes {dimension_semantics = [#tpu.dimension_semantics<parallel>, #tpu.dimension_semantics<parallel>], iteration_bounds = array<i64: 2, 2>, scalar_prefetch = 0 : i64, scratch_operands = 0 : i64, tpu.core_type = #tpu.core_type<tc>, window_params = [{transform_indices = @transform_0, window_bounds = array<i64: 1, 8, 16, 192>}, {pipeline_mode = #tpu.pipeline_mode<synchronous>, transform_indices = @transform_1, window_bounds = array<i64: 192, 208>}, {pipeline_mode = #tpu.pipeline_mode<synchronous>, transform_indices = @transform_2, window_bounds = array<i64: 1, 208>}, {pipeline_mode = #tpu.pipeline_mode<synchronous>, transform_indices = @transform_3, window_bounds = array<i64: 1, 208>}, {transform_indices = @transform_4, window_bounds = array<i64: 1, 8, 16, 96>}, {transform_indices = @transform_5, window_bounds = array<i64: 1, 8, 16, 48>}, {transform_indices = @transform_6, window_bounds = array<i64: 1, 8, 16, 64>}]} {
    %c0 = arith.constant 0 : index
    %c0_0 = arith.constant 0 : index
    %c0_1 = arith.constant 0 : index
    %c0_2 = arith.constant 0 : index
    %0 = vector.load %arg2[%c0, %c0_0, %c0_1, %c0_2] : memref<1x8x16x192xbf16, #tpu.memory_space<vmem>>, vector<1x8x16x192xbf16>
    %1 = vector.shape_cast %0 : vector<1x8x16x192xbf16> to vector<8x16x192xbf16>
    %2 = vector.shape_cast %1 : vector<8x16x192xbf16> to vector<128x192xbf16>
    %c0_3 = arith.constant 0 : index
    %c0_4 = arith.constant 0 : index
    %3 = vector.load %arg3[%c0_3, %c0_4] : memref<192x208xbf16, #tpu.memory_space<vmem>>, vector<192x208xbf16>
    %cst = arith.constant dense<0.000000e+00> : vector<128x208xf32>
    %4 = tpu.matmul %2, %3, %cst {dimension_numbers = #tpu.dot_dimension_numbers<[1], [0], [0], [1], [0, 0, 1, 1], [], []>} : vector<128x192xbf16>, vector<192x208xbf16>, vector<128x208xf32> -> vector<128x208xf32>
    %c0_5 = arith.constant 0 : index
    %c0_6 = arith.constant 0 : index
    %5 = vector.load %arg4[%c0_5, %c0_6] : memref<1x208xf32, #tpu.memory_space<vmem>>, vector<1x208xf32>
    %6 = vector.shape_cast %5 : vector<1x208xf32> to vector<208xf32>
    %7 = vector.shape_cast %6 : vector<208xf32> to vector<1x208xf32>
    %8 = vector.broadcast %7 : vector<1x208xf32> to vector<128x208xf32>
    %9 = arith.mulf %4, %8 : vector<128x208xf32>
    %c0_7 = arith.constant 0 : index
    %c0_8 = arith.constant 0 : index
    %10 = vector.load %arg5[%c0_7, %c0_8] : memref<1x208xf32, #tpu.memory_space<vmem>>, vector<1x208xf32>
    %11 = vector.shape_cast %10 : vector<1x208xf32> to vector<208xf32>
    %12 = vector.shape_cast %11 : vector<208xf32> to vector<1x208xf32>
    %13 = vector.broadcast %12 : vector<1x208xf32> to vector<128x208xf32>
    %14 = arith.addf %9, %13 : vector<128x208xf32>
    %cst_9 = arith.constant 0.000000e+00 : f32
    %15 = vector.broadcast %cst_9 : f32 to vector<128x208xf32>
    %16 = arith.maximumf %14, %15 : vector<128x208xf32>
    %17 = vector.extract_strided_slice %16 {offsets = [0, 0], sizes = [128, 96], strides = [1, 1]} : vector<128x208xf32> to vector<128x96xf32>
    %18 = vector.shape_cast %17 : vector<128x96xf32> to vector<8x16x96xf32>
    %c0_10 = arith.constant 0 : index
    %c0_11 = arith.constant 0 : index
    %c0_12 = arith.constant 0 : index
    %c0_13 = arith.constant 0 : index
    %19 = vector.load %arg6[%c0_10, %c0_11, %c0_12, %c0_13] : memref<1x8x16x96xf32, #tpu.memory_space<vmem>>, vector<1x8x16x96xf32>
    %20 = vector.shape_cast %19 : vector<1x8x16x96xf32> to vector<8x16x96xf32>
    %21 = vector.shape_cast %18 : vector<8x16x96xf32> to vector<1x8x16x96xf32>
    tpu.vector_store %arg6[%c0_10, %c0_11, %c0_12, %c0_13], %21 {strides = array<i32>} : memref<1x8x16x96xf32, #tpu.memory_space<vmem>>, vector<1x8x16x96xf32>,
    %22 = vector.extract_strided_slice %16 {offsets = [0, 96], sizes = [128, 48], strides = [1, 1]} : vector<128x208xf32> to vector<128x48xf32>
    %23 = vector.shape_cast %22 : vector<128x48xf32> to vector<8x16x48xf32>
    %24 = arith.truncf %23 : vector<8x16x48xf32> to vector<8x16x48xbf16>
    %c0_14 = arith.constant 0 : index
    %c0_15 = arith.constant 0 : index
    %c0_16 = arith.constant 0 : index
    %c0_17 = arith.constant 0 : index
    %25 = vector.load %arg7[%c0_14, %c0_15, %c0_16, %c0_17] : memref<1x8x16x48xbf16, #tpu.memory_space<vmem>>, vector<1x8x16x48xbf16>
    %26 = vector.shape_cast %25 : vector<1x8x16x48xbf16> to vector<8x16x48xbf16>
    %27 = vector.shape_cast %24 : vector<8x16x48xbf16> to vector<1x8x16x48xbf16>
    tpu.vector_store %arg7[%c0_14, %c0_15, %c0_16, %c0_17], %27 {strides = array<i32>} : memref<1x8x16x48xbf16, #tpu.memory_space<vmem>>, vector<1x8x16x48xbf16>,
    %28 = vector.extract_strided_slice %16 {offsets = [0, 144], sizes = [128, 64], strides = [1, 1]} : vector<128x208xf32> to vector<128x64xf32>
    %29 = vector.shape_cast %28 : vector<128x64xf32> to vector<8x16x64xf32>
    %30 = arith.truncf %29 : vector<8x16x64xf32> to vector<8x16x64xbf16>
    %c0_18 = arith.constant 0 : index
    %c0_19 = arith.constant 0 : index
    %c0_20 = arith.constant 0 : index
    %c0_21 = arith.constant 0 : index
    %31 = vector.load %arg8[%c0_18, %c0_19, %c0_20, %c0_21] : memref<1x8x16x64xbf16, #tpu.memory_space<vmem>>, vector<1x8x16x64xbf16>
    %32 = vector.shape_cast %31 : vector<1x8x16x64xbf16> to vector<8x16x64xbf16>
    %33 = vector.shape_cast %30 : vector<8x16x64xbf16> to vector<1x8x16x64xbf16>
    tpu.vector_store %arg8[%c0_18, %c0_19, %c0_20, %c0_21], %33 {strides = array<i32>} : memref<1x8x16x64xbf16, #tpu.memory_space<vmem>>, vector<1x8x16x64xbf16>,
    return
  }
  func.func @transform_0(%arg0: i32, %arg1: i32) -> (i32, i32, i32, i32) {
    %c0_i32 = arith.constant 0 : i32
    %c0_i32_0 = arith.constant 0 : i32
    %c0_i32_1 = arith.constant 0 : i32
    return %arg0, %arg1, %c0_i32, %c0_i32_0 : i32, i32, i32, i32
  }
  func.func @transform_1(%arg0: i32, %arg1: i32) -> (i32, i32) {
    %c0_i32 = arith.constant 0 : i32
    %c0_i32_0 = arith.constant 0 : i32
    %c0_i32_1 = arith.constant 0 : i32
    return %c0_i32, %c0_i32_0 : i32, i32
  }
  func.func @transform_2(%arg0: i32, %arg1: i32) -> (i32, i32) {
    %c0_i32 = arith.constant 0 : i32
    %c0_i32_0 = arith.constant 0 : i32
    %c0_i32_1 = arith.constant 0 : i32
    return %c0_i32, %c0_i32_0 : i32, i32
  }
  func.func @transform_3(%arg0: i32, %arg1: i32) -> (i32, i32) {
    %c0_i32 = arith.constant 0 : i32
    %c0_i32_0 = arith.constant 0 : i32
    %c0_i32_1 = arith.constant 0 : i32
    return %c0_i32, %c0_i32_0 : i32, i32
  }
  func.func @transform_4(%arg0: i32, %arg1: i32) -> (i32, i32, i32, i32) {
    %c0_i32 = arith.constant 0 : i32
    %c0_i32_0 = arith.constant 0 : i32
    %c0_i32_1 = arith.constant 0 : i32
    return %arg0, %arg1, %c0_i32, %c0_i32_0 : i32, i32, i32, i32
  }
  func.func @transform_5(%arg0: i32, %arg1: i32) -> (i32, i32, i32, i32) {
    %c0_i32 = arith.constant 0 : i32
    %c0_i32_0 = arith.constant 0 : i32
    %c0_i32_1 = arith.constant 0 : i32
    return %arg0, %arg1, %c0_i32, %c0_i32_0 : i32, i32, i32, i32
  }
  func.func @transform_6(%arg0: i32, %arg1: i32) -> (i32, i32, i32, i32) {
    %c0_i32 = arith.constant 0 : i32
    %c0_i32_0 = arith.constant 0 : i32
    %c0_i32_1 = arith.constant 0 : i32
    return %arg0, %arg1, %c0_i32, %c0_i32_0 : i32, i32, i32, i32
  }
}

module attributes {stable_mosaic.version = 11 : i64} {
  func.func @_conv_kxk_bn_relu_kernel(%arg0: i32, %arg1: memref<1x16x16x64xbf16, #tpu.memory_space<vmem>>, %arg2: memref<3x3x64x128xbf16, #tpu.memory_space<vmem>>, %arg3: memref<1x128xf32, #tpu.memory_space<vmem>>, %arg4: memref<1x128xf32, #tpu.memory_space<vmem>>, %arg5: memref<1x16x16x128xbf16, #tpu.memory_space<vmem>>) attributes {dimension_semantics = [#tpu.dimension_semantics<parallel>], iteration_bounds = array<i64: 2>, scalar_prefetch = 0 : i64, scratch_operands = 0 : i64, tpu.core_type = #tpu.core_type<tc>, window_params = [{transform_indices = @transform_0, window_bounds = array<i64: 1, 16, 16, 64>}, {pipeline_mode = #tpu.pipeline_mode<synchronous>, transform_indices = @transform_1, window_bounds = array<i64: 3, 3, 64, 128>}, {pipeline_mode = #tpu.pipeline_mode<synchronous>, transform_indices = @transform_2, window_bounds = array<i64: 1, 128>}, {pipeline_mode = #tpu.pipeline_mode<synchronous>, transform_indices = @transform_3, window_bounds = array<i64: 1, 128>}, {transform_indices = @transform_4, window_bounds = array<i64: 1, 16, 16, 128>}]} {
    %c0 = arith.constant 0 : index
    %c0_0 = arith.constant 0 : index
    %c0_1 = arith.constant 0 : index
    %c0_2 = arith.constant 0 : index
    %0 = vector.load %arg1[%c0, %c0_0, %c0_1, %c0_2] : memref<1x16x16x64xbf16, #tpu.memory_space<vmem>>, vector<1x16x16x64xbf16>
    %1 = vector.shape_cast %0 : vector<1x16x16x64xbf16> to vector<16x16x64xbf16>
    %cst = arith.constant 0.000000e+00 : bf16
    %2 = vector.broadcast %cst : bf16 to vector<1x16x64xbf16>
    %3 = tpu.concatenate %2, %1, %2 in 0 : vector<1x16x64xbf16>, vector<16x16x64xbf16>, vector<1x16x64xbf16> -> vector<18x16x64xbf16>
    %cst_3 = arith.constant 0.000000e+00 : bf16
    %4 = vector.broadcast %cst_3 : bf16 to vector<18x1x64xbf16>
    %5 = tpu.concatenate %4, %3, %4 in 1 : vector<18x1x64xbf16>, vector<18x16x64xbf16>, vector<18x1x64xbf16> -> vector<18x18x64xbf16>
    %cst_4 = arith.constant 0.000000e+00 : f32
    %6 = vector.broadcast %cst_4 : f32 to vector<256x128xf32>
    %7 = vector.extract_strided_slice %5 {offsets = [0, 0, 0], sizes = [16, 16, 64], strides = [1, 1, 1]} : vector<18x18x64xbf16> to vector<16x16x64xbf16>
    %8 = vector.shape_cast %7 : vector<16x16x64xbf16> to vector<256x64xbf16>
    %c0_5 = arith.constant 0 : index
    %c0_6 = arith.constant 0 : index
    %c0_7 = arith.constant 0 : index
    %c0_8 = arith.constant 0 : index
    %9 = vector.load %arg2[%c0_5, %c0_6, %c0_7, %c0_8] : memref<3x3x64x128xbf16, #tpu.memory_space<vmem>>, vector<1x1x64x128xbf16>
    %10 = vector.shape_cast %9 : vector<1x1x64x128xbf16> to vector<64x128xbf16>
    %cst_9 = arith.constant dense<0.000000e+00> : vector<256x128xf32>
    %11 = tpu.matmul %8, %10, %cst_9 {dimension_numbers = #tpu.dot_dimension_numbers<[1], [0], [0], [1], [0, 0, 1, 1], [], []>} : vector<256x64xbf16>, vector<64x128xbf16>, vector<256x128xf32> -> vector<256x128xf32>
    %12 = arith.addf %6, %11 : vector<256x128xf32>
    %13 = vector.extract_strided_slice %5 {offsets = [0, 1, 0], sizes = [16, 16, 64], strides = [1, 1, 1]} : vector<18x18x64xbf16> to vector<16x16x64xbf16>
    %14 = vector.shape_cast %13 : vector<16x16x64xbf16> to vector<256x64xbf16>
    %c0_10 = arith.constant 0 : index
    %c1 = arith.constant 1 : index
    %c0_11 = arith.constant 0 : index
    %c0_12 = arith.constant 0 : index
    %15 = vector.load %arg2[%c0_10, %c1, %c0_11, %c0_12] : memref<3x3x64x128xbf16, #tpu.memory_space<vmem>>, vector<1x1x64x128xbf16>
    %16 = vector.shape_cast %15 : vector<1x1x64x128xbf16> to vector<64x128xbf16>
    %cst_13 = arith.constant dense<0.000000e+00> : vector<256x128xf32>
    %17 = tpu.matmul %14, %16, %cst_13 {dimension_numbers = #tpu.dot_dimension_numbers<[1], [0], [0], [1], [0, 0, 1, 1], [], []>} : vector<256x64xbf16>, vector<64x128xbf16>, vector<256x128xf32> -> vector<256x128xf32>
    %18 = arith.addf %12, %17 : vector<256x128xf32>
    %19 = vector.extract_strided_slice %5 {offsets = [0, 2, 0], sizes = [16, 16, 64], strides = [1, 1, 1]} : vector<18x18x64xbf16> to vector<16x16x64xbf16>
    %20 = vector.shape_cast %19 : vector<16x16x64xbf16> to vector<256x64xbf16>
    %c0_14 = arith.constant 0 : index
    %c2 = arith.constant 2 : index
    %c0_15 = arith.constant 0 : index
    %c0_16 = arith.constant 0 : index
    %21 = vector.load %arg2[%c0_14, %c2, %c0_15, %c0_16] : memref<3x3x64x128xbf16, #tpu.memory_space<vmem>>, vector<1x1x64x128xbf16>
    %22 = vector.shape_cast %21 : vector<1x1x64x128xbf16> to vector<64x128xbf16>
    %cst_17 = arith.constant dense<0.000000e+00> : vector<256x128xf32>
    %23 = tpu.matmul %20, %22, %cst_17 {dimension_numbers = #tpu.dot_dimension_numbers<[1], [0], [0], [1], [0, 0, 1, 1], [], []>} : vector<256x64xbf16>, vector<64x128xbf16>, vector<256x128xf32> -> vector<256x128xf32>
    %24 = arith.addf %18, %23 : vector<256x128xf32>
    %25 = vector.extract_strided_slice %5 {offsets = [1, 0, 0], sizes = [16, 16, 64], strides = [1, 1, 1]} : vector<18x18x64xbf16> to vector<16x16x64xbf16>
    %26 = vector.shape_cast %25 : vector<16x16x64xbf16> to vector<256x64xbf16>
    %c1_18 = arith.constant 1 : index
    %c0_19 = arith.constant 0 : index
    %c0_20 = arith.constant 0 : index
    %c0_21 = arith.constant 0 : index
    %27 = vector.load %arg2[%c1_18, %c0_19, %c0_20, %c0_21] : memref<3x3x64x128xbf16, #tpu.memory_space<vmem>>, vector<1x1x64x128xbf16>
    %28 = vector.shape_cast %27 : vector<1x1x64x128xbf16> to vector<64x128xbf16>
    %cst_22 = arith.constant dense<0.000000e+00> : vector<256x128xf32>
    %29 = tpu.matmul %26, %28, %cst_22 {dimension_numbers = #tpu.dot_dimension_numbers<[1], [0], [0], [1], [0, 0, 1, 1], [], []>} : vector<256x64xbf16>, vector<64x128xbf16>, vector<256x128xf32> -> vector<256x128xf32>
    %30 = arith.addf %24, %29 : vector<256x128xf32>
    %31 = vector.extract_strided_slice %5 {offsets = [1, 1, 0], sizes = [16, 16, 64], strides = [1, 1, 1]} : vector<18x18x64xbf16> to vector<16x16x64xbf16>
    %32 = vector.shape_cast %31 : vector<16x16x64xbf16> to vector<256x64xbf16>
    %c1_23 = arith.constant 1 : index
    %c1_24 = arith.constant 1 : index
    %c0_25 = arith.constant 0 : index
    %c0_26 = arith.constant 0 : index
    %33 = vector.load %arg2[%c1_23, %c1_24, %c0_25, %c0_26] : memref<3x3x64x128xbf16, #tpu.memory_space<vmem>>, vector<1x1x64x128xbf16>
    %34 = vector.shape_cast %33 : vector<1x1x64x128xbf16> to vector<64x128xbf16>
    %cst_27 = arith.constant dense<0.000000e+00> : vector<256x128xf32>
    %35 = tpu.matmul %32, %34, %cst_27 {dimension_numbers = #tpu.dot_dimension_numbers<[1], [0], [0], [1], [0, 0, 1, 1], [], []>} : vector<256x64xbf16>, vector<64x128xbf16>, vector<256x128xf32> -> vector<256x128xf32>
    %36 = arith.addf %30, %35 : vector<256x128xf32>
    %37 = vector.extract_strided_slice %5 {offsets = [1, 2, 0], sizes = [16, 16, 64], strides = [1, 1, 1]} : vector<18x18x64xbf16> to vector<16x16x64xbf16>
    %38 = vector.shape_cast %37 : vector<16x16x64xbf16> to vector<256x64xbf16>
    %c1_28 = arith.constant 1 : index
    %c2_29 = arith.constant 2 : index
    %c0_30 = arith.constant 0 : index
    %c0_31 = arith.constant 0 : index
    %39 = vector.load %arg2[%c1_28, %c2_29, %c0_30, %c0_31] : memref<3x3x64x128xbf16, #tpu.memory_space<vmem>>, vector<1x1x64x128xbf16>
    %40 = vector.shape_cast %39 : vector<1x1x64x128xbf16> to vector<64x128xbf16>
    %cst_32 = arith.constant dense<0.000000e+00> : vector<256x128xf32>
    %41 = tpu.matmul %38, %40, %cst_32 {dimension_numbers = #tpu.dot_dimension_numbers<[1], [0], [0], [1], [0, 0, 1, 1], [], []>} : vector<256x64xbf16>, vector<64x128xbf16>, vector<256x128xf32> -> vector<256x128xf32>
    %42 = arith.addf %36, %41 : vector<256x128xf32>
    %43 = vector.extract_strided_slice %5 {offsets = [2, 0, 0], sizes = [16, 16, 64], strides = [1, 1, 1]} : vector<18x18x64xbf16> to vector<16x16x64xbf16>
    %44 = vector.shape_cast %43 : vector<16x16x64xbf16> to vector<256x64xbf16>
    %c2_33 = arith.constant 2 : index
    %c0_34 = arith.constant 0 : index
    %c0_35 = arith.constant 0 : index
    %c0_36 = arith.constant 0 : index
    %45 = vector.load %arg2[%c2_33, %c0_34, %c0_35, %c0_36] : memref<3x3x64x128xbf16, #tpu.memory_space<vmem>>, vector<1x1x64x128xbf16>
    %46 = vector.shape_cast %45 : vector<1x1x64x128xbf16> to vector<64x128xbf16>
    %cst_37 = arith.constant dense<0.000000e+00> : vector<256x128xf32>
    %47 = tpu.matmul %44, %46, %cst_37 {dimension_numbers = #tpu.dot_dimension_numbers<[1], [0], [0], [1], [0, 0, 1, 1], [], []>} : vector<256x64xbf16>, vector<64x128xbf16>, vector<256x128xf32> -> vector<256x128xf32>
    %48 = arith.addf %42, %47 : vector<256x128xf32>
    %49 = vector.extract_strided_slice %5 {offsets = [2, 1, 0], sizes = [16, 16, 64], strides = [1, 1, 1]} : vector<18x18x64xbf16> to vector<16x16x64xbf16>
    %50 = vector.shape_cast %49 : vector<16x16x64xbf16> to vector<256x64xbf16>
    %c2_38 = arith.constant 2 : index
    %c1_39 = arith.constant 1 : index
    %c0_40 = arith.constant 0 : index
    %c0_41 = arith.constant 0 : index
    %51 = vector.load %arg2[%c2_38, %c1_39, %c0_40, %c0_41] : memref<3x3x64x128xbf16, #tpu.memory_space<vmem>>, vector<1x1x64x128xbf16>
    %52 = vector.shape_cast %51 : vector<1x1x64x128xbf16> to vector<64x128xbf16>
    %cst_42 = arith.constant dense<0.000000e+00> : vector<256x128xf32>
    %53 = tpu.matmul %50, %52, %cst_42 {dimension_numbers = #tpu.dot_dimension_numbers<[1], [0], [0], [1], [0, 0, 1, 1], [], []>} : vector<256x64xbf16>, vector<64x128xbf16>, vector<256x128xf32> -> vector<256x128xf32>
    %54 = arith.addf %48, %53 : vector<256x128xf32>
    %55 = vector.extract_strided_slice %5 {offsets = [2, 2, 0], sizes = [16, 16, 64], strides = [1, 1, 1]} : vector<18x18x64xbf16> to vector<16x16x64xbf16>
    %56 = vector.shape_cast %55 : vector<16x16x64xbf16> to vector<256x64xbf16>
    %c2_43 = arith.constant 2 : index
    %c2_44 = arith.constant 2 : index
    %c0_45 = arith.constant 0 : index
    %c0_46 = arith.constant 0 : index
    %57 = vector.load %arg2[%c2_43, %c2_44, %c0_45, %c0_46] : memref<3x3x64x128xbf16, #tpu.memory_space<vmem>>, vector<1x1x64x128xbf16>
    %58 = vector.shape_cast %57 : vector<1x1x64x128xbf16> to vector<64x128xbf16>
    %cst_47 = arith.constant dense<0.000000e+00> : vector<256x128xf32>
    %59 = tpu.matmul %56, %58, %cst_47 {dimension_numbers = #tpu.dot_dimension_numbers<[1], [0], [0], [1], [0, 0, 1, 1], [], []>} : vector<256x64xbf16>, vector<64x128xbf16>, vector<256x128xf32> -> vector<256x128xf32>
    %60 = arith.addf %54, %59 : vector<256x128xf32>
    %c0_48 = arith.constant 0 : index
    %c0_49 = arith.constant 0 : index
    %61 = vector.load %arg3[%c0_48, %c0_49] : memref<1x128xf32, #tpu.memory_space<vmem>>, vector<1x128xf32>
    %62 = vector.shape_cast %61 : vector<1x128xf32> to vector<128xf32>
    %63 = vector.shape_cast %62 : vector<128xf32> to vector<1x128xf32>
    %64 = vector.broadcast %63 : vector<1x128xf32> to vector<256x128xf32>
    %65 = arith.mulf %60, %64 : vector<256x128xf32>
    %c0_50 = arith.constant 0 : index
    %c0_51 = arith.constant 0 : index
    %66 = vector.load %arg4[%c0_50, %c0_51] : memref<1x128xf32, #tpu.memory_space<vmem>>, vector<1x128xf32>
    %67 = vector.shape_cast %66 : vector<1x128xf32> to vector<128xf32>
    %68 = vector.shape_cast %67 : vector<128xf32> to vector<1x128xf32>
    %69 = vector.broadcast %68 : vector<1x128xf32> to vector<256x128xf32>
    %70 = arith.addf %65, %69 : vector<256x128xf32>
    %cst_52 = arith.constant 0.000000e+00 : f32
    %71 = vector.broadcast %cst_52 : f32 to vector<256x128xf32>
    %72 = arith.maximumf %70, %71 : vector<256x128xf32>
    %73 = vector.shape_cast %72 : vector<256x128xf32> to vector<16x16x128xf32>
    %74 = arith.truncf %73 : vector<16x16x128xf32> to vector<16x16x128xbf16>
    %c0_53 = arith.constant 0 : index
    %c0_54 = arith.constant 0 : index
    %c0_55 = arith.constant 0 : index
    %c0_56 = arith.constant 0 : index
    %75 = vector.load %arg5[%c0_53, %c0_54, %c0_55, %c0_56] : memref<1x16x16x128xbf16, #tpu.memory_space<vmem>>, vector<1x16x16x128xbf16>
    %76 = vector.shape_cast %75 : vector<1x16x16x128xbf16> to vector<16x16x128xbf16>
    %77 = vector.shape_cast %74 : vector<16x16x128xbf16> to vector<1x16x16x128xbf16>
    tpu.vector_store %arg5[%c0_53, %c0_54, %c0_55, %c0_56], %77 {strides = array<i32>} : memref<1x16x16x128xbf16, #tpu.memory_space<vmem>>, vector<1x16x16x128xbf16>,
    return
  }
  func.func @transform_0(%arg0: i32) -> (i32, i32, i32, i32) {
    %c0_i32 = arith.constant 0 : i32
    %c0_i32_0 = arith.constant 0 : i32
    %c0_i32_1 = arith.constant 0 : i32
    %c0_i32_2 = arith.constant 0 : i32
    return %arg0, %c0_i32, %c0_i32_0, %c0_i32_1 : i32, i32, i32, i32
  }
  func.func @transform_1(%arg0: i32) -> (i32, i32, i32, i32) {
    %c0_i32 = arith.constant 0 : i32
    %c0_i32_0 = arith.constant 0 : i32
    %c0_i32_1 = arith.constant 0 : i32
    %c0_i32_2 = arith.constant 0 : i32
    %c0_i32_3 = arith.constant 0 : i32
    return %c0_i32, %c0_i32_0, %c0_i32_1, %c0_i32_2 : i32, i32, i32, i32
  }
  func.func @transform_2(%arg0: i32) -> (i32, i32) {
    %c0_i32 = arith.constant 0 : i32
    %c0_i32_0 = arith.constant 0 : i32
    %c0_i32_1 = arith.constant 0 : i32
    return %c0_i32, %c0_i32_0 : i32, i32
  }
  func.func @transform_3(%arg0: i32) -> (i32, i32) {
    %c0_i32 = arith.constant 0 : i32
    %c0_i32_0 = arith.constant 0 : i32
    %c0_i32_1 = arith.constant 0 : i32
    return %c0_i32, %c0_i32_0 : i32, i32
  }
  func.func @transform_4(%arg0: i32) -> (i32, i32, i32, i32) {
    %c0_i32 = arith.constant 0 : i32
    %c0_i32_0 = arith.constant 0 : i32
    %c0_i32_1 = arith.constant 0 : i32
    %c0_i32_2 = arith.constant 0 : i32
    return %arg0, %c0_i32, %c0_i32_0, %c0_i32_1 : i32, i32, i32, i32
  }
}

module attributes {stable_mosaic.version = 11 : i64} {
  func.func @_conv_kxk_bn_relu_kernel(%arg0: i32, %arg1: memref<1x16x16x128xbf16, #tpu.memory_space<vmem>>, %arg2: memref<3x3x128x96xbf16, #tpu.memory_space<vmem>>, %arg3: memref<1x96xf32, #tpu.memory_space<vmem>>, %arg4: memref<1x96xf32, #tpu.memory_space<vmem>>, %arg5: memref<1x16x16x96xf32, #tpu.memory_space<vmem>>) attributes {dimension_semantics = [#tpu.dimension_semantics<parallel>], iteration_bounds = array<i64: 2>, scalar_prefetch = 0 : i64, scratch_operands = 0 : i64, tpu.core_type = #tpu.core_type<tc>, window_params = [{transform_indices = @transform_0, window_bounds = array<i64: 1, 16, 16, 128>}, {pipeline_mode = #tpu.pipeline_mode<synchronous>, transform_indices = @transform_1, window_bounds = array<i64: 3, 3, 128, 96>}, {pipeline_mode = #tpu.pipeline_mode<synchronous>, transform_indices = @transform_2, window_bounds = array<i64: 1, 96>}, {pipeline_mode = #tpu.pipeline_mode<synchronous>, transform_indices = @transform_3, window_bounds = array<i64: 1, 96>}, {transform_indices = @transform_4, window_bounds = array<i64: 1, 16, 16, 96>}]} {
    %c0 = arith.constant 0 : index
    %c0_0 = arith.constant 0 : index
    %c0_1 = arith.constant 0 : index
    %c0_2 = arith.constant 0 : index
    %0 = vector.load %arg1[%c0, %c0_0, %c0_1, %c0_2] : memref<1x16x16x128xbf16, #tpu.memory_space<vmem>>, vector<1x16x16x128xbf16>
    %1 = vector.shape_cast %0 : vector<1x16x16x128xbf16> to vector<16x16x128xbf16>
    %cst = arith.constant 0.000000e+00 : bf16
    %2 = vector.broadcast %cst : bf16 to vector<1x16x128xbf16>
    %3 = tpu.concatenate %2, %1, %2 in 0 : vector<1x16x128xbf16>, vector<16x16x128xbf16>, vector<1x16x128xbf16> -> vector<18x16x128xbf16>
    %cst_3 = arith.constant 0.000000e+00 : bf16
    %4 = vector.broadcast %cst_3 : bf16 to vector<18x1x128xbf16>
    %5 = tpu.concatenate %4, %3, %4 in 1 : vector<18x1x128xbf16>, vector<18x16x128xbf16>, vector<18x1x128xbf16> -> vector<18x18x128xbf16>
    %cst_4 = arith.constant 0.000000e+00 : f32
    %6 = vector.broadcast %cst_4 : f32 to vector<256x96xf32>
    %7 = vector.extract_strided_slice %5 {offsets = [0, 0, 0], sizes = [16, 16, 128], strides = [1, 1, 1]} : vector<18x18x128xbf16> to vector<16x16x128xbf16>
    %8 = vector.shape_cast %7 : vector<16x16x128xbf16> to vector<256x128xbf16>
    %c0_5 = arith.constant 0 : index
    %c0_6 = arith.constant 0 : index
    %c0_7 = arith.constant 0 : index
    %c0_8 = arith.constant 0 : index
    %9 = vector.load %arg2[%c0_5, %c0_6, %c0_7, %c0_8] : memref<3x3x128x96xbf16, #tpu.memory_space<vmem>>, vector<1x1x128x96xbf16>
    %10 = vector.shape_cast %9 : vector<1x1x128x96xbf16> to vector<128x96xbf16>
    %cst_9 = arith.constant dense<0.000000e+00> : vector<256x96xf32>
    %11 = tpu.matmul %8, %10, %cst_9 {dimension_numbers = #tpu.dot_dimension_numbers<[1], [0], [0], [1], [0, 0, 1, 1], [], []>} : vector<256x128xbf16>, vector<128x96xbf16>, vector<256x96xf32> -> vector<256x96xf32>
    %12 = arith.addf %6, %11 : vector<256x96xf32>
    %13 = vector.extract_strided_slice %5 {offsets = [0, 1, 0], sizes = [16, 16, 128], strides = [1, 1, 1]} : vector<18x18x128xbf16> to vector<16x16x128xbf16>
    %14 = vector.shape_cast %13 : vector<16x16x128xbf16> to vector<256x128xbf16>
    %c0_10 = arith.constant 0 : index
    %c1 = arith.constant 1 : index
    %c0_11 = arith.constant 0 : index
    %c0_12 = arith.constant 0 : index
    %15 = vector.load %arg2[%c0_10, %c1, %c0_11, %c0_12] : memref<3x3x128x96xbf16, #tpu.memory_space<vmem>>, vector<1x1x128x96xbf16>
    %16 = vector.shape_cast %15 : vector<1x1x128x96xbf16> to vector<128x96xbf16>
    %cst_13 = arith.constant dense<0.000000e+00> : vector<256x96xf32>
    %17 = tpu.matmul %14, %16, %cst_13 {dimension_numbers = #tpu.dot_dimension_numbers<[1], [0], [0], [1], [0, 0, 1, 1], [], []>} : vector<256x128xbf16>, vector<128x96xbf16>, vector<256x96xf32> -> vector<256x96xf32>
    %18 = arith.addf %12, %17 : vector<256x96xf32>
    %19 = vector.extract_strided_slice %5 {offsets = [0, 2, 0], sizes = [16, 16, 128], strides = [1, 1, 1]} : vector<18x18x128xbf16> to vector<16x16x128xbf16>
    %20 = vector.shape_cast %19 : vector<16x16x128xbf16> to vector<256x128xbf16>
    %c0_14 = arith.constant 0 : index
    %c2 = arith.constant 2 : index
    %c0_15 = arith.constant 0 : index
    %c0_16 = arith.constant 0 : index
    %21 = vector.load %arg2[%c0_14, %c2, %c0_15, %c0_16] : memref<3x3x128x96xbf16, #tpu.memory_space<vmem>>, vector<1x1x128x96xbf16>
    %22 = vector.shape_cast %21 : vector<1x1x128x96xbf16> to vector<128x96xbf16>
    %cst_17 = arith.constant dense<0.000000e+00> : vector<256x96xf32>
    %23 = tpu.matmul %20, %22, %cst_17 {dimension_numbers = #tpu.dot_dimension_numbers<[1], [0], [0], [1], [0, 0, 1, 1], [], []>} : vector<256x128xbf16>, vector<128x96xbf16>, vector<256x96xf32> -> vector<256x96xf32>
    %24 = arith.addf %18, %23 : vector<256x96xf32>
    %25 = vector.extract_strided_slice %5 {offsets = [1, 0, 0], sizes = [16, 16, 128], strides = [1, 1, 1]} : vector<18x18x128xbf16> to vector<16x16x128xbf16>
    %26 = vector.shape_cast %25 : vector<16x16x128xbf16> to vector<256x128xbf16>
    %c1_18 = arith.constant 1 : index
    %c0_19 = arith.constant 0 : index
    %c0_20 = arith.constant 0 : index
    %c0_21 = arith.constant 0 : index
    %27 = vector.load %arg2[%c1_18, %c0_19, %c0_20, %c0_21] : memref<3x3x128x96xbf16, #tpu.memory_space<vmem>>, vector<1x1x128x96xbf16>
    %28 = vector.shape_cast %27 : vector<1x1x128x96xbf16> to vector<128x96xbf16>
    %cst_22 = arith.constant dense<0.000000e+00> : vector<256x96xf32>
    %29 = tpu.matmul %26, %28, %cst_22 {dimension_numbers = #tpu.dot_dimension_numbers<[1], [0], [0], [1], [0, 0, 1, 1], [], []>} : vector<256x128xbf16>, vector<128x96xbf16>, vector<256x96xf32> -> vector<256x96xf32>
    %30 = arith.addf %24, %29 : vector<256x96xf32>
    %31 = vector.extract_strided_slice %5 {offsets = [1, 1, 0], sizes = [16, 16, 128], strides = [1, 1, 1]} : vector<18x18x128xbf16> to vector<16x16x128xbf16>
    %32 = vector.shape_cast %31 : vector<16x16x128xbf16> to vector<256x128xbf16>
    %c1_23 = arith.constant 1 : index
    %c1_24 = arith.constant 1 : index
    %c0_25 = arith.constant 0 : index
    %c0_26 = arith.constant 0 : index
    %33 = vector.load %arg2[%c1_23, %c1_24, %c0_25, %c0_26] : memref<3x3x128x96xbf16, #tpu.memory_space<vmem>>, vector<1x1x128x96xbf16>
    %34 = vector.shape_cast %33 : vector<1x1x128x96xbf16> to vector<128x96xbf16>
    %cst_27 = arith.constant dense<0.000000e+00> : vector<256x96xf32>
    %35 = tpu.matmul %32, %34, %cst_27 {dimension_numbers = #tpu.dot_dimension_numbers<[1], [0], [0], [1], [0, 0, 1, 1], [], []>} : vector<256x128xbf16>, vector<128x96xbf16>, vector<256x96xf32> -> vector<256x96xf32>
    %36 = arith.addf %30, %35 : vector<256x96xf32>
    %37 = vector.extract_strided_slice %5 {offsets = [1, 2, 0], sizes = [16, 16, 128], strides = [1, 1, 1]} : vector<18x18x128xbf16> to vector<16x16x128xbf16>
    %38 = vector.shape_cast %37 : vector<16x16x128xbf16> to vector<256x128xbf16>
    %c1_28 = arith.constant 1 : index
    %c2_29 = arith.constant 2 : index
    %c0_30 = arith.constant 0 : index
    %c0_31 = arith.constant 0 : index
    %39 = vector.load %arg2[%c1_28, %c2_29, %c0_30, %c0_31] : memref<3x3x128x96xbf16, #tpu.memory_space<vmem>>, vector<1x1x128x96xbf16>
    %40 = vector.shape_cast %39 : vector<1x1x128x96xbf16> to vector<128x96xbf16>
    %cst_32 = arith.constant dense<0.000000e+00> : vector<256x96xf32>
    %41 = tpu.matmul %38, %40, %cst_32 {dimension_numbers = #tpu.dot_dimension_numbers<[1], [0], [0], [1], [0, 0, 1, 1], [], []>} : vector<256x128xbf16>, vector<128x96xbf16>, vector<256x96xf32> -> vector<256x96xf32>
    %42 = arith.addf %36, %41 : vector<256x96xf32>
    %43 = vector.extract_strided_slice %5 {offsets = [2, 0, 0], sizes = [16, 16, 128], strides = [1, 1, 1]} : vector<18x18x128xbf16> to vector<16x16x128xbf16>
    %44 = vector.shape_cast %43 : vector<16x16x128xbf16> to vector<256x128xbf16>
    %c2_33 = arith.constant 2 : index
    %c0_34 = arith.constant 0 : index
    %c0_35 = arith.constant 0 : index
    %c0_36 = arith.constant 0 : index
    %45 = vector.load %arg2[%c2_33, %c0_34, %c0_35, %c0_36] : memref<3x3x128x96xbf16, #tpu.memory_space<vmem>>, vector<1x1x128x96xbf16>
    %46 = vector.shape_cast %45 : vector<1x1x128x96xbf16> to vector<128x96xbf16>
    %cst_37 = arith.constant dense<0.000000e+00> : vector<256x96xf32>
    %47 = tpu.matmul %44, %46, %cst_37 {dimension_numbers = #tpu.dot_dimension_numbers<[1], [0], [0], [1], [0, 0, 1, 1], [], []>} : vector<256x128xbf16>, vector<128x96xbf16>, vector<256x96xf32> -> vector<256x96xf32>
    %48 = arith.addf %42, %47 : vector<256x96xf32>
    %49 = vector.extract_strided_slice %5 {offsets = [2, 1, 0], sizes = [16, 16, 128], strides = [1, 1, 1]} : vector<18x18x128xbf16> to vector<16x16x128xbf16>
    %50 = vector.shape_cast %49 : vector<16x16x128xbf16> to vector<256x128xbf16>
    %c2_38 = arith.constant 2 : index
    %c1_39 = arith.constant 1 : index
    %c0_40 = arith.constant 0 : index
    %c0_41 = arith.constant 0 : index
    %51 = vector.load %arg2[%c2_38, %c1_39, %c0_40, %c0_41] : memref<3x3x128x96xbf16, #tpu.memory_space<vmem>>, vector<1x1x128x96xbf16>
    %52 = vector.shape_cast %51 : vector<1x1x128x96xbf16> to vector<128x96xbf16>
    %cst_42 = arith.constant dense<0.000000e+00> : vector<256x96xf32>
    %53 = tpu.matmul %50, %52, %cst_42 {dimension_numbers = #tpu.dot_dimension_numbers<[1], [0], [0], [1], [0, 0, 1, 1], [], []>} : vector<256x128xbf16>, vector<128x96xbf16>, vector<256x96xf32> -> vector<256x96xf32>
    %54 = arith.addf %48, %53 : vector<256x96xf32>
    %55 = vector.extract_strided_slice %5 {offsets = [2, 2, 0], sizes = [16, 16, 128], strides = [1, 1, 1]} : vector<18x18x128xbf16> to vector<16x16x128xbf16>
    %56 = vector.shape_cast %55 : vector<16x16x128xbf16> to vector<256x128xbf16>
    %c2_43 = arith.constant 2 : index
    %c2_44 = arith.constant 2 : index
    %c0_45 = arith.constant 0 : index
    %c0_46 = arith.constant 0 : index
    %57 = vector.load %arg2[%c2_43, %c2_44, %c0_45, %c0_46] : memref<3x3x128x96xbf16, #tpu.memory_space<vmem>>, vector<1x1x128x96xbf16>
    %58 = vector.shape_cast %57 : vector<1x1x128x96xbf16> to vector<128x96xbf16>
    %cst_47 = arith.constant dense<0.000000e+00> : vector<256x96xf32>
    %59 = tpu.matmul %56, %58, %cst_47 {dimension_numbers = #tpu.dot_dimension_numbers<[1], [0], [0], [1], [0, 0, 1, 1], [], []>} : vector<256x128xbf16>, vector<128x96xbf16>, vector<256x96xf32> -> vector<256x96xf32>
    %60 = arith.addf %54, %59 : vector<256x96xf32>
    %c0_48 = arith.constant 0 : index
    %c0_49 = arith.constant 0 : index
    %61 = vector.load %arg3[%c0_48, %c0_49] : memref<1x96xf32, #tpu.memory_space<vmem>>, vector<1x96xf32>
    %62 = vector.shape_cast %61 : vector<1x96xf32> to vector<96xf32>
    %63 = vector.shape_cast %62 : vector<96xf32> to vector<1x96xf32>
    %64 = vector.broadcast %63 : vector<1x96xf32> to vector<256x96xf32>
    %65 = arith.mulf %60, %64 : vector<256x96xf32>
    %c0_50 = arith.constant 0 : index
    %c0_51 = arith.constant 0 : index
    %66 = vector.load %arg4[%c0_50, %c0_51] : memref<1x96xf32, #tpu.memory_space<vmem>>, vector<1x96xf32>
    %67 = vector.shape_cast %66 : vector<1x96xf32> to vector<96xf32>
    %68 = vector.shape_cast %67 : vector<96xf32> to vector<1x96xf32>
    %69 = vector.broadcast %68 : vector<1x96xf32> to vector<256x96xf32>
    %70 = arith.addf %65, %69 : vector<256x96xf32>
    %cst_52 = arith.constant 0.000000e+00 : f32
    %71 = vector.broadcast %cst_52 : f32 to vector<256x96xf32>
    %72 = arith.maximumf %70, %71 : vector<256x96xf32>
    %73 = vector.shape_cast %72 : vector<256x96xf32> to vector<16x16x96xf32>
    %c0_53 = arith.constant 0 : index
    %c0_54 = arith.constant 0 : index
    %c0_55 = arith.constant 0 : index
    %c0_56 = arith.constant 0 : index
    %74 = vector.load %arg5[%c0_53, %c0_54, %c0_55, %c0_56] : memref<1x16x16x96xf32, #tpu.memory_space<vmem>>, vector<1x16x16x96xf32>
    %75 = vector.shape_cast %74 : vector<1x16x16x96xf32> to vector<16x16x96xf32>
    %76 = vector.shape_cast %73 : vector<16x16x96xf32> to vector<1x16x16x96xf32>
    tpu.vector_store %arg5[%c0_53, %c0_54, %c0_55, %c0_56], %76 {strides = array<i32>} : memref<1x16x16x96xf32, #tpu.memory_space<vmem>>, vector<1x16x16x96xf32>,
    return
  }
  func.func @transform_0(%arg0: i32) -> (i32, i32, i32, i32) {
    %c0_i32 = arith.constant 0 : i32
    %c0_i32_0 = arith.constant 0 : i32
    %c0_i32_1 = arith.constant 0 : i32
    %c0_i32_2 = arith.constant 0 : i32
    return %arg0, %c0_i32, %c0_i32_0, %c0_i32_1 : i32, i32, i32, i32
  }
  func.func @transform_1(%arg0: i32) -> (i32, i32, i32, i32) {
    %c0_i32 = arith.constant 0 : i32
    %c0_i32_0 = arith.constant 0 : i32
    %c0_i32_1 = arith.constant 0 : i32
    %c0_i32_2 = arith.constant 0 : i32
    %c0_i32_3 = arith.constant 0 : i32
    return %c0_i32, %c0_i32_0, %c0_i32_1, %c0_i32_2 : i32, i32, i32, i32
  }
  func.func @transform_2(%arg0: i32) -> (i32, i32) {
    %c0_i32 = arith.constant 0 : i32
    %c0_i32_0 = arith.constant 0 : i32
    %c0_i32_1 = arith.constant 0 : i32
    return %c0_i32, %c0_i32_0 : i32, i32
  }
  func.func @transform_3(%arg0: i32) -> (i32, i32) {
    %c0_i32 = arith.constant 0 : i32
    %c0_i32_0 = arith.constant 0 : i32
    %c0_i32_1 = arith.constant 0 : i32
    return %c0_i32, %c0_i32_0 : i32, i32
  }
  func.func @transform_4(%arg0: i32) -> (i32, i32, i32, i32) {
    %c0_i32 = arith.constant 0 : i32
    %c0_i32_0 = arith.constant 0 : i32
    %c0_i32_1 = arith.constant 0 : i32
    %c0_i32_2 = arith.constant 0 : i32
    return %arg0, %c0_i32, %c0_i32_0, %c0_i32_1 : i32, i32, i32, i32
  }
}

</mosaic_0001>

<bundles_post_ra>
// kernel: mixed_5b_forward.5
= control target key start
LH: loop header
LB: loop body
LE: loop exit
PB: predicated region body
PF: predicated region fallthrough
CT: control target
= control target key end

     0   :  { %s1663_s21 = smov 0   ;;  %s1665_s22 = smov 0   ;;  %s2111_s0 = inlined_call_operand.vmem [shape: bf16[2,16,16,192], index: 0, kind: input, shape index: {}]   ;;  %s2112_s1 = inlined_call_operand.vmem [shape: bf16[192,208], index: 1, kind: input, shape index: {}]   ;;  %s2113_s2 = inlined_call_operand.vmem [shape: f32[1,208], index: 2, kind: input, shape index: {}]   ;;  %s2114_s3 = inlined_call_operand.vmem [shape: f32[1,208], index: 3, kind: input, shape index: {}]   ;;  %s2115_s4 = inlined_call_operand.vmem [shape: f32[2,16,16,96], index: 4, kind: output, shape index: {0}]   ;;  %s2116_s5 = inlined_call_operand.vmem [shape: bf16[2,16,16,48], index: 5, kind: output, shape index: {1}]   ;;  %s2117_s6 = inlined_call_operand.vmem [shape: bf16[2,16,16,64], index: 6, kind: output, shape index: {2}]  }
   0x1   :  { %s1667_s23 = smov 0   ;;  %s1669_s24 = smov 0  }
   0x2   :  { %s1671_s25 = smov 0  }
   0x3 LB: > { %s26_s26 = sadd.s32 1, %s1616_s23  ;;  %s29_s27 = sadd.s32 1, %s1620_s24  ;;  %s1624_s25 = sphi %s1671_s25, %s17_s25   ;;  %s1620_s24 = sphi %s1669_s24, %s2121_s24   ;;  %s1616_s23 = sphi %s1667_s23, %s2120_s23   ;;  %s1612_s22 = sphi %s1665_s22, %s2119_s22   ;;  %s1608_s21 = sphi %s1663_s21, %s2118_s21  }
   0x4   : > { %p27_p0 = scmp.ge.s32.totalorder %s26_s26, 2  ;;  %p1329_p1 = scmp.ge.s32.totalorder %s1624_s25, 1 }
   0x5   : > { %p243_p2 = scmp.lt.s32.totalorder %s1624_s25, 5 }
   0x6   : > { %s2123_s26 = smov (%p27_p0, %s26_s26), 0  ;;  %s2125_s27 = smov (!%p27_p0, %s29_s27), %s1620_s24 }
   0x7   : > { %p244_p3 = pnand %p1329_p1, %p243_p2  ;;  %p31_p4 = scmp.ge.s32.totalorder %s2125_s27, 2 }
   0x8   : > { %v1526_v0 = vld [vmem:[%s2112_s1 + $0x4] ss:$8 sps:$4 sm:$0xff] (!%p244_p3)   ;;  %s1330_s30 = sshll.u32 (!%p244_p3), %s1608_s21, 3  ;;  %p304_p5 = scmp.lt.s32.totalorder (!%p244_p3), %s1612_s22, 1  ;;  %v1528_v1 = vld [vmem:[%s2112_s1] ss:$8 sps:$4 sm:$0xff] (!%p244_p3)   ;;  %v720_v40 = vlaneseq (!%p244_p3) }
   0x9   : > { %s2127_s27 = smov (%p31_p4, %s2125_s27), 0  ;;  %247 = sbr.rel (%p244_p3) target bundleno = 457 (0x1c9), region = 36 }
   0xa   : > { %p306_p6 = scmp.lt.s32.totalorder (!%p244_p3), %s1330_s30, 15  ;;  %605 = vmatprep.subr.bf16.mxu0 (!%p244_p3), %v1526_v0  ;;  %1460 = vmatprep.subr.bf16.mxu1 (!%p244_p3), %v1526_v0  ;;  %v1529_v2 = vld [vmem:[%s2112_s1 + $0x14] ss:$8 sps:$4 sm:$0xff] (!%p244_p3)   ;;  %v1531_v3 = vld [vmem:[%s2112_s1 + $0x10] ss:$8 sps:$4 sm:$0xff] (!%p244_p3)   ;;  %vm580_vm0 = vcmask (!%p244_p3), 523264  }
   0xb   : > { %606 = vmatpush1.bf16.msra.mxu0 (!%p244_p3), %v1528_v1  ;;  %1472 = vmatpush1.bf16.msra.mxu1 (!%p244_p3), %v1528_v1  ;;  %v1532_v4 = vld [vmem:[%s2112_s1 + $0x24] ss:$8 sps:$4 sm:$0xff] (!%p244_p3)   ;;  %v1534_v5 = vld [vmem:[%s2112_s1 + $0x20] ss:$8 sps:$4 sm:$0xff] (!%p244_p3)   ;;  %v1535_v6 = vld [vmem:[%s2112_s1 + $0x34] ss:$8 sps:$4 sm:$0xff] (!%p244_p3)  }
   0xc   : > { %607 = vmatprep.subr.bf16.mxu0 (!%p244_p3), %v1529_v2  ;;  %1461 = vmatprep.subr.bf16.mxu1 (!%p244_p3), %v1529_v2  ;;  %v1537_v7 = vld [vmem:[%s2112_s1 + $0x30] ss:$8 sps:$4 sm:$0xff] (!%p244_p3)   ;;  %v1538_v8 = vld [vmem:[%s2112_s1 + $0x44] ss:$8 sps:$4 sm:$0xff] (!%p244_p3)   ;;  %v1540_v9 = vld [vmem:[%s2112_s1 + $0x40] ss:$8 sps:$4 sm:$0xff] (!%p244_p3)  }
   0xd   : > { %v1541_v10 = vld [vmem:[%s2112_s1 + $0x54] ss:$8 sps:$4 sm:$0xff] (!%p244_p3)   ;;  %v1543_v13 = vld [vmem:[%s2112_s1 + $0x50] ss:$8 sps:$4 sm:$0xff] (!%p244_p3)   ;;  %v1544_v14 = vld [vmem:[%s2112_s1 + $0x64] ss:$8 sps:$4 sm:$0xff] (!%p244_p3)  }
   0xe   : > { %v1546_v15 = vld [vmem:[%s2112_s1 + $0x60] ss:$8 sps:$4 sm:$0xff] (!%p244_p3)   ;;  %v1547_v16 = vld [vmem:[%s2112_s1 + $0x74] ss:$8 sps:$4 sm:$0xff] (!%p244_p3)   ;;  %v1549_v17 = vld [vmem:[%s2112_s1 + $0x70] ss:$8 sps:$4 sm:$0xff] (!%p244_p3)  }
   0xf   : > { %608 = vmatpush1.bf16.msra.mxu0 (!%p244_p3), %v1531_v3  ;;  %1473 = vmatpush1.bf16.msra.mxu1 (!%p244_p3), %v1531_v3  ;;  %v1550_v18 = vld [vmem:[%s2112_s1 + $0x84] ss:$8 sps:$4 sm:$0xff] (!%p244_p3)   ;;  %v1552_v19 = vld [vmem:[%s2112_s1 + $0x80] ss:$8 sps:$4 sm:$0xff] (!%p244_p3)   ;;  %v1553_v20 = vld [vmem:[%s2112_s1 + $0x94] ss:$8 sps:$4 sm:$0xff] (!%p244_p3)  }
  0x10   : > { %s2129_s22 = smov (!%p304_p5, %s1612_s22), 1  ;;  %s2131_s30 = smov (!%p306_p6, %s1330_s30), 15  ;;  %609 = vmatprep.subr.bf16.mxu0 %v1532_v4  ;;  %1462 = vmatprep.subr.bf16.mxu1 %v1532_v4  ;;  %v1555_v21 = vld [vmem:[%s2112_s1 + $0x90] ss:$8 sps:$4 sm:$0xff]   ;;  %v1556_v22 = vld [vmem:[%s2112_s1 + $0xa4] ss:$8 sps:$4 sm:$0xff]  }
  0x11   : > { %s1332_s15 = sshll.u32 %s2129_s22, 6  ;;  %s1336_s16 = sshll.u32 %s2129_s22, 5  ;;  %v1558_v23 = vld [vmem:[%s2112_s1 + $0xa0] ss:$8 sps:$4 sm:$0xff]   ;;  %v1559_v24 = vld [vmem:[%s2112_s1 + $0xb4] ss:$8 sps:$4 sm:$0xff]  }
  0x12   : > { %s1331_s17 = sshll.u32 %s2131_s30, 2  ;;  %s1335_s18 = sshll.u32 %s2131_s30, 1  ;;  %v1561_v25 = vld [vmem:[%s2112_s1 + $0xb0] ss:$8 sps:$4 sm:$0xff]   ;;  %v721_v41 = vshrl.u32 %v720_v40, 7  ;;  %vm838_vm1 = vcmask 785408  }
  0x13   : > { %s1708_s19 = sadd.s32 %s1336_s16, %s1335_s18  ;;  %s310_s7 = sadd.s32 %s1332_s15, %s1331_s17  ;;  %610 = vmatpush1.bf16.msra.mxu0 %v1534_v5  ;;  %1474 = vmatpush1.bf16.msra.mxu1 %v1534_v5  ;;  %v718_v43 = vld [vmem:[%s2113_s2] sm:$0x3]  ;;  %vm983_vm2 = vcmask 261120   ;;  %vm1016_vm3 = vcmask 388096   ;;  %vm1097_vm4 = vcmask 519168  }
  0x14   : > { %s1333_s30 = sshll.u32 %s310_s7, 2  ;;  %611 = vmatprep.subr.bf16.mxu0 %v1535_v6  ;;  %1463 = vmatprep.subr.bf16.mxu1 %v1535_v6  ;;  %v722_v42 = vsub.s32 0, %v721_v41  ;;  %v726_v44 = vsub.s32 1, %v721_v41  ;;  %v762_v45 = vld [vmem:[%s2114_s3] sm:$0x3]  ;;  %s1626_s17 = smov 32  }
  0x15   : > { %s1725_s13 = scalar_lea.vmem %s2111_s0, %s1333_s30  ;;  %s1627_s18 = smov 112  }
  0x16   : > { %v1564_v11 = vld [vmem:[%s1725_s13 + $0x4] ss:$8 sps:$4 sm:$0xff]   ;;  %v1562_v26 = vld [vmem:[%s1725_s13] ss:$8 sps:$4 sm:$0xff]   ;;  %v1568_v28 = vld [vmem:[%s1725_s13 + $0x14] ss:$8 sps:$4 sm:$0xff]   ;;  %v1802_v46 = vrot.slane %v718_v43, %v722_v42  ;;  %v1804_v47 = vrot.slane %v718_v43, %v726_v44  ;;  %v1806_v48 = vrot.slane %v762_v45, %v722_v42  ;;  %v1808_v51 = vrot.slane %v762_v45, %v726_v44 }
  0x17   : > { %612 = vmatpush1.bf16.msra.mxu0 %v1537_v7  ;;  %1475 = vmatpush1.bf16.msra.mxu1 %v1537_v7  ;;  %v1567_v12 = vld [vmem:[%s1725_s13 + $0x44] ss:$8 sps:$4 sm:$0xff]   ;;  %v1565_v27 = vld [vmem:[%s1725_s13 + $0x40] ss:$8 sps:$4 sm:$0xff]   ;;  %v1571_v29 = vld [vmem:[%s1725_s13 + $0x54] ss:$8 sps:$4 sm:$0xff]  }
  0x18   : > { %613 = vmatprep.subr.bf16.mxu0 %v1538_v8  ;;  %1464 = vmatprep.subr.bf16.mxu1 %v1538_v8  ;;  %v1570_v30 = vld [vmem:[%s1725_s13 + $0x10] ss:$8 sps:$4 sm:$0xff]   ;;  %v1574_v32 = vld [vmem:[%s1725_s13 + $0x24] ss:$8 sps:$4 sm:$0xff]   ;;  %v1576_v34 = vld [vmem:[%s1725_s13 + $0x20] ss:$8 sps:$4 sm:$0xff]  }
  0x19   : > { %1386 = vmatprep.mubr.msk.bf16.mxu0 %vm580_vm0, %v1564_v11  ;;  %1390 = vmatprep.mubr.msk.bf16.mxu1 %vm580_vm0, %v1567_v12  ;;  %v1573_v31 = vld [vmem:[%s1725_s13 + $0x50] ss:$8 sps:$4 sm:$0xff]   ;;  %v1577_v33 = vld [vmem:[%s1725_s13 + $0x64] ss:$8 sps:$4 sm:$0xff]   ;;  %v1579_v35 = vld [vmem:[%s1725_s13 + $0x60] ss:$8 sps:$4 sm:$0xff]  }
  0x1a   : > { %v1580_v36 = vld [vmem:[%s1725_s13 + $0x34] ss:$8 sps:$4 sm:$0xff]   ;;  %v1582_v38 = vld [vmem:[%s1725_s13 + $0x30] ss:$8 sps:$4 sm:$0xff]   ;;  %s1341_s20 = sshll.u32 %s1708_s19, 2 }
  0x1b   : > { %614 = vmatpush1.bf16.msra.mxu0 %v1540_v9  ;;  %1476 = vmatpush1.bf16.msra.mxu1 %v1540_v9  ;;  %v1583_v37 = vld [vmem:[%s1725_s13 + $0x74] ss:$8 sps:$4 sm:$0xff]   ;;  %v1585_v39 = vld [vmem:[%s1725_s13 + $0x70] ss:$8 sps:$4 sm:$0xff]   ;;  %s1337_s13 = sshll.u32 %s1708_s19, 3  ;;  %s2009_s29 = scalar_lea.vmem %s2116_s5, %s1341_s20 }
  0x1c   : > { %615 = vmatprep.subr.bf16.mxu0 %v1541_v10  ;;  %1465 = vmatprep.subr.bf16.mxu1 %v1541_v10  ;;  %s1822_s16 = scalar_lea.vmem %s2115_s4, %s1337_s13  ;;  %s2017_s22 = scalar_lea.vmem %s2117_s6, %s1341_s20 }
  0x1f   : > { %616 = vmatpush1.bf16.msra.mxu0 %v1543_v13  ;;  %1477 = vmatpush1.bf16.msra.mxu1 %v1543_v13 }
  0x20   : > { %617 = vmatprep.subr.bf16.mxu0 %v1544_v14  ;;  %1466 = vmatprep.subr.bf16.mxu1 %v1544_v14 }
  0x23   : > { %618 = vmatpush1.bf16.msra.mxu0 %v1546_v15  ;;  %1478 = vmatpush1.bf16.msra.mxu1 %v1546_v15 }
  0x24   : > { %619 = vmatprep.subr.bf16.mxu0 %v1547_v16  ;;  %1467 = vmatprep.subr.bf16.mxu1 %v1547_v16 }
  0x27   : > { %620 = vmatpush1.bf16.msra.mxu0 %v1549_v17  ;;  %1479 = vmatpush1.bf16.msra.mxu1 %v1549_v17 }
  0x28   : > { %621 = vmatprep.subr.bf16.mxu0 %v1550_v18  ;;  %1468 = vmatprep.subr.bf16.mxu1 %v1550_v18 }
  0x2b   : > { %622 = vmatpush1.bf16.msra.mxu0 %v1552_v19  ;;  %1480 = vmatpush1.bf16.msra.mxu1 %v1552_v19 }
  0x2c   : > { %623 = vmatprep.subr.bf16.mxu0 %v1553_v20  ;;  %1469 = vmatprep.subr.bf16.mxu1 %v1553_v20 }
  0x2f   : > { %624 = vmatpush1.bf16.msra.mxu0 %v1555_v21  ;;  %1481 = vmatpush1.bf16.msra.mxu1 %v1555_v21 }
  0x30   : > { %625 = vmatprep.subr.bf16.mxu0 %v1556_v22  ;;  %1470 = vmatprep.subr.bf16.mxu1 %v1556_v22 }
  0x33   : > { %626 = vmatpush1.bf16.msra.mxu0 %v1558_v23  ;;  %1482 = vmatpush1.bf16.msra.mxu1 %v1558_v23 }
  0x34   : > { %627 = vmatprep.subr.bf16.mxu0 %v1559_v24  ;;  %1471 = vmatprep.subr.bf16.mxu1 %v1559_v24 }
  0x37   : > { %628 = vmatpush1.bf16.msra.mxu0 %v1561_v25  ;;  %1483 = vmatpush1.bf16.msra.mxu1 %v1561_v25 }
  0x3a   : > { %638 = vmatmul.mubr.bf16.vlgmr.msra.gmra.mrb[0].mxu0 %v1562_v26  ;;  %678 = vmatmul.mubr.bf16.vlgmr.msra.gmra.mrb[0].mxu1 %v1565_v27 }
  0x3b   : > { %1387 = vmatprep.mubr.msk.bf16.mxu0 %vm580_vm0, %v1568_v28  ;;  %1391 = vmatprep.mubr.msk.bf16.mxu1 %vm580_vm0, %v1571_v29 }
  0x42   : > { %648 = vmatmul.mubr.bf16.gmra.mrb[4].mxu0 %v1570_v30  ;;  %688 = vmatmul.mubr.bf16.gmra.mrb[4].mxu1 %v1573_v31 }
  0x43   : > { %1388 = vmatprep.mubr.msk.bf16.mxu0 %vm580_vm0, %v1574_v32  ;;  %1392 = vmatprep.mubr.msk.bf16.mxu1 %vm580_vm0, %v1577_v33 }
  0x4a   : > { %658 = vmatmul.mubr.bf16.gmra.mrb[8].mxu0 %v1576_v34  ;;  %698 = vmatmul.mubr.bf16.gmra.mrb[8].mxu1 %v1579_v35 }
  0x4b   : > { %1389 = vmatprep.mubr.msk.bf16.mxu0 %vm580_vm0, %v1580_v36  ;;  %1393 = vmatprep.mubr.msk.bf16.mxu1 %vm580_vm0, %v1583_v37 }
  0x52   : > { %668 = vmatmul.mubr.bf16.gmra.mrb[12].mxu0 %v1582_v38  ;;  %708 = vmatmul.mubr.bf16.gmra.mrb[12].mxu1 %v1585_v39 }
 0x10d   : > { %v639_v49 = vpop.f32.mrb[0].mxu0  ;;  %v679_v50 = vpop.f32.mrb[0].mxu1 }
 0x10e   : > { %v730_v52 = vmul.f32 %v1802_v46, %v639_v49  ;;  %v746_v53 = vmul.f32 %v1802_v46, %v679_v50  ;;  %v641_v54 = vpop.f32.mrb[1].mxu0  ;;  %v681_v55 = vpop.f32.mrb[1].mxu1 }
 0x10f   : > { %v731_v56 = vmul.f32 %v1804_v47, %v641_v54  ;;  %v747_v57 = vmul.f32 %v1804_v47, %v681_v55  ;;  %v643_v58 = vpop.f32.mrb[2].mxu0  ;;  %v683_v59 = vpop.f32.mrb[2].mxu1 }
 0x110   : > { %v774_v60 = vadd.f32 %v1806_v48, %v730_v52  ;;  %v790_v61 = vadd.f32 %v1806_v48, %v746_v53  ;;  %v732_v62 = vmul.f32 %v1802_v46, %v643_v58  ;;  %v748_v63 = vmul.f32 %v1802_v46, %v683_v59  ;;  %v645_v0 = vpop.f32.mrb[3].mxu0  ;;  %v685_v1 = vpop.f32.mrb[3].mxu1 }
 0x111   : > { %v775_v2 = vadd.f32 %v1808_v51, %v731_v56  ;;  %v791_v3 = vadd.f32 %v1808_v51, %v747_v57  ;;  %v733_v4 = vmul.f32 %v1804_v47, %v645_v0  ;;  %v749_v5 = vmul.f32 %v1804_v47, %v685_v1 }
 0x112   : > { %v806_v6 = vmax.f32 %v774_v60, 0.0  ;;  %v822_v7 = vmax.f32 %v790_v61, 0.0  ;;  %v776_v8 = vadd.f32 %v1806_v48, %v732_v62  ;;  %v792_v9 = vadd.f32 %v1806_v48, %v748_v63 }
 0x113   : > { %v1830_v10 = vmax.f32 %v775_v2, 0.0  ;;  %v1832_v11 = vmax.f32 %v791_v3, 0.0  ;;  %v777_v12 = vadd.f32 %v1808_v51, %v733_v4  ;;  %v793_v13 = vadd.f32 %v1808_v51, %v749_v5 }
 0x114   : > { %839 = vst.msk [vmem:[%s1822_s16] sm:$0xff] %vm838_vm1, %v806_v6  ;;  %847 = vst.msk [vmem:[%s1822_s16 + $0x40] sm:$0xff] %vm838_vm1, %v822_v7  ;;  %v808_v14 = vmax.f32 %v776_v8, 0.0  ;;  %v824_v15 = vmax.f32 %v792_v9, 0.0 }
 0x115   : > { %v809_v16 = vmax.f32 %v777_v12, 0.0  ;;  %v1840_v17 = vmax.f32 %v793_v13, 0.0  ;;  %v1428_v18 = vpack.c.bf16 %v1830_v10, %v806_v6  ;;  %v649_v19 = vpop.f32.mrb[4].mxu0  ;;  %v1436_v20 = vpack.c.bf16 %v1832_v11, %v822_v7  ;;  %v689_v21 = vpop.f32.mrb[4].mxu1 }
 0x116   : > { %840 = vst.msk [vmem:[%s1822_s16 + $0x8] sm:$0xff] %vm838_vm1, %v808_v14  ;;  %848 = vst.msk [vmem:[%s1822_s16 + $0x48] sm:$0xff] %vm838_vm1, %v824_v15  ;;  %v734_v22 = vmul.f32 %v1802_v46, %v649_v19  ;;  %v651_v23 = vpop.f32.mrb[5].mxu0  ;;  %v750_v24 = vmul.f32 %v1802_v46, %v689_v21  ;;  %v691_v25 = vpop.f32.mrb[5].mxu1  ;;  %v1444_v55 = vpack.c.bf16 %v1830_v10, %v1830_v10 }
 0x117   : > { %935 = vrot.lane.b32.xlu0 %v1428_v18, %s1626_s17  ;;  %v1437_v26 = vpack.c.bf16 %v1840_v17, %v824_v15  ;;  %v735_v27 = vmul.f32 %v1804_v47, %v651_v23  ;;  %v653_v28 = vpop.f32.mrb[6].mxu0  ;;  %v1445_v29 = vpack.c.bf16 %v809_v16, %v809_v16  ;;  %v751_v30 = vmul.f32 %v1804_v47, %v691_v25  ;;  %v693_v31 = vpop.f32.mrb[6].mxu1 }
 0x118   : > { %v778_v32 = vadd.f32 %v1806_v48, %v734_v22  ;;  %v736_v33 = vmul.f32 %v1802_v46, %v653_v28  ;;  %v655_v34 = vpop.f32.mrb[7].mxu0  ;;  %v794_v35 = vadd.f32 %v1806_v48, %v750_v24  ;;  %v752_v36 = vmul.f32 %v1802_v46, %v693_v31  ;;  %v695_v37 = vpop.f32.mrb[7].mxu1 }
 0x119   : > { %953 = vrot.lane.b32.xlu1 %v1437_v26, %s1626_s17  ;;  %v779_v38 = vadd.f32 %v1808_v51, %v735_v27  ;;  %v737_v39 = vmul.f32 %v1804_v47, %v655_v34  ;;  %v795_v40 = vadd.f32 %v1808_v51, %v751_v30  ;;  %v753_v41 = vmul.f32 %v1804_v47, %v695_v37 }
 0x11a   : > { %v810_v42 = vmax.f32 %v778_v32, 0.0  ;;  %v780_v43 = vadd.f32 %v1806_v48, %v736_v33  ;;  %v826_v44 = vmax.f32 %v794_v35, 0.0  ;;  %v796_v45 = vadd.f32 %v1806_v48, %v752_v36 }
 0x11b   : > { %v1865_v49 = vmax.f32 %v779_v38, 0.0  ;;  %951 = vrot.lane.b32.xlu0 %v1436_v20, %s1626_s17  ;;  %v781_v50 = vadd.f32 %v1808_v51, %v737_v39  ;;  %v1869_v52 = vmax.f32 %v795_v40, 0.0  ;;  %v797_v53 = vadd.f32 %v1808_v51, %v753_v41 }
 0x11c   : > { %841 = vst.msk [vmem:[%s1822_s16 + $0x10] sm:$0xff] %vm838_vm1, %v810_v42  ;;  %v812_v54 = vmax.f32 %v780_v43, 0.0  ;;  %849 = vst.msk [vmem:[%s1822_s16 + $0x50] sm:$0xff] %vm838_vm1, %v826_v44  ;;  %v828_v56 = vmax.f32 %v796_v45, 0.0  ;;  %v1429_v57 = vpack.c.bf16 %v809_v16, %v808_v14  ;;  %v1453_v0 = vpack.c.bf16 %v1840_v17, %v1840_v17 }
 0x11d   : > { %v1878_v58 = vmax.f32 %v781_v50, 0.0  ;;  %1051 = vrot.lane.b32.xlu1 %v1445_v29, %s1627_s18  ;;  %v1881_v59 = vmax.f32 %v797_v53, 0.0  ;;  %v1430_v60 = vpack.c.bf16 %v1865_v49, %v810_v42  ;;  %v659_v61 = vpop.f32.mrb[8].mxu0  ;;  %v1885_v62 = vpack.c.bf16 %v1869_v52, %v826_v44  ;;  %v699_v63 = vpop.f32.mrb[8].mxu1 }
 0x11e   : > { %842 = vst.msk [vmem:[%s1822_s16 + $0x18] sm:$0xff] %vm838_vm1, %v812_v54  ;;  %850 = vst.msk [vmem:[%s1822_s16 + $0x58] sm:$0xff] %vm838_vm1, %v828_v56  ;;  %v1452_v1 = vpack.c.bf16 %v1832_v11, %v1832_v11  ;;  %v738_v2 = vmul.f32 %v1802_v46, %v659_v61  ;;  %v661_v3 = vpop.f32.mrb[9].mxu0  ;;  %v754_v4 = vmul.f32 %v1802_v46, %v699_v63  ;;  %v701_v5 = vpop.f32.mrb[9].mxu1 }
 0x11f   : > { %1049 = vrot.lane.b32.xlu0 %v1444_v55, %s1627_s18  ;;  %v1431_v6 = vpack.c.bf16 %v1878_v58, %v812_v54  ;;  %v739_v7 = vmul.f32 %v1804_v47, %v661_v3  ;;  %v663_v8 = vpop.f32.mrb[10].mxu0  ;;  %v1901_v9 = vpack.c.bf16 %v1881_v59, %v828_v56  ;;  %v755_v10 = vmul.f32 %v1804_v47, %v701_v5  ;;  %v703_v12 = vpop.f32.mrb[10].mxu1 }
 0x120   : > { %v782_v11 = vadd.f32 %v1806_v48, %v738_v2  ;;  %v740_v13 = vmul.f32 %v1802_v46, %v663_v8  ;;  %v665_v14 = vpop.f32.mrb[11].mxu0  ;;  %v798_v15 = vadd.f32 %v1806_v48, %v754_v4  ;;  %v756_v16 = vmul.f32 %v1802_v46, %v703_v12  ;;  %v705_v17 = vpop.f32.mrb[11].mxu1 }
 0x121   : > { %1067 = vrot.lane.b32.xlu1 %v1453_v0, %s1627_s18  ;;  %v783_v18 = vadd.f32 %v1808_v51, %v739_v7  ;;  %v741_v19 = vmul.f32 %v1804_v47, %v665_v14  ;;  %v799_v20 = vadd.f32 %v1808_v51, %v755_v10  ;;  %v757_v21 = vmul.f32 %v1804_v47, %v705_v17 }
 0x122   : > { %v814_v22 = vmax.f32 %v782_v11, 0.0  ;;  %v784_v23 = vadd.f32 %v1806_v48, %v740_v13  ;;  %v830_v24 = vmax.f32 %v798_v15, 0.0  ;;  %v800_v25 = vadd.f32 %v1806_v48, %v756_v16 }
 0x123   : > { %1065 = vrot.lane.b32.xlu0 %v1452_v1, %s1627_s18  ;;  %v1916_v26 = vmax.f32 %v783_v18, 0.0  ;;  %v785_v27 = vadd.f32 %v1808_v51, %v741_v19  ;;  %v1919_v28 = vmax.f32 %v799_v20, 0.0  ;;  %v801_v29 = vadd.f32 %v1808_v51, %v757_v21 }
 0x124   : > { %843 = vst.msk [vmem:[%s1822_s16 + $0x20] sm:$0xff] %vm838_vm1, %v814_v22  ;;  %v816_v30 = vmax.f32 %v784_v23, 0.0  ;;  %851 = vst.msk [vmem:[%s1822_s16 + $0x60] sm:$0xff] %vm838_vm1, %v830_v24  ;;  %v832_v31 = vmax.f32 %v800_v25, 0.0  ;;  %v1455_v16 = vpack.c.bf16 %v1881_v59, %v1881_v59 }
 0x125   : > { %939 = vrot.lane.b32.xlu1 %v1430_v60, %s1626_s17  ;;  %v1927_v32 = vmax.f32 %v785_v27, 0.0  ;;  %v1929_v33 = vmax.f32 %v801_v29, 0.0  ;;  %v1432_v34 = vpack.c.bf16 %v1916_v26, %v814_v22  ;;  %v669_v35 = vpop.f32.mrb[12].mxu0  ;;  %v1440_v36 = vpack.c.bf16 %v1919_v28, %v830_v24  ;;  %v709_v37 = vpop.f32.mrb[12].mxu1 }
 0x126   : > { %844 = vst.msk [vmem:[%s1822_s16 + $0x28] sm:$0xff] %vm838_vm1, %v816_v30  ;;  %852 = vst.msk [vmem:[%s1822_s16 + $0x68] sm:$0xff] %vm838_vm1, %v832_v31  ;;  %v742_v38 = vmul.f32 %v1802_v46, %v669_v35  ;;  %v671_v39 = vpop.f32.mrb[13].mxu0  ;;  %v758_v40 = vmul.f32 %v1802_v46, %v709_v37  ;;  %v711_v41 = vpop.f32.mrb[13].mxu1  ;;  %v1456_v59 = vpack.c.bf16 %v1919_v28, %v1919_v28 }
 0x127   : > { %937 = vrot.lane.b32.xlu0 %v1429_v57, %s1626_s17  ;;  %v1433_v42 = vpack.c.bf16 %v1927_v32, %v816_v30  ;;  %v743_v43 = vmul.f32 %v1804_v47, %v671_v39  ;;  %v673_v44 = vpop.f32.mrb[14].mxu0  ;;  %v1441_v45 = vpack.c.bf16 %v1929_v33, %v832_v31  ;;  %v759_v50 = vmul.f32 %v1804_v47, %v711_v41  ;;  %v713_v53 = vpop.f32.mrb[14].mxu1 }
 0x128   : > { %v786_v54 = vadd.f32 %v1806_v48, %v742_v38  ;;  %v744_v55 = vmul.f32 %v1802_v46, %v673_v44  ;;  %v675_v56 = vpop.f32.mrb[15].mxu0  ;;  %v802_v60 = vadd.f32 %v1806_v48, %v758_v40  ;;  %v760_v61 = vmul.f32 %v1802_v46, %v713_v53  ;;  %v715_v57 = vpop.f32.mrb[15].mxu1 }
 0x129   : > { %941 = vrot.lane.b32.xlu1 %v1431_v6, %s1626_s17  ;;  %v787_v63 = vadd.f32 %v1808_v51, %v743_v43  ;;  %v745_v0 = vmul.f32 %v1804_v47, %v675_v56  ;;  %v803_v1 = vadd.f32 %v1808_v51, %v759_v50  ;;  %v761_v2 = vmul.f32 %v1804_v47, %v715_v57 }
 0x12a   : > { %v818_v3 = vmax.f32 %v786_v54, 0.0  ;;  %v788_v4 = vadd.f32 %v1806_v48, %v744_v55  ;;  %v834_v5 = vmax.f32 %v802_v60, 0.0  ;;  %v804_v7 = vadd.f32 %v1806_v48, %v760_v61 }
 0x12b   : > { %955 = vrot.lane.b32.xlu0 %v1885_v62, %s1626_s17  ;;  %v819_v46 = vmax.f32 %v787_v63, 0.0  ;;  %v789_v6 = vadd.f32 %v1808_v51, %v745_v0  ;;  %v835_v8 = vmax.f32 %v803_v1, 0.0  ;;  %v805_v10 = vadd.f32 %v1808_v51, %v761_v2 }
 0x12c   : > { %v1446_v47 = vpack.c.bf16 %v1865_v49, %v1865_v49  ;;  %845 = vst.msk [vmem:[%s1822_s16 + $0x30] sm:$0xff] %vm838_vm1, %v818_v3  ;;  %v820_v12 = vmax.f32 %v788_v4, 0.0  ;;  %853 = vst.msk [vmem:[%s1822_s16 + $0x70] sm:$0xff] %vm838_vm1, %v834_v5  ;;  %v836_v48 = vmax.f32 %v804_v7, 0.0  ;;  %v1447_v51 = vpack.c.bf16 %v1878_v58, %v1878_v58 }
 0x12d   : > { %957 = vrot.lane.b32.xlu1 %v1901_v9, %s1626_s17  ;;  %v821_v62 = vmax.f32 %v789_v6, 0.0  ;;  %v837_v11 = vmax.f32 %v805_v10, 0.0  ;;  %v1434_v13 = vpack.c.bf16 %v819_v46, %v818_v3  ;;  %v1442_v14 = vpack.c.bf16 %v835_v8, %v834_v5 }
 0x12e   : > { %846 = vst.msk [vmem:[%s1822_s16 + $0x38] sm:$0xff] %vm838_vm1, %v820_v12  ;;  %854 = vst.msk [vmem:[%s1822_s16 + $0x78] sm:$0xff] %vm838_vm1, %v836_v48  ;;  %v1454_v9 = vpack.c.bf16 %v1869_v52, %v1869_v52  ;;  %v1448_v58 = vpack.c.bf16 %v1916_v26, %v1916_v26  ;;  %v1449_v52 = vpack.c.bf16 %v1927_v32, %v1927_v32 }
 0x12f   : > { %1053 = vrot.lane.b32.xlu0 %v1446_v47, %s1627_s18  ;;  %v1435_v49 = vpack.c.bf16 %v821_v62, %v820_v12  ;;  %v1443_v15 = vpack.c.bf16 %v837_v11, %v836_v48  ;;  %v1457_v17 = vpack.c.bf16 %v1929_v33, %v1929_v33  ;;  %v1450_v18 = vpack.c.bf16 %v819_v46, %v819_v46 }
 0x130   : > { %v1451_v19 = vpack.c.bf16 %v821_v62, %v821_v62  ;;  %v1458_v20 = vpack.c.bf16 %v835_v8, %v835_v8  ;;  %v1459_v21 = vpack.c.bf16 %v837_v11, %v837_v11 }
 0x131   : > { %1055 = vrot.lane.b32.xlu1 %v1447_v51, %s1627_s18 }
 0x133   : > { %1069 = vrot.lane.b32.xlu0 %v1454_v9, %s1627_s18 }
 0x135   : > { %1071 = vrot.lane.b32.xlu1 %v1455_v16, %s1627_s18 }
 0x137   : > { %943 = vrot.lane.b32.xlu0 %v1432_v34, %s1626_s17 }
 0x139   : > { %945 = vrot.lane.b32.xlu1 %v1433_v42, %s1626_s17 }
 0x13b   : > { %959 = vrot.lane.b32.xlu0 %v1440_v36, %s1626_s17 }
 0x13d   : > { %961 = vrot.lane.b32.xlu1 %v1441_v45, %s1626_s17 }
 0x13f   : > { %1057 = vrot.lane.b32.xlu0 %v1448_v58, %s1627_s18 }
 0x141   : > { %1059 = vrot.lane.b32.xlu1 %v1449_v52, %s1627_s18 }
 0x143   : > { %1073 = vrot.lane.b32.xlu0 %v1456_v59, %s1627_s18 }
 0x145   : > { %1075 = vrot.lane.b32.xlu1 %v1457_v17, %s1627_s18 }
 0x147   : > { %947 = vrot.lane.b32.xlu0 %v1434_v13, %s1626_s17 }
 0x149   : > { %949 = vrot.lane.b32.xlu1 %v1435_v49, %s1626_s17 }
 0x14b   : > { %963 = vrot.lane.b32.xlu0 %v1442_v14, %s1626_s17 }
 0x14d   : > { %965 = vrot.lane.b32.xlu1 %v1443_v15, %s1626_s17 }
 0x14f   : > { %1061 = vrot.lane.b32.xlu0 %v1450_v18, %s1627_s18 }
 0x151   : > { %1063 = vrot.lane.b32.xlu1 %v1451_v19, %s1627_s18 }
 0x153   : > { %1077 = vrot.lane.b32.xlu0 %v1458_v20, %s1627_s18 }
 0x155   : > { %1079 = vrot.lane.b32.xlu1 %v1459_v21, %s1627_s18 }
 0x189   : > { %v936_v22 = vpop.permute.xlu0 %935 }
 0x18a   : > { %v967_v23 = vrot.slane %v936_v22, 4 }
 0x18b   : > { %v954_v24 = vpop.permute.xlu1 %953 }
 0x18c   : > { %v984_v25 = vsel %vm983_vm2, %v936_v22, %v967_v23  ;;  %v976_v26 = vrot.slane %v954_v24, 4 }
 0x18d   : > { %1017 = vst.msk [vmem:[%s2009_s29] sm:$0xf] %vm1016_vm3, %v984_v25  ;;  %v952_v27 = vpop.permute.xlu0 %951 }
 0x18e   : > { %v993_v28 = vsel %vm983_vm2, %v954_v24, %v976_v26  ;;  %v975_v29 = vrot.slane %v952_v27, 4 }
 0x18f   : > { %1026 = vst.msk [vmem:[%s2009_s29 + $0x24] sm:$0xf] %vm1016_vm3, %v993_v28  ;;  %v1052_v30 = vpop.permute.xlu1 %1051 }
 0x190   : > { %v992_v31 = vsel %vm983_vm2, %v952_v27, %v975_v29  ;;  %1099 = vst.msk [vmem:[%s2017_s22 + $0x4] sm:$0xf] %vm1097_vm4, %v1052_v30 }
 0x191   : > { %1025 = vst.msk [vmem:[%s2009_s29 + $0x20] sm:$0xf] %vm1016_vm3, %v992_v31  ;;  %v1050_v32 = vpop.permute.xlu0 %1049 }
 0x192   : > { %1098 = vst.msk [vmem:[%s2017_s22] sm:$0xf] %vm1097_vm4, %v1050_v32 }
 0x193   : > { %v1068_v33 = vpop.permute.xlu1 %1067 }
 0x194   : > { %1107 = vst.msk [vmem:[%s2017_s22 + $0x24] sm:$0xf] %vm1097_vm4, %v1068_v33 }
 0x195   : > { %v1066_v34 = vpop.permute.xlu0 %1065 }
 0x196   : > { %1106 = vst.msk [vmem:[%s2017_s22 + $0x20] sm:$0xf] %vm1097_vm4, %v1066_v34 }
 0x197   : > { %v940_v35 = vpop.permute.xlu1 %939 }
 0x198   : > { %v969_v36 = vrot.slane %v940_v35, 4 }
 0x199   : > { %v938_v37 = vpop.permute.xlu0 %937 }
 0x19a   : > { %v986_v38 = vsel %vm983_vm2, %v940_v35, %v969_v36  ;;  %v968_v39 = vrot.slane %v938_v37, 4 }
 0x19b   : > { %1019 = vst.msk [vmem:[%s2009_s29 + $0x8] sm:$0xf] %vm1016_vm3, %v986_v38  ;;  %v942_v40 = vpop.permute.xlu1 %941 }
 0x19c   : > { %v985_v41 = vsel %vm983_vm2, %v938_v37, %v968_v39  ;;  %v970_v42 = vrot.slane %v942_v40, 4 }
 0x19d   : > { %1018 = vst.msk [vmem:[%s2009_s29 + $0x4] sm:$0xf] %vm1016_vm3, %v985_v41  ;;  %v956_v43 = vpop.permute.xlu0 %955 }
 0x19e   : > { %v987_v44 = vsel %vm983_vm2, %v942_v40, %v970_v42  ;;  %v977_v45 = vrot.slane %v956_v43, 4 }
 0x19f   : > { %1020 = vst.msk [vmem:[%s2009_s29 + $0xc] sm:$0xf] %vm1016_vm3, %v987_v44  ;;  %v958_v50 = vpop.permute.xlu1 %957 }
 0x1a0   : > { %v994_v53 = vsel %vm983_vm2, %v956_v43, %v977_v45  ;;  %v978_v54 = vrot.slane %v958_v50, 4 }
 0x1a1   : > { %1027 = vst.msk [vmem:[%s2009_s29 + $0x28] sm:$0xf] %vm1016_vm3, %v994_v53  ;;  %v1054_v55 = vpop.permute.xlu0 %1053 }
 0x1a2   : > { %v995_v56 = vsel %vm983_vm2, %v958_v50, %v978_v54  ;;  %1100 = vst.msk [vmem:[%s2017_s22 + $0x8] sm:$0xf] %vm1097_vm4, %v1054_v55 }
 0x1a3   : > { %1028 = vst.msk [vmem:[%s2009_s29 + $0x2c] sm:$0xf] %vm1016_vm3, %v995_v56  ;;  %v1056_v60 = vpop.permute.xlu1 %1055 }
 0x1a4   : > { %1101 = vst.msk [vmem:[%s2017_s22 + $0xc] sm:$0xf] %vm1097_vm4, %v1056_v60 }
 0x1a5   : > { %v1070_v61 = vpop.permute.xlu0 %1069 }
 0x1a6   : > { %1108 = vst.msk [vmem:[%s2017_s22 + $0x28] sm:$0xf] %vm1097_vm4, %v1070_v61 }
 0x1a7   : > { %v1072_v57 = vpop.permute.xlu1 %1071 }
 0x1a8   : > { %1109 = vst.msk [vmem:[%s2017_s22 + $0x2c] sm:$0xf] %vm1097_vm4, %v1072_v57 }
 0x1a9   : > { %v944_v63 = vpop.permute.xlu0 %943 }
 0x1aa   : > { %v971_v0 = vrot.slane %v944_v63, 4 }
 0x1ab   : > { %v946_v1 = vpop.permute.xlu1 %945 }
 0x1ac   : > { %v988_v2 = vsel %vm983_vm2, %v944_v63, %v971_v0  ;;  %v972_v3 = vrot.slane %v946_v1, 4 }
 0x1ad   : > { %1021 = vst.msk [vmem:[%s2009_s29 + $0x10] sm:$0xf] %vm1016_vm3, %v988_v2  ;;  %v960_v4 = vpop.permute.xlu0 %959 }
 0x1ae   : > { %v989_v5 = vsel %vm983_vm2, %v946_v1, %v972_v3  ;;  %v979_v7 = vrot.slane %v960_v4, 4 }
 0x1af   : > { %1022 = vst.msk [vmem:[%s2009_s29 + $0x14] sm:$0xf] %vm1016_vm3, %v989_v5  ;;  %v962_v46 = vpop.permute.xlu1 %961 }
 0x1b0   : > { %v996_v6 = vsel %vm983_vm2, %v960_v4, %v979_v7  ;;  %v980_v8 = vrot.slane %v962_v46, 4 }
 0x1b1   : > { %1029 = vst.msk [vmem:[%s2009_s29 + $0x30] sm:$0xf] %vm1016_vm3, %v996_v6  ;;  %v1058_v10 = vpop.permute.xlu0 %1057 }
 0x1b2   : > { %v997_v47 = vsel %vm983_vm2, %v962_v46, %v980_v8  ;;  %1102 = vst.msk [vmem:[%s2017_s22 + $0x10] sm:$0xf] %vm1097_vm4, %v1058_v10 }
 0x1b3   : > { %1030 = vst.msk [vmem:[%s2009_s29 + $0x34] sm:$0xf] %vm1016_vm3, %v997_v47  ;;  %v1060_v12 = vpop.permute.xlu1 %1059 }
 0x1b4   : > { %1103 = vst.msk [vmem:[%s2017_s22 + $0x14] sm:$0xf] %vm1097_vm4, %v1060_v12 }
 0x1b5   : > { %v1074_v48 = vpop.permute.xlu0 %1073 }
 0x1b6   : > { %1110 = vst.msk [vmem:[%s2017_s22 + $0x30] sm:$0xf] %vm1097_vm4, %v1074_v48 }
 0x1b7   : > { %v1076_v62 = vpop.permute.xlu1 %1075 }
 0x1b8   : > { %1111 = vst.msk [vmem:[%s2017_s22 + $0x34] sm:$0xf] %vm1097_vm4, %v1076_v62 }
 0x1b9   : > { %v948_v11 = vpop.permute.xlu0 %947 }
 0x1ba   : > { %v973_v13 = vrot.slane %v948_v11, 4 }
 0x1bb   : > { %v950_v14 = vpop.permute.xlu1 %949 }
 0x1bc   : > { %v990_v51 = vsel %vm983_vm2, %v948_v11, %v973_v13  ;;  %v974_v49 = vrot.slane %v950_v14, 4 }
 0x1bd   : > { %1023 = vst.msk [vmem:[%s2009_s29 + $0x18] sm:$0xf] %vm1016_vm3, %v990_v51  ;;  %v964_v15 = vpop.permute.xlu0 %963 }
 0x1be   : > { %v991_v9 = vsel %vm983_vm2, %v950_v14, %v974_v49  ;;  %v981_v16 = vrot.slane %v964_v15, 4 }
 0x1bf   : > { %1024 = vst.msk [vmem:[%s2009_s29 + $0x1c] sm:$0xf] %vm1016_vm3, %v991_v9  ;;  %v966_v58 = vpop.permute.xlu1 %965 }
 0x1c0   : > { %v998_v52 = vsel %vm983_vm2, %v964_v15, %v981_v16  ;;  %v982_v59 = vrot.slane %v966_v58, 4 }
 0x1c1   : > { %1031 = vst.msk [vmem:[%s2009_s29 + $0x38] sm:$0xf] %vm1016_vm3, %v998_v52  ;;  %v1062_v17 = vpop.permute.xlu0 %1061 }
 0x1c2   : > { %v999_v18 = vsel %vm983_vm2, %v966_v58, %v982_v59  ;;  %1104 = vst.msk [vmem:[%s2017_s22 + $0x18] sm:$0xf] %vm1097_vm4, %v1062_v17 }
 0x1c3   : > { %1032 = vst.msk [vmem:[%s2009_s29 + $0x3c] sm:$0xf] %vm1016_vm3, %v999_v18  ;;  %v1064_v19 = vpop.permute.xlu1 %1063 }
 0x1c4   : > { %1105 = vst.msk [vmem:[%s2017_s22 + $0x1c] sm:$0xf] %vm1097_vm4, %v1064_v19 }
 0x1c5   : > { %v1078_v20 = vpop.permute.xlu0 %1077 }
 0x1c6   : > { %1112 = vst.msk [vmem:[%s2017_s22 + $0x38] sm:$0xf] %vm1097_vm4, %v1078_v20 }
 0x1c7   : > { %v1080_v21 = vpop.permute.xlu1 %1079 }
 0x1c8   : > { %1113 = vst.msk [vmem:[%s2017_s22 + $0x3c] sm:$0xf] %vm1097_vm4, %v1080_v21 }
 0x1c9 PF: > { %s17_s25 = sadd.s32 1, %s1624_s25   ;;  %s2118_s21 = smov %s1616_s23 }
 0x1ca   : > { %p14_p7 = scmp.ge.s32.totalorder %s17_s25, 6   ;;  %s2119_s22 = smov %s1620_s24 }
 0x1cb   : > { %s2120_s23 = smov %s2123_s26  ;;  %s2121_s24 = smov %s2127_s27 }
 0x1cc   :  { %16 = sbr.rel (!%p14_p7) target bundleno = 3 (0x3), region = 90 }

// kernel: mixed_5b_forward.9
= control target key start
LH: loop header
LB: loop body
LE: loop exit
PB: predicated region body
PF: predicated region fallthrough
CT: control target
= control target key end

     0   :  { %s2301_s18 = smov 0   ;;  %s3389_s0 = inlined_call_operand.vmem [shape: bf16[2,16,16,192], index: 0, kind: input, shape index: {}]   ;;  %s3390_s1 = inlined_call_operand.vmem [shape: f32[256,1], index: 1, kind: input, shape index: {}]   ;;  %s3391_s2 = inlined_call_operand.vmem [shape: bf16[192,64], index: 2, kind: input, shape index: {}]   ;;  %s3392_s3 = inlined_call_operand.vmem [shape: f32[1,64], index: 3, kind: input, shape index: {}]   ;;  %s3393_s4 = inlined_call_operand.vmem [shape: f32[1,64], index: 4, kind: input, shape index: {}]   ;;  %s3394_s5 = inlined_call_operand.vmem [shape: f32[2,16,16,64], index: 5, kind: output, shape index: {}]  }
   0x1 LB: > { %s2172_s19 = sadd.s32 4294967295, %s2268_s18   ;;  %p2176_p0 = scmp.ge.s32.totalorder %s2268_s18, 1  ;;  %s2268_s18 = sphi %s2301_s18, %s15_s18  }
   0x2   : > { %p187_p1 = scmp.lt.s32.totalorder %s2268_s18, 3 }
   0x4   : > { %p188_p2 = pnand %p2176_p0, %p187_p1 }
   0x5   : > { %v2250_v0 = vld [vmem:[%s3391_s2] sm:$0xff] (!%p188_p2)   ;;  %v2270_v1 = vmov (!%p188_p2), 0   ;;  %p215_p3 = scmp.lt.s32.totalorder (!%p188_p2), %s2172_s19, 1  ;;  %v2251_v2 = vld [vmem:[%s3391_s2 + $0x8] sm:$0xff] (!%p188_p2)   ;;  %v2252_v3 = vld [vmem:[%s3391_s2 + $0x10] sm:$0xff] (!%p188_p2)   ;;  %vm386_vm0 = vcmask (!%p188_p2), 1040384  }
   0x6   : > { %191 = sbr.rel (%p188_p2) target bundleno = 457 (0x1c9), region = 40  ;;  %1590 = vmatprep.subr.bf16.mxu0 (!%p188_p2), %v2270_v1  ;;  %2215 = vmatprep.subr.bf16.mxu1 (!%p188_p2), %v2270_v1  ;;  %v2253_v4 = vld [vmem:[%s3391_s2 + $0x18] sm:$0xff] (!%p188_p2)   ;;  %vm707_vm1 = vcmask (!%p188_p2), 1046528   ;;  %v2254_v15 = vld [vmem:[%s3391_s2 + $0x20] sm:$0xff] (!%p188_p2)   ;;  %vm996_vm2 = vcmask (!%p188_p2), 1045504   ;;  %v2255_v33 = vld [vmem:[%s3391_s2 + $0x28] sm:$0xff] (!%p188_p2)  }
   0x7   : > { %1591 = vmatpush1.bf16.msra.mxu0 (!%p188_p2), %v2250_v0  ;;  %2227 = vmatpush1.bf16.msra.mxu1 (!%p188_p2), %v2250_v0  ;;  %v1753_v38 = vld [vmem:[%s3390_s1 + $0x10] sm:$0xff] (!%p188_p2)  ;;  %v1751_v39 = vld [vmem:[%s3390_s1] sm:$0xff] (!%p188_p2)  ;;  %vm1541_vm3 = vcmask (!%p188_p2), 523264  }
   0x8   : > { %1592 = vmatprep.subr.bf16.mxu0 (!%p188_p2), %v2270_v1  ;;  %2216 = vmatprep.subr.bf16.mxu1 (!%p188_p2), %v2270_v1  ;;  %v2256_v52 = vld [vmem:[%s3391_s2 + $0x30] sm:$0xff] (!%p188_p2)  }
   0x9   : > { %2249 = vset.pattern.permute.xlu1 (!%p188_p2), %v2270_v1  ;;  %2248 = vset.pattern.permute.xlu0 (!%p188_p2), %v2270_v1 }
   0xa   : > { %1795 = vperm.xlu1 (!%p188_p2), %2249, %v1753_v38   ;;  %1785 = vperm.xlu0 (!%p188_p2), %2248, %v1751_v39  }
   0xb   : > { %1593 = vmatpush1.bf16.msra.mxu0 (!%p188_p2), %v2251_v2  ;;  %2228 = vmatpush1.bf16.msra.mxu1 (!%p188_p2), %v2251_v2 }
   0xc   : > { %1594 = vmatprep.subr.bf16.mxu0 (!%p188_p2), %v2270_v1  ;;  %2217 = vmatprep.subr.bf16.mxu1 (!%p188_p2), %v2270_v1 }
   0xd   : > { %s3396_s19 = smov (!%p215_p3, %s2172_s19), 1 }
   0xe   : > { %s2213_s26 = sshll.u32 %s3396_s19, 8 }
   0xf   : > { %1595 = vmatpush1.bf16.msra.mxu0 %v2252_v3  ;;  %2229 = vmatpush1.bf16.msra.mxu1 %v2252_v3  ;;  %s2339_s6 = scalar_lea.vmem %s3389_s0, %s2213_s26  ;;  %s3243_s8 = scalar_lea.vmem %s3394_s5, %s2213_s26 }
  0x10   : > { %1596 = vmatprep.subr.bf16.mxu0 %v2270_v1  ;;  %2218 = vmatprep.subr.bf16.mxu1 %v2270_v1  ;;  %v2342_v5 = vld [vmem:[%s2339_s6] sm:$0xff]  ;;  %v2345_v6 = vld [vmem:[%s2339_s6 + $0x8] sm:$0xff]  ;;  %v2348_v7 = vld [vmem:[%s2339_s6 + $0x10] sm:$0xff] }
  0x11   : > { %v2351_v8 = vld [vmem:[%s2339_s6 + $0x18] sm:$0xff]  ;;  %v2354_v9 = vld [vmem:[%s2339_s6 + $0x20] sm:$0xff]  ;;  %v2357_v10 = vld [vmem:[%s2339_s6 + $0x28] sm:$0xff]  ;;  %v258_v11 = vunpack.c.l.bf16 %v2342_v5  ;;  %v259_v12 = vunpack.c.h.bf16 %v2342_v5  ;;  %v260_v13 = vunpack.c.l.bf16 %v2345_v6  ;;  %v261_v14 = vunpack.c.h.bf16 %v2345_v6 }
  0x12   : > { %v262_v16 = vunpack.c.l.bf16 %v2348_v7  ;;  %v263_v17 = vunpack.c.h.bf16 %v2348_v7  ;;  %v264_v18 = vunpack.c.l.bf16 %v2351_v8  ;;  %v265_v19 = vunpack.c.h.bf16 %v2351_v8  ;;  %v2371_v20 = vld [vmem:[%s2339_s6 + $0x70] sm:$0xff] }
  0x13   : > { %1597 = vmatpush1.bf16.msra.mxu0 %v2253_v4  ;;  %2230 = vmatpush1.bf16.msra.mxu1 %v2253_v4  ;;  %v267_v21 = vunpack.c.h.bf16 %v2354_v9  ;;  %v269_v22 = vunpack.c.h.bf16 %v2357_v10  ;;  %v388_v23 = vrot.slane %v259_v12, 7  ;;  %v391_v24 = vrot.slane %v261_v14, 7  ;;  %v2425_v14 = vld [vmem:[%s2339_s6 + $0x78] sm:$0xff]  ;;  %v2260_v5 = vld [vmem:[%s3391_s2 + $0x50] sm:$0xff]  }
  0x14   : > { %1598 = vmatprep.subr.bf16.mxu0 %v2270_v1  ;;  %2219 = vmatprep.subr.bf16.mxu1 %v2270_v1  ;;  %v394_v25 = vrot.slane %v263_v17, 7  ;;  %v397_v26 = vrot.slane %v265_v19, 7  ;;  %v286_v27 = vunpack.c.l.bf16 %v2371_v20  ;;  %v287_v28 = vunpack.c.h.bf16 %v2371_v20  ;;  %v1752_v17 = vld [vmem:[%s3390_s1 + $0x8] sm:$0xff]  ;;  %v2257_v19 = vld [vmem:[%s3391_s2 + $0x38] sm:$0xff]  }
  0x15   : > { %v2380_v29 = vsel %vm386_vm0, %v388_v23, %v391_v24  ;;  %v400_v30 = vrot.slane %v267_v21, 7  ;;  %v403_v31 = vrot.slane %v269_v22, 7  ;;  %v580_v32 = vsel %vm386_vm0, 0.0, %v388_v23  ;;  %1790 = vperm.xlu0 %2248, %v1752_v17  }
  0x16   : > { %v2387_v34 = vsel %vm386_vm0, %v394_v25, %v397_v26  ;;  %v582_v35 = vsel %vm386_vm0, 0.0, %v394_v25  ;;  %v612_v36 = vsel %vm386_vm0, %v391_v24, 0.0  ;;  %v614_v37 = vsel %vm386_vm0, %v397_v26, 0.0 }
  0x17   : > { %1599 = vmatpush1.bf16.msra.mxu0 %v2254_v15  ;;  %2231 = vmatpush1.bf16.msra.mxu1 %v2254_v15  ;;  %v2401_v40 = vsel %vm386_vm0, %v400_v30, %v403_v31  ;;  %v584_v41 = vsel %vm386_vm0, 0.0, %v400_v30  ;;  %v616_v42 = vsel %vm386_vm0, %v403_v31, 0.0  ;;  %v711_v43 = vrot.slane %v580_v32, 1  ;;  %v1754_v15 = vld [vmem:[%s3390_s1 + $0x18] sm:$0xff]  ;;  %v2442_v31 = vld [vmem:[%s2339_s6 + $0x80] sm:$0xff] }
  0x18   : > { %1600 = vmatprep.subr.bf16.mxu0 %v2270_v1  ;;  %2220 = vmatprep.subr.bf16.mxu1 %v2270_v1  ;;  %v712_v44 = vrot.slane %v2380_v29, 1  ;;  %v716_v45 = vrot.slane %v612_v36, 1  ;;  %v721_v46 = vrot.slane %v582_v35, 1  ;;  %v722_v47 = vrot.slane %v2387_v34, 1 }
  0x19   : > { %v726_v48 = vrot.slane %v614_v37, 1  ;;  %v731_v49 = vrot.slane %v584_v41, 1  ;;  %v732_v50 = vrot.slane %v2401_v40, 1  ;;  %v736_v51 = vrot.slane %v616_v42, 1  ;;  %1800 = vperm.xlu1 %2249, %v1754_v15  }
  0x1a   : > { %v713_v53 = vsel %vm707_vm1, %v711_v43, %v712_v44  ;;  %v717_v54 = vsel %vm707_vm1, %v712_v44, %v716_v45  ;;  %v723_v55 = vsel %vm707_vm1, %v721_v46, %v722_v47  ;;  %v1000_v56 = vrot.slane %v580_v32, 2  ;;  %v1755_v43 = vld [vmem:[%s3390_s1 + $0x20] sm:$0xff] }
  0x1b   : > { %1601 = vmatpush1.bf16.msra.mxu0 %v2255_v33  ;;  %2232 = vmatpush1.bf16.msra.mxu1 %v2255_v33  ;;  %v727_v57 = vsel %vm707_vm1, %v722_v47, %v726_v48  ;;  %v733_v58 = vsel %vm707_vm1, %v731_v49, %v732_v50  ;;  %v737_v59 = vsel %vm707_vm1, %v732_v50, %v736_v51  ;;  %v1001_v60 = vrot.slane %v2380_v29, 2  ;;  %v2258_v44 = vld [vmem:[%s3391_s2 + $0x40] sm:$0xff]   ;;  %v2473_v51 = vld [vmem:[%s2339_s6 + $0x98] sm:$0xff] }
  0x1c   : > { %1602 = vmatprep.subr.bf16.mxu0 %v2270_v1  ;;  %2221 = vmatprep.subr.bf16.mxu1 %v2270_v1  ;;  %v933_v61 = vadd.f32 %v713_v53, %v580_v32  ;;  %v935_v62 = vadd.f32 %v717_v54, %v2380_v29  ;;  %v937_v63 = vadd.f32 %v723_v55, %v582_v35  ;;  %v1005_v12 = vrot.slane %v612_v36, 2 }
  0x1d   : > { %v939_v0 = vadd.f32 %v727_v57, %v2387_v34  ;;  %v941_v2 = vadd.f32 %v733_v58, %v584_v41  ;;  %v943_v3 = vadd.f32 %v737_v59, %v2401_v40  ;;  %v1002_v4 = vsel %vm996_vm2, %v1000_v56, %v1001_v60  ;;  %1805 = vperm.xlu0 %2248, %v1755_v43  }
  0x1e   : > { %v1010_v21 = vrot.slane %v582_v35, 2  ;;  %v1011_v22 = vrot.slane %v2387_v34, 2  ;;  %v1015_v23 = vrot.slane %v614_v37, 2  ;;  %v1020_v24 = vrot.slane %v584_v41, 2  ;;  %v2447_v35 = vld [vmem:[%s2339_s6 + $0x88] sm:$0xff]  ;;  %v2453_v41 = vld [vmem:[%s2339_s6 + $0x90] sm:$0xff] }
  0x1f   : > { %1603 = vmatpush1.bf16.msra.mxu0 %v2256_v52  ;;  %2233 = vmatpush1.bf16.msra.mxu1 %v2256_v52  ;;  %v1006_v25 = vsel %vm996_vm2, %v1001_v60, %v1005_v12  ;;  %v1021_v26 = vrot.slane %v2401_v40, 2  ;;  %v1025_v29 = vrot.slane %v616_v42, 2  ;;  %v1222_v30 = vadd.f32 %v1002_v4, %v933_v61  ;;  %v1756_v42 = vld [vmem:[%s3390_s1 + $0x28] sm:$0xff] }
  0x20   : > { %1604 = vmatprep.subr.bf16.mxu0 %v2270_v1  ;;  %2222 = vmatprep.subr.bf16.mxu1 %v2270_v1  ;;  %v1012_v32 = vsel %vm996_vm2, %v1010_v21, %v1011_v22  ;;  %v1016_v33 = vsel %vm996_vm2, %v1011_v22, %v1015_v23  ;;  %v1224_v34 = vadd.f32 %v1006_v25, %v935_v62  ;;  %v288_v36 = vunpack.c.l.bf16 %v2425_v14  ;;  %v2259_v62 = vld [vmem:[%s3391_s2 + $0x48] sm:$0xff]  }
  0x21   : > { %v1022_v37 = vsel %vm996_vm2, %v1020_v24, %v1021_v26  ;;  %v1026_v38 = vsel %vm996_vm2, %v1021_v26, %v1025_v29  ;;  %v1226_v39 = vadd.f32 %v1012_v32, %v937_v63  ;;  %v1228_v40 = vadd.f32 %v1016_v33, %v939_v0  ;;  %1810 = vperm.xlu1 %2249, %v1756_v42  }
  0x22   : > { %v2464_v45 = vadd.f32 %v1022_v37, %v941_v2  ;;  %v2466_v46 = vadd.f32 %v1026_v38, %v943_v3  ;;  %v289_v47 = vunpack.c.h.bf16 %v2425_v14  ;;  %v290_v48 = vunpack.c.l.bf16 %v2442_v31 }
  0x23   : > { %1605 = vmatpush1.bf16.msra.mxu0 %v2257_v19  ;;  %2234 = vmatpush1.bf16.msra.mxu1 %v2257_v19  ;;  %v1290_v49 = vadd.f32 %v1226_v39, %v1222_v30  ;;  %v1292_v50 = vadd.f32 %v1228_v40, %v1224_v34  ;;  %v291_v52 = vunpack.c.h.bf16 %v2442_v31  ;;  %v292_v53 = vunpack.c.l.bf16 %v2447_v35 }
  0x24   : > { %1606 = vmatprep.subr.bf16.mxu0 %v2270_v1  ;;  %2223 = vmatprep.subr.bf16.mxu1 %v2270_v1  ;;  %v2478_v54 = vadd.f32 %v2464_v45, %v1226_v39  ;;  %v2481_v55 = vadd.f32 %v2466_v46, %v1228_v40  ;;  %v293_v56 = vunpack.c.h.bf16 %v2447_v35  ;;  %v294_v57 = vunpack.c.l.bf16 %v2453_v41 }
  0x25   : > { %v2486_v58 = vadd.f32 %v1290_v49, %v2464_v45  ;;  %v2489_v59 = vadd.f32 %v1292_v50, %v2466_v46  ;;  %v1414_v60 = vpack.c.bf16 %v1292_v50, %v1290_v49  ;;  %v295_v61 = vunpack.c.h.bf16 %v2453_v41 }
  0x26   : > { %v296_v63 = vunpack.c.l.bf16 %v2473_v51  ;;  %v297_v0 = vunpack.c.h.bf16 %v2473_v51  ;;  %v430_v2 = vrot.slane %v287_v28, 7  ;;  %v433_v3 = vrot.slane %v289_v47, 7 }
  0x27   : > { %1607 = vmatpush1.bf16.msra.mxu0 %v2258_v44  ;;  %2235 = vmatpush1.bf16.msra.mxu1 %v2258_v44  ;;  %v436_v4 = vrot.slane %v291_v52, 7  ;;  %v439_v12 = vrot.slane %v293_v56, 7  ;;  %v442_v15 = vrot.slane %v295_v61, 7  ;;  %v2503_v17 = vrot.slane %v258_v11, 7  ;;  %v2261_v52 = vld [vmem:[%s3391_s2 + $0x58] sm:$0xff]  }
  0x28   : > { %1608 = vmatprep.subr.bf16.mxu0 %v2270_v1  ;;  %2224 = vmatprep.subr.bf16.mxu1 %v2270_v1  ;;  %v434_v19 = vsel %vm386_vm0, %v430_v2, %v433_v3  ;;  %v445_v21 = vrot.slane %v297_v0, 7  ;;  %v594_v22 = vsel %vm386_vm0, 0.0, %v430_v2  ;;  %v626_v28 = vsel %vm386_vm0, %v433_v3, 0.0 }
  0x29   : > { %2193 = vmatprep.mubr.msk.bf16.mxu0 %vm1541_vm3, %v1414_v60  ;;  %v440_v23 = vsel %vm386_vm0, %v436_v4, %v439_v12  ;;  %v596_v24 = vsel %vm386_vm0, 0.0, %v436_v4  ;;  %v598_v25 = vsel %vm386_vm0, 0.0, %v442_v15  ;;  %v628_v26 = vsel %vm386_vm0, %v439_v12, 0.0 }
  0x2a   : > { %v446_v11 = vsel %vm386_vm0, %v442_v15, %v445_v21  ;;  %v630_v29 = vsel %vm386_vm0, %v445_v21, 0.0  ;;  %v781_v30 = vrot.slane %v594_v22, 1  ;;  %v782_v32 = vrot.slane %v434_v19, 1 }
  0x2b   : > { %1609 = vmatpush1.bf16.msra.mxu0 %v2259_v62  ;;  %2236 = vmatpush1.bf16.msra.mxu1 %v2259_v62  ;;  %v786_v33 = vrot.slane %v626_v28, 1  ;;  %v791_v34 = vrot.slane %v596_v24, 1  ;;  %v792_v37 = vrot.slane %v440_v23, 1  ;;  %v796_v38 = vrot.slane %v628_v26, 1 }
  0x2c   : > { %1610 = vmatprep.subr.bf16.mxu0 %v2270_v1  ;;  %2225 = vmatprep.subr.bf16.mxu1 %v2270_v1  ;;  %v783_v39 = vsel %vm707_vm1, %v781_v30, %v782_v32  ;;  %v801_v40 = vrot.slane %v598_v25, 1  ;;  %v802_v42 = vrot.slane %v446_v11, 1  ;;  %v806_v43 = vrot.slane %v630_v29, 1 }
  0x2d   : > { %v787_v44 = vsel %vm707_vm1, %v782_v32, %v786_v33  ;;  %v793_v47 = vsel %vm707_vm1, %v791_v34, %v792_v37  ;;  %v797_v49 = vsel %vm707_vm1, %v792_v37, %v796_v38  ;;  %v961_v50 = vadd.f32 %v783_v39, %v594_v22 }
  0x2e   : > { %v803_v56 = vsel %vm707_vm1, %v801_v40, %v802_v42  ;;  %v807_v60 = vsel %vm707_vm1, %v802_v42, %v806_v43  ;;  %v963_v61 = vadd.f32 %v787_v44, %v434_v19  ;;  %v1070_v62 = vrot.slane %v594_v22, 2 }
  0x2f   : > { %1611 = vmatpush1.bf16.msra.mxu0 %v2260_v5  ;;  %2237 = vmatpush1.bf16.msra.mxu1 %v2260_v5  ;;  %v965_v0 = vadd.f32 %v793_v47, %v596_v24  ;;  %v967_v2 = vadd.f32 %v797_v49, %v440_v23  ;;  %v969_v3 = vadd.f32 %v803_v56, %v598_v25  ;;  %v1071_v4 = vrot.slane %v434_v19, 2 }
  0x30   : > { %1612 = vmatprep.subr.bf16.mxu0 %v2270_v1  ;;  %2226 = vmatprep.subr.bf16.mxu1 %v2270_v1  ;;  %v971_v12 = vadd.f32 %v807_v60, %v446_v11  ;;  %v1075_v15 = vrot.slane %v626_v28, 2  ;;  %v1080_v21 = vrot.slane %v596_v24, 2  ;;  %v1081_v5 = vrot.slane %v440_v23, 2  ;;  %v1758_v60 = vld [vmem:[%s3390_s1 + $0x38] sm:$0xff] }
  0x31   : > { %v1072_v30 = vsel %vm996_vm2, %v1070_v62, %v1071_v4  ;;  %v1085_v32 = vrot.slane %v628_v26, 2  ;;  %v1090_v33 = vrot.slane %v598_v25, 2  ;;  %v1091_v34 = vrot.slane %v446_v11, 2  ;;  %1820 = vperm.xlu1 %2249, %v1758_v60  }
  0x32   : > { %v1076_v22 = vsel %vm996_vm2, %v1071_v4, %v1075_v15  ;;  %v1082_v37 = vsel %vm996_vm2, %v1080_v21, %v1081_v5  ;;  %v1095_v1 = vrot.slane %v630_v29, 2  ;;  %v2534_v38 = vadd.f32 %v1072_v30, %v961_v50  ;;  %v1760_v21 = vld [vmem:[%s3390_s1 + $0x48] sm:$0xff] }
  0x33   : > { %1613 = vmatpush1.bf16.msra.mxu0 %v2261_v52  ;;  %2238 = vmatpush1.bf16.msra.mxu1 %v2261_v52  ;;  %v1086_v19 = vsel %vm996_vm2, %v1081_v5, %v1085_v32  ;;  %v1092_v28 = vsel %vm996_vm2, %v1090_v33, %v1091_v34  ;;  %v2538_v24 = vadd.f32 %v1076_v22, %v963_v61  ;;  %v389_v39 = vrot.slane %v260_v13, 7  ;;  %v1759_v5 = vld [vmem:[%s3390_s1 + $0x40] sm:$0xff] }
  0x34   : > { %v2540_v23 = vadd.f32 %v1082_v37, %v965_v0  ;;  %v1096_v25 = vsel %vm996_vm2, %v1091_v34, %v1095_v1  ;;  %v2543_v26 = vadd.f32 %v1086_v19, %v967_v2  ;;  %v2545_v11 = vadd.f32 %v1092_v28, %v969_v3 }
  0x35   : > { %v2549_v29 = vadd.f32 %v1096_v25, %v971_v12  ;;  %v393_v42 = vrot.slane %v262_v16, 7  ;;  %v395_v43 = vrot.slane %v264_v18, 7  ;;  %v390_v47 = vsel %vm386_vm0, %v2503_v17, %v389_v39  ;;  %1830 = vperm.xlu1 %2249, %v1760_v21  }
  0x36   : > { %v1318_v40 = vadd.f32 %v2540_v23, %v2534_v38  ;;  %v1320_v44 = vadd.f32 %v2543_v26, %v2538_v24  ;;  %v579_v6 = vsel %vm386_vm0, 0.0, %v2503_v17  ;;  %v611_v13 = vsel %vm386_vm0, %v389_v39, 0.0  ;;  %v1757_v17 = vld [vmem:[%s3390_s1 + $0x30] sm:$0xff] }
  0x37   : > { %v396_v50 = vsel %vm386_vm0, %v393_v42, %v395_v43  ;;  %v581_v7 = vsel %vm386_vm0, 0.0, %v393_v42  ;;  %v613_v8 = vsel %vm386_vm0, %v395_v43, 0.0  ;;  %v708_v18 = vrot.slane %v579_v6, 1  ;;  %1815 = vperm.xlu0 %2248, %v1757_v17  }
  0x38   : > { %v1382_v49 = vadd.f32 %v1318_v40, %v2545_v11  ;;  %v1384_v16 = vadd.f32 %v1320_v44, %v2549_v29  ;;  %v709_v52 = vrot.slane %v390_v47, 1  ;;  %v714_v56 = vrot.slane %v611_v13, 1 }
  0x39   : > { %v718_v61 = vrot.slane %v581_v7, 1  ;;  %v719_v62 = vrot.slane %v396_v50, 1  ;;  %v724_v0 = vrot.slane %v613_v8, 1  ;;  %v997_v2 = vrot.slane %v579_v6, 2 }
  0x3a   : > { %v1430_v3 = vpack.c.bf16 %v1384_v16, %v1382_v49  ;;  %v710_v4 = vsel %vm707_vm1, %v708_v18, %v709_v52  ;;  %v715_v12 = vsel %vm707_vm1, %v709_v52, %v714_v56  ;;  %v998_v15 = vrot.slane %v390_v47, 2 }
  0x3b   : > { %v720_v30 = vsel %vm707_vm1, %v718_v61, %v719_v62  ;;  %v725_v32 = vsel %vm707_vm1, %v719_v62, %v724_v0  ;;  %v932_v33 = vadd.f32 %v710_v4, %v579_v6  ;;  %v934_v34 = vadd.f32 %v715_v12, %v390_v47  ;;  %1825 = vperm.xlu0 %2248, %v1759_v5  }
  0x3c   : > { %2201 = vmatprep.mubr.msk.bf16.mxu1 %vm1541_vm3, %v1430_v3  ;;  %v936_v22 = vadd.f32 %v720_v30, %v581_v7  ;;  %v938_v37 = vadd.f32 %v725_v32, %v396_v50  ;;  %v999_v1 = vsel %vm996_vm2, %v997_v2, %v998_v15  ;;  %v1003_v19 = vrot.slane %v611_v13, 2 }
  0x3d   : > { %v1007_v28 = vrot.slane %v581_v7, 2  ;;  %v1008_v25 = vrot.slane %v396_v50, 2  ;;  %v1013_v39 = vrot.slane %v613_v8, 2  ;;  %v1221_v40 = vadd.f32 %v999_v1, %v932_v33 }
  0x3e   : > { %v1004_v42 = vsel %vm996_vm2, %v998_v15, %v1003_v19  ;;  %v429_v43 = vrot.slane %v286_v27, 7  ;;  %v431_v44 = vrot.slane %v288_v36, 7  ;;  %v435_v47 = vrot.slane %v290_v48, 7 }
  0x3f   : > { %v1009_v6 = vsel %vm996_vm2, %v1007_v28, %v1008_v25  ;;  %v1014_v13 = vsel %vm996_vm2, %v1008_v25, %v1013_v39  ;;  %v1223_v49 = vadd.f32 %v1004_v42, %v934_v34  ;;  %v437_v50 = vrot.slane %v292_v53, 7 }
  0x40   : > { %v2598_v7 = vadd.f32 %v1009_v6, %v936_v22  ;;  %v2600_v8 = vadd.f32 %v1014_v13, %v938_v37  ;;  %v432_v20 = vsel %vm386_vm0, %v429_v43, %v431_v44  ;;  %v441_v27 = vrot.slane %v294_v57, 7 }
  0x41   : > { %v438_v14 = vsel %vm386_vm0, %v435_v47, %v437_v50  ;;  %v443_v31 = vrot.slane %v296_v63, 7  ;;  %v593_v36 = vsel %vm386_vm0, 0.0, %v429_v43  ;;  %v595_v48 = vsel %vm386_vm0, 0.0, %v435_v47 }
  0x42   : > { %v2611_v35 = vadd.f32 %v2598_v7, %v1221_v40  ;;  %v2614_v53 = vadd.f32 %v2600_v8, %v1223_v49  ;;  %v597_v16 = vsel %vm386_vm0, 0.0, %v441_v27  ;;  %v625_v41 = vsel %vm386_vm0, %v431_v44, 0.0  ;;  %v2632_v49 = vld [vmem:[%s2339_s6 + $0xa0] sm:$0xff] }
  0x43   : > { %v444_v57 = vsel %vm386_vm0, %v441_v27, %v443_v31  ;;  %v627_v18 = vsel %vm386_vm0, %v437_v50, 0.0  ;;  %v629_v51 = vsel %vm386_vm0, %v443_v31, 0.0  ;;  %v778_v63 = vrot.slane %v593_v36, 1 }
  0x44   : > { %v1413_v52 = vpack.c.bf16 %v2614_v53, %v2611_v35  ;;  %v779_v56 = vrot.slane %v432_v20, 1  ;;  %v784_v60 = vrot.slane %v625_v41, 1  ;;  %v788_v17 = vrot.slane %v595_v48, 1 }
  0x45   : > { %v789_v61 = vrot.slane %v438_v14, 1  ;;  %v794_v62 = vrot.slane %v627_v18, 1  ;;  %v798_v0 = vrot.slane %v597_v16, 1  ;;  %v799_v2 = vrot.slane %v444_v57, 1 }
  0x46   : > { %1623 = vmatmul.mubr.bf16.vlgmr.msra.gmra.mrb[0].mxu0 %v1413_v52  ;;  %v780_v3 = vsel %vm707_vm1, %v778_v63, %v779_v56  ;;  %v785_v4 = vsel %vm707_vm1, %v779_v56, %v784_v60  ;;  %v804_v12 = vrot.slane %v629_v51, 1  ;;  %v1067_v15 = vrot.slane %v593_v36, 2 }
  0x47   : > { %v790_v21 = vsel %vm707_vm1, %v788_v17, %v789_v61  ;;  %v795_v5 = vsel %vm707_vm1, %v789_v61, %v794_v62  ;;  %v800_v30 = vsel %vm707_vm1, %v798_v0, %v799_v2  ;;  %v960_v32 = vadd.f32 %v780_v3, %v593_v36  ;;  %v2641_v36 = vld [vmem:[%s2339_s6 + $0xa8] sm:$0xff] }
  0x48   : > { %v805_v33 = vsel %vm707_vm1, %v799_v2, %v804_v12  ;;  %v962_v34 = vadd.f32 %v785_v4, %v432_v20  ;;  %v964_v22 = vadd.f32 %v790_v21, %v595_v48  ;;  %v966_v37 = vadd.f32 %v795_v5, %v438_v14 }
  0x49   : > { %v968_v1 = vadd.f32 %v800_v30, %v597_v16  ;;  %v970_v19 = vadd.f32 %v805_v33, %v444_v57  ;;  %v1068_v28 = vrot.slane %v432_v20, 2  ;;  %v1073_v25 = vrot.slane %v625_v41, 2  ;;  %v1762_v30 = vld [vmem:[%s3390_s1 + $0x58] sm:$0xff] }
  0x4a   : > { %v1077_v39 = vrot.slane %v595_v48, 2  ;;  %v1078_v40 = vrot.slane %v438_v14, 2  ;;  %v1083_v42 = vrot.slane %v627_v18, 2  ;;  %v1087_v43 = vrot.slane %v597_v16, 2  ;;  %1840 = vperm.xlu1 %2249, %v1762_v30  }
  0x4b   : > { %v1069_v44 = vsel %vm996_vm2, %v1067_v15, %v1068_v28  ;;  %v1074_v47 = vsel %vm996_vm2, %v1068_v28, %v1073_v25  ;;  %v1088_v6 = vrot.slane %v444_v57, 2  ;;  %v1093_v13 = vrot.slane %v629_v51, 2  ;;  %v1764_v28 = vld [vmem:[%s3390_s1 + $0x68] sm:$0xff]  ;;  %v1763_v25 = vld [vmem:[%s3390_s1 + $0x60] sm:$0xff] }
  0x4c   : > { %v1079_v50 = vsel %vm996_vm2, %v1077_v39, %v1078_v40  ;;  %v1084_v27 = vsel %vm996_vm2, %v1078_v40, %v1083_v42  ;;  %v2636_v31 = vadd.f32 %v1069_v44, %v960_v32  ;;  %v2638_v20 = vadd.f32 %v1074_v47, %v962_v34 }
  0x4d   : > { %v1089_v14 = vsel %vm996_vm2, %v1087_v43, %v1088_v6  ;;  %v1094_v48 = vsel %vm996_vm2, %v1088_v6, %v1093_v13  ;;  %v2645_v16 = vadd.f32 %v1079_v50, %v964_v22  ;;  %v2647_v41 = vadd.f32 %v1084_v27, %v966_v37 }
  0x4e   : > { %v2649_v57 = vadd.f32 %v1089_v14, %v968_v1  ;;  %v2651_v18 = vadd.f32 %v1094_v48, %v970_v19  ;;  %v1416_v51 = vpack.c.bf16 %v2489_v59, %v2486_v58  ;;  %v299_v63 = vunpack.c.h.bf16 %v2632_v49  ;;  %1850 = vperm.xlu1 %2249, %v1764_v28  }
  0x4f   : > { %v1317_v52 = vadd.f32 %v2645_v16, %v2636_v31  ;;  %v1319_v56 = vadd.f32 %v2647_v41, %v2638_v20  ;;  %v301_v60 = vunpack.c.h.bf16 %v2641_v36  ;;  %v1322_v17 = vadd.f32 %v2545_v11, %v2540_v23 }
  0x50   : > { %2194 = vmatprep.mubr.msk.bf16.mxu0 %vm1541_vm3, %v1416_v51  ;;  %v448_v61 = vrot.slane %v299_v63, 7  ;;  %v1324_v62 = vadd.f32 %v2549_v29, %v2543_v26  ;;  %v266_v58 = vunpack.c.l.bf16 %v2354_v9  ;;  %v268_v59 = vunpack.c.l.bf16 %v2357_v10  ;;  %v1761_v9 = vld [vmem:[%s3390_s1 + $0x50] sm:$0xff] }
  0x51   : > { %v1381_v0 = vadd.f32 %v1317_v52, %v2649_v57  ;;  %v1383_v2 = vadd.f32 %v1319_v56, %v2651_v18  ;;  %v451_v3 = vrot.slane %v301_v60, 7  ;;  %v298_v4 = vunpack.c.l.bf16 %v2632_v49  ;;  %1835 = vperm.xlu0 %2248, %v1761_v9  }
  0x52   : > { %v600_v12 = vsel %vm386_vm0, 0.0, %v448_v61  ;;  %v399_v15 = vrot.slane %v266_v58, 7  ;;  %v401_v21 = vrot.slane %v268_v59, 7  ;;  %v300_v5 = vunpack.c.l.bf16 %v2641_v36 }
  0x53   : > { %v1429_v10 = vpack.c.bf16 %v1383_v2, %v1381_v0  ;;  %v452_v32 = vsel %vm386_vm0, %v448_v61, %v451_v3  ;;  %v632_v33 = vsel %vm386_vm0, %v451_v3, 0.0  ;;  %v811_v34 = vrot.slane %v600_v12, 1 }
  0x54   : > { %v812_v22 = vrot.slane %v452_v32, 1  ;;  %v816_v37 = vrot.slane %v632_v33, 1  ;;  %v1100_v1 = vrot.slane %v600_v12, 2  ;;  %v1101_v19 = vrot.slane %v452_v32, 2 }
  0x55   : > { %1687 = vmatmul.mubr.bf16.vlgmr.msra.gmra.mrb[0].mxu1 %v1429_v10  ;;  %v1105_v39 = vrot.slane %v632_v33, 2  ;;  %v402_v40 = vsel %vm386_vm0, %v399_v15, %v401_v21  ;;  %v583_v42 = vsel %vm386_vm0, 0.0, %v399_v15  ;;  %v615_v43 = vsel %vm386_vm0, %v401_v21, 0.0  ;;  %1845 = vperm.xlu0 %2248, %v1763_v25  }
  0x56   : > { %v813_v44 = vsel %vm707_vm1, %v811_v34, %v812_v22  ;;  %v817_v47 = vsel %vm707_vm1, %v812_v22, %v816_v37  ;;  %v1102_v6 = vsel %vm996_vm2, %v1100_v1, %v1101_v19  ;;  %v728_v13 = vrot.slane %v583_v42, 1  ;;  %v2716_v34 = vld [vmem:[%s2339_s6 + $0x30] sm:$0xff] }
  0x57   : > { %v973_v49 = vadd.f32 %v813_v44, %v600_v12  ;;  %v975_v50 = vadd.f32 %v817_v47, %v452_v32  ;;  %v1106_v27 = vsel %vm996_vm2, %v1101_v19, %v1105_v39  ;;  %v729_v36 = vrot.slane %v402_v40, 1 }
  0x58   : > { %v734_v14 = vrot.slane %v615_v43, 1  ;;  %v1017_v48 = vrot.slane %v583_v42, 2  ;;  %v1018_v51 = vrot.slane %v402_v40, 2  ;;  %v1023_v63 = vrot.slane %v615_v43, 2 }
  0x59   : > { %v2694_v52 = vadd.f32 %v1102_v6, %v973_v49  ;;  %v2696_v56 = vadd.f32 %v1106_v27, %v975_v50  ;;  %v730_v60 = vsel %vm707_vm1, %v728_v13, %v729_v36  ;;  %v447_v61 = vrot.slane %v298_v4, 7  ;;  %v2734_v6 = vld [vmem:[%s2339_s6 + $0xb8] sm:$0xff] }
  0x5a   : > { %v735_v58 = vsel %vm707_vm1, %v729_v36, %v734_v14  ;;  %v940_v59 = vadd.f32 %v730_v60, %v583_v42  ;;  %v1019_v0 = vsel %vm996_vm2, %v1017_v48, %v1018_v51  ;;  %v1024_v2 = vsel %vm996_vm2, %v1018_v51, %v1023_v63  ;;  %v2727_v42 = vld [vmem:[%s2339_s6 + $0xb0] sm:$0xff]  ;;  %v1766_v51 = vld [vmem:[%s3390_s1 + $0x78] sm:$0xff] }
  0x5b   : > { %v1386_v3 = vadd.f32 %v1322_v17, %v2694_v52  ;;  %v1388_v12 = vadd.f32 %v1324_v62, %v2696_v56  ;;  %v942_v15 = vadd.f32 %v735_v58, %v402_v40  ;;  %v449_v21 = vrot.slane %v300_v5, 7  ;;  %v2719_v5 = vld [vmem:[%s2339_s6 + $0x38] sm:$0xff]  ;;  %v1765_v63 = vld [vmem:[%s3390_s1 + $0x70] sm:$0xff]  ;;  %1860 = vperm.xlu1 %2249, %v1766_v51  }
  0x5c   : > { %v2704_v30 = vadd.f32 %v1019_v0, %v940_v59  ;;  %v599_v9 = vsel %vm386_vm0, 0.0, %v447_v61  ;;  %v1321_v4 = vadd.f32 %v2649_v57, %v2645_v16  ;;  %v1323_v10 = vadd.f32 %v2651_v18, %v2647_v41  ;;  %1855 = vperm.xlu0 %2248, %v1765_v63  }
  0x5d   : > { %v1432_v32 = vpack.c.bf16 %v1388_v12, %v1386_v3  ;;  %v2711_v33 = vadd.f32 %v1024_v2, %v942_v15  ;;  %v450_v17 = vsel %vm386_vm0, %v447_v61, %v449_v21  ;;  %v631_v62 = vsel %vm386_vm0, %v449_v21, 0.0  ;;  %v1768_v15 = vld [vmem:[%s3390_s1 + $0x88] sm:$0xff] }
  0x5e   : > { %v1353_v22 = vadd.f32 %v2611_v35, %v2704_v30  ;;  %v808_v37 = vrot.slane %v599_v9, 1  ;;  %v809_v1 = vrot.slane %v450_v17, 1  ;;  %v814_v19 = vrot.slane %v631_v62, 1 }
  0x5f   : > { %2202 = vmatprep.mubr.msk.bf16.mxu1 %vm1541_vm3, %v1432_v32  ;;  %v1355_v28 = vadd.f32 %v2614_v53, %v2711_v33  ;;  %v1097_v25 = vrot.slane %v599_v9, 2  ;;  %v1098_v39 = vrot.slane %v450_v17, 2  ;;  %v1103_v40 = vrot.slane %v631_v62, 2  ;;  %1870 = vperm.xlu1 %2249, %v1768_v15   ;;  %v1772_v15 = vld [vmem:[%s3390_s1 + $0xa8] sm:$0xff] }
  0x60   : > { %v810_v43 = vsel %vm707_vm1, %v808_v37, %v809_v1  ;;  %v815_v44 = vsel %vm707_vm1, %v809_v1, %v814_v19  ;;  %v271_v47 = vunpack.c.h.bf16 %v2716_v34  ;;  %v273_v35 = vunpack.c.h.bf16 %v2719_v5 }
  0x61   : > { %v1415_v13 = vpack.c.bf16 %v1355_v28, %v1353_v22  ;;  %v972_v49 = vadd.f32 %v810_v43, %v599_v9  ;;  %v974_v50 = vadd.f32 %v815_v44, %v450_v17  ;;  %v1099_v53 = vsel %vm996_vm2, %v1097_v25, %v1098_v39  ;;  %v1767_v17 = vld [vmem:[%s3390_s1 + $0x80] sm:$0xff] }
  0x62   : > { %v1104_v27 = vsel %vm996_vm2, %v1098_v39, %v1103_v40  ;;  %v406_v36 = vrot.slane %v271_v47, 7  ;;  %v409_v14 = vrot.slane %v273_v35, 7  ;;  %v303_v48 = vunpack.c.h.bf16 %v2727_v42  ;;  %1865 = vperm.xlu0 %2248, %v1767_v17  }
  0x63   : > { %1631 = vmatmul.mubr.bf16.gmra.mrb[4].mxu0 %v1415_v13  ;;  %v2745_v60 = vadd.f32 %v1099_v53, %v972_v49  ;;  %v2747_v61 = vadd.f32 %v1104_v27, %v974_v50  ;;  %v305_v58 = vunpack.c.h.bf16 %v2734_v6  ;;  %v2752_v59 = vadd.f32 %v2694_v52, %v2545_v11 }
  0x64   : > { %v410_v0 = vsel %vm386_vm0, %v406_v36, %v409_v14  ;;  %v586_v2 = vsel %vm386_vm0, 0.0, %v406_v36  ;;  %v618_v3 = vsel %vm386_vm0, %v409_v14, 0.0  ;;  %v454_v12 = vrot.slane %v303_v48, 7  ;;  %v1770_v36 = vld [vmem:[%s3390_s1 + $0x98] sm:$0xff]  ;;  %v1769_v14 = vld [vmem:[%s3390_s1 + $0x90] sm:$0xff] }
  0x65   : > { %v1385_v21 = vadd.f32 %v1321_v4, %v2745_v60  ;;  %v1387_v9 = vadd.f32 %v1323_v10, %v2747_v61  ;;  %v741_v32 = vrot.slane %v586_v2, 1  ;;  %v742_v11 = vrot.slane %v410_v0, 1  ;;  %1880 = vperm.xlu1 %2249, %v1770_v36  }
  0x66   : > { %v746_v62 = vrot.slane %v618_v3, 1  ;;  %v1030_v22 = vrot.slane %v586_v2, 2  ;;  %v1031_v37 = vrot.slane %v410_v0, 2  ;;  %v1035_v1 = vrot.slane %v618_v3, 2  ;;  %1875 = vperm.xlu0 %2248, %v1769_v14   ;;  %v1776_v14 = vld [vmem:[%s3390_s1 + $0xc8] sm:$0xff] }
  0x67   : > { %v1431_v19 = vpack.c.bf16 %v1387_v9, %v1385_v21  ;;  %v743_v28 = vsel %vm707_vm1, %v741_v32, %v742_v11  ;;  %v457_v25 = vrot.slane %v305_v58, 7  ;;  %v602_v39 = vsel %vm386_vm0, 0.0, %v454_v12 }
  0x68   : > { %v747_v4 = vsel %vm707_vm1, %v742_v11, %v746_v62  ;;  %v945_v10 = vadd.f32 %v743_v28, %v586_v2  ;;  %v1032_v40 = vsel %vm996_vm2, %v1030_v22, %v1031_v37  ;;  %v1036_v43 = vsel %vm996_vm2, %v1031_v37, %v1035_v1 }
  0x69   : > { %1695 = vmatmul.mubr.bf16.gmra.mrb[4].mxu1 %v1431_v19  ;;  %v947_v44 = vadd.f32 %v747_v4, %v410_v0  ;;  %v458_v47 = vsel %vm386_vm0, %v454_v12, %v457_v25  ;;  %v634_v35 = vsel %vm386_vm0, %v457_v25, 0.0  ;;  %v821_v13 = vrot.slane %v602_v39, 1  ;;  %1890 = vperm.xlu1 %2249, %v1772_v15  }
  0x6a   : > { %v2772_v49 = vadd.f32 %v1032_v40, %v945_v10  ;;  %v822_v50 = vrot.slane %v458_v47, 1  ;;  %v826_v53 = vrot.slane %v634_v35, 1  ;;  %v1110_v27 = vrot.slane %v602_v39, 2 }
  0x6b   : > { %v2780_v48 = vadd.f32 %v1036_v43, %v947_v44  ;;  %v1111_v51 = vrot.slane %v458_v47, 2  ;;  %v1115_v63 = vrot.slane %v634_v35, 2  ;;  %v1328_v58 = vadd.f32 %v2696_v56, %v2549_v29 }
  0x6c   : > { %v1358_v0 = vadd.f32 %v2478_v54, %v2772_v49  ;;  %v823_v2 = vsel %vm707_vm1, %v821_v13, %v822_v50  ;;  %v827_v3 = vsel %vm707_vm1, %v822_v50, %v826_v53  ;;  %v270_v12 = vunpack.c.l.bf16 %v2716_v34  ;;  %v1771_v54 = vld [vmem:[%s3390_s1 + $0xa0] sm:$0xff] }
  0x6d   : > { %v1360_v21 = vadd.f32 %v2481_v55, %v2780_v48  ;;  %v977_v9 = vadd.f32 %v823_v2, %v602_v39  ;;  %v979_v29 = vadd.f32 %v827_v3, %v458_v47  ;;  %v1112_v32 = vsel %vm996_vm2, %v1110_v27, %v1111_v51  ;;  %1885 = vperm.xlu0 %2248, %v1771_v54   ;;  %v1775_v2 = vld [vmem:[%s3390_s1 + $0xc0] sm:$0xff] }
  0x6e   : > { %v1116_v11 = vsel %vm996_vm2, %v1111_v51, %v1115_v63  ;;  %v272_v34 = vunpack.c.l.bf16 %v2719_v5  ;;  %v405_v17 = vrot.slane %v270_v12, 7  ;;  %v1293_v62 = vadd.f32 %v2704_v30, %v2598_v7  ;;  %v1774_v7 = vld [vmem:[%s3390_s1 + $0xb8] sm:$0xff] }
  0x6f   : > { %v1418_v22 = vpack.c.bf16 %v1360_v21, %v1358_v0  ;;  %v2802_v37 = vadd.f32 %v1112_v32, %v977_v9  ;;  %v2804_v55 = vadd.f32 %v1116_v11, %v979_v29  ;;  %v1295_v1 = vadd.f32 %v2711_v33, %v2600_v8  ;;  %1900 = vperm.xlu1 %2249, %v1774_v7  }
  0x70   : > { %v407_v19 = vrot.slane %v272_v34, 7  ;;  %v585_v28 = vsel %vm386_vm0, 0.0, %v405_v17  ;;  %v302_v25 = vunpack.c.l.bf16 %v2727_v42  ;;  %v304_v5 = vunpack.c.l.bf16 %v2734_v6  ;;  %v1773_v42 = vld [vmem:[%s3390_s1 + $0xb0] sm:$0xff] }
  0x71   : > { %2195 = vmatprep.mubr.msk.bf16.mxu0 %vm1541_vm3, %v1418_v22  ;;  %v1390_v39 = vadd.f32 %v2752_v59, %v2802_v37  ;;  %v1392_v8 = vadd.f32 %v1328_v58, %v2804_v55  ;;  %v738_v4 = vrot.slane %v585_v28, 1  ;;  %v1027_v10 = vrot.slane %v585_v28, 2  ;;  %1895 = vperm.xlu0 %2248, %v1773_v42  }
  0x72   : > { %v408_v6 = vsel %vm386_vm0, %v405_v17, %v407_v19  ;;  %v617_v40 = vsel %vm386_vm0, %v407_v19, 0.0  ;;  %v453_v43 = vrot.slane %v302_v25, 7  ;;  %v455_v44 = vrot.slane %v304_v5, 7  ;;  %v2845_v19 = vld [vmem:[%s2339_s6 + $0x40] sm:$0xff]  ;;  %v1778_v25 = vld [vmem:[%s3390_s1 + $0xd8] sm:$0xff] }
  0x73   : > { %v1434_v47 = vpack.c.bf16 %v1392_v8, %v1390_v39  ;;  %v739_v35 = vrot.slane %v408_v6, 1  ;;  %v744_v13 = vrot.slane %v617_v40, 1  ;;  %v1028_v50 = vrot.slane %v408_v6, 2  ;;  %1910 = vperm.xlu1 %2249, %v1776_v14   ;;  %v1779_v14 = vld [vmem:[%s3390_s1 + $0xe0] sm:$0xff] }
  0x74   : > { %v1033_v59 = vrot.slane %v617_v40, 2  ;;  %v456_v53 = vsel %vm386_vm0, %v453_v43, %v455_v44  ;;  %v601_v27 = vsel %vm386_vm0, 0.0, %v453_v43  ;;  %v633_v36 = vsel %vm386_vm0, %v455_v44, 0.0  ;;  %v2867_v43 = vld [vmem:[%s2339_s6 + $0xc8] sm:$0xff] }
  0x75   : > { %2203 = vmatprep.mubr.msk.bf16.mxu1 %vm1541_vm3, %v1434_v47  ;;  %v740_v51 = vsel %vm707_vm1, %v738_v4, %v739_v35  ;;  %v745_v63 = vsel %vm707_vm1, %v739_v35, %v744_v13  ;;  %v1029_v58 = vsel %vm996_vm2, %v1027_v10, %v1028_v50  ;;  %v818_v0 = vrot.slane %v601_v27, 1  ;;  %1905 = vperm.xlu0 %2248, %v1775_v2   ;;  %v2857_v4 = vld [vmem:[%s2339_s6 + $0xc0] sm:$0xff] }
  0x76   : > { %v944_v3 = vadd.f32 %v740_v51, %v585_v28  ;;  %v946_v12 = vadd.f32 %v745_v63, %v408_v6  ;;  %v1034_v15 = vsel %vm996_vm2, %v1028_v50, %v1033_v59  ;;  %v819_v21 = vrot.slane %v456_v53, 1  ;;  %v2848_v28 = vld [vmem:[%s2339_s6 + $0x48] sm:$0xff] }
  0x77   : > { %v824_v9 = vrot.slane %v633_v36, 1  ;;  %v1107_v29 = vrot.slane %v601_v27, 2  ;;  %v1108_v32 = vrot.slane %v456_v53, 2  ;;  %v1113_v54 = vrot.slane %v633_v36, 2  ;;  %1920 = vperm.xlu1 %2249, %v1778_v25   ;;  %v1780_v59 = vld [vmem:[%s3390_s1 + $0xe8] sm:$0xff] }
  0x78   : > { %v2837_v11 = vadd.f32 %v1029_v58, %v944_v3  ;;  %v2839_v34 = vadd.f32 %v1034_v15, %v946_v12  ;;  %v820_v17 = vsel %vm707_vm1, %v818_v0, %v819_v21  ;;  %v1325_v22 = vadd.f32 %v2745_v60, %v2649_v57  ;;  %v1777_v57 = vld [vmem:[%s3390_s1 + $0xd0] sm:$0xff] }
  0x79   : > { %v825_v5 = vsel %vm707_vm1, %v819_v21, %v824_v9  ;;  %v976_v7 = vadd.f32 %v820_v17, %v601_v27  ;;  %v1109_v39 = vsel %vm996_vm2, %v1107_v29, %v1108_v32  ;;  %v1114_v8 = vsel %vm996_vm2, %v1108_v32, %v1113_v54  ;;  %1915 = vperm.xlu0 %2248, %v1777_v57  }
  0x7a   : > { %v1357_v10 = vadd.f32 %v1293_v62, %v2837_v11  ;;  %v1359_v42 = vadd.f32 %v1295_v1, %v2839_v34  ;;  %v978_v6 = vadd.f32 %v825_v5, %v456_v53  ;;  %v1327_v40 = vadd.f32 %v2747_v61, %v2651_v18 }
  0x7b   : > { %v2869_v44 = vadd.f32 %v1109_v39, %v976_v7  ;;  %v275_v47 = vunpack.c.h.bf16 %v2845_v19  ;;  %v277_v35 = vunpack.c.h.bf16 %v2848_v28  ;;  %v1298_v13 = vadd.f32 %v2772_v49, %v2464_v45  ;;  %1930 = vperm.xlu1 %2249, %v1780_v59  }
  0x7c   : > { %v1417_v50 = vpack.c.bf16 %v1359_v42, %v1357_v10  ;;  %v2875_v62 = vadd.f32 %v1114_v8, %v978_v6  ;;  %v1300_v1 = vadd.f32 %v2780_v48, %v2466_v46  ;;  %v307_v18 = vunpack.c.h.bf16 %v2857_v4 }
  0x7d   : > { %v1389_v53 = vadd.f32 %v1325_v22, %v2869_v44  ;;  %v412_v27 = vrot.slane %v275_v47, 7  ;;  %v415_v36 = vrot.slane %v277_v35, 7  ;;  %v309_v45 = vunpack.c.h.bf16 %v2867_v43  ;;  %1925 = vperm.xlu0 %2248, %v1779_v14   ;;  %v1781_v22 = vld [vmem:[%s3390_s1 + $0xf0] sm:$0xff] }
  0x7e   : > { %1639 = vmatmul.mubr.bf16.gmra.mrb[8].mxu0 %v1417_v50  ;;  %v1391_v46 = vadd.f32 %v1327_v40, %v2875_v62  ;;  %v460_v51 = vrot.slane %v307_v18, 7  ;;  %v1330_v63 = vadd.f32 %v2802_v37, %v2694_v52  ;;  %v1332_v58 = vadd.f32 %v2804_v55, %v2696_v56  ;;  %v1782_v52 = vld [vmem:[%s3390_s1 + $0xf8] sm:$0xff] }
  0x7f   : > { %v416_v0 = vsel %vm386_vm0, %v412_v27, %v415_v36  ;;  %v588_v2 = vsel %vm386_vm0, 0.0, %v412_v27  ;;  %v620_v3 = vsel %vm386_vm0, %v415_v36, 0.0  ;;  %v463_v12 = vrot.slane %v309_v45, 7  ;;  %1940 = vperm.xlu1 %2249, %v1782_v52  }
  0x80   : > { %v1433_v15 = vpack.c.bf16 %v1391_v46, %v1389_v53  ;;  %v751_v21 = vrot.slane %v588_v2, 1  ;;  %v752_v9 = vrot.slane %v416_v0, 1  ;;  %v756_v29 = vrot.slane %v620_v3, 1 }
  0x81   : > { %v1040_v32 = vrot.slane %v588_v2, 2  ;;  %v1041_v54 = vrot.slane %v416_v0, 2  ;;  %v1045_v56 = vrot.slane %v620_v3, 2  ;;  %v464_v17 = vsel %vm386_vm0, %v460_v51, %v463_v12  ;;  %1935 = vperm.xlu0 %2248, %v1781_v22  }
  0x82   : > { %1703 = vmatmul.mubr.bf16.gmra.mrb[8].mxu1 %v1433_v15  ;;  %v753_v25 = vsel %vm707_vm1, %v751_v21, %v752_v9  ;;  %v757_v5 = vsel %vm707_vm1, %v752_v9, %v756_v29  ;;  %v604_v7 = vsel %vm386_vm0, 0.0, %v460_v51  ;;  %v636_v39 = vsel %vm386_vm0, %v463_v12, 0.0 }
  0x83   : > { %v949_v8 = vadd.f32 %v753_v25, %v588_v2  ;;  %v951_v57 = vadd.f32 %v757_v5, %v416_v0  ;;  %v1042_v10 = vsel %vm996_vm2, %v1040_v32, %v1041_v54  ;;  %v1046_v42 = vsel %vm996_vm2, %v1041_v54, %v1045_v56 }
  0x84   : > { %v831_v6 = vrot.slane %v604_v7, 1  ;;  %v832_v40 = vrot.slane %v464_v17, 1  ;;  %v836_v47 = vrot.slane %v636_v39, 1  ;;  %v1120_v35 = vrot.slane %v604_v7, 2 }
  0x85   : > { %v2909_v50 = vadd.f32 %v1042_v10, %v949_v8  ;;  %v2911_v18 = vadd.f32 %v1046_v42, %v951_v57  ;;  %v1121_v59 = vrot.slane %v464_v17, 2  ;;  %v1125_v53 = vrot.slane %v636_v39, 2  ;;  %v2942_v42 = vld [vmem:[%s2339_s6 + $0x58] sm:$0xff] }
  0x86   : > { %v833_v27 = vsel %vm707_vm1, %v831_v6, %v832_v40  ;;  %v837_v36 = vsel %vm707_vm1, %v832_v40, %v836_v47  ;;  %v274_v45 = vunpack.c.l.bf16 %v2845_v19  ;;  %v276_v14 = vunpack.c.l.bf16 %v2848_v28 }
  0x87   : > { %v1362_v46 = vadd.f32 %v1298_v13, %v2909_v50  ;;  %v1364_v51 = vadd.f32 %v1300_v1, %v2911_v18  ;;  %v981_v0 = vadd.f32 %v833_v27, %v604_v7  ;;  %v983_v2 = vadd.f32 %v837_v36, %v464_v17 }
  0x88   : > { %v1122_v3 = vsel %vm996_vm2, %v1120_v35, %v1121_v59  ;;  %v1126_v12 = vsel %vm996_vm2, %v1121_v59, %v1125_v53  ;;  %v411_v15 = vrot.slane %v274_v45, 7  ;;  %v413_v21 = vrot.slane %v276_v14, 7 }
  0x89   : > { %v1420_v9 = vpack.c.bf16 %v1364_v51, %v1362_v46  ;;  %v2921_v29 = vadd.f32 %v1122_v3, %v981_v0  ;;  %v2923_v52 = vadd.f32 %v1126_v12, %v983_v2  ;;  %v1297_v19 = vadd.f32 %v2837_v11, %v2704_v30 }
  0x8a   : > { %v414_v28 = vsel %vm386_vm0, %v411_v15, %v413_v21  ;;  %v587_v13 = vsel %vm386_vm0, 0.0, %v411_v15  ;;  %v619_v1 = vsel %vm386_vm0, %v413_v21, 0.0  ;;  %v1299_v32 = vadd.f32 %v2839_v34, %v2711_v33  ;;  %v2939_v33 = vld [vmem:[%s2339_s6 + $0x50] sm:$0xff] }
  0x8b   : > { %2196 = vmatprep.mubr.msk.bf16.mxu0 %vm1541_vm3, %v1420_v9  ;;  %v1394_v54 = vadd.f32 %v1330_v63, %v2921_v29  ;;  %v1396_v56 = vadd.f32 %v1332_v58, %v2923_v52  ;;  %v748_v17 = vrot.slane %v587_v13, 1  ;;  %v749_v22 = vrot.slane %v414_v28, 1 }
  0x8c   : > { %v754_v30 = vrot.slane %v619_v1, 1  ;;  %v1037_v25 = vrot.slane %v587_v13, 2  ;;  %v1038_v5 = vrot.slane %v414_v28, 2  ;;  %v1043_v7 = vrot.slane %v619_v1, 2 }
  0x8d   : > { %v1436_v39 = vpack.c.bf16 %v1396_v56, %v1394_v54  ;;  %v750_v8 = vsel %vm707_vm1, %v748_v17, %v749_v22  ;;  %v306_v57 = vunpack.c.l.bf16 %v2857_v4  ;;  %v308_v10 = vunpack.c.l.bf16 %v2867_v43 }
  0x8e   : > { %v755_v63 = vsel %vm707_vm1, %v749_v22, %v754_v30  ;;  %v948_v58 = vadd.f32 %v750_v8, %v587_v13  ;;  %v1039_v6 = vsel %vm996_vm2, %v1037_v25, %v1038_v5  ;;  %v1044_v40 = vsel %vm996_vm2, %v1038_v5, %v1043_v7 }
  0x8f   : > { %2204 = vmatprep.mubr.msk.bf16.mxu1 %vm1541_vm3, %v1436_v39  ;;  %v950_v47 = vadd.f32 %v755_v63, %v414_v28  ;;  %v459_v35 = vrot.slane %v306_v57, 7  ;;  %v461_v59 = vrot.slane %v308_v10, 7  ;;  %v1329_v4 = vadd.f32 %v2869_v44, %v2745_v60 }
  0x90   : > { %v2950_v43 = vadd.f32 %v1039_v6, %v948_v58  ;;  %v1331_v53 = vadd.f32 %v2875_v62, %v2747_v61  ;;  %v279_v27 = vunpack.c.h.bf16 %v2939_v33  ;;  %v281_v36 = vunpack.c.h.bf16 %v2942_v42  ;;  %v2975_v6 = vld [vmem:[%s2339_s6 + $0xd0] sm:$0xff] }
  0x91   : > { %v2956_v45 = vadd.f32 %v1044_v40, %v950_v47  ;;  %v462_v14 = vsel %vm386_vm0, %v459_v35, %v461_v59  ;;  %v603_v46 = vsel %vm386_vm0, 0.0, %v459_v35  ;;  %v635_v51 = vsel %vm386_vm0, %v461_v59, 0.0 }
  0x92   : > { %v1361_v0 = vadd.f32 %v1297_v19, %v2950_v43  ;;  %v828_v60 = vrot.slane %v603_v46, 1  ;;  %v829_v2 = vrot.slane %v462_v14, 1  ;;  %v834_v3 = vrot.slane %v635_v51, 1 }
  0x93   : > { %v1363_v12 = vadd.f32 %v1299_v32, %v2956_v45  ;;  %v1117_v61 = vrot.slane %v603_v46, 2  ;;  %v1118_v15 = vrot.slane %v462_v14, 2  ;;  %v1123_v21 = vrot.slane %v635_v51, 2 }
  0x94   : > { %v830_v9 = vsel %vm707_vm1, %v828_v60, %v829_v2  ;;  %v835_v28 = vsel %vm707_vm1, %v829_v2, %v834_v3  ;;  %v418_v13 = vrot.slane %v279_v27, 7  ;;  %v421_v1 = vrot.slane %v281_v36, 7  ;;  %v2983_v27 = vld [vmem:[%s2339_s6 + $0xd8] sm:$0xff] }
  0x95   : > { %v1419_v54 = vpack.c.bf16 %v1363_v12, %v1361_v0  ;;  %v980_v56 = vadd.f32 %v830_v9, %v603_v46  ;;  %v982_v17 = vadd.f32 %v835_v28, %v462_v14  ;;  %v1119_v19 = vsel %vm996_vm2, %v1117_v61, %v1118_v15 }
  0x96   : > { %v1124_v22 = vsel %vm996_vm2, %v1118_v15, %v1123_v21  ;;  %v422_v30 = vsel %vm386_vm0, %v418_v13, %v421_v1  ;;  %v590_v32 = vsel %vm386_vm0, 0.0, %v418_v13  ;;  %v622_v25 = vsel %vm386_vm0, %v421_v1, 0.0 }
  0x97   : > { %1647 = vmatmul.mubr.bf16.gmra.mrb[12].mxu0 %v1419_v54  ;;  %v2970_v5 = vadd.f32 %v1119_v19, %v980_v56  ;;  %v2972_v7 = vadd.f32 %v1124_v22, %v982_v17  ;;  %v761_v39 = vrot.slane %v590_v32, 1  ;;  %v762_v8 = vrot.slane %v422_v30, 1 }
  0x98   : > { %v766_v57 = vrot.slane %v622_v25, 1  ;;  %v1050_v10 = vrot.slane %v590_v32, 2  ;;  %v1051_v63 = vrot.slane %v422_v30, 2  ;;  %v1055_v58 = vrot.slane %v622_v25, 2 }
  0x99   : > { %v1393_v40 = vadd.f32 %v1329_v4, %v2970_v5  ;;  %v1395_v47 = vadd.f32 %v1331_v53, %v2972_v7  ;;  %v763_v35 = vsel %vm707_vm1, %v761_v39, %v762_v8  ;;  %v1302_v59 = vadd.f32 %v2909_v50, %v2772_v49 }
  0x9a   : > { %v767_v36 = vsel %vm707_vm1, %v762_v8, %v766_v57  ;;  %v953_v14 = vadd.f32 %v763_v35, %v590_v32  ;;  %v1052_v46 = vsel %vm996_vm2, %v1050_v10, %v1051_v63  ;;  %v1056_v51 = vsel %vm996_vm2, %v1051_v63, %v1055_v58 }
  0x9b   : > { %v1435_v0 = vpack.c.bf16 %v1395_v47, %v1393_v40  ;;  %v955_v60 = vadd.f32 %v767_v36, %v422_v30  ;;  %v1304_v4 = vadd.f32 %v2911_v18, %v2780_v48  ;;  %v311_v53 = vunpack.c.h.bf16 %v2975_v6 }
  0x9c   : > { %v2991_v2 = vadd.f32 %v1052_v46, %v953_v14  ;;  %v313_v49 = vunpack.c.h.bf16 %v2983_v27  ;;  %v1334_v3 = vadd.f32 %v2921_v29, %v2802_v37  ;;  %v1336_v12 = vadd.f32 %v2923_v52, %v2804_v55 }
  0x9d   : > { %1711 = vmatmul.mubr.bf16.gmra.mrb[12].mxu1 %v1435_v0  ;;  %v2998_v61 = vadd.f32 %v1056_v51, %v955_v60  ;;  %v466_v15 = vrot.slane %v311_v53, 7  ;;  %v278_v21 = vunpack.c.l.bf16 %v2939_v33  ;;  %v280_v48 = vunpack.c.l.bf16 %v2942_v42 }
  0x9e   : > { %v1366_v9 = vadd.f32 %v1302_v59, %v2991_v2  ;;  %v469_v28 = vrot.slane %v313_v49, 7  ;;  %v1301_v13 = vadd.f32 %v2950_v43, %v2837_v11  ;;  %v1303_v37 = vadd.f32 %v2956_v45, %v2839_v34 }
  0x9f   : > { %v1368_v1 = vadd.f32 %v1304_v4, %v2998_v61  ;;  %v606_v55 = vsel %vm386_vm0, 0.0, %v466_v15  ;;  %v417_v54 = vrot.slane %v278_v21, 7  ;;  %v419_v56 = vrot.slane %v280_v48, 7 }
  0xa0   : > { %v470_v17 = vsel %vm386_vm0, %v466_v15, %v469_v28  ;;  %v638_v33 = vsel %vm386_vm0, %v469_v28, 0.0  ;;  %v841_v42 = vrot.slane %v606_v55, 1  ;;  %v1130_v19 = vrot.slane %v606_v55, 2 }
  0xa1   : > { %v1422_v22 = vpack.c.bf16 %v1368_v1, %v1366_v9  ;;  %v842_v30 = vrot.slane %v470_v17, 1  ;;  %v846_v32 = vrot.slane %v638_v33, 1  ;;  %v1131_v25 = vrot.slane %v470_v17, 2  ;;  %v3029_v9 = vld [vmem:[%s2339_s6 + $0x60] sm:$0xff] }
  0xa2   : > { %v1135_v11 = vrot.slane %v638_v33, 2  ;;  %v420_v39 = vsel %vm386_vm0, %v417_v54, %v419_v56  ;;  %v589_v34 = vsel %vm386_vm0, 0.0, %v417_v54  ;;  %v621_v8 = vsel %vm386_vm0, %v419_v56, 0.0  ;;  %v3035_v56 = vld [vmem:[%s2339_s6 + $0x68] sm:$0xff] }
  0xa3   : > { %2197 = vmatprep.mubr.msk.bf16.mxu0 %vm1541_vm3, %v1422_v22  ;;  %v843_v57 = vsel %vm707_vm1, %v841_v42, %v842_v30  ;;  %v847_v10 = vsel %vm707_vm1, %v842_v30, %v846_v32  ;;  %v1132_v63 = vsel %vm996_vm2, %v1130_v19, %v1131_v25  ;;  %v758_v58 = vrot.slane %v589_v34, 1 }
  0xa4   : > { %v985_v40 = vadd.f32 %v843_v57, %v606_v55  ;;  %v987_v47 = vadd.f32 %v847_v10, %v470_v17  ;;  %v1136_v35 = vsel %vm996_vm2, %v1131_v25, %v1135_v11  ;;  %v759_v59 = vrot.slane %v420_v39, 1 }
  0xa5   : > { %v764_v36 = vrot.slane %v621_v8, 1  ;;  %v1047_v14 = vrot.slane %v589_v34, 2  ;;  %v1048_v46 = vrot.slane %v420_v39, 2  ;;  %v1053_v51 = vrot.slane %v621_v8, 2 }
  0xa6   : > { %v3019_v0 = vadd.f32 %v1132_v63, %v985_v40  ;;  %v3021_v60 = vadd.f32 %v1136_v35, %v987_v47  ;;  %v760_v4 = vsel %vm707_vm1, %v758_v58, %v759_v59  ;;  %v310_v53 = vunpack.c.l.bf16 %v2975_v6 }
  0xa7   : > { %v765_v49 = vsel %vm707_vm1, %v759_v59, %v764_v36  ;;  %v952_v15 = vadd.f32 %v760_v4, %v589_v34  ;;  %v1049_v21 = vsel %vm996_vm2, %v1047_v14, %v1048_v46  ;;  %v1054_v48 = vsel %vm996_vm2, %v1048_v46, %v1053_v51  ;;  %v3063_v51 = vld [vmem:[%s2339_s6 + $0xe0] sm:$0xff]  ;;  %v3066_v4 = vld [vmem:[%s2339_s6 + $0xe8] sm:$0xff] }
  0xa8   : > { %v1398_v28 = vadd.f32 %v1334_v3, %v3019_v0  ;;  %v1400_v1 = vadd.f32 %v1336_v12, %v3021_v60  ;;  %v954_v55 = vadd.f32 %v765_v49, %v420_v39  ;;  %v312_v54 = vunpack.c.l.bf16 %v2983_v27 }
  0xa9   : > { %v3037_v17 = vadd.f32 %v1049_v21, %v952_v15  ;;  %v465_v6 = vrot.slane %v310_v53, 7  ;;  %v1333_v33 = vadd.f32 %v2970_v5, %v2869_v44  ;;  %v1335_v42 = vadd.f32 %v2972_v7, %v2875_v62 }
  0xaa   : > { %v1438_v19 = vpack.c.bf16 %v1400_v1, %v1398_v28  ;;  %v3043_v22 = vadd.f32 %v1054_v48, %v954_v55  ;;  %v467_v3 = vrot.slane %v312_v54, 7  ;;  %v283_v12 = vunpack.c.h.bf16 %v3029_v9 }
  0xab   : > { %v1365_v30 = vadd.f32 %v1301_v13, %v3037_v17  ;;  %v605_v27 = vsel %vm386_vm0, 0.0, %v465_v6  ;;  %v285_v32 = vunpack.c.h.bf16 %v3035_v56  ;;  %v1306_v25 = vadd.f32 %v2991_v2, %v2909_v50 }
  0xac   : > { %2205 = vmatprep.mubr.msk.bf16.mxu1 %vm1541_vm3, %v1438_v19  ;;  %v1367_v44 = vadd.f32 %v1303_v37, %v3043_v22  ;;  %v468_v62 = vsel %vm386_vm0, %v465_v6, %v467_v3  ;;  %v637_v11 = vsel %vm386_vm0, %v467_v3, 0.0  ;;  %v838_v39 = vrot.slane %v605_v27, 1 }
  0xad   : > { %v839_v34 = vrot.slane %v468_v62, 1  ;;  %v844_v8 = vrot.slane %v637_v11, 1  ;;  %v1127_v13 = vrot.slane %v605_v27, 2  ;;  %v1128_v57 = vrot.slane %v468_v62, 2 }
  0xae   : > { %v1421_v10 = vpack.c.bf16 %v1367_v44, %v1365_v30  ;;  %v1133_v63 = vrot.slane %v637_v11, 2  ;;  %v424_v58 = vrot.slane %v283_v12, 7  ;;  %v427_v40 = vrot.slane %v285_v32, 7 }
  0xaf   : > { %v840_v50 = vsel %vm707_vm1, %v838_v39, %v839_v34  ;;  %v845_v47 = vsel %vm707_vm1, %v839_v34, %v844_v8  ;;  %v1129_v37 = vsel %vm996_vm2, %v1127_v13, %v1128_v57  ;;  %v1308_v35 = vadd.f32 %v2998_v61, %v2911_v18 }
  0xb0   : > { %1655 = vmatmul.mubr.bf16.gmra.mrb[16].mxu0 %v1421_v10  ;;  %v984_v59 = vadd.f32 %v840_v50, %v605_v27  ;;  %v986_v36 = vadd.f32 %v845_v47, %v468_v62  ;;  %v1134_v14 = vsel %vm996_vm2, %v1128_v57, %v1133_v63  ;;  %v428_v46 = vsel %vm386_vm0, %v424_v58, %v427_v40 }
  0xb1   : > { %v592_v53 = vsel %vm386_vm0, 0.0, %v424_v58  ;;  %v624_v49 = vsel %vm386_vm0, %v427_v40, 0.0  ;;  %v772_v15 = vrot.slane %v428_v46, 1  ;;  %v1061_v21 = vrot.slane %v428_v46, 2 }
  0xb2   : > { %v3070_v48 = vadd.f32 %v1129_v37, %v984_v59  ;;  %v3072_v18 = vadd.f32 %v1134_v14, %v986_v36  ;;  %v771_v28 = vrot.slane %v592_v53, 1  ;;  %v776_v1 = vrot.slane %v624_v49, 1 }
  0xb3   : > { %v1060_v55 = vrot.slane %v592_v53, 2  ;;  %v1065_v54 = vrot.slane %v624_v49, 2  ;;  %v315_v6 = vunpack.c.h.bf16 %v3063_v51  ;;  %v317_v19 = vunpack.c.h.bf16 %v3066_v4 }
  0xb4   : > { %v1397_v3 = vadd.f32 %v1333_v33, %v3070_v48  ;;  %v1399_v12 = vadd.f32 %v1335_v42, %v3072_v18  ;;  %v773_v30 = vsel %vm707_vm1, %v771_v28, %v772_v15  ;;  %v777_v27 = vsel %vm707_vm1, %v772_v15, %v776_v1 }
  0xb5   : > { %v957_v32 = vadd.f32 %v773_v30, %v592_v53  ;;  %v959_v44 = vadd.f32 %v777_v27, %v428_v46  ;;  %v1062_v62 = vsel %vm996_vm2, %v1060_v55, %v1061_v21  ;;  %v1066_v11 = vsel %vm996_vm2, %v1061_v21, %v1065_v54 }
  0xb6   : > { %v1437_v39 = vpack.c.bf16 %v1399_v12, %v1397_v3  ;;  %v472_v34 = vrot.slane %v315_v6, 7  ;;  %v475_v8 = vrot.slane %v317_v19, 7  ;;  %v1338_v13 = vadd.f32 %v3019_v0, %v2921_v29 }
  0xb7   : > { %v3084_v57 = vadd.f32 %v1062_v62, %v957_v32  ;;  %v3086_v33 = vadd.f32 %v1066_v11, %v959_v44  ;;  %v1340_v42 = vadd.f32 %v3021_v60, %v2923_v52  ;;  %v282_v10 = vunpack.c.l.bf16 %v3029_v9 }
  0xb8   : > { %1719 = vmatmul.mubr.bf16.gmra.mrb[16].mxu1 %v1437_v39  ;;  %v476_v63 = vsel %vm386_vm0, %v472_v34, %v475_v8  ;;  %v608_v58 = vsel %vm386_vm0, 0.0, %v472_v34  ;;  %v640_v40 = vsel %vm386_vm0, %v475_v8, 0.0  ;;  %v284_v50 = vunpack.c.l.bf16 %v3035_v56 }
  0xb9   : > { %v1370_v29 = vadd.f32 %v1306_v25, %v3084_v57  ;;  %v1372_v47 = vadd.f32 %v1308_v35, %v3086_v33  ;;  %v851_v37 = vrot.slane %v608_v58, 1  ;;  %v852_v59 = vrot.slane %v476_v63, 1 }
  0xba   : > { %v856_v36 = vrot.slane %v640_v40, 1  ;;  %v1140_v14 = vrot.slane %v608_v58, 2  ;;  %v1141_v52 = vrot.slane %v476_v63, 2  ;;  %v1145_v46 = vrot.slane %v640_v40, 2 }
  0xbb   : > { %v1424_v9 = vpack.c.bf16 %v1372_v47, %v1370_v29  ;;  %v853_v53 = vsel %vm707_vm1, %v851_v37, %v852_v59  ;;  %v423_v49 = vrot.slane %v282_v10, 7  ;;  %v425_v15 = vrot.slane %v284_v50, 7  ;;  %v3122_v47 = vld [vmem:[%s2339_s6 + $0xf0] sm:$0xff] }
  0xbc   : > { %v857_v21 = vsel %vm707_vm1, %v852_v59, %v856_v36  ;;  %v989_v28 = vadd.f32 %v853_v53, %v608_v58  ;;  %v1142_v56 = vsel %vm996_vm2, %v1140_v14, %v1141_v52  ;;  %v1146_v25 = vsel %vm996_vm2, %v1141_v52, %v1145_v46 }
  0xbd   : > { %2198 = vmatprep.mubr.msk.bf16.mxu0 %vm1541_vm3, %v1424_v9  ;;  %v991_v35 = vadd.f32 %v857_v21, %v476_v63  ;;  %v426_v1 = vsel %vm386_vm0, %v423_v49, %v425_v15  ;;  %v591_v55 = vsel %vm386_vm0, 0.0, %v423_v49  ;;  %v623_v54 = vsel %vm386_vm0, %v425_v15, 0.0 }
  0xbe   : > { %v3105_v6 = vadd.f32 %v1142_v56, %v989_v28  ;;  %v768_v19 = vrot.slane %v591_v55, 1  ;;  %v769_v3 = vrot.slane %v426_v1, 1  ;;  %v774_v12 = vrot.slane %v623_v54, 1 }
  0xbf   : > { %v3107_v30 = vadd.f32 %v1146_v25, %v991_v35  ;;  %v1057_v27 = vrot.slane %v591_v55, 2  ;;  %v1058_v32 = vrot.slane %v426_v1, 2  ;;  %v1063_v44 = vrot.slane %v623_v54, 2 }
  0xc0   : > { %v1402_v62 = vadd.f32 %v1338_v13, %v3105_v6  ;;  %v770_v11 = vsel %vm707_vm1, %v768_v19, %v769_v3  ;;  %v775_v39 = vsel %vm707_vm1, %v769_v3, %v774_v12  ;;  %v1305_v34 = vadd.f32 %v3037_v17, %v2950_v43 }
  0xc1   : > { %v1404_v8 = vadd.f32 %v1340_v42, %v3107_v30  ;;  %v956_v10 = vadd.f32 %v770_v11, %v591_v55  ;;  %v958_v63 = vadd.f32 %v775_v39, %v426_v1  ;;  %v1059_v58 = vsel %vm996_vm2, %v1057_v27, %v1058_v32 }
  0xc2   : > { %v1064_v40 = vsel %vm996_vm2, %v1058_v32, %v1063_v44  ;;  %v1307_v50 = vadd.f32 %v3043_v22, %v2956_v45  ;;  %v314_v13 = vunpack.c.l.bf16 %v3063_v51  ;;  %v316_v29 = vunpack.c.l.bf16 %v3066_v4 }
  0xc3   : > { %v1440_v37 = vpack.c.bf16 %v1404_v8, %v1402_v62  ;;  %v3124_v59 = vadd.f32 %v1059_v58, %v956_v10  ;;  %v3126_v43 = vadd.f32 %v1064_v40, %v958_v63  ;;  %v1337_v42 = vadd.f32 %v3070_v48, %v2970_v5 }
  0xc4   : > { %v471_v36 = vrot.slane %v314_v13, 7  ;;  %v473_v14 = vrot.slane %v316_v29, 7  ;;  %v1339_v45 = vadd.f32 %v3072_v18, %v2972_v7  ;;  %v1310_v51 = vadd.f32 %v3084_v57, %v2991_v2  ;;  %v257_v2 = vld [vmem:[%s2339_s6 + $0xf8] sm:$0xff] }
  0xc5   : > { %2206 = vmatprep.mubr.msk.bf16.mxu1 %vm1541_vm3, %v1440_v37  ;;  %v1369_v4 = vadd.f32 %v1305_v34, %v3124_v59  ;;  %v1371_v52 = vadd.f32 %v1307_v50, %v3126_v43  ;;  %v1312_v46 = vadd.f32 %v3086_v33, %v2998_v61  ;;  %v319_v9 = vunpack.c.h.bf16 %v3122_v47 }
  0xc6   : > { %v474_v5 = vsel %vm386_vm0, %v471_v36, %v473_v14  ;;  %v607_v53 = vsel %vm386_vm0, 0.0, %v471_v36  ;;  %v639_v7 = vsel %vm386_vm0, %v473_v14, 0.0  ;;  %v1374_v49 = vadd.f32 %v1310_v51, %v2534_v38 }
  0xc7   : > { %v1423_v15 = vpack.c.bf16 %v1371_v52, %v1369_v4  ;;  %v848_v21 = vrot.slane %v607_v53, 1  ;;  %v849_v28 = vrot.slane %v474_v5, 1  ;;  %v854_v56 = vrot.slane %v639_v7, 1 }
  0xc8   : > { %v1137_v25 = vrot.slane %v607_v53, 2  ;;  %v1138_v35 = vrot.slane %v474_v5, 2  ;;  %v1143_v1 = vrot.slane %v639_v7, 2  ;;  %v1376_v61 = vadd.f32 %v1312_v46, %v2538_v24 }
  0xc9   : > { %1663 = vmatmul.mubr.bf16.gmra.mrb[20].mxu0 %v1423_v15  ;;  %v850_v55 = vsel %vm707_vm1, %v848_v21, %v849_v28  ;;  %v855_v54 = vsel %vm707_vm1, %v849_v28, %v854_v56  ;;  %v321_v19 = vunpack.c.h.bf16 %v257_v2  ;;  %v478_v3 = vrot.slane %v319_v9, 7 }
  0xca   : > { %v988_v12 = vadd.f32 %v850_v55, %v607_v53  ;;  %v990_v27 = vadd.f32 %v855_v54, %v474_v5  ;;  %v1139_v32 = vsel %vm996_vm2, %v1137_v25, %v1138_v35  ;;  %v1144_v44 = vsel %vm996_vm2, %v1138_v35, %v1143_v1 }
  0xcb   : > { %v1426_v62 = vpack.c.bf16 %v1376_v61, %v1374_v49  ;;  %v481_v11 = vrot.slane %v321_v19, 7  ;;  %v610_v39 = vsel %vm386_vm0, 0.0, %v478_v3  ;;  %v1342_v34 = vadd.f32 %v3105_v6, %v3019_v0 }
  0xcc   : > { %v3153_v8 = vadd.f32 %v1139_v32, %v988_v12  ;;  %v3155_v10 = vadd.f32 %v1144_v44, %v990_v27  ;;  %v861_v63 = vrot.slane %v610_v39, 1  ;;  %v1150_v58 = vrot.slane %v610_v39, 2 }
  0xcd   : > { %2199 = vmatprep.mubr.msk.bf16.mxu0 %vm1541_vm3, %v1426_v62  ;;  %v482_v40 = vsel %vm386_vm0, %v478_v3, %v481_v11  ;;  %v642_v50 = vsel %vm386_vm0, %v481_v11, 0.0  ;;  %v1344_v13 = vadd.f32 %v3107_v30, %v3021_v60  ;;  %v1309_v29 = vadd.f32 %v3124_v59, %v3037_v17 }
  0xce   : > { %v1401_v0 = vadd.f32 %v1337_v42, %v3153_v8  ;;  %v1403_v37 = vadd.f32 %v1339_v45, %v3155_v10  ;;  %v862_v36 = vrot.slane %v482_v40, 1  ;;  %v866_v14 = vrot.slane %v642_v50, 1 }
  0xcf   : > { %v1151_v51 = vrot.slane %v482_v40, 2  ;;  %v1155_v4 = vrot.slane %v642_v50, 2  ;;  %v1311_v52 = vadd.f32 %v3126_v43, %v3043_v22  ;;  %v1373_v46 = vadd.f32 %v1309_v29, %v2636_v31 }
  0xd0   : > { %v1439_v9 = vpack.c.bf16 %v1403_v37, %v1401_v0  ;;  %v863_v5 = vsel %vm707_vm1, %v861_v63, %v862_v36  ;;  %v867_v60 = vsel %vm707_vm1, %v862_v36, %v866_v14  ;;  %v318_v17 = vunpack.c.l.bf16 %v3122_v47 }
  0xd1   : > { %v993_v53 = vadd.f32 %v863_v5, %v610_v39  ;;  %v995_v42 = vadd.f32 %v867_v60, %v482_v40  ;;  %v1152_v45 = vsel %vm996_vm2, %v1150_v58, %v1151_v51  ;;  %v1156_v7 = vsel %vm996_vm2, %v1151_v51, %v1155_v4 }
  0xd2   : > { %1727 = vmatmul.mubr.bf16.gmra.mrb[20].mxu1 %v1439_v9  ;;  %v1375_v49 = vadd.f32 %v1311_v52, %v2638_v20  ;;  %v320_v15 = vunpack.c.l.bf16 %v257_v2  ;;  %v477_v22 = vrot.slane %v318_v17, 7  ;;  %v1314_v56 = vadd.f32 %v2534_v38, %v3084_v57 }
  0xd3   : > { %v1282_v21 = vadd.f32 %v1152_v45, %v993_v53  ;;  %v1284_v28 = vadd.f32 %v1156_v7, %v995_v42  ;;  %v1316_v1 = vadd.f32 %v2538_v24, %v3086_v33  ;;  %v1341_v24 = vadd.f32 %v3153_v8, %v3070_v48  ;;  %v3224_v42 = vld [vmem:[%s3392_s3] ss:$0 sm:$0xff] }
  0xd4   : > { %v1425_v25 = vpack.c.bf16 %v1375_v49, %v1373_v46  ;;  %v479_v35 = vrot.slane %v320_v15, 7  ;;  %v609_v47 = vsel %vm386_vm0, 0.0, %v477_v22  ;;  %v1378_v12 = vadd.f32 %v1314_v56, %v2540_v23  ;;  %v3229_v49 = vld [vmem:[%s3393_s4] ss:$0 sm:$0xff] }
  0xd5   : > { %v1406_v61 = vadd.f32 %v1342_v34, %v1282_v21  ;;  %v1408_v55 = vadd.f32 %v1344_v13, %v1284_v28  ;;  %v858_v54 = vrot.slane %v609_v47, 1  ;;  %v1147_v19 = vrot.slane %v609_v47, 2 }
  0xd6   : > { %1671 = vmatmul.mubr.bf16.gmra.mrb[24].mxu0 %v1425_v25  ;;  %v480_v2 = vsel %vm386_vm0, %v477_v22, %v479_v35  ;;  %v641_v3 = vsel %vm386_vm0, %v479_v35, 0.0  ;;  %v1380_v38 = vadd.f32 %v1316_v1, %v2543_v26  ;;  %v1313_v23 = vadd.f32 %v2636_v31, %v3124_v59 }
  0xd7   : > { %v1442_v57 = vpack.c.bf16 %v1408_v55, %v1406_v61  ;;  %v859_v27 = vrot.slane %v480_v2, 1  ;;  %v864_v32 = vrot.slane %v641_v3, 1  ;;  %v1148_v44 = vrot.slane %v480_v2, 2 }
  0xd8   : > { %v1153_v62 = vrot.slane %v641_v3, 2  ;;  %v1428_v33 = vpack.c.bf16 %v1380_v38, %v1378_v12  ;;  %v1343_v40 = vadd.f32 %v3155_v10, %v3072_v18  ;;  %v1346_v48 = vadd.f32 %v1282_v21, %v3105_v6 }
  0xd9   : > { %2207 = vmatprep.mubr.msk.bf16.mxu1 %vm1541_vm3, %v1442_v57  ;;  %v860_v11 = vsel %vm707_vm1, %v858_v54, %v859_v27  ;;  %v865_v39 = vsel %vm707_vm1, %v859_v27, %v864_v32  ;;  %v1149_v34 = vsel %vm996_vm2, %v1147_v19, %v1148_v44  ;;  %v1348_v50 = vadd.f32 %v1284_v28, %v3107_v30 }
  0xda   : > { %v992_v26 = vadd.f32 %v860_v11, %v609_v47  ;;  %v994_v63 = vadd.f32 %v865_v39, %v480_v2  ;;  %v1154_v58 = vsel %vm996_vm2, %v1148_v44, %v1153_v62  ;;  %2200 = vmatprep.mubr.msk.bf16.mxu0 %vm1541_vm3, %v1428_v33  ;;  %v1315_v13 = vadd.f32 %v2638_v20, %v3126_v43  ;;  %v1796_v43 = vpop.permute.xlu1 %1795 }
  0xdb   : > { %v1377_v29 = vadd.f32 %v1313_v23, %v2645_v16  ;;  %v1444_v14 = vpack.c.bf16 %v1348_v50, %v1346_v48  ;;  %v1786_v16 = vpop.permute.xlu0 %1785 }
  0xdc   : > { %v1281_v0 = vadd.f32 %v1149_v34, %v992_v26  ;;  %v1283_v31 = vadd.f32 %v1154_v58, %v994_v63  ;;  %v1379_v59 = vadd.f32 %v1315_v13, %v2647_v41 }
  0xde   : > { %v1405_v37 = vadd.f32 %v1341_v24, %v1281_v0  ;;  %v1407_v36 = vadd.f32 %v1343_v40, %v1283_v31  ;;  %v1427_v51 = vpack.c.bf16 %v1379_v59, %v1377_v29  ;;  %v1345_v6 = vadd.f32 %v1281_v0, %v3153_v8  ;;  %v1801_v52 = vpop.permute.xlu1 %1800 }
  0xdf   : > { %v1347_v30 = vadd.f32 %v1283_v31, %v3155_v10  ;;  %v1791_v4 = vpop.permute.xlu0 %1790 }
  0xe0   : > { %v1441_v18 = vpack.c.bf16 %v1407_v36, %v1405_v37  ;;  %1679 = vmatmul.mubr.bf16.gmra.mrb[28].mxu0 %v1427_v51 }
  0xe1   : > { %v1443_v20 = vpack.c.bf16 %v1347_v30, %v1345_v6 }
  0xe2   : > { %1735 = vmatmul.mubr.bf16.gmra.mrb[24].mxu1 %v1441_v18  ;;  %v3207_v46 = vpop.permute.xlu1 %1810 }
  0xe3   : > { %2208 = vmatprep.mubr.msk.bf16.mxu1 %vm1541_vm3, %v1444_v14  ;;  %v3205_v41 = vpop.permute.xlu0 %1805 }
  0xe6   : > { %v3211_v5 = vpop.permute.xlu1 %1820 }
  0xe7   : > { %v3209_v9 = vpop.permute.xlu0 %1815 }
  0xea   : > { %1743 = vmatmul.mubr.bf16.gmra.mrb[28].mxu1 %v1443_v20  ;;  %v3215_v8 = vpop.permute.xlu1 %1830 }
  0xeb   : > { %v3213_v60 = vpop.permute.xlu0 %1825 }
  0xee   : > { %v3219_v17 = vpop.permute.xlu1 %1840 }
  0xef   : > { %v3217_v10 = vpop.permute.xlu0 %1835 }
  0xf2   : > { %v3234_v25 = vpop.permute.xlu1 %1850 }
  0xf3   : > { %v3231_v22 = vpop.permute.xlu0 %1845 }
  0xf6   : > { %v3250_v19 = vpop.permute.xlu1 %1860 }
  0xf7   : > { %v3246_v55 = vpop.permute.xlu0 %1855 }
  0xfa   : > { %v1871_v57 = vpop.permute.xlu1 %1870 }
  0xfb   : > { %v1866_v2 = vpop.permute.xlu0 %1865 }
  0xfe   : > { %v1881_v51 = vpop.permute.xlu1 %1880 }
  0xff   : > { %v1876_v0 = vpop.permute.xlu0 %1875 }
 0x119   : > { %v1624_v53 = vpop.f32.mrb[0].mxu0 }
 0x11a   : > { %v1943_v45 = vmul.f32 %v1786_v16, %v1624_v53  ;;  %v1626_v7 = vpop.f32.mrb[1].mxu0 }
 0x11b   : > { %v1627_v15 = vpop.f32.mrb[2].mxu0 }
 0x11c   : > { %v1982_v21 = vmul.f32 %v3224_v42, %v1943_v45  ;;  %v1944_v28 = vmul.f32 %v1791_v4, %v1627_v15  ;;  %v1629_v56 = vpop.f32.mrb[3].mxu0 }
 0x11e   : > { %v2021_v35 = vadd.f32 %v3229_v49, %v1982_v21  ;;  %v1983_v47 = vmul.f32 %v3224_v42, %v1944_v28 }
 0x120   : > { %v2053_v1 = vmax.f32 %v2021_v35, 0.0  ;;  %v2022_v61 = vadd.f32 %v3229_v49, %v1983_v47 }
 0x122   : > { %2085 = vst.msk [vmem:[%s3243_s8] sm:$0xff] %vm1541_vm3, %v2053_v1  ;;  %v2054_v54 = vmax.f32 %v2022_v61, 0.0  ;;  %v1886_v1 = vpop.permute.xlu0 %1885 }
 0x124   : > { %2086 = vst.msk [vmem:[%s3243_s8 + $0x8] sm:$0xff] %vm1541_vm3, %v2054_v54 }
 0x128   : > { %v1688_v3 = vpop.f32.mrb[0].mxu1 }
 0x129   : > { %v1959_v12 = vmul.f32 %v1866_v2, %v1688_v3  ;;  %v1690_v38 = vpop.f32.mrb[1].mxu1 }
 0x12a   : > { %v1691_v27 = vpop.f32.mrb[2].mxu1  ;;  %v1891_v38 = vpop.permute.xlu1 %1890 }
 0x12b   : > { %v1998_v32 = vmul.f32 %v3224_v42, %v1959_v12  ;;  %v1960_v44 = vmul.f32 %v1871_v57, %v1691_v27  ;;  %v1693_v62 = vpop.f32.mrb[3].mxu1 }
 0x12d   : > { %v2037_v24 = vadd.f32 %v3229_v49, %v1998_v32  ;;  %v1999_v33 = vmul.f32 %v3224_v42, %v1960_v44 }
 0x12f   : > { %v2069_v11 = vmax.f32 %v2037_v24, 0.0  ;;  %v2038_v39 = vadd.f32 %v3229_v49, %v1999_v33 }
 0x131   : > { %2101 = vst.msk [vmem:[%s3243_s8 + $0x80] sm:$0xff] %vm1541_vm3, %v2069_v11  ;;  %v2070_v34 = vmax.f32 %v2038_v39, 0.0 }
 0x133   : > { %2102 = vst.msk [vmem:[%s3243_s8 + $0x88] sm:$0xff] %vm1541_vm3, %v2070_v34 }
 0x136   : > { %v1632_v23 = vpop.f32.mrb[4].mxu0 }
 0x137   : > { %v1945_v26 = vmul.f32 %v1796_v43, %v1632_v23  ;;  %v1634_v63 = vpop.f32.mrb[5].mxu0 }
 0x138   : > { %v1635_v58 = vpop.f32.mrb[6].mxu0 }
 0x139   : > { %v1984_v40 = vmul.f32 %v3224_v42, %v1945_v26  ;;  %v1946_v48 = vmul.f32 %v1801_v52, %v1635_v58  ;;  %v1637_v50 = vpop.f32.mrb[7].mxu0 }
 0x13b   : > { %v2023_v13 = vadd.f32 %v3229_v49, %v1984_v40  ;;  %v1985_v29 = vmul.f32 %v3224_v42, %v1946_v48 }
 0x13c   : > { %v1696_v31 = vpop.f32.mrb[4].mxu1 }
 0x13d   : > { %v2055_v59 = vmax.f32 %v2023_v13, 0.0  ;;  %v1961_v37 = vmul.f32 %v1876_v0, %v1696_v31  ;;  %v1698_v36 = vpop.f32.mrb[5].mxu1  ;;  %v2024_v14 = vadd.f32 %v3229_v49, %v1985_v29  ;;  %v1896_v0 = vpop.permute.xlu0 %1895 }
 0x13e   : > { %v1699_v18 = vpop.f32.mrb[6].mxu1 }
 0x13f   : > { %2087 = vst.msk [vmem:[%s3243_s8 + $0x10] sm:$0xff] %vm1541_vm3, %v2055_v59  ;;  %v2000_v6 = vmul.f32 %v3224_v42, %v1961_v37  ;;  %v2056_v30 = vmax.f32 %v2024_v14, 0.0  ;;  %v1962_v20 = vmul.f32 %v1881_v51, %v1699_v18  ;;  %v1701_v16 = vpop.f32.mrb[7].mxu1  ;;  %v1901_v14 = vpop.permute.xlu1 %1900 }
 0x141   : > { %v2039_v43 = vadd.f32 %v3229_v49, %v2000_v6  ;;  %2088 = vst.msk [vmem:[%s3243_s8 + $0x18] sm:$0xff] %vm1541_vm3, %v2056_v30  ;;  %v2001_v4 = vmul.f32 %v3224_v42, %v1962_v20 }
 0x143   : > { %v2071_v52 = vmax.f32 %v2039_v43, 0.0  ;;  %v2040_v53 = vadd.f32 %v3229_v49, %v2001_v4 }
 0x145   : > { %2103 = vst.msk [vmem:[%s3243_s8 + $0x90] sm:$0xff] %vm1541_vm3, %v2071_v52  ;;  %v2072_v45 = vmax.f32 %v2040_v53, 0.0 }
 0x147   : > { %2104 = vst.msk [vmem:[%s3243_s8 + $0x98] sm:$0xff] %vm1541_vm3, %v2072_v45 }
 0x151   : > { %v1640_v7 = vpop.f32.mrb[8].mxu0 }
 0x152   : > { %v1947_v15 = vmul.f32 %v3205_v41, %v1640_v7  ;;  %v1642_v21 = vpop.f32.mrb[9].mxu0 }
 0x153   : > { %v1643_v28 = vpop.f32.mrb[10].mxu0 }
 0x154   : > { %v1986_v56 = vmul.f32 %v3224_v42, %v1947_v15  ;;  %v1948_v35 = vmul.f32 %v3207_v46, %v1643_v28  ;;  %v1645_v47 = vpop.f32.mrb[11].mxu0 }
 0x155   : > { %v1704_v61 = vpop.f32.mrb[8].mxu1 }
 0x156   : > { %v2025_v54 = vadd.f32 %v3229_v49, %v1986_v56  ;;  %v1963_v2 = vmul.f32 %v1886_v1, %v1704_v61  ;;  %v1706_v3 = vpop.f32.mrb[9].mxu1  ;;  %v1987_v12 = vmul.f32 %v3224_v42, %v1948_v35 }
 0x157   : > { %v1707_v41 = vpop.f32.mrb[10].mxu1 }
 0x158   : > { %v2057_v57 = vmax.f32 %v2025_v54, 0.0  ;;  %v2002_v27 = vmul.f32 %v3224_v42, %v1963_v2  ;;  %v2026_v32 = vadd.f32 %v3229_v49, %v1987_v12  ;;  %v1964_v46 = vmul.f32 %v1891_v38, %v1707_v41  ;;  %v1709_v44 = vpop.f32.mrb[11].mxu1  ;;  %v1906_v54 = vpop.permute.xlu0 %1905 }
 0x159   : > { %v1911_v38 = vpop.permute.xlu1 %1910 }
 0x15a   : > { %2089 = vst.msk [vmem:[%s3243_s8 + $0x20] sm:$0xff] %vm1541_vm3, %v2057_v57  ;;  %v2041_v62 = vadd.f32 %v3229_v49, %v2002_v27  ;;  %v2058_v24 = vmax.f32 %v2026_v32, 0.0  ;;  %v2003_v33 = vmul.f32 %v3224_v42, %v1964_v46 }
 0x15c   : > { %v2073_v11 = vmax.f32 %v2041_v62, 0.0  ;;  %2090 = vst.msk [vmem:[%s3243_s8 + $0x28] sm:$0xff] %vm1541_vm3, %v2058_v24  ;;  %v2042_v39 = vadd.f32 %v3229_v49, %v2003_v33 }
 0x15e   : > { %2105 = vst.msk [vmem:[%s3243_s8 + $0xa0] sm:$0xff] %vm1541_vm3, %v2073_v11  ;;  %v2074_v34 = vmax.f32 %v2042_v39, 0.0 }
 0x160   : > { %2106 = vst.msk [vmem:[%s3243_s8 + $0xa8] sm:$0xff] %vm1541_vm3, %v2074_v34 }
 0x16a   : > { %v1648_v23 = vpop.f32.mrb[12].mxu0 }
 0x16b   : > { %v1949_v26 = vmul.f32 %v3209_v9, %v1648_v23  ;;  %v1650_v63 = vpop.f32.mrb[13].mxu0 }
 0x16c   : > { %v1651_v58 = vpop.f32.mrb[14].mxu0 }
 0x16d   : > { %v1988_v40 = vmul.f32 %v3224_v42, %v1949_v26  ;;  %v1950_v48 = vmul.f32 %v3211_v5, %v1651_v58  ;;  %v1653_v50 = vpop.f32.mrb[15].mxu0 }
 0x16f   : > { %v2027_v13 = vadd.f32 %v3229_v49, %v1988_v40  ;;  %v1989_v29 = vmul.f32 %v3224_v42, %v1950_v48 }
 0x170   : > { %v1712_v31 = vpop.f32.mrb[12].mxu1 }
 0x171   : > { %v2059_v59 = vmax.f32 %v2027_v13, 0.0  ;;  %v1965_v37 = vmul.f32 %v1896_v0, %v1712_v31  ;;  %v1714_v36 = vpop.f32.mrb[13].mxu1  ;;  %v2028_v9 = vadd.f32 %v3229_v49, %v1989_v29  ;;  %v1916_v13 = vpop.permute.xlu0 %1915 }
 0x172   : > { %v1715_v51 = vpop.f32.mrb[14].mxu1 }
 0x173   : > { %2091 = vst.msk [vmem:[%s3243_s8 + $0x30] sm:$0xff] %vm1541_vm3, %v2059_v59  ;;  %v2004_v5 = vmul.f32 %v3224_v42, %v1965_v37  ;;  %v2060_v18 = vmax.f32 %v2028_v9, 0.0  ;;  %v1966_v6 = vmul.f32 %v1901_v14, %v1715_v51  ;;  %v1717_v30 = vpop.f32.mrb[15].mxu1  ;;  %v1921_v59 = vpop.permute.xlu1 %1920 }
 0x175   : > { %v2043_v20 = vadd.f32 %v3229_v49, %v2004_v5  ;;  %2092 = vst.msk [vmem:[%s3243_s8 + $0x38] sm:$0xff] %vm1541_vm3, %v2060_v18  ;;  %v2005_v16 = vmul.f32 %v3224_v42, %v1966_v6 }
 0x177   : > { %v2075_v43 = vmax.f32 %v2043_v20, 0.0  ;;  %v2044_v4 = vadd.f32 %v3229_v49, %v2005_v16 }
 0x179   : > { %2107 = vst.msk [vmem:[%s3243_s8 + $0xb0] sm:$0xff] %vm1541_vm3, %v2075_v43  ;;  %v2076_v52 = vmax.f32 %v2044_v4, 0.0 }
 0x17b   : > { %2108 = vst.msk [vmem:[%s3243_s8 + $0xb8] sm:$0xff] %vm1541_vm3, %v2076_v52 }
 0x183   : > { %v1656_v53 = vpop.f32.mrb[16].mxu0 }
 0x184   : > { %v1951_v45 = vmul.f32 %v3213_v60, %v1656_v53  ;;  %v1658_v7 = vpop.f32.mrb[17].mxu0 }
 0x185   : > { %v1659_v15 = vpop.f32.mrb[18].mxu0 }
 0x186   : > { %v1990_v21 = vmul.f32 %v3224_v42, %v1951_v45  ;;  %v1952_v28 = vmul.f32 %v3215_v8, %v1659_v15  ;;  %v1661_v56 = vpop.f32.mrb[19].mxu0 }
 0x187   : > { %v1926_v56 = vpop.permute.xlu0 %1925 }
 0x188   : > { %v2029_v35 = vadd.f32 %v3229_v49, %v1990_v21  ;;  %v1991_v47 = vmul.f32 %v3224_v42, %v1952_v28  ;;  %v1931_v28 = vpop.permute.xlu1 %1930 }
 0x18a   : > { %v2061_v1 = vmax.f32 %v2029_v35, 0.0  ;;  %v2030_v61 = vadd.f32 %v3229_v49, %v1991_v47 }
 0x18b   : > { %v1720_v2 = vpop.f32.mrb[16].mxu1 }
 0x18c   : > { %2093 = vst.msk [vmem:[%s3243_s8 + $0x40] sm:$0xff] %vm1541_vm3, %v2061_v1  ;;  %v1967_v60 = vmul.f32 %v1906_v54, %v1720_v2  ;;  %v1722_v3 = vpop.f32.mrb[17].mxu1  ;;  %v2062_v12 = vmax.f32 %v2030_v61, 0.0 }
 0x18d   : > { %v1723_v41 = vpop.f32.mrb[18].mxu1 }
 0x18e   : > { %v2006_v8 = vmul.f32 %v3224_v42, %v1967_v60  ;;  %2094 = vst.msk [vmem:[%s3243_s8 + $0x48] sm:$0xff] %vm1541_vm3, %v2062_v12  ;;  %v1968_v57 = vmul.f32 %v1911_v38, %v1723_v41  ;;  %v1725_v27 = vpop.f32.mrb[19].mxu1 }
 0x190   : > { %v2045_v32 = vadd.f32 %v3229_v49, %v2006_v8  ;;  %v2007_v46 = vmul.f32 %v3224_v42, %v1968_v57 }
 0x192   : > { %v2077_v44 = vmax.f32 %v2045_v32, 0.0  ;;  %v2046_v62 = vadd.f32 %v3229_v49, %v2007_v46 }
 0x194   : > { %2109 = vst.msk [vmem:[%s3243_s8 + $0xc0] sm:$0xff] %vm1541_vm3, %v2077_v44  ;;  %v2078_v24 = vmax.f32 %v2046_v62, 0.0 }
 0x196   : > { %2110 = vst.msk [vmem:[%s3243_s8 + $0xc8] sm:$0xff] %vm1541_vm3, %v2078_v24 }
 0x19c   : > { %v1664_v33 = vpop.f32.mrb[20].mxu0 }
 0x19d   : > { %v1953_v11 = vmul.f32 %v3217_v10, %v1664_v33  ;;  %v1666_v39 = vpop.f32.mrb[21].mxu0  ;;  %v1936_v33 = vpop.permute.xlu0 %1935 }
 0x19e   : > { %v1667_v34 = vpop.f32.mrb[22].mxu0 }
 0x19f   : > { %v1992_v23 = vmul.f32 %v3224_v42, %v1953_v11  ;;  %v1954_v26 = vmul.f32 %v3219_v17, %v1667_v34  ;;  %v1669_v63 = vpop.f32.mrb[23].mxu0 }
 0x1a0   : > { %v1941_v63 = vpop.permute.xlu1 %1940 }
 0x1a1   : > { %v2031_v58 = vadd.f32 %v3229_v49, %v1992_v23  ;;  %v1993_v40 = vmul.f32 %v3224_v42, %v1954_v26 }
 0x1a3   : > { %v2063_v48 = vmax.f32 %v2031_v58, 0.0  ;;  %v2032_v50 = vadd.f32 %v3229_v49, %v1993_v40 }
 0x1a5   : > { %2095 = vst.msk [vmem:[%s3243_s8 + $0x50] sm:$0xff] %vm1541_vm3, %v2063_v48  ;;  %v1728_v29 = vpop.f32.mrb[20].mxu1  ;;  %v2064_v10 = vmax.f32 %v2032_v50, 0.0 }
 0x1a6   : > { %v1969_v0 = vmul.f32 %v1916_v13, %v1728_v29  ;;  %v1730_v31 = vpop.f32.mrb[21].mxu1 }
 0x1a7   : > { %2096 = vst.msk [vmem:[%s3243_s8 + $0x58] sm:$0xff] %vm1541_vm3, %v2064_v10  ;;  %v1731_v17 = vpop.f32.mrb[22].mxu1 }
 0x1a8   : > { %v2008_v37 = vmul.f32 %v3224_v42, %v1969_v0  ;;  %v1970_v36 = vmul.f32 %v1921_v59, %v1731_v17  ;;  %v1733_v9 = vpop.f32.mrb[23].mxu1 }
 0x1a9   : > { %v1672_v14 = vpop.f32.mrb[24].mxu0 }
 0x1aa   : > { %v2047_v51 = vadd.f32 %v3229_v49, %v2008_v37  ;;  %v2009_v5 = vmul.f32 %v3224_v42, %v1970_v36  ;;  %v1955_v18 = vmul.f32 %v3231_v22, %v1672_v14  ;;  %v1674_v6 = vpop.f32.mrb[25].mxu0 }
 0x1ab   : > { %v1675_v30 = vpop.f32.mrb[26].mxu0 }
 0x1ac   : > { %v2079_v20 = vmax.f32 %v2047_v51, 0.0  ;;  %v2048_v16 = vadd.f32 %v3229_v49, %v2009_v5  ;;  %v1994_v43 = vmul.f32 %v3224_v42, %v1955_v18  ;;  %v1956_v4 = vmul.f32 %v3234_v25, %v1675_v30  ;;  %v1677_v52 = vpop.f32.mrb[27].mxu0 }
 0x1ae   : > { %2111 = vst.msk [vmem:[%s3243_s8 + $0xd0] sm:$0xff] %vm1541_vm3, %v2079_v20  ;;  %v2080_v53 = vmax.f32 %v2048_v16, 0.0  ;;  %v2033_v45 = vadd.f32 %v3229_v49, %v1994_v43  ;;  %v1995_v7 = vmul.f32 %v3224_v42, %v1956_v4 }
 0x1b0   : > { %2112 = vst.msk [vmem:[%s3243_s8 + $0xd8] sm:$0xff] %vm1541_vm3, %v2080_v53  ;;  %v2065_v22 = vmax.f32 %v2033_v45, 0.0  ;;  %v2034_v15 = vadd.f32 %v3229_v49, %v1995_v7 }
 0x1b2   : > { %2097 = vst.msk [vmem:[%s3243_s8 + $0x60] sm:$0xff] %vm1541_vm3, %v2065_v22  ;;  %v2066_v21 = vmax.f32 %v2034_v15, 0.0 }
 0x1b3   : > { %v1680_v25 = vpop.f32.mrb[28].mxu0 }
 0x1b4   : > { %2098 = vst.msk [vmem:[%s3243_s8 + $0x68] sm:$0xff] %vm1541_vm3, %v2066_v21  ;;  %v1957_v47 = vmul.f32 %v3246_v55, %v1680_v25  ;;  %v1682_v1 = vpop.f32.mrb[29].mxu0 }
 0x1b5   : > { %v1736_v35 = vpop.f32.mrb[24].mxu1  ;;  %v1683_v2 = vpop.f32.mrb[30].mxu0 }
 0x1b6   : > { %v1971_v61 = vmul.f32 %v1926_v56, %v1736_v35  ;;  %v1738_v54 = vpop.f32.mrb[25].mxu1  ;;  %v1996_v3 = vmul.f32 %v3224_v42, %v1957_v47  ;;  %v1958_v12 = vmul.f32 %v3250_v19, %v1683_v2  ;;  %v1685_v38 = vpop.f32.mrb[31].mxu0 }
 0x1b7   : > { %v1739_v60 = vpop.f32.mrb[26].mxu1 }
 0x1b8   : > { %v2010_v41 = vmul.f32 %v3224_v42, %v1971_v61  ;;  %v1972_v8 = vmul.f32 %v1931_v28, %v1739_v60  ;;  %v1741_v57 = vpop.f32.mrb[27].mxu1  ;;  %v2035_v27 = vadd.f32 %v3229_v49, %v1996_v3  ;;  %v1997_v55 = vmul.f32 %v3224_v42, %v1958_v12 }
 0x1ba   : > { %v2049_v32 = vadd.f32 %v3229_v49, %v2010_v41  ;;  %v2011_v46 = vmul.f32 %v3224_v42, %v1972_v8  ;;  %v2067_v44 = vmax.f32 %v2035_v27, 0.0  ;;  %v2036_v62 = vadd.f32 %v3229_v49, %v1997_v55 }
 0x1bc   : > { %v2081_v19 = vmax.f32 %v2049_v32, 0.0  ;;  %v2050_v24 = vadd.f32 %v3229_v49, %v2011_v46  ;;  %2099 = vst.msk [vmem:[%s3243_s8 + $0x70] sm:$0xff] %vm1541_vm3, %v2067_v44  ;;  %v2068_v39 = vmax.f32 %v2036_v62, 0.0 }
 0x1bd   : > { %v1744_v11 = vpop.f32.mrb[28].mxu1 }
 0x1be   : > { %2113 = vst.msk [vmem:[%s3243_s8 + $0xe0] sm:$0xff] %vm1541_vm3, %v2081_v19  ;;  %v2082_v34 = vmax.f32 %v2050_v24, 0.0  ;;  %v1973_v23 = vmul.f32 %v1936_v33, %v1744_v11  ;;  %v1746_v26 = vpop.f32.mrb[29].mxu1  ;;  %2100 = vst.msk [vmem:[%s3243_s8 + $0x78] sm:$0xff] %vm1541_vm3, %v2068_v39 }
 0x1bf   : > { %v1747_v58 = vpop.f32.mrb[30].mxu1 }
 0x1c0   : > { %2114 = vst.msk [vmem:[%s3243_s8 + $0xe8] sm:$0xff] %vm1541_vm3, %v2082_v34  ;;  %v2012_v40 = vmul.f32 %v3224_v42, %v1973_v23  ;;  %v1974_v48 = vmul.f32 %v1941_v63, %v1747_v58  ;;  %v1749_v50 = vpop.f32.mrb[31].mxu1 }
 0x1c2   : > { %v2051_v13 = vadd.f32 %v3229_v49, %v2012_v40  ;;  %v2013_v29 = vmul.f32 %v3224_v42, %v1974_v48 }
 0x1c4   : > { %v2083_v10 = vmax.f32 %v2051_v13, 0.0  ;;  %v2052_v0 = vadd.f32 %v3229_v49, %v2013_v29 }
 0x1c6   : > { %2115 = vst.msk [vmem:[%s3243_s8 + $0xf0] sm:$0xff] %vm1541_vm3, %v2083_v10  ;;  %v2084_v31 = vmax.f32 %v2052_v0, 0.0 }
 0x1c8   : > { %2116 = vst.msk [vmem:[%s3243_s8 + $0xf8] sm:$0xff] %vm1541_vm3, %v2084_v31 }
 0x1c9 PF: > { %s15_s18 = sadd.s32 1, %s2268_s18  }
 0x1ca   : > { %p12_p4 = scmp.ge.s32.totalorder %s15_s18, 4  }
 0x1cc   :  { %14 = sbr.rel (!%p12_p4) target bundleno = 1 (0x1), region = 70 }

// kernel: mixed_5b_forward.7
= control target key start
LH: loop header
LB: loop body
LE: loop exit
PB: predicated region body
PF: predicated region fallthrough
CT: control target
= control target key end

     0   :  { %s4560_s15 = smov 0   ;;  %s5458_s0 = inlined_call_operand.vmem [shape: bf16[2,16,16,64], index: 0, kind: input, shape index: {}]   ;;  %s5459_s1 = inlined_call_operand.vmem [shape: bf16[3,3,64,128], index: 1, kind: input, shape index: {}]   ;;  %s5460_s2 = inlined_call_operand.vmem [shape: f32[1,128], index: 2, kind: input, shape index: {}]   ;;  %s5461_s3 = inlined_call_operand.vmem [shape: f32[1,128], index: 3, kind: input, shape index: {}]   ;;  %s5462_s4 = inlined_call_operand.vmem [shape: bf16[2,16,16,128], index: 4, kind: output, shape index: {}]  }
   0x1 LB: > { %s3223_s16 = sadd.s32 4294967295, %s4532_s15   ;;  %p3227_p0 = scmp.ge.s32.totalorder %s4532_s15, 1  ;;  %s4532_s15 = sphi %s4560_s15, %s14_s15  }
   0x2   : > { %p162_p1 = scmp.lt.s32.totalorder %s4532_s15, 3 }
   0x4   : > { %p163_p2 = pnand %p3227_p0, %p162_p1 }
   0x5   : > { %v4470_v0 = vld [vmem:[%s5459_s1 + $0x20] sm:$0xff] (!%p163_p2)   ;;  %v4472_v2 = vld [vmem:[%s5459_s1 + $0x28] sm:$0xff] (!%p163_p2)   ;;  %v4474_v4 = vld [vmem:[%s5459_s1 + $0x30] sm:$0xff] (!%p163_p2)   ;;  %p188_p3 = scmp.lt.s32.totalorder (!%p163_p2), %s3223_s16, 1  ;;  %v4534_v6 = vmov (!%p163_p2), 0   ;;  %vm464_vm0 = vcmask (!%p163_p2), 1040384  }
   0x6   : > { %166 = sbr.rel (%p163_p2) target bundleno = 539 (0x21b), region = 36  ;;  %v4471_v1 = vld [vmem:[%s5459_s1 + $0x80] sm:$0xff] (!%p163_p2)   ;;  %3837 = vmatprep.subr.bf16.mxu1 (!%p163_p2), %v4470_v0  ;;  %v4473_v3 = vld [vmem:[%s5459_s1 + $0x88] sm:$0xff] (!%p163_p2)   ;;  %v4475_v5 = vld [vmem:[%s5459_s1 + $0x90] sm:$0xff] (!%p163_p2)   ;;  %v314_v7 = vrot.slane (!%p163_p2), %v4534_v6, 7  ;;  %vm735_vm4 = vcmask (!%p163_p2), 523264  }
   0x7   : > { %3997 = vmatprep.subr.bf16.mxu0 (!%p163_p2), %v4471_v1  ;;  %3838 = vmatpush3.bf16.msra.mxu1 (!%p163_p2), %v4470_v0  ;;  %v4476_v8 = vld [vmem:[%s5459_s1 + $0x38] sm:$0xff] (!%p163_p2)   ;;  %vm465_vm1 = vsmask.f32 (!%p163_p2), 256  ;;  %vm509_vm3 = vsmask.f32 (!%p163_p2), 7424  ;;  %v4621_v17 = vld [vmem:[%s5459_s1] sm:$0xff] (!%p163_p2)  }
   0x8   : > { %3998 = vmatpush3.bf16.msra.mxu0 (!%p163_p2), %v4471_v1  ;;  %3839 = vmatprep.subr.bf16.mxu1 (!%p163_p2), %v4472_v2  ;;  %v4477_v9 = vld [vmem:[%s5459_s1 + $0x98] sm:$0xff] (!%p163_p2)   ;;  %vm4595_vm2 = vmand (!%p163_p2), %vm464_vm0, %vm465_vm1  ;;  %v4626_v18 = vld [vmem:[%s5459_s1 + $0xa0] sm:$0xff] (!%p163_p2)   ;;  %vm1194_vm5 = vcmask (!%p163_p2), 1046528  }
   0x9   : > { %3999 = vmatprep.subr.bf16.mxu0 (!%p163_p2), %v4473_v3  ;;  %v4608_v11 = vsel (!%p163_p2), %vm4595_vm2, 0, %v314_v7  ;;  %v4612_v12 = vsel (!%p163_p2), %vm4595_vm2, %v314_v7, 0  ;;  %v4511_v10 = vld [vmem:[%s5459_s1 + $0xe8] sm:$0xff] (!%p163_p2)  }
   0xa   : > { %v511_v13 = vshrl.u32 (!%p163_p2), %v4608_v11, 16  ;;  %v513_v14 = vshll.u32 (!%p163_p2), %v4608_v11, 16  ;;  %v518_v15 = vshll.u32 (!%p163_p2), %v4612_v12, 16 }
   0xb   : > { %3840 = vmatpush3.bf16.msra.mxu1 (!%p163_p2), %v4472_v2  ;;  %v4486_v2 = vld [vmem:[%s5459_s1 + $0x8] sm:$0xff] (!%p163_p2)  }
   0xc   : > { %4000 = vmatpush3.bf16.msra.mxu0 (!%p163_p2), %v4473_v3  ;;  %3841 = vmatprep.subr.bf16.mxu1 (!%p163_p2), %v4474_v4  ;;  %v515_v19 = vrot.slane (!%p163_p2), %v513_v14, 1  ;;  %v520_v20 = vrot.slane (!%p163_p2), %v518_v15, 1 }
   0xd   : > { %s5466_s16 = smov (!%p188_p3, %s3223_s16), 1  ;;  %4001 = vmatprep.subr.bf16.mxu0 %v4475_v5 }
   0xe   : > { %s3528_s7 = sshll.u32 %s5466_s16, 7  ;;  %v516_v24 = vor.u32 %v515_v19, %v511_v13 }
   0xf   : > { %s4604_s10 = scalar_lea.vmem %s5458_s0, %s3528_s7  ;;  %3842 = vmatpush3.bf16.msra.mxu1 %v4474_v4  ;;  %s5376_s13 = scalar_lea.vmem %s5462_s4, %s3528_s7 }
  0x10   : > { %v4478_v16 = vld [vmem:[%s4604_s10] sm:$0xff]   ;;  %4002 = vmatpush3.bf16.msra.mxu0 %v4475_v5  ;;  %3843 = vmatprep.subr.bf16.mxu1 %v4476_v8  ;;  %v4481_v23 = vld [vmem:[%s4604_s10 + $0x8] sm:$0xff]   ;;  %v4482_v26 = vld [vmem:[%s4604_s10 + $0x10] sm:$0xff]   ;;  %v4633_v30 = vsel %vm509_vm3, %v516_v24, %v520_v20 }
  0x11   : > { %4003 = vmatprep.subr.bf16.mxu0 %v4477_v9  ;;  %v319_v21 = vshrl.u32 %v4478_v16, 16  ;;  %v322_v22 = vshll.u32 %v4478_v16, 16  ;;  %v326_v27 = vshrl.u32 %v4481_v23, 16  ;;  %v329_v28 = vshll.u32 %v4481_v23, 16  ;;  %v4484_v29 = vld [vmem:[%s4604_s10 + $0x18] sm:$0xff]   ;;  %3845 = vmatprep.mubr.msk.bf16.mxu1 %vm735_vm4, %v4633_v30  ;;  %v4485_v48 = vld [vmem:[%s4604_s10 + $0x20] sm:$0xff]  }
  0x12   : > { %v333_v33 = vshrl.u32 %v4482_v26, 16  ;;  %v336_v36 = vshll.u32 %v4482_v26, 16  ;;  %v340_v37 = vshrl.u32 %v4484_v29, 16  ;;  %v343_v43 = vshll.u32 %v4484_v29, 16  ;;  %v4488_v61 = vld [vmem:[%s4604_s10 + $0x28] sm:$0xff]   ;;  %v4489_v7 = vld [vmem:[%s4604_s10 + $0x30] sm:$0xff]  }
  0x13   : > { %3844 = vmatpush3.bf16.msra.mxu1 %v4476_v8  ;;  %v321_v25 = vrot.slane %v319_v21, 7  ;;  %v328_v35 = vrot.slane %v326_v27, 7  ;;  %v347_v6 = vshrl.u32 %v4485_v48, 16  ;;  %v350_v14 = vshll.u32 %v4485_v48, 16  ;;  %v4493_v27 = vld [vmem:[%s5459_s1 + $0x10] sm:$0xff]  }
  0x14   : > { %4004 = vmatpush3.bf16.msra.mxu0 %v4477_v9  ;;  %3877 = vmatprep.subr.bf16.mxu1 %v4621_v17  ;;  %v335_v39 = vrot.slane %v333_v33, 7  ;;  %v342_v47 = vrot.slane %v340_v37, 7  ;;  %v4483_v9 = vld [vmem:[%s5459_s1 + $0xa8] sm:$0xff]   ;;  %v354_v15 = vshrl.u32 %v4488_v61, 16  ;;  %v357_v26 = vshll.u32 %v4488_v61, 16  ;;  %v4487_v29 = vld [vmem:[%s5459_s1 + $0xb0] sm:$0xff]  }
  0x15   : > { %v324_v31 = vor.u32 %v322_v22, %v321_v25  ;;  %v4637_v32 = vsel %vm4595_vm2, %v321_v25, 0  ;;  %4037 = vmatprep.subr.bf16.mxu0 %v4626_v18  ;;  %v331_v42 = vor.u32 %v329_v28, %v328_v35  ;;  %v4651_v44 = vsel %vm4595_vm2, %v328_v35, 0  ;;  %v4491_v22 = vld [vmem:[%s4604_s10 + $0x38] sm:$0xff]  }
  0x16   : > { %v530_v34 = vshll.u32 %v4637_v32, 16  ;;  %v338_v45 = vor.u32 %v336_v36, %v335_v39  ;;  %v4655_v46 = vsel %vm4595_vm2, %v335_v39, 0  ;;  %v542_v52 = vshll.u32 %v4651_v44, 16 }
  0x17   : > { %v4645_v38 = vsel %vm4595_vm2, 0, %v324_v31  ;;  %v4660_v51 = vsel %vm4595_vm2, 0, %v331_v42  ;;  %v554_v56 = vshll.u32 %v4655_v46, 16  ;;  %v345_v0 = vor.u32 %v343_v43, %v342_v47  ;;  %v4492_v42 = vld [vmem:[%s4604_s10 + $0x40] sm:$0xff]  }
  0x18   : > { %v523_v40 = vshrl.u32 %v4645_v38, 16  ;;  %v525_v41 = vshll.u32 %v4645_v38, 16  ;;  %v532_v50 = vrot.slane %v530_v34, 1  ;;  %v535_v53 = vshrl.u32 %v4660_v51, 16 }
  0x19   : > { %v537_v54 = vshll.u32 %v4660_v51, 16  ;;  %v4667_v55 = vsel %vm4595_vm2, 0, %v338_v45  ;;  %v544_v58 = vrot.slane %v542_v52, 1  ;;  %v556_v63 = vrot.slane %v554_v56, 1 }
  0x1a   : > { %v527_v49 = vrot.slane %v525_v41, 1  ;;  %v547_v59 = vshrl.u32 %v4667_v55, 16  ;;  %v549_v60 = vshll.u32 %v4667_v55, 16  ;;  %v4675_v1 = vsel %vm4595_vm2, %v342_v47, 0 }
  0x1b   : > { %v539_v62 = vrot.slane %v537_v54, 1  ;;  %v566_v5 = vshll.u32 %v4675_v1, 16  ;;  %v4690_v13 = vsel %vm4595_vm2, 0, %v345_v0  ;;  %v349_v24 = vrot.slane %v347_v6, 7 }
  0x1c   : > { %v528_v57 = vor.u32 %v527_v49, %v523_v40  ;;  %v551_v4 = vrot.slane %v549_v60, 1  ;;  %v559_v19 = vshrl.u32 %v4690_v13, 16  ;;  %v561_v20 = vshll.u32 %v4690_v13, 16 }
  0x1d   : > { %v540_v8 = vor.u32 %v539_v62, %v535_v53  ;;  %v568_v21 = vrot.slane %v566_v5, 1  ;;  %v356_v25 = vrot.slane %v354_v15, 7  ;;  %v361_v31 = vshrl.u32 %v4489_v7, 16 }
  0x1e   : > { %v533_v3 = vsel %vm509_vm3, %v528_v57, %v532_v50  ;;  %v552_v16 = vor.u32 %v551_v4, %v547_v59  ;;  %v563_v28 = vrot.slane %v561_v20, 1  ;;  %v364_v33 = vshll.u32 %v4489_v7, 16  ;;  %v4490_v59 = vld [vmem:[%s5459_s1 + $0xb8] sm:$0xff]  }
  0x1f   : > { %3846 = vmatmul.mubr.msk.bf16.vlgmr.msra.gmra.mrb[0].mxu1 %vm735_vm4, %v533_v3  ;;  %4005 = vmatprep.mubr.msk.bf16.mxu0 %vm735_vm4, %v533_v3  ;;  %v4697_v23 = vsel %vm509_vm3, %v540_v8, %v544_v58  ;;  %v352_v34 = vor.u32 %v350_v14, %v349_v24  ;;  %v4717_v35 = vsel %vm4595_vm2, %v349_v24, 0  ;;  %v359_v36 = vor.u32 %v357_v26, %v356_v25 }
  0x20   : > { %3878 = vmatpush3.bf16.msra.mxu1 %v4621_v17  ;;  %4006 = vmatmul.mubr.msk.bf16.vlgmr.msra.gmra.mrb[0].mxu0 %vm735_vm4, %v4697_v23  ;;  %v4707_v17 = vsel %vm509_vm3, %v552_v16, %v556_v63  ;;  %v4721_v37 = vsel %vm4595_vm2, %v356_v25, 0  ;;  %v564_v39 = vor.u32 %v563_v28, %v559_v19  ;;  %v578_v40 = vshll.u32 %v4717_v35, 16  ;;  %v4768_v19 = vld [vmem:[%s5459_s1 + $0xc0] sm:$0xff]   ;;  %v4499_v25 = vld [vmem:[%s5459_s1 + $0x18] sm:$0xff]   ;;  %v4495_v28 = vld [vmem:[%s4604_s10 + $0x48] sm:$0xff]  }
  0x21   : > { %3879 = vmatprep.subr.bf16.mxu1 %v4486_v2  ;;  %3849 = vmatprep.mubr.msk.bf16.mxu1 %vm735_vm4, %v4697_v23  ;;  %v363_v41 = vrot.slane %v361_v31, 7  ;;  %v4728_v43 = vsel %vm4595_vm2, 0, %v352_v34  ;;  %v4732_v45 = vsel %vm4595_vm2, 0, %v359_v36  ;;  %v368_v47 = vshrl.u32 %v4491_v22, 16 }
  0x22   : > { %4038 = vmatpush3.bf16.msra.mxu0 %v4626_v18  ;;  %4009 = vmatprep.mubr.msk.bf16.mxu0 %vm735_vm4, %v4707_v17  ;;  %v590_v18 = vshll.u32 %v4721_v37, 16  ;;  %v371_v48 = vshll.u32 %v4491_v22, 16  ;;  %v4735_v49 = vsel %vm509_vm3, %v564_v39, %v568_v21  ;;  %v571_v50 = vshrl.u32 %v4728_v43, 16 }
  0x23   : > { %4039 = vmatprep.subr.bf16.mxu0 %v4483_v9  ;;  %v573_v52 = vshll.u32 %v4728_v43, 16  ;;  %v580_v53 = vrot.slane %v578_v40, 1  ;;  %v583_v54 = vshrl.u32 %v4732_v45, 16  ;;  %v585_v56 = vshll.u32 %v4732_v45, 16 }
  0x24   : > { %3880 = vmatpush3.bf16.msra.mxu1 %v4486_v2  ;;  %v592_v57 = vrot.slane %v590_v18, 1  ;;  %v366_v58 = vor.u32 %v364_v33, %v363_v41  ;;  %v4750_v61 = vsel %vm4595_vm2, %v363_v41, 0  ;;  %v370_v62 = vrot.slane %v368_v47, 7  ;;  %v4496_v33 = vld [vmem:[%s4604_s10 + $0x50] sm:$0xff]  }
  0x25   : > { %3881 = vmatprep.subr.bf16.mxu1 %v4493_v27  ;;  %v575_v60 = vrot.slane %v573_v52, 1  ;;  %v375_v63 = vshrl.u32 %v4492_v42, 16  ;;  %v587_v0 = vrot.slane %v585_v56, 1  ;;  %v602_v3 = vshll.u32 %v4750_v61, 16 }
  0x26   : > { %4040 = vmatpush3.bf16.msra.mxu0 %v4483_v9  ;;  %v4754_v2 = vsel %vm4595_vm2, 0, %v366_v58  ;;  %v378_v4 = vshll.u32 %v4492_v42, 16  ;;  %v373_v8 = vor.u32 %v371_v48, %v370_v62  ;;  %v4763_v15 = vsel %vm4595_vm2, %v370_v62, 0  ;;  %v4497_v48 = vld [vmem:[%s4604_s10 + $0x58] sm:$0xff]  }
  0x27   : > { %3850 = vmatmul.mubr.msk.bf16.gmra.mrb[4].mxu1 %vm735_vm4, %v4707_v17  ;;  %4041 = vmatprep.subr.bf16.mxu0 %v4487_v29  ;;  %v576_v5 = vor.u32 %v575_v60, %v571_v50  ;;  %v595_v6 = vshrl.u32 %v4754_v2, 16  ;;  %v597_v7 = vshll.u32 %v4754_v2, 16  ;;  %v588_v9 = vor.u32 %v587_v0, %v583_v54 }
  0x28   : > { %3853 = vmatprep.mubr.msk.bf16.mxu1 %vm735_vm4, %v4735_v49  ;;  %3882 = vmatpush3.bf16.msra.mxu1 %v4493_v27  ;;  %v604_v14 = vrot.slane %v602_v3, 1  ;;  %v377_v16 = vrot.slane %v375_v63, 7  ;;  %v4775_v22 = vsel %vm4595_vm2, 0, %v373_v8  ;;  %v614_v24 = vshll.u32 %v4763_v15, 16  ;;  %v4819_v63 = vld [vmem:[%s5459_s1 + $0x40] sm:$0xff]  }
  0x29   : > { %4010 = vmatmul.mubr.msk.bf16.gmra.mrb[4].mxu0 %vm735_vm4, %v4735_v49  ;;  %v4771_v20 = vsel %vm509_vm3, %v576_v5, %v580_v53  ;;  %v599_v21 = vrot.slane %v597_v7, 1  ;;  %v609_v26 = vshll.u32 %v4775_v22, 16  ;;  %3883 = vmatprep.subr.bf16.mxu1 %v4499_v25  ;;  %v4793_v34 = vsel %vm509_vm3, %v588_v9, %v592_v57  ;;  %v4498_v8 = vld [vmem:[%s4604_s10 + $0x60] sm:$0xff]  }
  0x2a   : > { %4042 = vmatpush3.bf16.msra.mxu0 %v4487_v29  ;;  %4013 = vmatprep.mubr.msk.bf16.mxu0 %vm735_vm4, %v4771_v20  ;;  %v380_v27 = vor.u32 %v378_v4, %v377_v16  ;;  %v4787_v31 = vsel %vm4595_vm2, %v377_v16, 0  ;;  %v607_v36 = vshrl.u32 %v4775_v22, 16  ;;  %v616_v41 = vrot.slane %v614_v24, 1 }
  0x2b   : > { %4043 = vmatprep.subr.bf16.mxu0 %v4490_v59  ;;  %v600_v29 = vor.u32 %v599_v21, %v595_v6  ;;  %v611_v39 = vrot.slane %v609_v26, 1  ;;  %v1198_v47 = vrot.slane %v4645_v38, 1  ;;  %v626_v50 = vshll.u32 %v4787_v31, 16 }
  0x2c   : > { %v4798_v40 = vsel %vm4595_vm2, 0, %v380_v27  ;;  %v382_v52 = vshrl.u32 %v4495_v28, 16  ;;  %3884 = vmatpush3.bf16.msra.mxu1 %v4499_v25  ;;  %v1199_v54 = vrot.slane %v4637_v32, 1  ;;  %v385_v56 = vshll.u32 %v4495_v28, 16 }
  0x2d   : > { %v4803_v18 = vsel %vm509_vm3, %v600_v29, %v604_v14  ;;  %v621_v42 = vshll.u32 %v4798_v40, 16  ;;  %v619_v53 = vshrl.u32 %v4798_v40, 16  ;;  %v389_v57 = vshrl.u32 %v4496_v33, 16  ;;  %3917 = vmatprep.subr.bf16.mxu1 %v4819_v63 }
  0x2e   : > { %4044 = vmatpush3.bf16.msra.mxu0 %v4490_v59  ;;  %v612_v58 = vor.u32 %v611_v39, %v607_v36  ;;  %v384_v60 = vrot.slane %v382_v52, 7  ;;  %v392_v62 = vshll.u32 %v4496_v33, 16  ;;  %v1202_v0 = vrot.slane %v4651_v44, 1 }
  0x2f   : > { %3854 = vmatmul.mubr.msk.bf16.gmra.mrb[8].mxu1 %vm735_vm4, %v4771_v20  ;;  %4077 = vmatprep.subr.bf16.mxu0 %v4768_v19  ;;  %v623_v59 = vrot.slane %v621_v42, 1  ;;  %v1201_v3 = vrot.slane %v4660_v51, 1  ;;  %v391_v32 = vrot.slane %v389_v57, 7  ;;  %v628_v4 = vrot.slane %v626_v50, 1 }
  0x30   : > { %3857 = vmatprep.mubr.msk.bf16.mxu1 %vm735_vm4, %v4793_v34  ;;  %v387_v5 = vor.u32 %v385_v56, %v384_v60  ;;  %v4825_v6 = vsel %vm4595_vm2, %v384_v60, 0  ;;  %v396_v7 = vshrl.u32 %v4497_v48, 16  ;;  %v4830_v9 = vsel %vm1194_vm5, %v1198_v47, %v1199_v54 }
  0x31   : > { %4014 = vmatmul.mubr.msk.bf16.gmra.mrb[8].mxu0 %vm735_vm4, %v4793_v34  ;;  %v638_v14 = vshll.u32 %v4825_v6, 16  ;;  %v394_v16 = vor.u32 %v392_v62, %v391_v32  ;;  %v1204_v44 = vrot.slane %v4667_v55, 1  ;;  %v4837_v21 = vsel %vm509_vm3, %v612_v58, %v616_v41  ;;  %v4501_v62 = vld [vmem:[%s4604_s10 + $0x68] sm:$0xff]  }
  0x32   : > { %4017 = vmatprep.mubr.msk.bf16.mxu0 %vm735_vm4, %v4803_v18  ;;  %v624_v24 = vor.u32 %v623_v59, %v619_v53  ;;  %v4841_v25 = vsel %vm4595_vm2, 0, %v387_v5  ;;  %v1205_v26 = vrot.slane %v4655_v46, 1  ;;  %v4854_v33 = vsel %vm4595_vm2, %v391_v32, 0 }
  0x33   : > { %v631_v27 = vshrl.u32 %v4841_v25, 16  ;;  %v633_v28 = vshll.u32 %v4841_v25, 16  ;;  %v4850_v29 = vsel %vm4595_vm2, 0, %v394_v16  ;;  %v640_v36 = vrot.slane %v638_v14, 1 }
  0x34   : > { %v645_v39 = vshll.u32 %v4850_v29, 16  ;;  %v1207_v46 = vrot.slane %v4690_v13, 1  ;;  %v398_v41 = vrot.slane %v396_v7, 7  ;;  %v399_v47 = vshll.u32 %v4497_v48, 16 }
  0x35   : > { %v635_v42 = vrot.slane %v633_v28, 1  ;;  %v403_v50 = vshrl.u32 %v4498_v8, 16  ;;  %v406_v52 = vshll.u32 %v4498_v8, 16  ;;  %v643_v53 = vshrl.u32 %v4850_v29, 16 }
  0x36   : > { %v647_v54 = vrot.slane %v645_v39, 1  ;;  %v650_v56 = vshll.u32 %v4854_v33, 16  ;;  %v4866_v57 = vsel %vm4595_vm2, %v398_v41, 0  ;;  %v4869_v58 = vsel %vm509_vm3, %v624_v24, %v628_v4  ;;  %v4502_v24 = vld [vmem:[%s4604_s10 + $0x70] sm:$0xff]  }
  0x37   : > { %3858 = vmatmul.mubr.msk.bf16.gmra.mrb[12].mxu1 %vm735_vm4, %v4803_v18  ;;  %v636_v59 = vor.u32 %v635_v42, %v631_v27  ;;  %v401_v48 = vor.u32 %v399_v47, %v398_v41  ;;  %v405_v60 = vrot.slane %v403_v50, 7  ;;  %v4873_v32 = vsel %vm1194_vm5, %v1201_v3, %v1202_v0 }
  0x38   : > { %3861 = vmatprep.mubr.msk.bf16.mxu1 %vm735_vm4, %v4837_v21  ;;  %v1208_v5 = vrot.slane %v4675_v1, 1  ;;  %v662_v7 = vshll.u32 %v4866_v57, 16  ;;  %v4881_v14 = vsel %vm1194_vm5, %v1204_v44, %v1205_v26  ;;  %v648_v0 = vor.u32 %v647_v54, %v643_v53  ;;  %v4500_v44 = vld [vmem:[%s5459_s1 + $0xc8] sm:$0xff]  }
  0x39   : > { %4018 = vmatmul.mubr.msk.bf16.gmra.mrb[12].mxu0 %vm735_vm4, %v4837_v21  ;;  %v4878_v8 = vsel %vm509_vm3, %v636_v59, %v640_v36  ;;  %v4885_v4 = vsel %vm4595_vm2, 0, %v401_v48  ;;  %v408_v16 = vor.u32 %v406_v52, %v405_v60  ;;  %v652_v3 = vrot.slane %v650_v56, 1 }
  0x3a   : > { %4045 = vmatprep.mubr.msk.bf16.mxu0 %vm735_vm4, %v4830_v9  ;;  %v655_v1 = vshrl.u32 %v4885_v4, 16  ;;  %v657_v27 = vshll.u32 %v4885_v4, 16  ;;  %v4903_v28 = vsel %vm4595_vm2, %v405_v60, 0  ;;  %v1210_v36 = vrot.slane %v4728_v43, 1 }
  0x3b   : > { %v4899_v26 = vsel %vm4595_vm2, 0, %v408_v16  ;;  %v410_v39 = vshrl.u32 %v4501_v62, 16  ;;  %v664_v42 = vrot.slane %v662_v7, 1  ;;  %v413_v50 = vshll.u32 %v4501_v62, 16 }
  0x3c   : > { %v659_v41 = vrot.slane %v657_v27, 1  ;;  %v669_v47 = vshll.u32 %v4899_v26, 16  ;;  %v1211_v52 = vrot.slane %v4717_v35, 1  ;;  %v417_v54 = vshrl.u32 %v4502_v24, 16 }
  0x3d   : > { %v412_v53 = vrot.slane %v410_v39, 7  ;;  %v420_v56 = vshll.u32 %v4502_v24, 16  ;;  %v4912_v59 = vsel %vm509_vm3, %v648_v0, %v652_v3  ;;  %v667_v60 = vshrl.u32 %v4899_v26, 16 }
  0x3e   : > { %v660_v48 = vor.u32 %v659_v41, %v655_v1  ;;  %v674_v62 = vshll.u32 %v4903_v28, 16  ;;  %v671_v7 = vrot.slane %v669_v47, 1  ;;  %v419_v24 = vrot.slane %v417_v54, 7 }
  0x3f   : > { %3862 = vmatmul.mubr.msk.bf16.gmra.mrb[16].mxu1 %vm735_vm4, %v4869_v58  ;;  %v415_v16 = vor.u32 %v413_v50, %v412_v53  ;;  %v4920_v35 = vsel %vm4595_vm2, %v412_v53, 0  ;;  %v4938_v39 = vsel %vm1194_vm5, %v1207_v46, %v1208_v5  ;;  %v4945_v53 = vsel %vm1194_vm5, %v1210_v36, %v1211_v52  ;;  %v4506_v46 = vld [vmem:[%s5459_s1 + $0xd8] sm:$0xff]  }
  0x40   : > { %3865 = vmatprep.mubr.msk.bf16.mxu1 %vm735_vm4, %v4878_v8  ;;  %v4926_v0 = vsel %vm509_vm3, %v660_v48, %v664_v42  ;;  %v686_v3 = vshll.u32 %v4920_v35, 16  ;;  %v422_v27 = vor.u32 %v420_v56, %v419_v24  ;;  %v672_v47 = vor.u32 %v671_v7, %v667_v60 }
  0x41   : > { %4046 = vmatmul.mubr.msk.bf16.vlgmr.msra.gmra.mrb[0].mxu0 %vm735_vm4, %v4873_v32  ;;  %v4931_v1 = vsel %vm4595_vm2, 0, %v415_v16  ;;  %v676_v50 = vrot.slane %v674_v62, 1  ;;  %v4956_v56 = vsel %vm4595_vm2, %v419_v24, 0  ;;  %v1213_v36 = vrot.slane %v4732_v45, 1 }
  0x42   : > { %4078 = vmatpush3.bf16.msra.mxu0 %v4768_v19  ;;  %4049 = vmatprep.mubr.msk.bf16.mxu0 %vm735_vm4, %v4881_v14  ;;  %v4504_v19 = vld [vmem:[%s5459_s1 + $0xd0] sm:$0xff]   ;;  %v679_v41 = vshrl.u32 %v4931_v1, 16  ;;  %v681_v42 = vshll.u32 %v4931_v1, 16  ;;  %v4949_v54 = vsel %vm4595_vm2, 0, %v422_v27  ;;  %v1214_v52 = vrot.slane %v4721_v37, 1  ;;  %v4975_v37 = vld [vmem:[%s5459_s1 + $0xe0] sm:$0xff]  }
  0x43   : > { %4079 = vmatprep.subr.bf16.mxu0 %v4500_v44  ;;  %v693_v48 = vshll.u32 %v4949_v54, 16  ;;  %v1216_v62 = vrot.slane %v4754_v2, 1  ;;  %v1217_v7 = vrot.slane %v4750_v61, 1  ;;  %v4968_v16 = vsel %vm509_vm3, %v672_v47, %v676_v50 }
  0x44   : > { %v683_v5 = vrot.slane %v681_v42, 1  ;;  %v691_v24 = vshrl.u32 %v4949_v54, 16  ;;  %v698_v27 = vshll.u32 %v4956_v56, 16  ;;  %v1196_v61 = vrot.slane %v4612_v12, 1 }
  0x45   : > { %v4989_v50 = vsel %vm1194_vm5, %v1216_v62, %v1217_v7  ;;  %v1228_v7 = vrot.slane %v4850_v29, 1 }
  0x46   : > { %4080 = vmatpush3.bf16.msra.mxu0 %v4500_v44  ;;  %v688_v44 = vrot.slane %v686_v3, 1  ;;  %v684_v60 = vor.u32 %v683_v5, %v679_v41  ;;  %v695_v3 = vrot.slane %v693_v48, 1  ;;  %v700_v47 = vrot.slane %v698_v27, 1 }
  0x47   : > { %3866 = vmatmul.mubr.msk.bf16.gmra.mrb[20].mxu1 %vm735_vm4, %v4912_v59  ;;  %4081 = vmatprep.subr.bf16.mxu0 %v4504_v19  ;;  %v1195_v5 = vrot.slane %v4608_v11, 1 }
  0x48   : > { %3869 = vmatprep.mubr.msk.bf16.mxu1 %vm735_vm4, %v4926_v0  ;;  %v4978_v41 = vsel %vm509_vm3, %v684_v60, %v688_v44  ;;  %v696_v42 = vor.u32 %v695_v3, %v691_v24  ;;  %v1220_v44 = vrot.slane %v4763_v15, 1  ;;  %v1225_v15 = vrot.slane %v4841_v25, 1  ;;  %v4505_v3 = vld [vmem:[%s5459_s1 + $0x48] sm:$0xff]  }
  0x49   : > { %4050 = vmatmul.mubr.msk.bf16.gmra.mrb[4].mxu0 %vm735_vm4, %v4938_v39  ;;  %v4996_v12 = vsel %vm1194_vm5, %v1195_v5, %v1196_v61  ;;  %v1229_v24 = vrot.slane %v4854_v33, 1  ;;  %v4507_v61 = vld [vmem:[%s4604_s10 + $0x78] sm:$0xff]   ;;  %v4508_v33 = vld [vmem:[%s5459_s1 + $0x50] sm:$0xff]   ;;  %v1235_v5 = vrot.slane %v4903_v28, 1 }
  0x4a   : > { %4053 = vmatprep.mubr.msk.bf16.mxu0 %vm735_vm4, %v4945_v53  ;;  %4082 = vmatpush3.bf16.msra.mxu0 %v4504_v19  ;;  %v4984_v19 = vsel %vm1194_vm5, %v1213_v36, %v1214_v52  ;;  %v5003_v48 = vsel %vm509_vm3, %v696_v42, %v700_v47  ;;  %v1222_v36 = vrot.slane %v4798_v40, 1  ;;  %v1223_v52 = vrot.slane %v4787_v31, 1 }
  0x4b   : > { %4083 = vmatprep.subr.bf16.mxu0 %v4506_v46  ;;  %v1226_v31 = vrot.slane %v4825_v6, 1  ;;  %v5037_v6 = vsel %vm1194_vm5, %v1228_v7, %v1229_v24  ;;  %v1232_v42 = vrot.slane %v4866_v57, 1  ;;  %v1234_v47 = vrot.slane %v4899_v26, 1 }
  0x4c   : > { %v5015_v62 = vsel %vm1194_vm5, %v1222_v36, %v1223_v52  ;;  %v427_v52 = vshll.u32 %v4507_v61, 16  ;;  %v1238_v7 = vrot.slane %v4920_v35, 1  ;;  %v1240_v24 = vrot.slane %v4949_v54, 1 }
  0x4d   : > { %v5031_v27 = vsel %vm1194_vm5, %v1225_v15, %v1226_v31  ;;  %v5062_v57 = vsel %vm1194_vm5, %v1234_v47, %v1235_v5  ;;  %v4512_v15 = vld [vmem:[%s5459_s1 + $0x60] sm:$0xff]   ;;  %v1237_v31 = vrot.slane %v4931_v1, 1 }
  0x4e   : > { %4084 = vmatpush3.bf16.msra.mxu0 %v4506_v46  ;;  %v1219_v46 = vrot.slane %v4775_v22, 1 }
  0x4f   : > { %3870 = vmatmul.mubr.msk.bf16.gmra.mrb[24].mxu1 %vm735_vm4, %v4968_v16  ;;  %4117 = vmatprep.subr.bf16.mxu0 %v4975_v37 }
  0x50   : > { %3873 = vmatprep.mubr.msk.bf16.mxu1 %vm735_vm4, %v4978_v41  ;;  %v5010_v60 = vsel %vm1194_vm5, %v1219_v46, %v1220_v44  ;;  %v424_v46 = vshrl.u32 %v4507_v61, 16  ;;  %v4510_v44 = vld [vmem:[%s5459_s1 + $0x58] sm:$0xff]  }
  0x51   : > { %4054 = vmatmul.mubr.msk.bf16.gmra.mrb[8].mxu0 %vm735_vm4, %v4984_v19 }
  0x52   : > { %4057 = vmatprep.mubr.msk.bf16.mxu0 %vm735_vm4, %v4989_v50  ;;  %v426_v28 = vrot.slane %v424_v46, 7  ;;  %v4513_v46 = vld [vmem:[%s5459_s1 + $0xf0] sm:$0xff]  }
  0x54   : > { %v429_v61 = vor.u32 %v427_v52, %v426_v28  ;;  %v4516_v52 = vld [vmem:[%s5459_s1 + $0x70] sm:$0xff]  }
  0x56   : > { %v5087_v35 = vsel %vm4595_vm2, 0, %v429_v61 }
  0x57   : > { %3874 = vmatmul.mubr.msk.bf16.gmra.mrb[28].mxu1 %vm735_vm4, %v5003_v48 }
  0x58   : > { %3885 = vmatprep.mubr.msk.bf16.mxu1 %vm735_vm4, %v4608_v11 }
  0x59   : > { %4058 = vmatmul.mubr.msk.bf16.gmra.mrb[12].mxu0 %vm735_vm4, %v5010_v60 }
  0x5a   : > { %4061 = vmatprep.mubr.msk.bf16.mxu0 %vm735_vm4, %v5015_v62 }
  0x5f   : > { %3886 = vmatmul.mubr.msk.bf16.vlgmr.msra.gmra.mrb[0].mxu1 %vm735_vm4, %v4645_v38 }
  0x60   : > { %3918 = vmatpush3.bf16.msra.mxu1 %v4819_v63  ;;  %3889 = vmatprep.mubr.msk.bf16.mxu1 %vm735_vm4, %v4660_v51  ;;  %v1231_v63 = vrot.slane %v4885_v4, 1 }
  0x61   : > { %3919 = vmatprep.subr.bf16.mxu1 %v4505_v3  ;;  %4062 = vmatmul.mubr.msk.bf16.gmra.mrb[16].mxu0 %vm735_vm4, %v5031_v27 }
  0x62   : > { %4065 = vmatprep.mubr.msk.bf16.mxu0 %vm735_vm4, %v5037_v6  ;;  %v5057_v36 = vsel %vm1194_vm5, %v1231_v63, %v1232_v42  ;;  %v1988_v42 = vrot.slane %v5087_v35, 1 }
  0x64   : > { %3920 = vmatpush3.bf16.msra.mxu1 %v4505_v3  ;;  %v1241_v3 = vrot.slane %v4956_v56, 1  ;;  %v5091_v56 = vsel %vm4595_vm2, %v426_v28, 0  ;;  %v4514_v28 = vld [vmem:[%s5459_s1 + $0x68] sm:$0xff]  }
  0x65   : > { %3921 = vmatprep.subr.bf16.mxu1 %v4508_v33  ;;  %v1989_v47 = vrot.slane %v5091_v56, 1 }
  0x66   : > { %v5083_v63 = vsel %vm1194_vm5, %v1240_v24, %v1241_v3 }
  0x67   : > { %3890 = vmatmul.mubr.msk.bf16.gmra.mrb[4].mxu1 %vm735_vm4, %v4667_v55  ;;  %v5102_v5 = vsel %vm1194_vm5, %v1988_v42, %v1989_v47 }
  0x68   : > { %3893 = vmatprep.mubr.msk.bf16.mxu1 %vm735_vm4, %v4690_v13  ;;  %3922 = vmatpush3.bf16.msra.mxu1 %v4508_v33  ;;  %v5078_v33 = vsel %vm1194_vm5, %v1237_v31, %v1238_v7  ;;  %v4519_v31 = vld [vmem:[%s5459_s1 + $0x108] sm:$0xff]  }
  0x69   : > { %3923 = vmatprep.subr.bf16.mxu1 %v4510_v44  ;;  %4066 = vmatmul.mubr.msk.bf16.gmra.mrb[20].mxu0 %vm735_vm4, %v5057_v36 }
  0x6a   : > { %4069 = vmatprep.mubr.msk.bf16.mxu0 %vm735_vm4, %v5062_v57 }
  0x6c   : > { %3924 = vmatpush3.bf16.msra.mxu1 %v4510_v44  ;;  %v4517_v44 = vld [vmem:[%s5459_s1 + $0x100] sm:$0xff]  }
  0x6d   : > { %3957 = vmatprep.subr.bf16.mxu1 %v4512_v15 }
  0x6f   : > { %3894 = vmatmul.mubr.msk.bf16.gmra.mrb[8].mxu1 %vm735_vm4, %v4728_v43 }
  0x70   : > { %3897 = vmatprep.mubr.msk.bf16.mxu1 %vm735_vm4, %v4732_v45 }
  0x71   : > { %4070 = vmatmul.mubr.msk.bf16.gmra.mrb[24].mxu0 %vm735_vm4, %v5078_v33 }
  0x72   : > { %4073 = vmatprep.mubr.msk.bf16.mxu0 %vm735_vm4, %v5083_v63 }
  0x77   : > { %3898 = vmatmul.mubr.msk.bf16.gmra.mrb[12].mxu1 %vm735_vm4, %v4754_v2 }
  0x78   : > { %3901 = vmatprep.mubr.msk.bf16.mxu1 %vm735_vm4, %v4775_v22 }
  0x79   : > { %4074 = vmatmul.mubr.msk.bf16.gmra.mrb[28].mxu0 %vm735_vm4, %v5102_v5 }
  0x7a   : > { %4085 = vmatprep.mubr.msk.bf16.mxu0 %vm735_vm4, %v4660_v51 }
  0x7f   : > { %3902 = vmatmul.mubr.msk.bf16.gmra.mrb[16].mxu1 %vm735_vm4, %v4798_v40 }
  0x80   : > { %3905 = vmatprep.mubr.msk.bf16.mxu1 %vm735_vm4, %v4841_v25 }
  0x81   : > { %4086 = vmatmul.mubr.msk.bf16.vlgmr.msra.gmra.mrb[0].mxu0 %vm735_vm4, %v4667_v55 }
  0x82   : > { %4118 = vmatpush3.bf16.msra.mxu0 %v4975_v37  ;;  %4089 = vmatprep.mubr.msk.bf16.mxu0 %vm735_vm4, %v4690_v13  ;;  %v4515_v37 = vld [vmem:[%s5459_s1 + $0xf8] sm:$0xff]  }
  0x83   : > { %4119 = vmatprep.subr.bf16.mxu0 %v4511_v10 }
  0x86   : > { %4120 = vmatpush3.bf16.msra.mxu0 %v4511_v10 }
  0x87   : > { %3906 = vmatmul.mubr.msk.bf16.gmra.mrb[20].mxu1 %vm735_vm4, %v4850_v29  ;;  %4121 = vmatprep.subr.bf16.mxu0 %v4513_v46 }
  0x88   : > { %3909 = vmatprep.mubr.msk.bf16.mxu1 %vm735_vm4, %v4885_v4 }
  0x89   : > { %4090 = vmatmul.mubr.msk.bf16.gmra.mrb[4].mxu0 %vm735_vm4, %v4728_v43 }
  0x8a   : > { %4093 = vmatprep.mubr.msk.bf16.mxu0 %vm735_vm4, %v4732_v45  ;;  %4122 = vmatpush3.bf16.msra.mxu0 %v4513_v46 }
  0x8b   : > { %4123 = vmatprep.subr.bf16.mxu0 %v4515_v37 }
  0x8e   : > { %4124 = vmatpush3.bf16.msra.mxu0 %v4515_v37 }
  0x8f   : > { %3910 = vmatmul.mubr.msk.bf16.gmra.mrb[24].mxu1 %vm735_vm4, %v4899_v26  ;;  %4157 = vmatprep.subr.bf16.mxu0 %v4517_v44 }
  0x90   : > { %3913 = vmatprep.mubr.msk.bf16.mxu1 %vm735_vm4, %v4931_v1 }
  0x91   : > { %4094 = vmatmul.mubr.msk.bf16.gmra.mrb[8].mxu0 %vm735_vm4, %v4754_v2 }
  0x92   : > { %4097 = vmatprep.mubr.msk.bf16.mxu0 %vm735_vm4, %v4775_v22 }
  0x97   : > { %3914 = vmatmul.mubr.msk.bf16.gmra.mrb[28].mxu1 %vm735_vm4, %v4949_v54 }
  0x98   : > { %3925 = vmatprep.mubr.msk.bf16.mxu1 %vm735_vm4, %v4996_v12 }
  0x99   : > { %4098 = vmatmul.mubr.msk.bf16.gmra.mrb[12].mxu0 %vm735_vm4, %v4798_v40 }
  0x9a   : > { %4101 = vmatprep.mubr.msk.bf16.mxu0 %vm735_vm4, %v4841_v25 }
  0x9f   : > { %3926 = vmatmul.mubr.msk.bf16.vlgmr.msra.gmra.mrb[0].mxu1 %vm735_vm4, %v4830_v9  ;;  %v4518_v9 = vld [vmem:[%s5459_s1 + $0x78] sm:$0xff]  }
  0xa0   : > { %3958 = vmatpush3.bf16.msra.mxu1 %v4512_v15  ;;  %3929 = vmatprep.mubr.msk.bf16.mxu1 %vm735_vm4, %v4873_v32  ;;  %v4522_v15 = vld [vmem:[%s5459_s1 + $0x80] sm:$0xff]  }
  0xa1   : > { %3959 = vmatprep.subr.bf16.mxu1 %v4514_v28  ;;  %4102 = vmatmul.mubr.msk.bf16.gmra.mrb[16].mxu0 %vm735_vm4, %v4850_v29 }
  0xa2   : > { %4105 = vmatprep.mubr.msk.bf16.mxu0 %vm735_vm4, %v4885_v4 }
  0xa4   : > { %3960 = vmatpush3.bf16.msra.mxu1 %v4514_v28 }
  0xa5   : > { %3961 = vmatprep.subr.bf16.mxu1 %v4516_v52 }
  0xa7   : > { %3930 = vmatmul.mubr.msk.bf16.gmra.mrb[4].mxu1 %vm735_vm4, %v4881_v14 }
  0xa8   : > { %3933 = vmatprep.mubr.msk.bf16.mxu1 %vm735_vm4, %v4938_v39  ;;  %3962 = vmatpush3.bf16.msra.mxu1 %v4516_v52 }
  0xa9   : > { %3963 = vmatprep.subr.bf16.mxu1 %v4518_v9  ;;  %4106 = vmatmul.mubr.msk.bf16.gmra.mrb[20].mxu0 %vm735_vm4, %v4899_v26 }
  0xaa   : > { %4109 = vmatprep.mubr.msk.bf16.mxu0 %vm735_vm4, %v4931_v1 }
  0xac   : > { %3964 = vmatpush3.bf16.msra.mxu1 %v4518_v9 }
  0xad   : > { %4197 = vmatprep.subr.bf16.mxu1 %v4522_v15 }
  0xaf   : > { %3934 = vmatmul.mubr.msk.bf16.gmra.mrb[8].mxu1 %vm735_vm4, %v4945_v53 }
  0xb0   : > { %3937 = vmatprep.mubr.msk.bf16.mxu1 %vm735_vm4, %v4984_v19 }
  0xb1   : > { %4110 = vmatmul.mubr.msk.bf16.gmra.mrb[24].mxu0 %vm735_vm4, %v4949_v54 }
  0xb2   : > { %4113 = vmatprep.mubr.msk.bf16.mxu0 %vm735_vm4, %v5087_v35 }
  0xb7   : > { %3938 = vmatmul.mubr.msk.bf16.gmra.mrb[12].mxu1 %vm735_vm4, %v4989_v50 }
  0xb8   : > { %3941 = vmatprep.mubr.msk.bf16.mxu1 %vm735_vm4, %v5010_v60 }
  0xb9   : > { %4114 = vmatmul.mubr.msk.bf16.gmra.mrb[28].mxu0 %vm735_vm4, %v4608_v11  ;;  %v4520_v11 = vld [vmem:[%s5459_s1 + $0x110] sm:$0xff]  }
  0xba   : > { %4125 = vmatprep.mubr.msk.bf16.mxu0 %vm735_vm4, %v4697_v23  ;;  %v4521_v23 = vld [vmem:[%s5459_s1 + $0x118] sm:$0xff]  }
  0xbf   : > { %3942 = vmatmul.mubr.msk.bf16.gmra.mrb[16].mxu1 %vm735_vm4, %v5015_v62 }
  0xc0   : > { %3945 = vmatprep.mubr.msk.bf16.mxu1 %vm735_vm4, %v5031_v27 }
  0xc1   : > { %4126 = vmatmul.mubr.msk.bf16.vlgmr.msra.gmra.mrb[0].mxu0 %vm735_vm4, %v4707_v17  ;;  %v4523_v17 = vld [vmem:[%s5459_s1 + $0x88] sm:$0xff]  }
  0xc2   : > { %4158 = vmatpush3.bf16.msra.mxu0 %v4517_v44  ;;  %4129 = vmatprep.mubr.msk.bf16.mxu0 %vm735_vm4, %v4735_v49 }
  0xc3   : > { %4159 = vmatprep.subr.bf16.mxu0 %v4519_v31 }
  0xc6   : > { %4160 = vmatpush3.bf16.msra.mxu0 %v4519_v31 }
  0xc7   : > { %3946 = vmatmul.mubr.msk.bf16.gmra.mrb[20].mxu1 %vm735_vm4, %v5037_v6  ;;  %4161 = vmatprep.subr.bf16.mxu0 %v4520_v11 }
  0xc8   : > { %3949 = vmatprep.mubr.msk.bf16.mxu1 %vm735_vm4, %v5057_v36 }
  0xc9   : > { %4130 = vmatmul.mubr.msk.bf16.gmra.mrb[4].mxu0 %vm735_vm4, %v4771_v20  ;;  %v1753_v20 = vshll.u32 %v5091_v56, 16 }
  0xca   : > { %4133 = vmatprep.mubr.msk.bf16.mxu0 %vm735_vm4, %v4793_v34  ;;  %4162 = vmatpush3.bf16.msra.mxu0 %v4520_v11  ;;  %v4525_v34 = vld [vmem:[%s5459_s1 + $0x98] sm:$0xff]  }
  0xcb   : > { %4163 = vmatprep.subr.bf16.mxu0 %v4521_v23 }
  0xce   : > { %4164 = vmatpush3.bf16.msra.mxu0 %v4521_v23 }
  0xcf   : > { %3950 = vmatmul.mubr.msk.bf16.gmra.mrb[24].mxu1 %vm735_vm4, %v5062_v57 }
  0xd0   : > { %3953 = vmatprep.mubr.msk.bf16.mxu1 %vm735_vm4, %v5078_v33 }
  0xd1   : > { %4134 = vmatmul.mubr.msk.bf16.gmra.mrb[8].mxu0 %vm735_vm4, %v4803_v18  ;;  %v1755_v18 = vrot.slane %v1753_v20, 1 }
  0xd2   : > { %4137 = vmatprep.mubr.msk.bf16.mxu0 %vm735_vm4, %v4837_v21 }
  0xd7   : > { %3954 = vmatmul.mubr.msk.bf16.gmra.mrb[28].mxu1 %vm735_vm4, %v5083_v63 }
  0xd8   : > { %3965 = vmatprep.mubr.msk.bf16.mxu1 %vm735_vm4, %v4645_v38  ;;  %v1748_v38 = vshll.u32 %v5087_v35, 16 }
  0xd9   : > { %4138 = vmatmul.mubr.msk.bf16.gmra.mrb[12].mxu0 %vm735_vm4, %v4869_v58 }
  0xda   : > { %4141 = vmatprep.mubr.msk.bf16.mxu0 %vm735_vm4, %v4878_v8  ;;  %v1750_v49 = vrot.slane %v1748_v38, 1 }
  0xdf   : > { %3966 = vmatmul.mubr.msk.bf16.vlgmr.msra.gmra.mrb[0].mxu1 %vm735_vm4, %v4660_v51  ;;  %v4524_v51 = vld [vmem:[%s5459_s1 + $0x90] sm:$0xff]  }
  0xe0   : > { %4201 = vmatpush3.bf16.msra.mxu1 %v4522_v15  ;;  %3969 = vmatprep.mubr.msk.bf16.mxu1 %vm735_vm4, %v4667_v55  ;;  %v1746_v55 = vshrl.u32 %v5087_v35, 16 }
  0xe1   : > { %4198 = vmatprep.subr.bf16.mxu1 %v4523_v17  ;;  %4142 = vmatmul.mubr.msk.bf16.gmra.mrb[16].mxu0 %vm735_vm4, %v4912_v59 }
  0xe2   : > { %4145 = vmatprep.mubr.msk.bf16.mxu0 %vm735_vm4, %v4926_v0 }
  0xe4   : > { %4202 = vmatpush3.bf16.msra.mxu1 %v4523_v17 }
  0xe5   : > { %4199 = vmatprep.subr.bf16.mxu1 %v4524_v51 }
  0xe7   : > { %3970 = vmatmul.mubr.msk.bf16.gmra.mrb[4].mxu1 %vm735_vm4, %v4690_v13  ;;  %v1751_v13 = vor.u32 %v1750_v49, %v1746_v55 }
  0xe8   : > { %3973 = vmatprep.mubr.msk.bf16.mxu1 %vm735_vm4, %v4728_v43  ;;  %4203 = vmatpush3.bf16.msra.mxu1 %v4524_v51 }
  0xe9   : > { %4200 = vmatprep.subr.bf16.mxu1 %v4525_v34  ;;  %4146 = vmatmul.mubr.msk.bf16.gmra.mrb[20].mxu0 %vm735_vm4, %v4968_v16  ;;  %v1756_v43 = vsel %vm509_vm3, %v1751_v13, %v1755_v18 }
  0xea   : > { %4149 = vmatprep.mubr.msk.bf16.mxu0 %vm735_vm4, %v4978_v41 }
  0xec   : > { %4204 = vmatpush3.bf16.msra.mxu1 %v4525_v34 }
  0xef   : > { %3974 = vmatmul.mubr.msk.bf16.gmra.mrb[8].mxu1 %vm735_vm4, %v4732_v45 }
  0xf0   : > { %3977 = vmatprep.mubr.msk.bf16.mxu1 %vm735_vm4, %v4754_v2 }
  0xf1   : > { %4150 = vmatmul.mubr.msk.bf16.gmra.mrb[24].mxu0 %vm735_vm4, %v5003_v48 }
  0xf2   : > { %4153 = vmatprep.mubr.msk.bf16.mxu0 %vm735_vm4, %v1756_v43 }
  0xf7   : > { %3978 = vmatmul.mubr.msk.bf16.gmra.mrb[12].mxu1 %vm735_vm4, %v4775_v22 }
  0xf8   : > { %3981 = vmatprep.mubr.msk.bf16.mxu1 %vm735_vm4, %v4798_v40 }
  0xf9   : > { %4154 = vmatmul.mubr.msk.bf16.gmra.mrb[28].mxu0 %vm735_vm4, %v4633_v30 }
  0xfa   : > { %4165 = vmatprep.mubr.msk.bf16.mxu0 %vm735_vm4, %v4873_v32 }
  0xff   : > { %3982 = vmatmul.mubr.msk.bf16.gmra.mrb[16].mxu1 %vm735_vm4, %v4841_v25 }
 0x100   : > { %3985 = vmatprep.mubr.msk.bf16.mxu1 %vm735_vm4, %v4850_v29 }
 0x101   : > { %4166 = vmatmul.mubr.msk.bf16.vlgmr.msra.gmra.mrb[0].mxu0 %vm735_vm4, %v4881_v14 }
 0x102   : > { %4169 = vmatprep.mubr.msk.bf16.mxu0 %vm735_vm4, %v4938_v39  ;;  %v5356_v39 = vld [vmem:[%s5460_s2] ss:$0 sm:$0xff] }
 0x107   : > { %3986 = vmatmul.mubr.msk.bf16.gmra.mrb[20].mxu1 %vm735_vm4, %v4885_v4 }
 0x108   : > { %3989 = vmatprep.mubr.msk.bf16.mxu1 %vm735_vm4, %v4899_v26 }
 0x109   : > { %4170 = vmatmul.mubr.msk.bf16.gmra.mrb[4].mxu0 %vm735_vm4, %v4945_v53 }
 0x10a   : > { %4173 = vmatprep.mubr.msk.bf16.mxu0 %vm735_vm4, %v4984_v19 }
 0x10f   : > { %3990 = vmatmul.mubr.msk.bf16.gmra.mrb[24].mxu1 %vm735_vm4, %v4931_v1 }
 0x110   : > { %3993 = vmatprep.mubr.msk.bf16.mxu1 %vm735_vm4, %v4949_v54 }
 0x111   : > { %4174 = vmatmul.mubr.msk.bf16.gmra.mrb[8].mxu0 %vm735_vm4, %v4989_v50 }
 0x112   : > { %4177 = vmatprep.mubr.msk.bf16.mxu0 %vm735_vm4, %v5010_v60 }
 0x117   : > { %3994 = vmatmul.mubr.msk.bf16.gmra.mrb[28].mxu1 %vm735_vm4, %v5087_v35 }
 0x118   : > { %4021 = vmatprep.mubr.msk.bf16.mxu1 %vm735_vm4, %v4869_v58 }
 0x119   : > { %4178 = vmatmul.mubr.msk.bf16.gmra.mrb[12].mxu0 %vm735_vm4, %v5015_v62 }
 0x11a   : > { %4181 = vmatprep.mubr.msk.bf16.mxu0 %vm735_vm4, %v5031_v27 }
 0x11f   : > { %4022 = vmatmul.mubr.msk.bf16.vlgmr.msra.gmra.mrb[16].mxu1 %vm735_vm4, %v4878_v8 }
 0x120   : > { %4025 = vmatprep.mubr.msk.bf16.mxu1 %vm735_vm4, %v4912_v59 }
 0x121   : > { %4182 = vmatmul.mubr.msk.bf16.gmra.mrb[16].mxu0 %vm735_vm4, %v5037_v6 }
 0x122   : > { %4185 = vmatprep.mubr.msk.bf16.mxu0 %vm735_vm4, %v5057_v36 }
 0x127   : > { %4026 = vmatmul.mubr.msk.bf16.gmra.mrb[20].mxu1 %vm735_vm4, %v4926_v0 }
 0x128   : > { %4029 = vmatprep.mubr.msk.bf16.mxu1 %vm735_vm4, %v4968_v16  ;;  %v5361_v16 = vld [vmem:[%s5461_s3] ss:$0 sm:$0xff] }
 0x129   : > { %4186 = vmatmul.mubr.msk.bf16.gmra.mrb[20].mxu0 %vm735_vm4, %v5062_v57 }
 0x12a   : > { %4189 = vmatprep.mubr.msk.bf16.mxu0 %vm735_vm4, %v5078_v33 }
 0x12f   : > { %4030 = vmatmul.mubr.msk.bf16.gmra.mrb[24].mxu1 %vm735_vm4, %v4978_v41 }
 0x130   : > { %4033 = vmatprep.mubr.msk.bf16.mxu1 %vm735_vm4, %v5003_v48 }
 0x131   : > { %4190 = vmatmul.mubr.msk.bf16.gmra.mrb[24].mxu0 %vm735_vm4, %v5083_v63 }
 0x132   : > { %4193 = vmatprep.mubr.msk.bf16.mxu0 %vm735_vm4, %v5102_v5 }
 0x137   : > { %4034 = vmatmul.mubr.msk.bf16.gmra.mrb[28].mxu1 %vm735_vm4, %v1756_v43 }
 0x139   : > { %4194 = vmatmul.mubr.msk.bf16.gmra.mrb[28].mxu0 %vm735_vm4, %v4996_v12 }
 0x1b2   : > { %v3967_v30 = vpop.f32.mrb[0].mxu1 }
 0x1b3   : > { %v1587_v45 = vpop.f32.mrb[1].mxu1 }
 0x1b4   : > { %v3968_v2 = vpop.f32.mrb[2].mxu1 }
 0x1b5   : > { %v1590_v22 = vpop.f32.mrb[3].mxu1 }
 0x1ba   : > { %v3971_v40 = vpop.f32.mrb[4].mxu1 }
 0x1bb   : > { %v1603_v21 = vpop.f32.mrb[5].mxu1 }
 0x1bc   : > { %v3972_v25 = vpop.f32.mrb[6].mxu1 }
 0x1bd   : > { %v1606_v29 = vpop.f32.mrb[7].mxu1 }
 0x1c2   : > { %v3975_v58 = vpop.f32.mrb[8].mxu1 }
 0x1c3   : > { %v1619_v32 = vpop.f32.mrb[9].mxu1 }
 0x1c4   : > { %v3976_v8 = vpop.f32.mrb[10].mxu1 }
 0x1c5   : > { %v5343_v14 = vpop.f32.mrb[11].mxu1 }
 0x1ca   : > { %v5345_v4 = vpop.f32.mrb[12].mxu1 }
 0x1cb   : > { %v5347_v26 = vpop.f32.mrb[13].mxu1 }
 0x1cc   : > { %v5349_v59 = vpop.f32.mrb[14].mxu1 }
 0x1cd   : > { %v5351_v0 = vpop.f32.mrb[15].mxu1 }
 0x1d4   : > { %v4167_v1 = vpop.f32.mrb[0].mxu0 }
 0x1d5   : > { %v4205_v53 = vadd.f32 %v4167_v1, %v3967_v30  ;;  %v2739_v54 = vpop.f32.mrb[1].mxu0 }
 0x1d6   : > { %v4206_v41 = vadd.f32 %v2739_v54, %v1587_v45  ;;  %v4168_v19 = vpop.f32.mrb[2].mxu0 }
 0x1d7   : > { %v2907_v50 = vmul.f32 %v4205_v53, %v5356_v39  ;;  %v4207_v12 = vadd.f32 %v4168_v19, %v3968_v2  ;;  %v2742_v48 = vpop.f32.mrb[3].mxu0 }
 0x1d8   : > { %v2905_v60 = vmul.f32 %v4206_v41, %v5356_v39  ;;  %v4208_v62 = vadd.f32 %v2742_v48, %v1590_v22 }
 0x1d9   : > { %v2946_v27 = vadd.f32 %v5361_v16, %v2907_v50  ;;  %v2908_v6 = vmul.f32 %v4207_v12, %v5356_v39 }
 0x1da   : > { %v2944_v36 = vadd.f32 %v5361_v16, %v2905_v60  ;;  %v2906_v57 = vmul.f32 %v4208_v62, %v5356_v39 }
 0x1db   : > { %v2947_v7 = vadd.f32 %v5361_v16, %v2908_v6  ;;  %v2978_v61 = vmax.f32 %v2946_v27, 0.0 }
 0x1dc   : > { %v2945_v24 = vadd.f32 %v5361_v16, %v2906_v57  ;;  %v4171_v3 = vpop.f32.mrb[4].mxu0  ;;  %v2976_v56 = vmax.f32 %v2944_v36, 0.0 }
 0x1dd   : > { %v2979_v33 = vmax.f32 %v2947_v7, 0.0  ;;  %v4209_v63 = vadd.f32 %v4171_v3, %v3971_v40  ;;  %v2755_v35 = vpop.f32.mrb[5].mxu0 }
 0x1de   : > { %v2977_v42 = vmax.f32 %v2945_v24, 0.0  ;;  %v4210_v47 = vadd.f32 %v2755_v35, %v1603_v21  ;;  %v4172_v5 = vpop.f32.mrb[6].mxu0 }
 0x1df   : > { %v3570_v10 = vpack.c.bf16 %v2979_v33, %v2978_v61  ;;  %v2911_v46 = vmul.f32 %v4209_v63, %v5356_v39  ;;  %v4211_v37 = vadd.f32 %v4172_v5, %v3972_v25  ;;  %v2758_v44 = vpop.f32.mrb[7].mxu0 }
 0x1e0   : > { %v3565_v28 = vpack.c.bf16 %v2977_v42, %v2976_v56  ;;  %v2909_v52 = vmul.f32 %v4210_v47, %v5356_v39  ;;  %v4212_v9 = vadd.f32 %v2758_v44, %v1606_v29 }
 0x1e1   : > { %3642 = vst [vmem:[%s5376_s13 + $0x8] sm:$0xff] %v3570_v10   ;;  %v2950_v15 = vadd.f32 %v5361_v16, %v2911_v46  ;;  %v2912_v31 = vmul.f32 %v4211_v37, %v5356_v39 }
 0x1e2   : > { %3566 = vst [vmem:[%s5376_s13] sm:$0xff] %v3565_v28   ;;  %v2948_v11 = vadd.f32 %v5361_v16, %v2909_v52  ;;  %v2910_v23 = vmul.f32 %v4212_v9, %v5356_v39 }
 0x1e3   : > { %v2951_v17 = vadd.f32 %v5361_v16, %v2912_v31  ;;  %v2982_v55 = vmax.f32 %v2950_v15, 0.0 }
 0x1e4   : > { %v2949_v38 = vadd.f32 %v5361_v16, %v2910_v23  ;;  %v4175_v51 = vpop.f32.mrb[8].mxu0  ;;  %v2980_v13 = vmax.f32 %v2948_v11, 0.0 }
 0x1e5   : > { %v2983_v49 = vmax.f32 %v2951_v17, 0.0  ;;  %v4213_v20 = vadd.f32 %v4175_v51, %v3975_v58  ;;  %v2771_v34 = vpop.f32.mrb[9].mxu0 }
 0x1e6   : > { %v2981_v18 = vmax.f32 %v2949_v38, 0.0  ;;  %v4214_v43 = vadd.f32 %v2771_v34, %v1619_v32  ;;  %v4176_v30 = vpop.f32.mrb[10].mxu0 }
 0x1e7   : > { %v3580_v45 = vpack.c.bf16 %v2983_v49, %v2982_v55  ;;  %v2915_v2 = vmul.f32 %v4213_v20, %v5356_v39  ;;  %v4215_v22 = vadd.f32 %v4176_v30, %v3976_v8  ;;  %v2774_v40 = vpop.f32.mrb[11].mxu0 }
 0x1e8   : > { %v3575_v21 = vpack.c.bf16 %v2981_v18, %v2980_v13  ;;  %v2913_v25 = vmul.f32 %v4214_v43, %v5356_v39  ;;  %v4216_v29 = vadd.f32 %v2774_v40, %v5343_v14 }
 0x1e9   : > { %3644 = vst [vmem:[%s5376_s13 + $0x18] sm:$0xff] %v3580_v45   ;;  %v2954_v1 = vadd.f32 %v5361_v16, %v2915_v2  ;;  %v2916_v58 = vmul.f32 %v4215_v22, %v5356_v39 }
 0x1ea   : > { %3643 = vst [vmem:[%s5376_s13 + $0x10] sm:$0xff] %v3575_v21   ;;  %v2952_v53 = vadd.f32 %v5361_v16, %v2913_v25  ;;  %v2914_v32 = vmul.f32 %v4216_v29, %v5356_v39 }
 0x1eb   : > { %v2955_v54 = vadd.f32 %v5361_v16, %v2916_v58  ;;  %v2986_v19 = vmax.f32 %v2954_v1, 0.0 }
 0x1ec   : > { %v2953_v8 = vadd.f32 %v5361_v16, %v2914_v32  ;;  %v4179_v41 = vpop.f32.mrb[12].mxu0  ;;  %v2984_v48 = vmax.f32 %v2952_v53, 0.0 }
 0x1ed   : > { %v2987_v50 = vmax.f32 %v2955_v54, 0.0  ;;  %v4217_v14 = vadd.f32 %v4179_v41, %v5345_v4  ;;  %v2787_v12 = vpop.f32.mrb[13].mxu0 }
 0x1ee   : > { %v2985_v60 = vmax.f32 %v2953_v8, 0.0  ;;  %v4218_v62 = vadd.f32 %v2787_v12, %v5347_v26  ;;  %v4180_v27 = vpop.f32.mrb[14].mxu0 }
 0x1ef   : > { %v3590_v6 = vpack.c.bf16 %v2987_v50, %v2986_v19  ;;  %v2919_v36 = vmul.f32 %v4217_v14, %v5356_v39  ;;  %v4219_v57 = vadd.f32 %v4180_v27, %v5349_v59  ;;  %v2790_v7 = vpop.f32.mrb[15].mxu0 }
 0x1f0   : > { %v3585_v24 = vpack.c.bf16 %v2985_v60, %v2984_v48  ;;  %v2917_v3 = vmul.f32 %v4218_v62, %v5356_v39  ;;  %v4220_v61 = vadd.f32 %v2790_v7, %v5351_v0 }
 0x1f1   : > { %3646 = vst [vmem:[%s5376_s13 + $0x28] sm:$0xff] %v3590_v6   ;;  %v2958_v4 = vadd.f32 %v5361_v16, %v2919_v36  ;;  %v2920_v33 = vmul.f32 %v4219_v57, %v5356_v39 }
 0x1f2   : > { %v4023_v63 = vpop.f32.mrb[16].mxu1  ;;  %3645 = vst [vmem:[%s5376_s13 + $0x20] sm:$0xff] %v3585_v24   ;;  %v2956_v26 = vadd.f32 %v5361_v16, %v2917_v3  ;;  %v2918_v35 = vmul.f32 %v4220_v61, %v5356_v39 }
 0x1f3   : > { %v1891_v56 = vpop.f32.mrb[17].mxu1  ;;  %v2959_v59 = vadd.f32 %v5361_v16, %v2920_v33  ;;  %v2990_v0 = vmax.f32 %v2958_v4, 0.0 }
 0x1f4   : > { %v4024_v42 = vpop.f32.mrb[18].mxu1  ;;  %v2957_v47 = vadd.f32 %v5361_v16, %v2918_v35  ;;  %v4183_v5 = vpop.f32.mrb[16].mxu0  ;;  %v2988_v28 = vmax.f32 %v2956_v26, 0.0 }
 0x1f5   : > { %v1894_v10 = vpop.f32.mrb[19].mxu1  ;;  %v2991_v46 = vmax.f32 %v2959_v59, 0.0  ;;  %v4221_v37 = vadd.f32 %v4183_v5, %v4023_v63  ;;  %v2803_v44 = vpop.f32.mrb[17].mxu0 }
 0x1f6   : > { %v2989_v52 = vmax.f32 %v2957_v47, 0.0  ;;  %v4222_v9 = vadd.f32 %v2803_v44, %v1891_v56  ;;  %v4184_v15 = vpop.f32.mrb[18].mxu0 }
 0x1f7   : > { %v3600_v31 = vpack.c.bf16 %v2991_v46, %v2990_v0  ;;  %v2923_v11 = vmul.f32 %v4221_v37, %v5356_v39  ;;  %v4223_v23 = vadd.f32 %v4184_v15, %v4024_v42  ;;  %v2806_v17 = vpop.f32.mrb[19].mxu0 }
 0x1f8   : > { %v3595_v38 = vpack.c.bf16 %v2989_v52, %v2988_v28  ;;  %v2921_v51 = vmul.f32 %v4222_v9, %v5356_v39  ;;  %v4224_v55 = vadd.f32 %v2806_v17, %v1894_v10 }
 0x1f9   : > { %3648 = vst [vmem:[%s5376_s13 + $0x38] sm:$0xff] %v3600_v31   ;;  %v2962_v49 = vadd.f32 %v5361_v16, %v2923_v11  ;;  %v2924_v20 = vmul.f32 %v4223_v23, %v5356_v39 }
 0x1fa   : > { %v4027_v34 = vpop.f32.mrb[20].mxu1  ;;  %3647 = vst [vmem:[%s5376_s13 + $0x30] sm:$0xff] %v3595_v38   ;;  %v2960_v13 = vadd.f32 %v5361_v16, %v2921_v51  ;;  %v2922_v18 = vmul.f32 %v4224_v55, %v5356_v39 }
 0x1fb   : > { %v1907_v43 = vpop.f32.mrb[21].mxu1  ;;  %v2963_v30 = vadd.f32 %v5361_v16, %v2924_v20  ;;  %v2994_v21 = vmax.f32 %v2962_v49, 0.0 }
 0x1fc   : > { %v4028_v45 = vpop.f32.mrb[22].mxu1  ;;  %v2961_v2 = vadd.f32 %v5361_v16, %v2922_v18  ;;  %v4187_v22 = vpop.f32.mrb[20].mxu0  ;;  %v2992_v58 = vmax.f32 %v2960_v13, 0.0 }
 0x1fd   : > { %v1910_v40 = vpop.f32.mrb[23].mxu1  ;;  %v2995_v25 = vmax.f32 %v2963_v30, 0.0  ;;  %v4225_v29 = vadd.f32 %v4187_v22, %v4027_v34  ;;  %v2819_v1 = vpop.f32.mrb[21].mxu0 }
 0x1fe   : > { %v2993_v53 = vmax.f32 %v2961_v2, 0.0  ;;  %v4226_v32 = vadd.f32 %v2819_v1, %v1907_v43  ;;  %v4188_v54 = vpop.f32.mrb[22].mxu0 }
 0x1ff   : > { %v3610_v8 = vpack.c.bf16 %v2995_v25, %v2994_v21  ;;  %v2927_v41 = vmul.f32 %v4225_v29, %v5356_v39  ;;  %v4227_v19 = vadd.f32 %v4188_v54, %v4028_v45  ;;  %v2822_v50 = vpop.f32.mrb[23].mxu0 }
 0x200   : > { %v3605_v14 = vpack.c.bf16 %v2993_v53, %v2992_v58  ;;  %v2925_v12 = vmul.f32 %v4226_v32, %v5356_v39  ;;  %v4228_v48 = vadd.f32 %v2822_v50, %v1910_v40 }
 0x201   : > { %3650 = vst [vmem:[%s5376_s13 + $0x48] sm:$0xff] %v3610_v8   ;;  %v2966_v60 = vadd.f32 %v5361_v16, %v2927_v41  ;;  %v2928_v62 = vmul.f32 %v4227_v19, %v5356_v39 }
 0x202   : > { %v4031_v27 = vpop.f32.mrb[24].mxu1  ;;  %3649 = vst [vmem:[%s5376_s13 + $0x40] sm:$0xff] %v3605_v14   ;;  %v2964_v6 = vadd.f32 %v5361_v16, %v2925_v12  ;;  %v2926_v36 = vmul.f32 %v4228_v48, %v5356_v39 }
 0x203   : > { %v1923_v57 = vpop.f32.mrb[25].mxu1  ;;  %v2967_v7 = vadd.f32 %v5361_v16, %v2928_v62  ;;  %v2998_v33 = vmax.f32 %v2966_v60, 0.0 }
 0x204   : > { %v4032_v24 = vpop.f32.mrb[26].mxu1  ;;  %v2965_v3 = vadd.f32 %v5361_v16, %v2926_v36  ;;  %v4191_v61 = vpop.f32.mrb[24].mxu0  ;;  %v2996_v56 = vmax.f32 %v2964_v6, 0.0 }
 0x205   : > { %v1926_v4 = vpop.f32.mrb[27].mxu1  ;;  %v2999_v63 = vmax.f32 %v2967_v7, 0.0  ;;  %v4229_v26 = vadd.f32 %v4191_v61, %v4031_v27  ;;  %v2835_v35 = vpop.f32.mrb[25].mxu0 }
 0x206   : > { %v2997_v59 = vmax.f32 %v2965_v3, 0.0  ;;  %v4230_v42 = vadd.f32 %v2835_v35, %v1923_v57  ;;  %v4192_v47 = vpop.f32.mrb[26].mxu0 }
 0x207   : > { %v3620_v5 = vpack.c.bf16 %v2999_v63, %v2998_v33  ;;  %v2931_v10 = vmul.f32 %v4229_v26, %v5356_v39  ;;  %v4231_v0 = vadd.f32 %v4192_v47, %v4032_v24  ;;  %v2838_v46 = vpop.f32.mrb[27].mxu0 }
 0x208   : > { %v3615_v37 = vpack.c.bf16 %v2997_v59, %v2996_v56  ;;  %v2929_v44 = vmul.f32 %v4230_v42, %v5356_v39  ;;  %v4232_v28 = vadd.f32 %v2838_v46, %v1926_v4 }
 0x209   : > { %3652 = vst [vmem:[%s5376_s13 + $0x58] sm:$0xff] %v3620_v5   ;;  %v2970_v52 = vadd.f32 %v5361_v16, %v2931_v10  ;;  %v2932_v9 = vmul.f32 %v4231_v0, %v5356_v39 }
 0x20a   : > { %v4035_v15 = vpop.f32.mrb[28].mxu1  ;;  %3651 = vst [vmem:[%s5376_s13 + $0x50] sm:$0xff] %v3615_v37   ;;  %v2968_v31 = vadd.f32 %v5361_v16, %v2929_v44  ;;  %v2930_v11 = vmul.f32 %v4232_v28, %v5356_v39 }
 0x20b   : > { %v1939_v23 = vpop.f32.mrb[29].mxu1  ;;  %v2971_v17 = vadd.f32 %v5361_v16, %v2932_v9  ;;  %v3002_v20 = vmax.f32 %v2970_v52, 0.0 }
 0x20c   : > { %v4036_v38 = vpop.f32.mrb[30].mxu1  ;;  %v2969_v51 = vadd.f32 %v5361_v16, %v2930_v11  ;;  %v4195_v55 = vpop.f32.mrb[28].mxu0  ;;  %v3000_v43 = vmax.f32 %v2968_v31, 0.0 }
 0x20d   : > { %v1942_v49 = vpop.f32.mrb[31].mxu1  ;;  %v3003_v34 = vmax.f32 %v2971_v17, 0.0  ;;  %v4233_v13 = vadd.f32 %v4195_v55, %v4035_v15  ;;  %v2851_v18 = vpop.f32.mrb[29].mxu0 }
 0x20e   : > { %v3001_v30 = vmax.f32 %v2969_v51, 0.0  ;;  %v4234_v45 = vadd.f32 %v2851_v18, %v1939_v23  ;;  %v4196_v2 = vpop.f32.mrb[30].mxu0 }
 0x20f   : > { %v3630_v22 = vpack.c.bf16 %v3003_v34, %v3002_v20  ;;  %v2935_v40 = vmul.f32 %v4233_v13, %v5356_v39  ;;  %v4235_v21 = vadd.f32 %v4196_v2, %v4036_v38  ;;  %v2854_v25 = vpop.f32.mrb[31].mxu0 }
 0x210   : > { %v3625_v29 = vpack.c.bf16 %v3001_v30, %v3000_v43  ;;  %v2933_v1 = vmul.f32 %v4234_v45, %v5356_v39  ;;  %v4236_v58 = vadd.f32 %v2854_v25, %v1942_v49 }
 0x211   : > { %3654 = vst [vmem:[%s5376_s13 + $0x68] sm:$0xff] %v3630_v22   ;;  %v2974_v53 = vadd.f32 %v5361_v16, %v2935_v40  ;;  %v2936_v32 = vmul.f32 %v4235_v21, %v5356_v39 }
 0x212   : > { %3653 = vst [vmem:[%s5376_s13 + $0x60] sm:$0xff] %v3625_v29   ;;  %v2972_v54 = vadd.f32 %v5361_v16, %v2933_v1  ;;  %v2934_v8 = vmul.f32 %v4236_v58, %v5356_v39 }
 0x213   : > { %v2975_v41 = vadd.f32 %v5361_v16, %v2936_v32  ;;  %v3006_v50 = vmax.f32 %v2974_v53, 0.0 }
 0x214   : > { %v2973_v19 = vadd.f32 %v5361_v16, %v2934_v8  ;;  %v3004_v12 = vmax.f32 %v2972_v54, 0.0 }
 0x215   : > { %v3007_v14 = vmax.f32 %v2975_v41, 0.0 }
 0x216   : > { %v3005_v48 = vmax.f32 %v2973_v19, 0.0 }
 0x217   : > { %v3640_v60 = vpack.c.bf16 %v3007_v14, %v3006_v50 }
 0x218   : > { %v3635_v62 = vpack.c.bf16 %v3005_v48, %v3004_v12 }
 0x219   : > { %3656 = vst [vmem:[%s5376_s13 + $0x78] sm:$0xff] %v3640_v60  }
 0x21a   : > { %3655 = vst [vmem:[%s5376_s13 + $0x70] sm:$0xff] %v3635_v62  }
 0x21b PF: > { %s14_s15 = sadd.s32 1, %s4532_s15  }
 0x21c   : > { %p11_p4 = scmp.ge.s32.totalorder %s14_s15, 4  }
 0x21e   :  { %13 = sbr.rel (!%p11_p4) target bundleno = 1 (0x1), region = 74 }

// kernel: mixed_5b_forward.6
= control target key start
LH: loop header
LB: loop body
LE: loop exit
PB: predicated region body
PF: predicated region fallthrough
CT: control target
= control target key end

     0   :  { %s9653_s15 = smov 0   ;;  %s11555_s0 = inlined_call_operand.vmem [shape: bf16[2,16,16,48], index: 0, kind: input, shape index: {}]   ;;  %s11556_s1 = inlined_call_operand.vmem [shape: bf16[5,5,48,64], index: 1, kind: input, shape index: {}]   ;;  %s11557_s2 = inlined_call_operand.vmem [shape: f32[1,64], index: 2, kind: input, shape index: {}]   ;;  %s11558_s3 = inlined_call_operand.vmem [shape: f32[1,64], index: 3, kind: input, shape index: {}]   ;;  %s11559_s4 = inlined_call_operand.vmem [shape: f32[2,16,16,64], index: 4, kind: output, shape index: {}]  }
   0x1 LB: > { %s6667_s16 = sadd.s32 4294967295, %s9625_s15   ;;  %p6671_p0 = scmp.ge.s32.totalorder %s9625_s15, 1  ;;  %s9625_s15 = sphi %s9653_s15, %s14_s15  }
   0x2   : > { %p162_p1 = scmp.lt.s32.totalorder %s9625_s15, 3 }
   0x4   : > { %p163_p2 = pnand %p6671_p0, %p162_p1 }
   0x6   : > { %166 = sbr.rel (%p163_p2) target bundleno = 1045 (0x415), region = 36 }
   0xd   : > { %v9525_v0 = vld [vmem:[%s11556_s1 + $0x18] sm:$0xff]   ;;  %v9526_v1 = vld [vmem:[%s11556_s1 + $0x120] sm:$0xff]   ;;  %v9627_v2 = vmov 0   ;;  %vm329_vm0 = vcmask 1040384   ;;  %v9528_v5 = vld [vmem:[%s11556_s1 + $0x128] sm:$0xff]   ;;  %p188_p3 = scmp.lt.s32.totalorder %s6667_s16, 1 }
   0xe   : > { %v312_v3 = vrot.slane %v9627_v2, 7  ;;  %7792 = vmatprep.subr.bf16.mxu1 %v9525_v0  ;;  %v9527_v4 = vld [vmem:[%s11556_s1 + $0x20] sm:$0xff]   ;;  %8248 = vmatprep.subr.bf16.mxu0 %v9526_v1  ;;  %v9529_v7 = vld [vmem:[%s11556_s1 + $0x28] sm:$0xff]   ;;  %v9530_v9 = vld [vmem:[%s11556_s1 + $0x130] sm:$0xff]   ;;  %vm388_vm1 = vsmask.f32 7424 }
   0xf   : > { %7793 = vmatpush3.bf16.msra.mxu1 %v9525_v0  ;;  %8249 = vmatpush3.bf16.msra.mxu0 %v9526_v1  ;;  %v9531_v13 = vld [vmem:[%s11556_s1] sm:$0xff]   ;;  %s11876_s16 = smov (!%p188_p3, %s6667_s16), 1  ;;  %v9533_v16 = vld [vmem:[%s11556_s1 + $0x138] sm:$0xff]   ;;  %vm564_vm2 = vcmask 392192   ;;  %v9540_v19 = vld [vmem:[%s11556_s1 + $0x8] sm:$0xff]   ;;  %vm1010_vm3 = vcmask 1046528  }
  0x10   : > { %v9674_v6 = vsel %vm329_vm0, 0, %v312_v3  ;;  %7794 = vmatprep.subr.bf16.mxu1 %v9527_v4  ;;  %v9680_v8 = vsel %vm329_vm0, %v312_v3, 0  ;;  %8250 = vmatprep.subr.bf16.mxu0 %v9528_v5  ;;  %s7315_s7 = sshll.u32 %s11876_s16, 7  ;;  %v9537_v32 = vld [vmem:[%s11556_s1 + $0x140] sm:$0xff]   ;;  %v9541_v55 = vld [vmem:[%s11556_s1 + $0x148] sm:$0xff]   ;;  %vm1718_vm5 = vcmask 1045504  }
  0x11   : > { %v11562_v10 = vshrl.u32 %v9674_v6, 16  ;;  %v11561_v11 = vshll.u32 %v9674_v6, 16  ;;  %v11560_v12 = vshll.u32 %v9680_v8, 16  ;;  %s9713_s10 = scalar_lea.vmem %s11555_s0, %s7315_s7  ;;  %vm1319_vm4 = vsmask.f32 6400  ;;  %s7316_s11 = sshll.u32 %s11876_s16, 8 }
  0x12   : > { %v9532_v20 = vld [vmem:[%s9713_s10] sm:$0xff]   ;;  %v9534_v21 = vld [vmem:[%s9713_s10 + $0x8] sm:$0xff]   ;;  %v9535_v23 = vld [vmem:[%s9713_s10 + $0x10] sm:$0xff]   ;;  %s11420_s14 = scalar_lea.vmem %s11559_s4, %s7316_s11  ;;  %vm6579_vm6 = vcmask 523264  }
  0x13   : > { %7795 = vmatpush3.bf16.msra.mxu1 %v9527_v4  ;;  %8251 = vmatpush3.bf16.msra.mxu0 %v9528_v5  ;;  %v393_v14 = vrot.slane %v11561_v11, 1  ;;  %v397_v15 = vrot.slane %v11560_v12, 1  ;;  %v313_v22 = vrot.slane %v9532_v20, 7  ;;  %v314_v24 = vrot.slane %v9534_v21, 7  ;;  %v9536_v41 = vld [vmem:[%s9713_s10 + $0x18] sm:$0xff]   ;;  %v9538_v54 = vld [vmem:[%s9713_s10 + $0x20] sm:$0xff]  }
  0x14   : > { %7796 = vmatprep.subr.bf16.mxu1 %v9529_v7  ;;  %8252 = vmatprep.subr.bf16.mxu0 %v9530_v9  ;;  %v315_v27 = vrot.slane %v9535_v23, 7  ;;  %v316_v59 = vrot.slane %v9536_v41, 7  ;;  %v9539_v60 = vld [vmem:[%s9713_s10 + $0x28] sm:$0xff]   ;;  %v9542_v1 = vld [vmem:[%s9713_s10 + $0x30] sm:$0xff]   ;;  %v317_v20 = vrot.slane %v9538_v54, 7 }
  0x15   : > { %v394_v17 = vor.u32 %v393_v14, %v11562_v10  ;;  %v9726_v25 = vsel %vm329_vm0, 0, %v313_v22  ;;  %v9729_v26 = vsel %vm329_vm0, %v313_v22, 0  ;;  %v9734_v30 = vsel %vm329_vm0, 0, %v314_v24 }
  0x16   : > { %11696 = vst [vmem:[#allocation3_spill] sm:$0xff] %v9726_v25  ;;  %v1014_v28 = vrot.slane %v9726_v25, 1  ;;  %v1015_v29 = vrot.slane %v9729_v26, 1  ;;  %11697 = vst [vmem:[#allocation4_spill] sm:$0xff] %v9734_v30  ;;  %v9737_v31 = vsel %vm329_vm0, %v314_v24, 0  ;;  %v1017_v33 = vrot.slane %v9734_v30, 1 }
  0x17   : > { %7797 = vmatpush3.bf16.msra.mxu1 %v9529_v7  ;;  %8253 = vmatpush3.bf16.msra.mxu0 %v9530_v9  ;;  %v9708_v18 = vsel %vm388_vm1, %v394_v17, %v397_v15  ;;  %v1018_v34 = vrot.slane %v9737_v31, 1  ;;  %v399_v35 = vshrl.u32 %v9726_v25, 16  ;;  %v401_v36 = vshll.u32 %v9726_v25, 16  ;;  %v9820_v15 = vld [vmem:[%s11556_s1 + $0x150] sm:$0xff]  }
  0x18   : > { %11695 = vst [vmem:[#allocation2_spill] sm:$0xff] %v9708_v18  ;;  %7830 = vmatprep.subr.bf16.mxu1 %v9531_v13  ;;  %7798 = vmatprep.mubr.msk.bf16.mxu1 %vm564_vm2, %v9708_v18  ;;  %v9747_v37 = vsel %vm1010_vm3, %v1014_v28, %v1015_v29  ;;  %v405_v38 = vshll.u32 %v9729_v26, 16  ;;  %v409_v39 = vshrl.u32 %v9734_v30, 16  ;;  %v411_v40 = vshll.u32 %v9734_v30, 16 }
  0x19   : > { %8286 = vmatprep.subr.bf16.mxu0 %v9533_v16  ;;  %11698 = vst [vmem:[#allocation5_spill] sm:$0xff] %v9747_v37  ;;  %8254 = vmatprep.mubr.msk.bf16.mxu0 %vm564_vm2, %v9747_v37  ;;  %v9756_v42 = vsel %vm1010_vm3, %v1017_v33, %v1018_v34  ;;  %v403_v43 = vrot.slane %v401_v36, 1  ;;  %v415_v44 = vshll.u32 %v9737_v31, 16  ;;  %v9762_v45 = vsel %vm329_vm0, 0, %v315_v27  ;;  %v9547_v33 = vld [vmem:[%s11556_s1 + $0x10] sm:$0xff]  }
  0x1a   : > { %7799 = vmatmul.mubr.msk.bf16.vlgmr.msra.gmra.mrb[0].mxu1 %vm564_vm2, %v9708_v18  ;;  %8255 = vmatmul.mubr.msk.bf16.vlgmr.msra.gmra.mrb[0].mxu0 %vm564_vm2, %v9756_v42  ;;  %v407_v46 = vrot.slane %v405_v38, 1  ;;  %v413_v47 = vrot.slane %v411_v40, 1  ;;  %v9768_v48 = vrot.slane %v409_v39, 1  ;;  %v9770_v49 = vrot.slane %v411_v40, 2  ;;  %v9554_v18 = vld [vmem:[%s11556_s1 + $0x160] sm:$0xff]  }
  0x1b   : > { %7831 = vmatpush3.bf16.msra.mxu1 %v9531_v13  ;;  %8287 = vmatpush3.bf16.msra.mxu0 %v9533_v16  ;;  %v404_v50 = vor.u32 %v403_v43, %v399_v35  ;;  %v417_v51 = vrot.slane %v415_v44, 1  ;;  %v9774_v52 = vrot.slane %v415_v44, 2  ;;  %v9777_v53 = vsel %vm329_vm0, %v315_v27, 0 }
  0x1c   : > { %7832 = vmatprep.subr.bf16.mxu1 %v9540_v19  ;;  %v414_v56 = vor.u32 %v413_v47, %v409_v39  ;;  %v1020_v57 = vrot.slane %v9762_v45, 1  ;;  %v1021_v58 = vrot.slane %v9777_v53, 1  ;;  %8288 = vmatprep.subr.bf16.mxu0 %v9537_v32  ;;  %v419_v62 = vshrl.u32 %v9762_v45, 16 }
  0x1d   : > { %v9787_v61 = vsel %vm388_vm1, %v404_v50, %v407_v46  ;;  %v421_v63 = vshll.u32 %v9762_v45, 16  ;;  %v425_v0 = vshll.u32 %v9777_v53, 16  ;;  %v9802_v4 = vsel %vm329_vm0, 0, %v316_v59 }
  0x1e   : > { %11699 = vst [vmem:[#allocation6_spill] sm:$0xff] %v9787_v61  ;;  %7802 = vmatprep.mubr.msk.bf16.mxu1 %vm564_vm2, %v9787_v61  ;;  %v9796_v2 = vsel %vm388_vm1, %v414_v56, %v417_v51  ;;  %v9799_v3 = vsel %vm1010_vm3, %v1020_v57, %v1021_v58  ;;  %11701 = vst [vmem:[#allocation8_spill] sm:$0xff] %v9802_v4  ;;  %v9805_v5 = vsel %vm329_vm0, %v316_v59, 0  ;;  %v1023_v7 = vrot.slane %v9802_v4, 1  ;;  %v9543_v57 = vld [vmem:[%s9713_s10 + $0x38] sm:$0xff]  }
  0x1f   : > { %7833 = vmatpush3.bf16.msra.mxu1 %v9540_v19  ;;  %11700 = vst [vmem:[#allocation7_spill] sm:$0xff] %v9796_v2  ;;  %8258 = vmatprep.mubr.msk.bf16.mxu0 %vm564_vm2, %v9799_v3  ;;  %v1024_v9 = vrot.slane %v9805_v5, 1  ;;  %v423_v13 = vrot.slane %v421_v63, 1  ;;  %v427_v14 = vrot.slane %v425_v0, 1  ;;  %v429_v16 = vshrl.u32 %v9802_v4, 16 }
  0x20   : > { %8289 = vmatpush3.bf16.msra.mxu0 %v9537_v32  ;;  %v431_v17 = vshll.u32 %v9802_v4, 16  ;;  %v11575_v19 = vshll.u32 %v9805_v5, 16  ;;  %v318_v23 = vrot.slane %v9539_v60, 7  ;;  %v319_v24 = vrot.slane %v9542_v1, 7  ;;  %7834 = vmatprep.subr.bf16.mxu1 %v9547_v33 }
  0x21   : > { %v9826_v21 = vsel %vm1010_vm3, %v1023_v7, %v1024_v9  ;;  %v424_v22 = vor.u32 %v423_v13, %v419_v62  ;;  %8290 = vmatprep.subr.bf16.mxu0 %v9541_v55  ;;  %v9837_v29 = vsel %vm329_vm0, 0, %v317_v20  ;;  %v9840_v32 = vsel %vm329_vm0, %v317_v20, 0 }
  0x22   : > { %7803 = vmatmul.mubr.msk.bf16.gmra.mrb[4].mxu1 %vm564_vm2, %v9796_v2  ;;  %8259 = vmatmul.mubr.msk.bf16.gmra.mrb[4].mxu0 %vm564_vm2, %v9826_v21  ;;  %v433_v27 = vrot.slane %v431_v17, 1  ;;  %v437_v28 = vrot.slane %v11575_v19, 1  ;;  %11702 = vst [vmem:[#allocation9_spill] sm:$0xff] %v9837_v29  ;;  %v1026_v39 = vrot.slane %v9837_v29, 1  ;;  %v1027_v40 = vrot.slane %v9840_v32, 1 }
  0x23   : > { %v9846_v34 = vsel %vm388_vm1, %v424_v22, %v427_v14  ;;  %v9851_v41 = vsel %vm329_vm0, 0, %v318_v23  ;;  %v9858_v44 = vsel %vm329_vm0, %v318_v23, 0  ;;  %v11573_v47 = vshrl.u32 %v9837_v29, 16  ;;  %7835 = vmatpush3.bf16.msra.mxu1 %v9547_v33  ;;  %v9893_v14 = vld [vmem:[%s11556_s1 + $0x30] sm:$0xff]  }
  0x24   : > { %11703 = vst [vmem:[#allocation10_spill] sm:$0xff] %v9846_v34  ;;  %7806 = vmatprep.mubr.msk.bf16.mxu1 %vm564_vm2, %v9846_v34  ;;  %v434_v43 = vor.u32 %v433_v27, %v429_v16  ;;  %v1029_v46 = vrot.slane %v9851_v41, 1  ;;  %8291 = vmatpush3.bf16.msra.mxu0 %v9541_v55  ;;  %v9863_v50 = vsel %vm1010_vm3, %v1026_v39, %v1027_v40  ;;  %v1030_v51 = vrot.slane %v9858_v44, 1 }
  0x25   : > { %v11570_v54 = vshll.u32 %v9837_v29, 16  ;;  %v11568_v56 = vshll.u32 %v9840_v32, 16  ;;  %8324 = vmatprep.subr.bf16.mxu0 %v9820_v15  ;;  %8262 = vmatprep.mubr.msk.bf16.mxu0 %vm564_vm2, %v9863_v50  ;;  %v11565_v55 = vshrl.u32 %v9851_v41, 16  ;;  %v11564_v59 = vshll.u32 %v9851_v41, 16 }
  0x26   : > { %v9871_v58 = vsel %vm388_vm1, %v434_v43, %v437_v28  ;;  %v11563_v60 = vshll.u32 %v9858_v44, 16  ;;  %v9881_v1 = vsel %vm1010_vm3, %v1029_v46, %v1030_v51  ;;  %v9888_v13 = vsel %vm329_vm0, 0, %v319_v24  ;;  %7868 = vmatprep.subr.bf16.mxu1 %v9893_v14 }
  0x27   : > { %11704 = vst [vmem:[#allocation11_spill] sm:$0xff] %v9871_v58  ;;  %v443_v7 = vrot.slane %v11570_v54, 1  ;;  %v447_v9 = vrot.slane %v11568_v56, 1  ;;  %v453_v20 = vrot.slane %v11564_v59, 1  ;;  %v9900_v23 = vsel %vm329_vm0, %v319_v24, 0 }
  0x28   : > { %v457_v22 = vrot.slane %v11563_v60, 1  ;;  %v1032_v27 = vrot.slane %v9888_v13, 1  ;;  %v1033_v33 = vrot.slane %v9900_v23, 1  ;;  %v320_v39 = vrot.slane %v9543_v57, 7 }
  0x29   : > { %v444_v28 = vor.u32 %v443_v7, %v11573_v47  ;;  %v11569_v40 = vshrl.u32 %v9888_v13, 16  ;;  %v454_v24 = vor.u32 %v453_v20, %v11565_v55  ;;  %v11566_v43 = vshll.u32 %v9888_v13, 16  ;;  %v9545_v20 = vld [vmem:[%s9713_s10 + $0x40] sm:$0xff]  }
  0x2a   : > { %7807 = vmatmul.mubr.msk.bf16.gmra.mrb[8].mxu1 %vm564_vm2, %v9871_v58  ;;  %8263 = vmatmul.mubr.msk.bf16.gmra.mrb[8].mxu0 %vm564_vm2, %v9881_v1  ;;  %v11567_v46 = vshll.u32 %v9900_v23, 16  ;;  %v1329_v51 = vrot.slane %v399_v35, 1  ;;  %v9920_v7 = vsel %vm1010_vm3, %v1032_v27, %v1033_v33  ;;  %v9923_v12 = vsel %vm329_vm0, 0, %v320_v39 }
  0x2b   : > { %v9917_v57 = vsel %vm388_vm1, %v444_v28, %v447_v9  ;;  %11706 = vst [vmem:[#allocation13_spill] sm:$0xff] %v9920_v7  ;;  %v9926_v11 = vsel %vm329_vm0, %v320_v39, 0  ;;  %v9932_v10 = vsel %vm388_vm1, %v454_v24, %v457_v22  ;;  %8266 = vmatprep.mubr.msk.bf16.mxu0 %vm564_vm2, %v9920_v7  ;;  %v1035_v35 = vrot.slane %v9923_v12, 1  ;;  %v9546_v28 = vld [vmem:[%s9713_s10 + $0x48] sm:$0xff]  }
  0x2c   : > { %11705 = vst [vmem:[#allocation12_spill] sm:$0xff] %v9917_v57  ;;  %7810 = vmatprep.mubr.msk.bf16.mxu1 %vm564_vm2, %v9917_v57  ;;  %11707 = vst [vmem:[#allocation14_spill] sm:$0xff] %v9932_v10  ;;  %v1036_v9 = vrot.slane %v9926_v11, 1  ;;  %v463_v27 = vrot.slane %v11566_v43, 1  ;;  %v467_v33 = vrot.slane %v11567_v46, 1  ;;  %v11574_v39 = vshrl.u32 %v9923_v12, 16 }
  0x2d   : > { %v11571_v60 = vshll.u32 %v9923_v12, 16  ;;  %v11572_v22 = vshll.u32 %v9926_v11, 16  ;;  %v1330_v55 = vrot.slane %v401_v36, 2  ;;  %v1332_v43 = vshrl.u32 %v9729_v26, 16 }
  0x2e   : > { %v9947_v24 = vsel %vm1010_vm3, %v1035_v35, %v1036_v9  ;;  %v464_v59 = vor.u32 %v463_v27, %v11569_v40  ;;  %v1335_v35 = vrot.slane %v405_v38, 2  ;;  %v1340_v9 = vor.u32 %v9770_v49, %v9768_v48 }
  0x2f   : > { %11708 = vst [vmem:[#allocation15_spill] sm:$0xff] %v9947_v24  ;;  %v473_v46 = vrot.slane %v11571_v60, 1  ;;  %v477_v56 = vrot.slane %v11572_v22, 1  ;;  %v1331_v36 = vor.u32 %v1330_v55, %v1329_v51  ;;  %v1334_v40 = vrot.slane %v1332_v43, 1 }
  0x30   : > { %v9965_v27 = vsel %vm388_vm1, %v464_v59, %v467_v33  ;;  %v1341_v54 = vshrl.u32 %v9737_v31, 16  ;;  %v321_v22 = vrot.slane %v9545_v20, 7  ;;  %v322_v47 = vrot.slane %v9546_v28, 7 }
  0x31   : > { %11709 = vst [vmem:[#allocation16_spill] sm:$0xff] %v9965_v27  ;;  %v474_v60 = vor.u32 %v473_v46, %v11574_v39  ;;  %v1347_v38 = vrot.slane %v419_v62, 1  ;;  %v1336_v48 = vor.u32 %v1335_v35, %v1334_v40  ;;  %v1348_v55 = vrot.slane %v421_v63, 2 }
  0x32   : > { %7811 = vmatmul.mubr.msk.bf16.gmra.mrb[12].mxu1 %vm564_vm2, %v9932_v10  ;;  %8267 = vmatmul.mubr.msk.bf16.gmra.mrb[12].mxu0 %vm564_vm2, %v9947_v24  ;;  %v1343_v49 = vrot.slane %v1341_v54, 1  ;;  %v1350_v59 = vshrl.u32 %v9777_v53, 16  ;;  %v9983_v46 = vsel %vm329_vm0, 0, %v321_v22  ;;  %v9986_v51 = vsel %vm329_vm0, %v321_v22, 0 }
  0x33   : > { %7814 = vmatprep.mubr.msk.bf16.mxu1 %vm564_vm2, %v9965_v27  ;;  %v9980_v43 = vsel %vm388_vm1, %v474_v60, %v477_v56  ;;  %v9989_v62 = vsel %vm329_vm0, 0, %v322_v47  ;;  %v9992_v40 = vsel %vm1319_vm4, %v1331_v36, %v1336_v48  ;;  %v11579_v63 = vshrl.u32 %v9983_v46, 16  ;;  %v9548_v56 = vld [vmem:[%s9713_s10 + $0x50] sm:$0xff]   ;;  %v9549_v60 = vld [vmem:[%s9713_s10 + $0x58] sm:$0xff]  }
  0x34   : > { %11710 = vst [vmem:[#allocation17_spill] sm:$0xff] %v9980_v43  ;;  %11711 = vst [vmem:[#allocation18_spill] sm:$0xff] %v9992_v40  ;;  %v1345_v54 = vor.u32 %v9774_v52, %v1343_v49  ;;  %v11576_v20 = vshll.u32 %v9983_v46, 16  ;;  %8292 = vmatprep.mubr.msk.bf16.mxu0 %vm564_vm2, %v9992_v40  ;;  %v11578_v28 = vshll.u32 %v9986_v51, 16  ;;  %v10003_v33 = vsel %vm329_vm0, %v322_v47, 0 }
  0x35   : > { %v11585_v22 = vshrl.u32 %v9989_v62, 16  ;;  %v11577_v35 = vshll.u32 %v9989_v62, 16  ;;  %v11580_v48 = vshll.u32 %v10003_v33, 16  ;;  %v1349_v49 = vor.u32 %v1348_v55, %v1347_v38 }
  0x36   : > { %v10008_v52 = vsel %vm1319_vm4, %v1340_v9, %v1345_v54  ;;  %v483_v36 = vrot.slane %v11576_v20, 1  ;;  %v487_v47 = vrot.slane %v11578_v28, 1  ;;  %v1352_v19 = vrot.slane %v1350_v59, 1 }
  0x37   : > { %11712 = vst [vmem:[#allocation19_spill] sm:$0xff] %v10008_v52  ;;  %v493_v39 = vrot.slane %v11577_v35, 1  ;;  %v1353_v9 = vrot.slane %v425_v0, 2  ;;  %v497_v20 = vrot.slane %v11580_v48, 1  ;;  %v1356_v38 = vrot.slane %v429_v16, 1  ;;  %v9550_v35 = vld [vmem:[%s11556_s1 + $0x158] sm:$0xff]  }
  0x38   : > { %v484_v54 = vor.u32 %v483_v36, %v11579_v63  ;;  %v1357_v55 = vrot.slane %v431_v17, 2  ;;  %v1359_v28 = vshrl.u32 %v9805_v5, 16  ;;  %v11713_v36 = vshll.u32 %v9805_v5, 16 }
  0x39   : > { %v494_v59 = vor.u32 %v493_v39, %v11585_v22  ;;  %v1354_v0 = vor.u32 %v1353_v9, %v1352_v19  ;;  %v323_v48 = vrot.slane %v9548_v56, 7  ;;  %v324_v61 = vrot.slane %v9549_v60, 7 }
  0x3a   : > { %7815 = vmatmul.mubr.msk.bf16.gmra.mrb[16].mxu1 %vm564_vm2, %v9980_v43  ;;  %v1362_v63 = vrot.slane %v11713_v36, 2  ;;  %8293 = vmatmul.mubr.msk.bf16.vlgmr.msra.gmra.mrb[0].mxu0 %vm564_vm2, %v10008_v52  ;;  %v10040_v16 = vsel %vm388_vm1, %v484_v54, %v487_v47  ;;  %v1358_v17 = vor.u32 %v1357_v55, %v1356_v38  ;;  %v1361_v47 = vrot.slane %v1359_v28, 1 }
  0x3b   : > { %11714 = vst [vmem:[#allocation20_spill] sm:$0xff] %v10040_v16  ;;  %8325 = vmatpush3.bf16.msra.mxu0 %v9820_v15  ;;  %7818 = vmatprep.mubr.msk.bf16.mxu1 %vm564_vm2, %v10040_v16  ;;  %v10049_v19 = vsel %vm388_vm1, %v494_v59, %v497_v20  ;;  %v10052_v39 = vsel %vm1319_vm4, %v1349_v49, %v1354_v0  ;;  %v11717_v56 = vshrl.u32 %v9837_v29, 16  ;;  %v10059_v9 = vsel %vm329_vm0, 0, %v323_v48  ;;  %v9551_v59 = vld [vmem:[%s9713_s10 + $0x60] sm:$0xff]   ;;  %v9552_v49 = vld [vmem:[%s9713_s10 + $0x68] sm:$0xff]  }
  0x3c   : > { %11715 = vst [vmem:[#allocation21_spill] sm:$0xff] %v10049_v19  ;;  %11716 = vst [vmem:[#allocation22_spill] sm:$0xff] %v10052_v39  ;;  %8296 = vmatprep.mubr.msk.bf16.mxu0 %vm564_vm2, %v10052_v39  ;;  %v10062_v15 = vsel %vm329_vm0, %v323_v48, 0  ;;  %v10065_v54 = vsel %vm329_vm0, 0, %v324_v61  ;;  %v10068_v20 = vsel %vm329_vm0, %v324_v61, 0  ;;  %8326 = vmatprep.subr.bf16.mxu0 %v9550_v35  ;;  %v1363_v28 = vor.u32 %v1362_v63, %v1361_v47 }
  0x3d   : > { %v1365_v60 = vrot.slane %v11717_v56, 1  ;;  %v11590_v38 = vshll.u32 %v10059_v9, 16  ;;  %v11591_v55 = vshll.u32 %v10062_v15, 16  ;;  %v11596_v48 = vshll.u32 %v10065_v54, 16 }
  0x3e   : > { %v11718_v56 = vshll.u32 %v9837_v29, 16  ;;  %v10082_v63 = vsel %vm1319_vm4, %v1358_v17, %v1363_v28  ;;  %v1368_v0 = vshrl.u32 %v9840_v32, 16  ;;  %v11721_v17 = vshll.u32 %v9840_v32, 16 }
  0x3f   : > { %11719 = vst [vmem:[#allocation23_spill] sm:$0xff] %v10082_v63  ;;  %v503_v47 = vrot.slane %v11590_v38, 1  ;;  %v507_v22 = vrot.slane %v11591_v55, 1  ;;  %8327 = vmatpush3.bf16.msra.mxu0 %v9550_v35  ;;  %v513_v36 = vrot.slane %v11596_v48, 1  ;;  %v10099_v38 = vld [vmem:[%s11556_s1 + $0x168] sm:$0xff]   ;;  %v11722_v55 = vshrl.u32 %v10059_v9, 16 }
  0x40   : > { %v1366_v61 = vrot.slane %v11718_v56, 2  ;;  %v11720_v56 = vshll.u32 %v10068_v20, 16  ;;  %v1371_v28 = vrot.slane %v11721_v17, 2  ;;  %8328 = vmatprep.subr.bf16.mxu0 %v9554_v18  ;;  %v1370_v43 = vrot.slane %v1368_v0, 1 }
  0x41   : > { %v504_v35 = vor.u32 %v503_v47, %v11722_v55  ;;  %v11723_v27 = vshrl.u32 %v9851_v41, 16  ;;  %v11724_v10 = vshll.u32 %v9851_v41, 16  ;;  %v1377_v17 = vshrl.u32 %v9858_v44, 16 }
  0x42   : > { %7819 = vmatmul.mubr.msk.bf16.gmra.mrb[20].mxu1 %vm564_vm2, %v10049_v19  ;;  %v517_v16 = vrot.slane %v11720_v56, 1  ;;  %v1367_v19 = vor.u32 %v1366_v61, %v1365_v60  ;;  %8297 = vmatmul.mubr.msk.bf16.gmra.mrb[4].mxu0 %vm564_vm2, %v10082_v63  ;;  %v11725_v60 = vshrl.u32 %v10065_v54, 16  ;;  %v11726_v57 = vshll.u32 %v9858_v44, 16 }
  0x43   : > { %v1374_v48 = vrot.slane %v11723_v27, 1  ;;  %v1375_v56 = vrot.slane %v11724_v10, 2  ;;  %v325_v34 = vrot.slane %v9551_v59, 7  ;;  %v10115_v55 = vsel %vm388_vm1, %v504_v35, %v507_v22  ;;  %8329 = vmatpush3.bf16.msra.mxu0 %v9554_v18 }
  0x44   : > { %v514_v61 = vor.u32 %v513_v36, %v11725_v60  ;;  %v1380_v58 = vrot.slane %v11726_v57, 2  ;;  %11727 = vst [vmem:[#allocation24_spill] sm:$0xff] %v10115_v55  ;;  %v1372_v0 = vor.u32 %v1371_v28, %v1370_v43  ;;  %v326_v47 = vrot.slane %v9552_v49, 7  ;;  %7822 = vmatprep.mubr.msk.bf16.mxu1 %vm564_vm2, %v10115_v55  ;;  %8362 = vmatprep.subr.bf16.mxu0 %v10099_v38 }
  0x45   : > { %v1376_v27 = vor.u32 %v1375_v56, %v1374_v48  ;;  %v1379_v36 = vrot.slane %v1377_v17, 1  ;;  %v10123_v60 = vsel %vm329_vm0, 0, %v325_v34  ;;  %v10126_v57 = vsel %vm329_vm0, %v325_v34, 0 }
  0x46   : > { %v10120_v10 = vsel %vm388_vm1, %v514_v61, %v517_v16  ;;  %v10130_v43 = vsel %vm1319_vm4, %v1367_v19, %v1372_v0  ;;  %v11613_v18 = vshrl.u32 %v10123_v60, 16  ;;  %v11606_v22 = vshll.u32 %v10123_v60, 16 }
  0x47   : > { %11728 = vst [vmem:[#allocation25_spill] sm:$0xff] %v10120_v10  ;;  %11729 = vst [vmem:[#allocation26_spill] sm:$0xff] %v10130_v43  ;;  %v11605_v49 = vshll.u32 %v10126_v57, 16  ;;  %8300 = vmatprep.mubr.msk.bf16.mxu0 %vm564_vm2, %v10130_v43  ;;  %v1381_v16 = vor.u32 %v1380_v58, %v1379_v36  ;;  %v10138_v59 = vsel %vm329_vm0, 0, %v326_v47  ;;  %v10141_v34 = vsel %vm329_vm0, %v326_v47, 0 }
  0x48   : > { %v11730_v48 = vshrl.u32 %v9888_v13, 16  ;;  %v523_v28 = vrot.slane %v11606_v22, 1  ;;  %v11614_v56 = vshll.u32 %v10138_v59, 16  ;;  %v11619_v17 = vshll.u32 %v10141_v34, 16 }
  0x49   : > { %v527_v35 = vrot.slane %v11605_v49, 1  ;;  %v10154_v61 = vsel %vm1319_vm4, %v1376_v27, %v1381_v16  ;;  %v11732_v0 = vshll.u32 %v9888_v13, 16  ;;  %v1386_v36 = vshrl.u32 %v9900_v23, 16 }
  0x4a   : > { %v1383_v19 = vrot.slane %v11730_v48, 1  ;;  %7823 = vmatmul.mubr.msk.bf16.gmra.mrb[24].mxu1 %vm564_vm2, %v10120_v10  ;;  %11731 = vst [vmem:[#allocation27_spill] sm:$0xff] %v10154_v61  ;;  %v524_v48 = vor.u32 %v523_v28, %v11613_v18  ;;  %v533_v49 = vrot.slane %v11614_v56, 1  ;;  %v11733_v22 = vshll.u32 %v9900_v23, 16  ;;  %8301 = vmatmul.mubr.msk.bf16.gmra.mrb[8].mxu0 %vm564_vm2, %v10154_v61 }
  0x4b   : > { %v1384_v47 = vrot.slane %v11732_v0, 2  ;;  %v11734_v10 = vshrl.u32 %v9923_v12, 16  ;;  %v537_v16 = vrot.slane %v11619_v17, 1  ;;  %v1388_v55 = vrot.slane %v1386_v36, 1 }
  0x4c   : > { %v1389_v58 = vrot.slane %v11733_v22, 2  ;;  %v11735_v2 = vshll.u32 %v9923_v12, 16  ;;  %v10175_v18 = vsel %vm388_vm1, %v524_v48, %v527_v35  ;;  %v11737_v56 = vshrl.u32 %v10138_v59, 16 }
  0x4d   : > { %v1392_v27 = vrot.slane %v11734_v10, 1  ;;  %v1385_v0 = vor.u32 %v1384_v47, %v1383_v19  ;;  %11736 = vst [vmem:[#allocation28_spill] sm:$0xff] %v10175_v18  ;;  %v1395_v43 = vshrl.u32 %v9926_v11, 16  ;;  %v11738_v10 = vshll.u32 %v9926_v11, 16  ;;  %7826 = vmatprep.mubr.msk.bf16.mxu1 %vm564_vm2, %v10175_v18 }
  0x4e   : > { %v1393_v28 = vrot.slane %v11735_v2, 2  ;;  %v534_v22 = vor.u32 %v533_v49, %v11737_v56  ;;  %v1390_v17 = vor.u32 %v1389_v58, %v1388_v55  ;;  %v11739_v47 = vshrl.u32 %v9983_v46, 16 }
  0x4f   : > { %v1398_v63 = vrot.slane %v11738_v10, 2  ;;  %v11740_v2 = vshll.u32 %v9983_v46, 16  ;;  %v1397_v49 = vrot.slane %v1395_v43, 1  ;;  %v1404_v56 = vshrl.u32 %v9986_v51, 16 }
  0x50   : > { %v1394_v19 = vor.u32 %v1393_v28, %v1392_v27  ;;  %v1401_v36 = vrot.slane %v11739_v47, 1  ;;  %v10189_v48 = vsel %vm388_vm1, %v534_v22, %v537_v16  ;;  %v11742_v61 = vshll.u32 %v9986_v51, 16 }
  0x51   : > { %v1402_v35 = vrot.slane %v11740_v2, 2  ;;  %11741 = vst [vmem:[#allocation29_spill] sm:$0xff] %v10189_v48  ;;  %v10195_v39 = vsel %vm1319_vm4, %v1385_v0, %v1390_v17  ;;  %v11744_v58 = vshrl.u32 %v9989_v62, 16  ;;  %v11745_v28 = vshll.u32 %v9989_v62, 16 }
  0x52   : > { %v1407_v10 = vrot.slane %v11742_v61, 2  ;;  %11743 = vst [vmem:[#allocation30_spill] sm:$0xff] %v10195_v39  ;;  %7827 = vmatmul.mubr.msk.bf16.gmra.mrb[28].mxu1 %vm564_vm2, %v10189_v48  ;;  %8304 = vmatprep.mubr.msk.bf16.mxu0 %vm564_vm2, %v10195_v39  ;;  %v1399_v43 = vor.u32 %v1398_v63, %v1397_v49  ;;  %v1406_v16 = vrot.slane %v1404_v56, 1  ;;  %v1413_v61 = vshrl.u32 %v10003_v33, 16 }
  0x53   : > { %v1403_v55 = vor.u32 %v1402_v35, %v1401_v36  ;;  %v1410_v27 = vrot.slane %v11744_v58, 1  ;;  %v1411_v47 = vrot.slane %v11745_v28, 2  ;;  %v11746_v17 = vshll.u32 %v10003_v33, 16  ;;  %7836 = vmatprep.mubr.msk.bf16.mxu1 %vm564_vm2, %v9674_v6 }
  0x54   : > { %v11747_v22 = vshrl.u32 %v10059_v9, 16  ;;  %v11748_v2 = vshll.u32 %v10059_v9, 16  ;;  %v1422_v58 = vshrl.u32 %v10062_v15, 16  ;;  %v10216_v63 = vsel %vm1319_vm4, %v1394_v19, %v1399_v43  ;;  %v9556_v43 = vld [vmem:[%s9713_s10 + $0x70] sm:$0xff]  }
  0x55   : > { %v1416_v0 = vrot.slane %v11746_v17, 2  ;;  %11749 = vst [vmem:[#allocation31_spill] sm:$0xff] %v10216_v63  ;;  %v1408_v49 = vor.u32 %v1407_v10, %v1406_v16  ;;  %v1415_v56 = vrot.slane %v1413_v61, 1  ;;  %v11750_v28 = vshll.u32 %v10062_v15, 16  ;;  %8305 = vmatmul.mubr.msk.bf16.gmra.mrb[12].mxu0 %vm564_vm2, %v10216_v63 }
  0x56   : > { %v1419_v36 = vrot.slane %v11747_v22, 1  ;;  %v1420_v35 = vrot.slane %v11748_v2, 2  ;;  %v1424_v48 = vrot.slane %v1422_v58, 1  ;;  %v1412_v18 = vor.u32 %v1411_v47, %v1410_v27  ;;  %v9557_v58 = vld [vmem:[%s9713_s10 + $0x78] sm:$0xff]  }
  0x57   : > { %v1425_v17 = vrot.slane %v11750_v28, 2  ;;  %v10223_v22 = vsel %vm1319_vm4, %v1403_v55, %v1408_v49  ;;  %v1417_v2 = vor.u32 %v1416_v0, %v1415_v56  ;;  %v1431_v39 = vshrl.u32 %v10068_v20, 16  ;;  %v9555_v55 = vld [vmem:[%s11556_s1 + $0x38] sm:$0xff]  }
  0x58   : > { %11751 = vst [vmem:[#allocation32_spill] sm:$0xff] %v10223_v22  ;;  %8308 = vmatprep.mubr.msk.bf16.mxu0 %vm564_vm2, %v10223_v22  ;;  %v1421_v19 = vor.u32 %v1420_v35, %v1419_v36  ;;  %v11752_v16 = vshrl.u32 %v10065_v54, 16  ;;  %v1440_v28 = vshrl.u32 %v10126_v57, 16  ;;  %v11753_v27 = vshll.u32 %v10065_v54, 16 }
  0x59   : > { %v1426_v10 = vor.u32 %v1425_v17, %v1424_v48  ;;  %v11754_v0 = vshll.u32 %v10068_v20, 16  ;;  %v10243_v48 = vsel %vm1319_vm4, %v1412_v18, %v1417_v2  ;;  %v1433_v36 = vrot.slane %v1431_v39, 1  ;;  %v9559_v39 = vld [vmem:[%s11556_s1 + $0x40] sm:$0xff]  }
  0x5a   : > { %v1428_v61 = vrot.slane %v11752_v16, 1  ;;  %v1429_v47 = vrot.slane %v11753_v27, 2  ;;  %7837 = vmatmul.mubr.msk.bf16.vlgmr.msra.gmra.mrb[0].mxu1 %vm564_vm2, %v9674_v6  ;;  %11755 = vst [vmem:[#allocation33_spill] sm:$0xff] %v10243_v48  ;;  %v11756_v35 = vshrl.u32 %v10123_v60, 16  ;;  %v11757_v17 = vshll.u32 %v10123_v60, 16 }
  0x5b   : > { %v1434_v49 = vrot.slane %v11754_v0, 2  ;;  %7869 = vmatpush3.bf16.msra.mxu1 %v9893_v14  ;;  %7840 = vmatprep.mubr.msk.bf16.mxu1 %vm564_vm2, %v9726_v25  ;;  %v10253_v27 = vsel %vm1319_vm4, %v1421_v19, %v1426_v10  ;;  %v1442_v0 = vrot.slane %v1440_v28, 1  ;;  %v11759_v22 = vshll.u32 %v10126_v57, 16 }
  0x5c   : > { %v1437_v56 = vrot.slane %v11756_v35, 1  ;;  %v1438_v16 = vrot.slane %v11757_v17, 2  ;;  %11758 = vst [vmem:[#allocation34_spill] sm:$0xff] %v10253_v27  ;;  %v327_v2 = vrot.slane %v9556_v43, 7  ;;  %7870 = vmatprep.subr.bf16.mxu1 %v9555_v55  ;;  %v1449_v14 = vshrl.u32 %v10141_v34, 16 }
  0x5d   : > { %v1443_v18 = vrot.slane %v11759_v22, 2  ;;  %8309 = vmatmul.mubr.msk.bf16.gmra.mrb[16].mxu0 %vm564_vm2, %v10243_v48  ;;  %v328_v10 = vrot.slane %v9557_v58, 7  ;;  %v1430_v22 = vor.u32 %v1429_v47, %v1428_v61  ;;  %v1435_v43 = vor.u32 %v1434_v49, %v1433_v36  ;;  %v10282_v61 = vld [vmem:[%s11556_s1 + $0x48] sm:$0xff]  }
  0x5e   : > { %v10264_v35 = vsel %vm329_vm0, 0, %v327_v2  ;;  %v10267_v19 = vsel %vm329_vm0, %v327_v2, 0  ;;  %8312 = vmatprep.mubr.msk.bf16.mxu0 %vm564_vm2, %v10253_v27  ;;  %v1439_v63 = vor.u32 %v1438_v16, %v1437_v56  ;;  %v11760_v2 = vshrl.u32 %v10138_v59, 16 }
  0x5f   : > { %v11647_v28 = vshrl.u32 %v10264_v35, 16  ;;  %v11649_v17 = vshll.u32 %v10264_v35, 16  ;;  %v1444_v48 = vor.u32 %v1443_v18, %v1442_v0  ;;  %7871 = vmatpush3.bf16.msra.mxu1 %v9555_v55  ;;  %v11644_v52 = vshll.u32 %v10267_v19, 16 }
  0x60   : > { %v2707_v40 = vshrl.u32 %v10267_v19, 16  ;;  %v1446_v24 = vrot.slane %v11760_v2, 1  ;;  %v11761_v58 = vshll.u32 %v10138_v59, 16  ;;  %7872 = vmatprep.subr.bf16.mxu1 %v9559_v39  ;;  %v1451_v47 = vrot.slane %v1449_v14, 1 }
  0x61   : > { %v11762_v49 = vshll.u32 %v10141_v34, 16  ;;  %v10287_v36 = vsel %vm329_vm0, 0, %v328_v10  ;;  %v10290_v56 = vsel %vm329_vm0, %v328_v10, 0  ;;  %v10295_v16 = vsel %vm1319_vm4, %v1430_v22, %v1435_v43 }
  0x62   : > { %v1447_v7 = vrot.slane %v11761_v58, 2  ;;  %7841 = vmatmul.mubr.msk.bf16.gmra.mrb[4].mxu1 %vm564_vm2, %v9734_v30  ;;  %11763 = vst [vmem:[#allocation35_spill] sm:$0xff] %v10295_v16  ;;  %v2704_v0 = vrot.slane %v11647_v28, 1  ;;  %v2705_v18 = vrot.slane %v11649_v17, 2  ;;  %v10304_v14 = vsel %vm1319_vm4, %v1439_v63, %v1444_v48  ;;  %v11775_v17 = vld [vmem:[#allocation15_spill] sm:$0xff] }
  0x63   : > { %v1452_v55 = vrot.slane %v11762_v49, 2  ;;  %7844 = vmatprep.mubr.msk.bf16.mxu1 %vm564_vm2, %v9762_v45  ;;  %11764 = vst [vmem:[#allocation36_spill] sm:$0xff] %v10304_v14  ;;  %v2709_v10 = vrot.slane %v2707_v40, 1  ;;  %v2710_v2 = vrot.slane %v11644_v52, 2  ;;  %7873 = vmatpush3.bf16.msra.mxu1 %v9559_v39  ;;  %v11646_v58 = vshrl.u32 %v10287_v36, 16 }
  0x64   : > { %7906 = vmatprep.subr.bf16.mxu1 %v10282_v61  ;;  %v1448_v22 = vor.u32 %v1447_v7, %v1446_v24  ;;  %v11648_v49 = vshll.u32 %v10287_v36, 16  ;;  %v11645_v40 = vshll.u32 %v10290_v56, 16  ;;  %v3838_v63 = vshrl.u32 %v10290_v56, 16 }
  0x65   : > { %8313 = vmatmul.mubr.msk.bf16.gmra.mrb[20].mxu0 %vm564_vm2, %v10295_v16  ;;  %v1453_v43 = vor.u32 %v1452_v55, %v1451_v47  ;;  %v2706_v48 = vor.u32 %v2705_v18, %v2704_v0  ;;  %v2711_v39 = vor.u32 %v2710_v2, %v2709_v10  ;;  %v3835_v7 = vrot.slane %v11646_v58, 1 }
  0x66   : > { %8316 = vmatprep.mubr.msk.bf16.mxu0 %vm564_vm2, %v10304_v14  ;;  %v3836_v24 = vrot.slane %v11648_v49, 2  ;;  %v3840_v47 = vrot.slane %v3838_v63, 1  ;;  %v3841_v55 = vrot.slane %v11645_v40, 2  ;;  %v1722_v2 = vrot.slane %v9726_v25, 2 }
  0x67   : > { %v10318_v52 = vsel %vm1319_vm4, %v1448_v22, %v1453_v43  ;;  %v10331_v0 = vsel %vm1319_vm4, %v2706_v48, %v2711_v39  ;;  %v1723_v22 = vrot.slane %v9729_v26, 2  ;;  %v1725_v48 = vrot.slane %v9734_v30, 2 }
  0x68   : > { %11765 = vst [vmem:[#allocation37_spill] sm:$0xff] %v10318_v52  ;;  %11766 = vst [vmem:[#allocation38_spill] sm:$0xff] %v10331_v0  ;;  %v3837_v18 = vor.u32 %v3836_v24, %v3835_v7  ;;  %v3842_v10 = vor.u32 %v3841_v55, %v3840_v47  ;;  %v1726_v39 = vrot.slane %v9737_v31, 2  ;;  %v1728_v26 = vrot.slane %v9762_v45, 2  ;;  %v9560_v55 = vld [vmem:[%s11556_s1 + $0x170] sm:$0xff]  }
  0x69   : > { %v10347_v63 = vsel %vm1718_vm5, %v1722_v2, %v1723_v22  ;;  %v1729_v7 = vrot.slane %v9777_v53, 2  ;;  %v1731_v24 = vrot.slane %v9802_v4, 2  ;;  %v1732_v47 = vrot.slane %v9805_v5, 2  ;;  %v9562_v5 = vld [vmem:[%s11556_s1 + $0x178] sm:$0xff]  }
  0x6a   : > { %7845 = vmatmul.mubr.msk.bf16.gmra.mrb[8].mxu1 %vm564_vm2, %v9802_v4  ;;  %v10342_v43 = vsel %vm1319_vm4, %v3837_v18, %v3842_v10  ;;  %11768 = vst [vmem:[#allocation40_spill] sm:$0xff] %v10347_v63  ;;  %v10365_v31 = vsel %vm1718_vm5, %v1725_v48, %v1726_v39  ;;  %v1734_v18 = vrot.slane %v9837_v29, 2  ;;  %v1735_v53 = vrot.slane %v9840_v32, 2 }
  0x6b   : > { %7848 = vmatprep.mubr.msk.bf16.mxu1 %vm564_vm2, %v9837_v29  ;;  %11767 = vst [vmem:[#allocation39_spill] sm:$0xff] %v10342_v43  ;;  %11769 = vst [vmem:[#allocation41_spill] sm:$0xff] %v10365_v31  ;;  %v10372_v10 = vsel %vm1718_vm5, %v1728_v26, %v1729_v7  ;;  %v10385_v32 = vsel %vm1718_vm5, %v1731_v24, %v1732_v47  ;;  %v1737_v22 = vrot.slane %v9851_v41, 2  ;;  %v1738_v48 = vrot.slane %v9858_v44, 2 }
  0x6c   : > { %11770 = vst [vmem:[#allocation42_spill] sm:$0xff] %v10372_v10  ;;  %v10390_v2 = vsel %vm1718_vm5, %v1734_v18, %v1735_v53  ;;  %v1740_v39 = vrot.slane %v9888_v13, 2  ;;  %v1741_v26 = vrot.slane %v9900_v23, 2  ;;  %v1011_v44 = vrot.slane %v9674_v6, 1 }
  0x6d   : > { %8317 = vmatmul.mubr.msk.bf16.gmra.mrb[24].mxu0 %vm564_vm2, %v10318_v52  ;;  %v10409_v7 = vsel %vm1718_vm5, %v1737_v22, %v1738_v48  ;;  %v1012_v47 = vrot.slane %v9680_v8, 1  ;;  %v1743_v23 = vrot.slane %v9923_v12, 2  ;;  %v1746_v18 = vrot.slane %v9983_v46, 2 }
  0x6e   : > { %8320 = vmatprep.mubr.msk.bf16.mxu0 %vm564_vm2, %v10331_v0  ;;  %v10414_v24 = vsel %vm1718_vm5, %v1740_v39, %v1741_v26  ;;  %v1747_v53 = vrot.slane %v9986_v51, 2  ;;  %v1750_v39 = vrot.slane %v10003_v33, 2  ;;  %v1752_v26 = vrot.slane %v10059_v9, 2 }
  0x6f   : > { %v2935_v58 = vrot.slane %v10267_v19, 2  ;;  %v4066_v28 = vrot.slane %v10290_v56, 2 }
  0x70   : > { %v10437_v48 = vsel %vm1718_vm5, %v1746_v18, %v1747_v53  ;;  %v9565_v18 = vld [vmem:[%s11556_s1 + $0x58] sm:$0xff]   ;;  %v1755_v53 = vrot.slane %v10065_v54, 2 }
  0x72   : > { %7849 = vmatmul.mubr.msk.bf16.gmra.mrb[12].mxu1 %vm564_vm2, %v9851_v41 }
  0x73   : > { %7852 = vmatprep.mubr.msk.bf16.mxu1 %vm564_vm2, %v9888_v13 }
  0x75   : > { %8321 = vmatmul.mubr.msk.bf16.gmra.mrb[28].mxu0 %vm564_vm2, %v10342_v43 }
  0x76   : > { %8330 = vmatprep.mubr.msk.bf16.mxu0 %vm564_vm2, %v10347_v63 }
  0x7a   : > { %7853 = vmatmul.mubr.msk.bf16.gmra.mrb[16].mxu1 %vm564_vm2, %v9923_v12 }
  0x7b   : > { %7856 = vmatprep.mubr.msk.bf16.mxu1 %vm564_vm2, %v9983_v46 }
  0x7d   : > { %8331 = vmatmul.mubr.msk.bf16.vlgmr.msra.gmra.mrb[0].mxu0 %vm564_vm2, %v10365_v31 }
  0x7e   : > { %8363 = vmatpush3.bf16.msra.mxu0 %v10099_v38  ;;  %8334 = vmatprep.mubr.msk.bf16.mxu0 %vm564_vm2, %v10372_v10  ;;  %v10395_v38 = vld [vmem:[%s11556_s1 + $0x180] sm:$0xff]  }
  0x7f   : > { %8364 = vmatprep.subr.bf16.mxu0 %v9560_v55 }
  0x82   : > { %7857 = vmatmul.mubr.msk.bf16.gmra.mrb[20].mxu1 %vm564_vm2, %v9989_v62  ;;  %8365 = vmatpush3.bf16.msra.mxu0 %v9560_v55  ;;  %v1744_v55 = vrot.slane %v9926_v11, 2  ;;  %v1749_v11 = vrot.slane %v9989_v62, 2 }
  0x83   : > { %7860 = vmatprep.mubr.msk.bf16.mxu1 %vm564_vm2, %v10059_v9  ;;  %8366 = vmatprep.subr.bf16.mxu0 %v9562_v5 }
  0x84   : > { %v10432_v22 = vsel %vm1718_vm5, %v1743_v23, %v1744_v55  ;;  %v10453_v23 = vsel %vm1718_vm5, %v1749_v11, %v1750_v39  ;;  %v1758_v11 = vrot.slane %v10123_v60, 2  ;;  %v1759_v39 = vrot.slane %v10126_v57, 2 }
  0x85   : > { %8335 = vmatmul.mubr.msk.bf16.gmra.mrb[4].mxu0 %vm564_vm2, %v10385_v32 }
  0x86   : > { %8338 = vmatprep.mubr.msk.bf16.mxu0 %vm564_vm2, %v10390_v2  ;;  %8367 = vmatpush3.bf16.msra.mxu0 %v9562_v5  ;;  %v10427_v5 = vsel %vm1010_vm3, %v1011_v44, %v1012_v47  ;;  %v1753_v44 = vrot.slane %v10062_v15, 2  ;;  %v9563_v47 = vld [vmem:[%s11556_s1 + $0x50] sm:$0xff]   ;;  %v10485_v40 = vsel %vm1718_vm5, %v1758_v11, %v1759_v39  ;;  %v4065_v39 = vrot.slane %v10287_v36, 2 }
  0x87   : > { %8400 = vmatprep.subr.bf16.mxu0 %v10395_v38  ;;  %11771 = vst [vmem:[#allocation43_spill] sm:$0xff] %v10427_v5 }
  0x88   : > { %v10459_v55 = vsel %vm1718_vm5, %v1752_v26, %v1753_v44  ;;  %v10475_v26 = vld [vmem:[%s11556_s1 + $0x60] sm:$0xff]  }
  0x8a   : > { %7861 = vmatmul.mubr.msk.bf16.gmra.mrb[24].mxu1 %vm564_vm2, %v10065_v54 }
  0x8b   : > { %7864 = vmatprep.mubr.msk.bf16.mxu1 %vm564_vm2, %v10123_v60 }
  0x8d   : > { %8339 = vmatmul.mubr.msk.bf16.gmra.mrb[8].mxu0 %vm564_vm2, %v10409_v7 }
  0x8e   : > { %8342 = vmatprep.mubr.msk.bf16.mxu0 %vm564_vm2, %v10414_v24 }
  0x92   : > { %7865 = vmatmul.mubr.msk.bf16.gmra.mrb[28].mxu1 %vm564_vm2, %v10138_v59 }
  0x93   : > { %7874 = vmatprep.mubr.msk.bf16.mxu1 %vm564_vm2, %v10427_v5 }
  0x95   : > { %8343 = vmatmul.mubr.msk.bf16.gmra.mrb[12].mxu0 %vm564_vm2, %v10432_v22 }
  0x96   : > { %8346 = vmatprep.mubr.msk.bf16.mxu0 %vm564_vm2, %v10437_v48 }
  0x9a   : > { %7875 = vmatmul.mubr.msk.bf16.vlgmr.msra.gmra.mrb[0].mxu1 %vm564_vm2, %v10427_v5 }
  0x9b   : > { %7907 = vmatpush3.bf16.msra.mxu1 %v10282_v61  ;;  %7878 = vmatprep.mubr.msk.bf16.mxu1 %vm564_vm2, %v9747_v37  ;;  %v1756_v61 = vrot.slane %v10068_v20, 2 }
  0x9c   : > { %7908 = vmatprep.subr.bf16.mxu1 %v9563_v47 }
  0x9d   : > { %8347 = vmatmul.mubr.msk.bf16.gmra.mrb[16].mxu0 %vm564_vm2, %v10453_v23  ;;  %v10480_v44 = vsel %vm1718_vm5, %v1755_v53, %v1756_v61  ;;  %v1762_v53 = vrot.slane %v10141_v34, 2  ;;  %v2934_v61 = vrot.slane %v10264_v35, 2 }
  0x9e   : > { %8350 = vmatprep.mubr.msk.bf16.mxu0 %vm564_vm2, %v10459_v55 }
  0x9f   : > { %7909 = vmatpush3.bf16.msra.mxu1 %v9563_v47  ;;  %v1761_v47 = vrot.slane %v10138_v59, 2  ;;  %v10504_v11 = vsel %vm1718_vm5, %v2934_v61, %v2935_v58  ;;  %v1038_v58 = vrot.slane %v9983_v46, 1  ;;  %v1039_v61 = vrot.slane %v9986_v51, 1  ;;  %v9566_v51 = vld [vmem:[%s11556_s1 + $0x188] sm:$0xff]  }
  0xa0   : > { %7910 = vmatprep.subr.bf16.mxu1 %v9565_v18  ;;  %11772 = vst [vmem:[#allocation44_spill] sm:$0xff] %v10504_v11 }
  0xa1   : > { %v10526_v49 = vsel %vm1010_vm3, %v1038_v58, %v1039_v61 }
  0xa2   : > { %7879 = vmatmul.mubr.msk.bf16.gmra.mrb[4].mxu1 %vm564_vm2, %v9756_v42 }
  0xa3   : > { %7882 = vmatprep.mubr.msk.bf16.mxu1 %vm564_vm2, %v9799_v3  ;;  %7911 = vmatpush3.bf16.msra.mxu1 %v9565_v18  ;;  %v10499_v18 = vsel %vm1718_vm5, %v1761_v47, %v1762_v53  ;;  %v10515_v47 = vsel %vm1718_vm5, %v4065_v39, %v4066_v28  ;;  %v11774_v53 = vld [vmem:[#allocation13_spill] sm:$0xff]  ;;  %v1041_v28 = vrot.slane %v9989_v62, 1  ;;  %v1042_v39 = vrot.slane %v10003_v33, 1  ;;  %v9568_v33 = vld [vmem:[%s11556_s1 + $0x190] sm:$0xff]  }
  0xa4   : > { %7944 = vmatprep.subr.bf16.mxu1 %v10475_v26  ;;  %11773 = vst [vmem:[#allocation45_spill] sm:$0xff] %v10515_v47 }
  0xa5   : > { %8351 = vmatmul.mubr.msk.bf16.gmra.mrb[20].mxu0 %vm564_vm2, %v10480_v44  ;;  %v10545_v58 = vsel %vm1010_vm3, %v1041_v28, %v1042_v39  ;;  %v9570_v28 = vld [vmem:[%s11556_s1 + $0x198] sm:$0xff]   ;;  %v1050_v39 = vrot.slane %v10123_v60, 1 }
  0xa6   : > { %8354 = vmatprep.mubr.msk.bf16.mxu0 %vm564_vm2, %v10485_v40 }
  0xaa   : > { %7883 = vmatmul.mubr.msk.bf16.gmra.mrb[8].mxu1 %vm564_vm2, %v9826_v21 }
  0xab   : > { %7886 = vmatprep.mubr.msk.bf16.mxu1 %vm564_vm2, %v9863_v50 }
  0xad   : > { %8355 = vmatmul.mubr.msk.bf16.gmra.mrb[24].mxu0 %vm564_vm2, %v10499_v18 }
  0xae   : > { %8358 = vmatprep.mubr.msk.bf16.mxu0 %vm564_vm2, %v10504_v11  ;;  %v1045_v11 = vrot.slane %v10062_v15, 1  ;;  %v1047_v15 = vrot.slane %v10065_v54, 1 }
  0xb2   : > { %7887 = vmatmul.mubr.msk.bf16.gmra.mrb[12].mxu1 %vm564_vm2, %v9881_v1 }
  0xb3   : > { %7890 = vmatprep.mubr.msk.bf16.mxu1 %vm564_vm2, %v11774_v53 }
  0xb5   : > { %8359 = vmatmul.mubr.msk.bf16.gmra.mrb[28].mxu0 %vm564_vm2, %v10515_v47  ;;  %v1044_v47 = vrot.slane %v10059_v9, 1 }
  0xb6   : > { %8368 = vmatprep.mubr.msk.bf16.mxu0 %vm564_vm2, %v9734_v30 }
  0xb7   : > { %v10551_v61 = vsel %vm1010_vm3, %v1044_v47, %v1045_v11  ;;  %v1051_v11 = vrot.slane %v10126_v57, 1  ;;  %v1323_v47 = vshrl.u32 %v9680_v8, 16  ;;  %v11777_v57 = vshll.u32 %v9674_v6, 16 }
  0xb9   : > { %v10575_v43 = vsel %vm1010_vm3, %v1050_v39, %v1051_v11  ;;  %v1321_v0 = vrot.slane %v11777_v57, 2  ;;  %v1325_v5 = vrot.slane %v1323_v47, 1  ;;  %v11783_v47 = vld [vmem:[#allocation23_spill] sm:$0xff] }
  0xba   : > { %7891 = vmatmul.mubr.msk.bf16.gmra.mrb[16].mxu1 %vm564_vm2, %v11775_v17  ;;  %v11785_v57 = vld [vmem:[#allocation27_spill] sm:$0xff] }
  0xbb   : > { %7894 = vmatprep.mubr.msk.bf16.mxu1 %vm564_vm2, %v10526_v49 }
  0xbd   : > { %8369 = vmatmul.mubr.msk.bf16.vlgmr.msra.gmra.mrb[0].mxu0 %vm564_vm2, %v9762_v45 }
  0xbe   : > { %8401 = vmatpush3.bf16.msra.mxu0 %v10395_v38  ;;  %8372 = vmatprep.mubr.msk.bf16.mxu0 %vm564_vm2, %v9802_v4  ;;  %v1048_v38 = vrot.slane %v10068_v20, 1 }
  0xbf   : > { %8402 = vmatprep.subr.bf16.mxu0 %v9566_v51 }
  0xc0   : > { %v10570_v20 = vsel %vm1010_vm3, %v1047_v15, %v1048_v38  ;;  %v1054_v15 = vrot.slane %v10141_v34, 1  ;;  %v9571_v34 = vld [vmem:[%s11556_s1 + $0x70] sm:$0xff]  }
  0xc2   : > { %7895 = vmatmul.mubr.msk.bf16.gmra.mrb[20].mxu1 %vm564_vm2, %v10545_v58  ;;  %8403 = vmatpush3.bf16.msra.mxu0 %v9566_v51  ;;  %v11776_v51 = vshrl.u32 %v9674_v6, 16 }
  0xc3   : > { %7898 = vmatprep.mubr.msk.bf16.mxu1 %vm564_vm2, %v10551_v61  ;;  %8404 = vmatprep.subr.bf16.mxu0 %v9568_v33 }
  0xc4   : > { %v1320_v37 = vrot.slane %v11776_v51, 1  ;;  %v11784_v51 = vld [vmem:[#allocation26_spill] sm:$0xff] }
  0xc5   : > { %8373 = vmatmul.mubr.msk.bf16.gmra.mrb[4].mxu0 %vm564_vm2, %v9837_v29  ;;  %v11778_v29 = vshll.u32 %v9680_v8, 16 }
  0xc6   : > { %8376 = vmatprep.mubr.msk.bf16.mxu0 %vm564_vm2, %v9851_v41  ;;  %8405 = vmatpush3.bf16.msra.mxu0 %v9568_v33  ;;  %v1053_v33 = vrot.slane %v10138_v59, 1  ;;  %v1322_v38 = vor.u32 %v1321_v0, %v1320_v37  ;;  %v9569_v37 = vld [vmem:[%s11556_s1 + $0x68] sm:$0xff]   ;;  %v9573_v0 = vld [vmem:[%s11556_s1 + $0x78] sm:$0xff]  }
  0xc7   : > { %8438 = vmatprep.subr.bf16.mxu0 %v9570_v28  ;;  %v1326_v4 = vrot.slane %v11778_v29, 2 }
  0xc8   : > { %v10592_v29 = vsel %vm1010_vm3, %v1053_v33, %v1054_v15  ;;  %v11786_v33 = vld [vmem:[#allocation30_spill] sm:$0xff]  ;;  %v11787_v15 = vld [vmem:[#allocation7_spill] sm:$0xff] }
  0xc9   : > { %v1327_v39 = vor.u32 %v1326_v4, %v1325_v5  ;;  %v11780_v4 = vld [vmem:[#allocation18_spill] sm:$0xff]  ;;  %v11781_v5 = vld [vmem:[#allocation19_spill] sm:$0xff] }
  0xca   : > { %7899 = vmatmul.mubr.msk.bf16.gmra.mrb[24].mxu1 %vm564_vm2, %v10570_v20 }
  0xcb   : > { %7902 = vmatprep.mubr.msk.bf16.mxu1 %vm564_vm2, %v10575_v43  ;;  %v10595_v11 = vsel %vm1319_vm4, %v1322_v38, %v1327_v39  ;;  %v11788_v38 = vld [vmem:[#allocation31_spill] sm:$0xff]  ;;  %v11789_v39 = vld [vmem:[#allocation32_spill] sm:$0xff] }
  0xcc   : > { %11779 = vst [vmem:[#allocation13_spill] sm:$0xff] %v10595_v11 }
  0xcd   : > { %8377 = vmatmul.mubr.msk.bf16.gmra.mrb[8].mxu0 %vm564_vm2, %v9888_v13 }
  0xce   : > { %8380 = vmatprep.mubr.msk.bf16.mxu0 %vm564_vm2, %v9923_v12 }
  0xd2   : > { %7903 = vmatmul.mubr.msk.bf16.gmra.mrb[28].mxu1 %vm564_vm2, %v10592_v29 }
  0xd3   : > { %7912 = vmatprep.mubr.msk.bf16.mxu1 %vm564_vm2, %v10595_v11 }
  0xd5   : > { %8381 = vmatmul.mubr.msk.bf16.gmra.mrb[12].mxu0 %vm564_vm2, %v9983_v46 }
  0xd6   : > { %8384 = vmatprep.mubr.msk.bf16.mxu0 %vm564_vm2, %v9989_v62 }
  0xda   : > { %7913 = vmatmul.mubr.msk.bf16.vlgmr.msra.gmra.mrb[0].mxu1 %vm564_vm2, %v10595_v11  ;;  %v9574_v11 = vld [vmem:[%s11556_s1 + $0x1a8] sm:$0xff]  }
  0xdb   : > { %7945 = vmatpush3.bf16.msra.mxu1 %v10475_v26  ;;  %7916 = vmatprep.mubr.msk.bf16.mxu1 %vm564_vm2, %v11780_v4  ;;  %v11782_v26 = vld [vmem:[#allocation22_spill] sm:$0xff]  ;;  %v11791_v4 = vld [vmem:[#allocation11_spill] sm:$0xff] }
  0xdc   : > { %7946 = vmatprep.subr.bf16.mxu1 %v9569_v37 }
  0xdd   : > { %8385 = vmatmul.mubr.msk.bf16.gmra.mrb[16].mxu0 %vm564_vm2, %v10059_v9 }
  0xde   : > { %8388 = vmatprep.mubr.msk.bf16.mxu0 %vm564_vm2, %v10065_v54 }
  0xdf   : > { %7947 = vmatpush3.bf16.msra.mxu1 %v9569_v37  ;;  %v9572_v37 = vld [vmem:[%s11556_s1 + $0x1a0] sm:$0xff]  }
  0xe0   : > { %7948 = vmatprep.subr.bf16.mxu1 %v9571_v34 }
  0xe2   : > { %7917 = vmatmul.mubr.msk.bf16.gmra.mrb[4].mxu1 %vm564_vm2, %v11781_v5 }
  0xe3   : > { %7920 = vmatprep.mubr.msk.bf16.mxu1 %vm564_vm2, %v11782_v26  ;;  %7949 = vmatpush3.bf16.msra.mxu1 %v9571_v34  ;;  %v11790_v34 = vld [vmem:[#allocation10_spill] sm:$0xff] }
  0xe4   : > { %7982 = vmatprep.subr.bf16.mxu1 %v9573_v0 }
  0xe5   : > { %8389 = vmatmul.mubr.msk.bf16.gmra.mrb[20].mxu0 %vm564_vm2, %v10123_v60 }
  0xe6   : > { %8392 = vmatprep.mubr.msk.bf16.mxu0 %vm564_vm2, %v10138_v59 }
  0xea   : > { %7921 = vmatmul.mubr.msk.bf16.gmra.mrb[8].mxu1 %vm564_vm2, %v11783_v47 }
  0xeb   : > { %7924 = vmatprep.mubr.msk.bf16.mxu1 %vm564_vm2, %v11784_v51 }
  0xed   : > { %8393 = vmatmul.mubr.msk.bf16.gmra.mrb[24].mxu0 %vm564_vm2, %v10264_v35 }
  0xee   : > { %8396 = vmatprep.mubr.msk.bf16.mxu0 %vm564_vm2, %v10287_v36 }
  0xf2   : > { %7925 = vmatmul.mubr.msk.bf16.gmra.mrb[12].mxu1 %vm564_vm2, %v11785_v57 }
  0xf3   : > { %7928 = vmatprep.mubr.msk.bf16.mxu1 %vm564_vm2, %v11786_v33 }
  0xf5   : > { %8397 = vmatmul.mubr.msk.bf16.gmra.mrb[28].mxu0 %vm564_vm2, %v9674_v6 }
  0xf6   : > { %8406 = vmatprep.mubr.msk.bf16.mxu0 %vm564_vm2, %v11787_v15  ;;  %v11792_v15 = vld [vmem:[#allocation33_spill] sm:$0xff] }
  0xfa   : > { %7929 = vmatmul.mubr.msk.bf16.gmra.mrb[16].mxu1 %vm564_vm2, %v11788_v38 }
  0xfb   : > { %7932 = vmatprep.mubr.msk.bf16.mxu1 %vm564_vm2, %v11789_v39  ;;  %v11796_v39 = vld [vmem:[#allocation17_spill] sm:$0xff] }
  0xfd   : > { %8407 = vmatmul.mubr.msk.bf16.vlgmr.msra.gmra.mrb[0].mxu0 %vm564_vm2, %v11790_v34  ;;  %v11793_v34 = vld [vmem:[#allocation12_spill] sm:$0xff] }
  0xfe   : > { %8439 = vmatpush3.bf16.msra.mxu0 %v9570_v28  ;;  %8410 = vmatprep.mubr.msk.bf16.mxu0 %vm564_vm2, %v11791_v4  ;;  %v9576_v28 = vld [vmem:[%s11556_s1 + $0x1b0] sm:$0xff]   ;;  %v11794_v4 = vld [vmem:[#allocation14_spill] sm:$0xff] }
  0xff   : > { %8440 = vmatprep.subr.bf16.mxu0 %v9572_v37 }
 0x102   : > { %7933 = vmatmul.mubr.msk.bf16.gmra.mrb[20].mxu1 %vm564_vm2, %v11792_v15  ;;  %8441 = vmatpush3.bf16.msra.mxu0 %v9572_v37  ;;  %v1719_v37 = vrot.slane %v9674_v6, 2  ;;  %v11795_v15 = vld [vmem:[#allocation16_spill] sm:$0xff] }
 0x103   : > { %7936 = vmatprep.mubr.msk.bf16.mxu1 %vm564_vm2, %v10253_v27  ;;  %8442 = vmatprep.subr.bf16.mxu0 %v9574_v11  ;;  %v1720_v27 = vrot.slane %v9680_v8, 2  ;;  %v9575_v8 = vld [vmem:[%s11556_s1 + $0x80] sm:$0xff]  }
 0x105   : > { %8411 = vmatmul.mubr.msk.bf16.gmra.mrb[4].mxu0 %vm564_vm2, %v11793_v34  ;;  %v11799_v34 = vld [vmem:[#allocation21_spill] sm:$0xff] }
 0x106   : > { %8414 = vmatprep.mubr.msk.bf16.mxu0 %vm564_vm2, %v11794_v4  ;;  %8443 = vmatpush3.bf16.msra.mxu0 %v9574_v11  ;;  %v10683_v4 = vsel %vm1718_vm5, %v1719_v37, %v1720_v27  ;;  %v11798_v11 = vld [vmem:[#allocation20_spill] sm:$0xff]  ;;  %v9577_v27 = vld [vmem:[%s11556_s1 + $0x88] sm:$0xff]  }
 0x107   : > { %8476 = vmatprep.subr.bf16.mxu0 %v9576_v28  ;;  %11797 = vst [vmem:[#allocation15_spill] sm:$0xff] %v10683_v4  ;;  %v11800_v37 = vld [vmem:[#allocation24_spill] sm:$0xff] }
 0x10a   : > { %7937 = vmatmul.mubr.msk.bf16.gmra.mrb[24].mxu1 %vm564_vm2, %v10295_v16 }
 0x10b   : > { %7940 = vmatprep.mubr.msk.bf16.mxu1 %vm564_vm2, %v10304_v14  ;;  %v11809_v14 = vshll.u32 %v10290_v56, 16 }
 0x10d   : > { %8415 = vmatmul.mubr.msk.bf16.gmra.mrb[8].mxu0 %vm564_vm2, %v11795_v15  ;;  %v11807_v15 = vshll.u32 %v10267_v19, 16 }
 0x10e   : > { %8418 = vmatprep.mubr.msk.bf16.mxu0 %vm564_vm2, %v11796_v39  ;;  %v11806_v39 = vshrl.u32 %v10264_v35, 16 }
 0x112   : > { %7941 = vmatmul.mubr.msk.bf16.gmra.mrb[28].mxu1 %vm564_vm2, %v10318_v52  ;;  %v11808_v52 = vshrl.u32 %v10287_v36, 16 }
 0x113   : > { %7950 = vmatprep.mubr.msk.bf16.mxu1 %vm564_vm2, %v10683_v4 }
 0x115   : > { %8419 = vmatmul.mubr.msk.bf16.gmra.mrb[12].mxu0 %vm564_vm2, %v11798_v11 }
 0x116   : > { %8422 = vmatprep.mubr.msk.bf16.mxu0 %vm564_vm2, %v11799_v34  ;;  %v11801_v34 = vld [vmem:[#allocation25_spill] sm:$0xff] }
 0x11a   : > { %7951 = vmatmul.mubr.msk.bf16.vlgmr.msra.gmra.mrb[0].mxu1 %vm564_vm2, %v10683_v4 }
 0x11b   : > { %7983 = vmatpush3.bf16.msra.mxu1 %v9573_v0  ;;  %7954 = vmatprep.mubr.msk.bf16.mxu1 %vm564_vm2, %v10347_v63  ;;  %v9579_v0 = vld [vmem:[%s11556_s1 + $0x90] sm:$0xff]   ;;  %v11802_v63 = vshll.u32 %v10264_v35, 16 }
 0x11c   : > { %7984 = vmatprep.subr.bf16.mxu1 %v9575_v8 }
 0x11d   : > { %8423 = vmatmul.mubr.msk.bf16.gmra.mrb[16].mxu0 %vm564_vm2, %v11800_v37  ;;  %v2251_v4 = vrot.slane %v11802_v63, 1  ;;  %v11803_v37 = vshll.u32 %v10287_v36, 16  ;;  %v2255_v63 = vrot.slane %v11807_v15, 1  ;;  %v9581_v15 = vld [vmem:[%s11556_s1 + $0x98] sm:$0xff]  }
 0x11e   : > { %8426 = vmatprep.mubr.msk.bf16.mxu0 %vm564_vm2, %v11801_v34  ;;  %v11805_v34 = vld [vmem:[#allocation29_spill] sm:$0xff] }
 0x11f   : > { %7985 = vmatpush3.bf16.msra.mxu1 %v9575_v8  ;;  %v3382_v11 = vrot.slane %v11803_v37, 1  ;;  %v11804_v8 = vld [vmem:[#allocation28_spill] sm:$0xff]  ;;  %v3386_v37 = vrot.slane %v11809_v14, 1  ;;  %v9578_v14 = vld [vmem:[%s11556_s1 + $0x1b8] sm:$0xff]  }
 0x120   : > { %7986 = vmatprep.subr.bf16.mxu1 %v9577_v27 }
 0x122   : > { %7955 = vmatmul.mubr.msk.bf16.gmra.mrb[4].mxu1 %vm564_vm2, %v10365_v31  ;;  %v2252_v31 = vor.u32 %v2251_v4, %v11806_v39  ;;  %v9583_v39 = vld [vmem:[%s11556_s1 + $0xa0] sm:$0xff]  }
 0x123   : > { %7958 = vmatprep.mubr.msk.bf16.mxu1 %vm564_vm2, %v10372_v10  ;;  %7987 = vmatpush3.bf16.msra.mxu1 %v9577_v27  ;;  %v3383_v10 = vor.u32 %v3382_v11, %v11808_v52  ;;  %v11811_v52 = vld [vmem:[#allocation2_spill] sm:$0xff]  ;;  %v11812_v11 = vld [vmem:[#allocation8_spill] sm:$0xff] }
 0x124   : > { %8020 = vmatprep.subr.bf16.mxu1 %v9579_v0  ;;  %v10733_v27 = vsel %vm388_vm1, %v2252_v31, %v2255_v63  ;;  %v9580_v31 = vld [vmem:[%s11556_s1 + $0x1c0] sm:$0xff]   ;;  %v2481_v63 = vrot.slane %v10267_v19, 1  ;;  %v11815_v19 = vld [vmem:[#allocation43_spill] sm:$0xff] }
 0x125   : > { %8427 = vmatmul.mubr.msk.bf16.gmra.mrb[20].mxu0 %vm564_vm2, %v11804_v8  ;;  %v10738_v4 = vsel %vm388_vm1, %v3383_v10, %v3386_v37  ;;  %v9582_v10 = vld [vmem:[%s11556_s1 + $0x1c8] sm:$0xff]   ;;  %v3611_v37 = vrot.slane %v10287_v36, 1 }
 0x126   : > { %8430 = vmatprep.mubr.msk.bf16.mxu0 %vm564_vm2, %v11805_v34  ;;  %11810 = vst [vmem:[#allocation19_spill] sm:$0xff] %v10738_v4 }
 0x12a   : > { %7959 = vmatmul.mubr.msk.bf16.gmra.mrb[8].mxu1 %vm564_vm2, %v10385_v32 }
 0x12b   : > { %7962 = vmatprep.mubr.msk.bf16.mxu1 %vm564_vm2, %v10390_v2 }
 0x12d   : > { %8431 = vmatmul.mubr.msk.bf16.gmra.mrb[24].mxu0 %vm564_vm2, %v10733_v27 }
 0x12e   : > { %8434 = vmatprep.mubr.msk.bf16.mxu0 %vm564_vm2, %v10738_v4  ;;  %v11826_v4 = vld [vmem:[#allocation14_spill] sm:$0xff] }
 0x132   : > { %7963 = vmatmul.mubr.msk.bf16.gmra.mrb[12].mxu1 %vm564_vm2, %v10409_v7 }
 0x133   : > { %7966 = vmatprep.mubr.msk.bf16.mxu1 %vm564_vm2, %v10414_v24 }
 0x135   : > { %8435 = vmatmul.mubr.msk.bf16.gmra.mrb[28].mxu0 %vm564_vm2, %v11811_v52 }
 0x136   : > { %8444 = vmatprep.mubr.msk.bf16.mxu0 %vm564_vm2, %v9756_v42 }
 0x13a   : > { %7967 = vmatmul.mubr.msk.bf16.gmra.mrb[16].mxu1 %vm564_vm2, %v10432_v22 }
 0x13b   : > { %7970 = vmatprep.mubr.msk.bf16.mxu1 %vm564_vm2, %v10437_v48 }
 0x13d   : > { %8445 = vmatmul.mubr.msk.bf16.vlgmr.msra.gmra.mrb[0].mxu0 %vm564_vm2, %v9799_v3 }
 0x13e   : > { %8477 = vmatpush3.bf16.msra.mxu0 %v9576_v28  ;;  %8448 = vmatprep.mubr.msk.bf16.mxu0 %vm564_vm2, %v9826_v21  ;;  %v9585_v28 = vld [vmem:[%s11556_s1 + $0xa8] sm:$0xff]  }
 0x13f   : > { %8478 = vmatprep.subr.bf16.mxu0 %v9578_v14 }
 0x142   : > { %7971 = vmatmul.mubr.msk.bf16.gmra.mrb[20].mxu1 %vm564_vm2, %v10453_v23  ;;  %8479 = vmatpush3.bf16.msra.mxu0 %v9578_v14  ;;  %v3612_v14 = vrot.slane %v10290_v56, 1  ;;  %v9584_v56 = vld [vmem:[%s11556_s1 + $0x1d0] sm:$0xff]  }
 0x143   : > { %7974 = vmatprep.mubr.msk.bf16.mxu1 %vm564_vm2, %v10459_v55  ;;  %8480 = vmatprep.subr.bf16.mxu0 %v9580_v31 }
 0x145   : > { %8449 = vmatmul.mubr.msk.bf16.gmra.mrb[4].mxu0 %vm564_vm2, %v9863_v50 }
 0x146   : > { %8452 = vmatprep.mubr.msk.bf16.mxu0 %vm564_vm2, %v9881_v1  ;;  %8481 = vmatpush3.bf16.msra.mxu0 %v9580_v31  ;;  %v11813_v31 = vld [vmem:[#allocation9_spill] sm:$0xff] }
 0x147   : > { %8514 = vmatprep.subr.bf16.mxu0 %v9582_v10 }
 0x14a   : > { %7975 = vmatmul.mubr.msk.bf16.gmra.mrb[24].mxu1 %vm564_vm2, %v10480_v44 }
 0x14b   : > { %7978 = vmatprep.mubr.msk.bf16.mxu1 %vm564_vm2, %v10485_v40 }
 0x14d   : > { %8453 = vmatmul.mubr.msk.bf16.gmra.mrb[8].mxu0 %vm564_vm2, %v11774_v53 }
 0x14e   : > { %8456 = vmatprep.mubr.msk.bf16.mxu0 %vm564_vm2, %v11775_v17 }
 0x152   : > { %7979 = vmatmul.mubr.msk.bf16.gmra.mrb[28].mxu1 %vm564_vm2, %v10499_v18 }
 0x153   : > { %7988 = vmatprep.mubr.msk.bf16.mxu1 %vm564_vm2, %v9674_v6 }
 0x155   : > { %8457 = vmatmul.mubr.msk.bf16.gmra.mrb[12].mxu0 %vm564_vm2, %v10526_v49 }
 0x156   : > { %8460 = vmatprep.mubr.msk.bf16.mxu0 %vm564_vm2, %v10545_v58 }
 0x15a   : > { %7989 = vmatmul.mubr.msk.bf16.vlgmr.msra.gmra.mrb[0].mxu1 %vm564_vm2, %v9726_v25  ;;  %v11823_v25 = vld [vmem:[#allocation36_spill] sm:$0xff] }
 0x15b   : > { %8021 = vmatpush3.bf16.msra.mxu1 %v9579_v0  ;;  %7992 = vmatprep.mubr.msk.bf16.mxu1 %vm564_vm2, %v9734_v30  ;;  %v2480_v0 = vrot.slane %v10264_v35, 1  ;;  %v11820_v30 = vld [vmem:[#allocation34_spill] sm:$0xff] }
 0x15c   : > { %8022 = vmatprep.subr.bf16.mxu1 %v9581_v15 }
 0x15d   : > { %8461 = vmatmul.mubr.msk.bf16.gmra.mrb[16].mxu0 %vm564_vm2, %v10551_v61 }
 0x15e   : > { %8464 = vmatprep.mubr.msk.bf16.mxu0 %vm564_vm2, %v10570_v20 }
 0x15f   : > { %8023 = vmatpush3.bf16.msra.mxu1 %v9581_v15  ;;  %v10825_v15 = vsel %vm1010_vm3, %v2480_v0, %v2481_v63  ;;  %v9586_v0 = vld [vmem:[%s11556_s1 + $0x1d8] sm:$0xff]   ;;  %v11816_v63 = vld [vmem:[#allocation32_spill] sm:$0xff] }
 0x160   : > { %8024 = vmatprep.subr.bf16.mxu1 %v9583_v39 }
 0x162   : > { %7993 = vmatmul.mubr.msk.bf16.gmra.mrb[4].mxu1 %vm564_vm2, %v9762_v45 }
 0x163   : > { %7996 = vmatprep.mubr.msk.bf16.mxu1 %vm564_vm2, %v11812_v11  ;;  %8025 = vmatpush3.bf16.msra.mxu1 %v9583_v39  ;;  %v10830_v39 = vsel %vm1010_vm3, %v3611_v37, %v3612_v14  ;;  %v11817_v37 = vld [vmem:[#allocation33_spill] sm:$0xff]  ;;  %v9587_v14 = vld [vmem:[%s11556_s1 + $0xb0] sm:$0xff]  }
 0x164   : > { %8058 = vmatprep.subr.bf16.mxu1 %v9585_v28  ;;  %11814 = vst [vmem:[#allocation22_spill] sm:$0xff] %v10830_v39 }
 0x165   : > { %8465 = vmatmul.mubr.msk.bf16.gmra.mrb[20].mxu0 %vm564_vm2, %v10575_v43 }
 0x166   : > { %8468 = vmatprep.mubr.msk.bf16.mxu0 %vm564_vm2, %v10592_v29 }
 0x16a   : > { %7997 = vmatmul.mubr.msk.bf16.gmra.mrb[8].mxu1 %vm564_vm2, %v11813_v31 }
 0x16b   : > { %8000 = vmatprep.mubr.msk.bf16.mxu1 %vm564_vm2, %v9851_v41 }
 0x16d   : > { %8469 = vmatmul.mubr.msk.bf16.gmra.mrb[24].mxu0 %vm564_vm2, %v10825_v15 }
 0x16e   : > { %8472 = vmatprep.mubr.msk.bf16.mxu0 %vm564_vm2, %v10830_v39  ;;  %v9589_v39 = vld [vmem:[%s11556_s1 + $0xb8] sm:$0xff]  }
 0x172   : > { %8001 = vmatmul.mubr.msk.bf16.gmra.mrb[12].mxu1 %vm564_vm2, %v9888_v13 }
 0x173   : > { %8004 = vmatprep.mubr.msk.bf16.mxu1 %vm564_vm2, %v9923_v12 }
 0x175   : > { %8473 = vmatmul.mubr.msk.bf16.gmra.mrb[28].mxu0 %vm564_vm2, %v11815_v19 }
 0x176   : > { %8482 = vmatprep.mubr.msk.bf16.mxu0 %vm564_vm2, %v11781_v5 }
 0x17a   : > { %8005 = vmatmul.mubr.msk.bf16.gmra.mrb[16].mxu1 %vm564_vm2, %v9983_v46 }
 0x17b   : > { %8008 = vmatprep.mubr.msk.bf16.mxu1 %vm564_vm2, %v9989_v62 }
 0x17d   : > { %8483 = vmatmul.mubr.msk.bf16.vlgmr.msra.gmra.mrb[0].mxu0 %vm564_vm2, %v11782_v26 }
 0x17e   : > { %8515 = vmatpush3.bf16.msra.mxu0 %v9582_v10  ;;  %8486 = vmatprep.mubr.msk.bf16.mxu0 %vm564_vm2, %v11783_v47  ;;  %v9588_v10 = vld [vmem:[%s11556_s1 + $0x1e0] sm:$0xff]  }
 0x17f   : > { %8516 = vmatprep.subr.bf16.mxu0 %v9584_v56 }
 0x182   : > { %8009 = vmatmul.mubr.msk.bf16.gmra.mrb[20].mxu1 %vm564_vm2, %v10059_v9  ;;  %8517 = vmatpush3.bf16.msra.mxu0 %v9584_v56  ;;  %v11818_v56 = vld [vmem:[#allocation6_spill] sm:$0xff] }
 0x183   : > { %8012 = vmatprep.mubr.msk.bf16.mxu1 %vm564_vm2, %v10065_v54  ;;  %8518 = vmatprep.subr.bf16.mxu0 %v9586_v0 }
 0x185   : > { %8487 = vmatmul.mubr.msk.bf16.gmra.mrb[4].mxu0 %vm564_vm2, %v11784_v51 }
 0x186   : > { %8490 = vmatprep.mubr.msk.bf16.mxu0 %vm564_vm2, %v11785_v57  ;;  %8519 = vmatpush3.bf16.msra.mxu0 %v9586_v0  ;;  %v11819_v0 = vld [vmem:[#allocation7_spill] sm:$0xff] }
 0x187   : > { %8552 = vmatprep.subr.bf16.mxu0 %v9588_v10 }
 0x18a   : > { %8013 = vmatmul.mubr.msk.bf16.gmra.mrb[24].mxu1 %vm564_vm2, %v10123_v60 }
 0x18b   : > { %8016 = vmatprep.mubr.msk.bf16.mxu1 %vm564_vm2, %v10138_v59 }
 0x18d   : > { %8491 = vmatmul.mubr.msk.bf16.gmra.mrb[8].mxu0 %vm564_vm2, %v11786_v33 }
 0x18e   : > { %8494 = vmatprep.mubr.msk.bf16.mxu0 %vm564_vm2, %v11788_v38 }
 0x192   : > { %8017 = vmatmul.mubr.msk.bf16.gmra.mrb[28].mxu1 %vm564_vm2, %v10264_v35 }
 0x193   : > { %8026 = vmatprep.mubr.msk.bf16.mxu1 %vm564_vm2, %v11811_v52  ;;  %v11824_v52 = vld [vmem:[#allocation37_spill] sm:$0xff] }
 0x195   : > { %8495 = vmatmul.mubr.msk.bf16.gmra.mrb[12].mxu0 %vm564_vm2, %v11816_v63 }
 0x196   : > { %8498 = vmatprep.mubr.msk.bf16.mxu0 %vm564_vm2, %v11817_v37 }
 0x19a   : > { %8027 = vmatmul.mubr.msk.bf16.vlgmr.msra.gmra.mrb[0].mxu1 %vm564_vm2, %v11818_v56  ;;  %v11821_v56 = vld [vmem:[#allocation10_spill] sm:$0xff] }
 0x19b   : > { %8059 = vmatpush3.bf16.msra.mxu1 %v9585_v28  ;;  %8030 = vmatprep.mubr.msk.bf16.mxu1 %vm564_vm2, %v11819_v0  ;;  %v9591_v28 = vld [vmem:[%s11556_s1 + $0xc0] sm:$0xff]   ;;  %v11822_v0 = vld [vmem:[#allocation11_spill] sm:$0xff] }
 0x19c   : > { %8060 = vmatprep.subr.bf16.mxu1 %v9587_v14 }
 0x19d   : > { %8499 = vmatmul.mubr.msk.bf16.gmra.mrb[16].mxu0 %vm564_vm2, %v11820_v30  ;;  %v11828_v30 = vld [vmem:[#allocation39_spill] sm:$0xff] }
 0x19e   : > { %8502 = vmatprep.mubr.msk.bf16.mxu0 %vm564_vm2, %v10295_v16  ;;  %v11827_v16 = vld [vmem:[#allocation38_spill] sm:$0xff] }
 0x19f   : > { %8061 = vmatpush3.bf16.msra.mxu1 %v9587_v14  ;;  %v11825_v14 = vld [vmem:[#allocation12_spill] sm:$0xff] }
 0x1a0   : > { %8062 = vmatprep.subr.bf16.mxu1 %v9589_v39 }
 0x1a2   : > { %8031 = vmatmul.mubr.msk.bf16.gmra.mrb[4].mxu1 %vm564_vm2, %v11821_v56 }
 0x1a3   : > { %8034 = vmatprep.mubr.msk.bf16.mxu1 %vm564_vm2, %v11822_v0  ;;  %8063 = vmatpush3.bf16.msra.mxu1 %v9589_v39  ;;  %v11829_v39 = vld [vmem:[#allocation16_spill] sm:$0xff]  ;;  %v11830_v0 = vld [vmem:[#allocation17_spill] sm:$0xff] }
 0x1a4   : > { %8096 = vmatprep.subr.bf16.mxu1 %v9591_v28 }
 0x1a5   : > { %8503 = vmatmul.mubr.msk.bf16.gmra.mrb[20].mxu0 %vm564_vm2, %v11823_v25  ;;  %v11831_v25 = vld [vmem:[#allocation13_spill] sm:$0xff] }
 0x1a6   : > { %8506 = vmatprep.mubr.msk.bf16.mxu0 %vm564_vm2, %v11824_v52  ;;  %v11832_v52 = vld [vmem:[#allocation41_spill] sm:$0xff] }
 0x1aa   : > { %8035 = vmatmul.mubr.msk.bf16.gmra.mrb[8].mxu1 %vm564_vm2, %v11825_v14  ;;  %v11833_v14 = vld [vmem:[#allocation20_spill] sm:$0xff] }
 0x1ab   : > { %8038 = vmatprep.mubr.msk.bf16.mxu1 %vm564_vm2, %v11826_v4  ;;  %v11834_v4 = vld [vmem:[#allocation21_spill] sm:$0xff] }
 0x1ad   : > { %8507 = vmatmul.mubr.msk.bf16.gmra.mrb[24].mxu0 %vm564_vm2, %v11827_v16  ;;  %v11835_v16 = vld [vmem:[#allocation42_spill] sm:$0xff] }
 0x1ae   : > { %8510 = vmatprep.mubr.msk.bf16.mxu0 %vm564_vm2, %v11828_v30  ;;  %v9590_v30 = vld [vmem:[%s11556_s1 + $0x1e8] sm:$0xff]  }
 0x1b2   : > { %8039 = vmatmul.mubr.msk.bf16.gmra.mrb[12].mxu1 %vm564_vm2, %v11829_v39 }
 0x1b3   : > { %8042 = vmatprep.mubr.msk.bf16.mxu1 %vm564_vm2, %v11830_v0 }
 0x1b5   : > { %8511 = vmatmul.mubr.msk.bf16.gmra.mrb[28].mxu0 %vm564_vm2, %v11831_v25 }
 0x1b6   : > { %8520 = vmatprep.mubr.msk.bf16.mxu0 %vm564_vm2, %v11832_v52  ;;  %v9592_v52 = vld [vmem:[%s11556_s1 + $0x1f0] sm:$0xff]  }
 0x1ba   : > { %8043 = vmatmul.mubr.msk.bf16.gmra.mrb[16].mxu1 %vm564_vm2, %v11833_v14  ;;  %v11836_v14 = vld [vmem:[#allocation24_spill] sm:$0xff] }
 0x1bb   : > { %8046 = vmatprep.mubr.msk.bf16.mxu1 %vm564_vm2, %v11834_v4  ;;  %v11837_v4 = vld [vmem:[#allocation25_spill] sm:$0xff] }
 0x1bd   : > { %8521 = vmatmul.mubr.msk.bf16.vlgmr.msra.gmra.mrb[0].mxu0 %vm564_vm2, %v11835_v16 }
 0x1be   : > { %8553 = vmatpush3.bf16.msra.mxu0 %v9588_v10  ;;  %8524 = vmatprep.mubr.msk.bf16.mxu0 %vm564_vm2, %v10385_v32  ;;  %v9594_v10 = vld [vmem:[%s11556_s1 + $0x1f8] sm:$0xff]  }
 0x1bf   : > { %8554 = vmatprep.subr.bf16.mxu0 %v9590_v30 }
 0x1c2   : > { %8047 = vmatmul.mubr.msk.bf16.gmra.mrb[20].mxu1 %vm564_vm2, %v11836_v14  ;;  %8555 = vmatpush3.bf16.msra.mxu0 %v9590_v30  ;;  %v9593_v30 = vld [vmem:[%s11556_s1 + $0xc8] sm:$0xff]  }
 0x1c3   : > { %8050 = vmatprep.mubr.msk.bf16.mxu1 %vm564_vm2, %v11837_v4  ;;  %8556 = vmatprep.subr.bf16.mxu0 %v9592_v52 }
 0x1c5   : > { %8525 = vmatmul.mubr.msk.bf16.gmra.mrb[4].mxu0 %vm564_vm2, %v10390_v2 }
 0x1c6   : > { %8528 = vmatprep.mubr.msk.bf16.mxu0 %vm564_vm2, %v10409_v7  ;;  %8557 = vmatpush3.bf16.msra.mxu0 %v9592_v52  ;;  %v11838_v52 = vld [vmem:[#allocation5_spill] sm:$0xff] }
 0x1c7   : > { %8590 = vmatprep.subr.bf16.mxu0 %v9594_v10 }
 0x1ca   : > { %8051 = vmatmul.mubr.msk.bf16.gmra.mrb[24].mxu1 %vm564_vm2, %v11804_v8 }
 0x1cb   : > { %8054 = vmatprep.mubr.msk.bf16.mxu1 %vm564_vm2, %v11805_v34 }
 0x1cd   : > { %8529 = vmatmul.mubr.msk.bf16.gmra.mrb[8].mxu0 %vm564_vm2, %v10414_v24 }
 0x1ce   : > { %8532 = vmatprep.mubr.msk.bf16.mxu0 %vm564_vm2, %v10432_v22 }
 0x1d2   : > { %8055 = vmatmul.mubr.msk.bf16.gmra.mrb[28].mxu1 %vm564_vm2, %v10733_v27 }
 0x1d3   : > { %8064 = vmatprep.mubr.msk.bf16.mxu1 %vm564_vm2, %v11815_v19  ;;  %v9595_v19 = vld [vmem:[%s11556_s1 + $0xd0] sm:$0xff]  }
 0x1d5   : > { %8533 = vmatmul.mubr.msk.bf16.gmra.mrb[12].mxu0 %vm564_vm2, %v10437_v48 }
 0x1d6   : > { %8536 = vmatprep.mubr.msk.bf16.mxu0 %vm564_vm2, %v10453_v23 }
 0x1da   : > { %8065 = vmatmul.mubr.msk.bf16.vlgmr.msra.gmra.mrb[0].mxu1 %vm564_vm2, %v11838_v52  ;;  %v9596_v52 = vld [vmem:[%s11556_s1 + $0x200] sm:$0xff]  }
 0x1db   : > { %8097 = vmatpush3.bf16.msra.mxu1 %v9591_v28  ;;  %8068 = vmatprep.mubr.msk.bf16.mxu1 %vm564_vm2, %v9756_v42  ;;  %v9597_v28 = vld [vmem:[%s11556_s1 + $0xd8] sm:$0xff]   ;;  %v11839_v42 = vld [vmem:[#allocation44_spill] sm:$0xff] }
 0x1dc   : > { %8098 = vmatprep.subr.bf16.mxu1 %v9593_v30 }
 0x1dd   : > { %8537 = vmatmul.mubr.msk.bf16.gmra.mrb[16].mxu0 %vm564_vm2, %v10459_v55 }
 0x1de   : > { %8540 = vmatprep.mubr.msk.bf16.mxu0 %vm564_vm2, %v10480_v44 }
 0x1df   : > { %8099 = vmatpush3.bf16.msra.mxu1 %v9593_v30  ;;  %v11840_v30 = vld [vmem:[#allocation45_spill] sm:$0xff] }
 0x1e0   : > { %8100 = vmatprep.subr.bf16.mxu1 %v9595_v19 }
 0x1e2   : > { %8069 = vmatmul.mubr.msk.bf16.gmra.mrb[4].mxu1 %vm564_vm2, %v9799_v3 }
 0x1e3   : > { %8072 = vmatprep.mubr.msk.bf16.mxu1 %vm564_vm2, %v9826_v21  ;;  %8101 = vmatpush3.bf16.msra.mxu1 %v9595_v19  ;;  %v11841_v19 = vld [vmem:[#allocation15_spill] sm:$0xff] }
 0x1e4   : > { %8134 = vmatprep.subr.bf16.mxu1 %v9597_v28 }
 0x1e5   : > { %8541 = vmatmul.mubr.msk.bf16.gmra.mrb[20].mxu0 %vm564_vm2, %v10485_v40 }
 0x1e6   : > { %8544 = vmatprep.mubr.msk.bf16.mxu0 %vm564_vm2, %v10499_v18 }
 0x1ea   : > { %8073 = vmatmul.mubr.msk.bf16.gmra.mrb[8].mxu1 %vm564_vm2, %v9863_v50 }
 0x1eb   : > { %8076 = vmatprep.mubr.msk.bf16.mxu1 %vm564_vm2, %v9881_v1 }
 0x1ed   : > { %8545 = vmatmul.mubr.msk.bf16.gmra.mrb[24].mxu0 %vm564_vm2, %v11839_v42 }
 0x1ee   : > { %8548 = vmatprep.mubr.msk.bf16.mxu0 %vm564_vm2, %v11840_v30  ;;  %v9598_v30 = vld [vmem:[%s11556_s1 + $0x208] sm:$0xff]  }
 0x1f2   : > { %8077 = vmatmul.mubr.msk.bf16.gmra.mrb[12].mxu1 %vm564_vm2, %v11774_v53 }
 0x1f3   : > { %8080 = vmatprep.mubr.msk.bf16.mxu1 %vm564_vm2, %v11775_v17 }
 0x1f5   : > { %8549 = vmatmul.mubr.msk.bf16.gmra.mrb[28].mxu0 %vm564_vm2, %v11841_v19 }
 0x1f6   : > { %8558 = vmatprep.mubr.msk.bf16.mxu0 %vm564_vm2, %v9762_v45 }
 0x1fa   : > { %8081 = vmatmul.mubr.msk.bf16.gmra.mrb[16].mxu1 %vm564_vm2, %v10526_v49 }
 0x1fb   : > { %8084 = vmatprep.mubr.msk.bf16.mxu1 %vm564_vm2, %v10545_v58 }
 0x1fd   : > { %8559 = vmatmul.mubr.msk.bf16.vlgmr.msra.gmra.mrb[0].mxu0 %vm564_vm2, %v11812_v11 }
 0x1fe   : > { %8591 = vmatpush3.bf16.msra.mxu0 %v9594_v10  ;;  %8562 = vmatprep.mubr.msk.bf16.mxu0 %vm564_vm2, %v11813_v31  ;;  %v9600_v10 = vld [vmem:[%s11556_s1 + $0x210] sm:$0xff]  }
 0x1ff   : > { %8592 = vmatprep.subr.bf16.mxu0 %v9596_v52 }
 0x202   : > { %8085 = vmatmul.mubr.msk.bf16.gmra.mrb[20].mxu1 %vm564_vm2, %v10551_v61  ;;  %8593 = vmatpush3.bf16.msra.mxu0 %v9596_v52  ;;  %v11842_v52 = vld [vmem:[#allocation18_spill] sm:$0xff] }
 0x203   : > { %8088 = vmatprep.mubr.msk.bf16.mxu1 %vm564_vm2, %v10570_v20  ;;  %8594 = vmatprep.subr.bf16.mxu0 %v9598_v30 }
 0x205   : > { %8563 = vmatmul.mubr.msk.bf16.gmra.mrb[4].mxu0 %vm564_vm2, %v9851_v41 }
 0x206   : > { %8566 = vmatprep.mubr.msk.bf16.mxu0 %vm564_vm2, %v9888_v13  ;;  %8595 = vmatpush3.bf16.msra.mxu0 %v9598_v30  ;;  %v9599_v30 = vld [vmem:[%s11556_s1 + $0xe0] sm:$0xff]  }
 0x207   : > { %8628 = vmatprep.subr.bf16.mxu0 %v9600_v10 }
 0x20a   : > { %8089 = vmatmul.mubr.msk.bf16.gmra.mrb[24].mxu1 %vm564_vm2, %v10575_v43 }
 0x20b   : > { %8092 = vmatprep.mubr.msk.bf16.mxu1 %vm564_vm2, %v10592_v29 }
 0x20d   : > { %8567 = vmatmul.mubr.msk.bf16.gmra.mrb[8].mxu0 %vm564_vm2, %v9923_v12 }
 0x20e   : > { %8570 = vmatprep.mubr.msk.bf16.mxu0 %vm564_vm2, %v9983_v46 }
 0x212   : > { %8093 = vmatmul.mubr.msk.bf16.gmra.mrb[28].mxu1 %vm564_vm2, %v10825_v15 }
 0x213   : > { %8102 = vmatprep.mubr.msk.bf16.mxu1 %vm564_vm2, %v11831_v25  ;;  %v9601_v25 = vld [vmem:[%s11556_s1 + $0xe8] sm:$0xff]  }
 0x215   : > { %8571 = vmatmul.mubr.msk.bf16.gmra.mrb[12].mxu0 %vm564_vm2, %v9989_v62 }
 0x216   : > { %8574 = vmatprep.mubr.msk.bf16.mxu0 %vm564_vm2, %v10059_v9 }
 0x21a   : > { %8103 = vmatmul.mubr.msk.bf16.vlgmr.msra.gmra.mrb[0].mxu1 %vm564_vm2, %v11842_v52  ;;  %v11845_v52 = vld [vmem:[#allocation34_spill] sm:$0xff] }
 0x21b   : > { %8135 = vmatpush3.bf16.msra.mxu1 %v9597_v28  ;;  %8106 = vmatprep.mubr.msk.bf16.mxu1 %vm564_vm2, %v11781_v5  ;;  %v9603_v28 = vld [vmem:[%s11556_s1 + $0xf0] sm:$0xff]   ;;  %v11843_v5 = vld [vmem:[#allocation11_spill] sm:$0xff] }
 0x21c   : > { %8136 = vmatprep.subr.bf16.mxu1 %v9599_v30 }
 0x21d   : > { %8575 = vmatmul.mubr.msk.bf16.gmra.mrb[16].mxu0 %vm564_vm2, %v10065_v54 }
 0x21e   : > { %8578 = vmatprep.mubr.msk.bf16.mxu0 %vm564_vm2, %v10123_v60 }
 0x21f   : > { %8137 = vmatpush3.bf16.msra.mxu1 %v9599_v30  ;;  %v11844_v30 = vld [vmem:[#allocation12_spill] sm:$0xff] }
 0x220   : > { %8138 = vmatprep.subr.bf16.mxu1 %v9601_v25 }
 0x222   : > { %8107 = vmatmul.mubr.msk.bf16.gmra.mrb[4].mxu1 %vm564_vm2, %v11782_v26 }
 0x223   : > { %8110 = vmatprep.mubr.msk.bf16.mxu1 %vm564_vm2, %v11783_v47  ;;  %8139 = vmatpush3.bf16.msra.mxu1 %v9601_v25  ;;  %v9602_v25 = vld [vmem:[%s11556_s1 + $0x218] sm:$0xff]  }
 0x224   : > { %8172 = vmatprep.subr.bf16.mxu1 %v9603_v28 }
 0x225   : > { %8579 = vmatmul.mubr.msk.bf16.gmra.mrb[20].mxu0 %vm564_vm2, %v10138_v59 }
 0x226   : > { %8582 = vmatprep.mubr.msk.bf16.mxu0 %vm564_vm2, %v10264_v35 }
 0x22a   : > { %8111 = vmatmul.mubr.msk.bf16.gmra.mrb[8].mxu1 %vm564_vm2, %v11784_v51 }
 0x22b   : > { %8114 = vmatprep.mubr.msk.bf16.mxu1 %vm564_vm2, %v11785_v57 }
 0x22d   : > { %8583 = vmatmul.mubr.msk.bf16.gmra.mrb[24].mxu0 %vm564_vm2, %v10287_v36 }
 0x22e   : > { %8586 = vmatprep.mubr.msk.bf16.mxu0 %vm564_vm2, %v9674_v6 }
 0x232   : > { %8115 = vmatmul.mubr.msk.bf16.gmra.mrb[12].mxu1 %vm564_vm2, %v11786_v33 }
 0x233   : > { %8118 = vmatprep.mubr.msk.bf16.mxu1 %vm564_vm2, %v11788_v38 }
 0x235   : > { %8587 = vmatmul.mubr.msk.bf16.gmra.mrb[28].mxu0 %vm564_vm2, %v9674_v6  ;;  %v9604_v6 = vld [vmem:[%s11556_s1 + $0x220] sm:$0xff]  }
 0x236   : > { %8596 = vmatprep.mubr.msk.bf16.mxu0 %vm564_vm2, %v11821_v56  ;;  %v11846_v56 = vld [vmem:[#allocation35_spill] sm:$0xff] }
 0x23a   : > { %8119 = vmatmul.mubr.msk.bf16.gmra.mrb[16].mxu1 %vm564_vm2, %v11816_v63 }
 0x23b   : > { %8122 = vmatprep.mubr.msk.bf16.mxu1 %vm564_vm2, %v11817_v37 }
 0x23d   : > { %8597 = vmatmul.mubr.msk.bf16.vlgmr.msra.gmra.mrb[0].mxu0 %vm564_vm2, %v11843_v5  ;;  %v11847_v5 = vld [vmem:[#allocation14_spill] sm:$0xff] }
 0x23e   : > { %8629 = vmatpush3.bf16.msra.mxu0 %v9600_v10  ;;  %8600 = vmatprep.mubr.msk.bf16.mxu0 %vm564_vm2, %v11844_v30  ;;  %v9606_v10 = vld [vmem:[%s11556_s1 + $0x228] sm:$0xff]   ;;  %v11848_v30 = vld [vmem:[#allocation36_spill] sm:$0xff] }
 0x23f   : > { %8630 = vmatprep.subr.bf16.mxu0 %v9602_v25 }
 0x242   : > { %8123 = vmatmul.mubr.msk.bf16.gmra.mrb[20].mxu1 %vm564_vm2, %v11845_v52  ;;  %8631 = vmatpush3.bf16.msra.mxu0 %v9602_v25  ;;  %v11849_v25 = vld [vmem:[#allocation37_spill] sm:$0xff]  ;;  %v11851_v52 = vld [vmem:[#allocation38_spill] sm:$0xff] }
 0x243   : > { %8126 = vmatprep.mubr.msk.bf16.mxu1 %vm564_vm2, %v11846_v56  ;;  %8632 = vmatprep.subr.bf16.mxu0 %v9604_v6  ;;  %v11850_v56 = vld [vmem:[#allocation20_spill] sm:$0xff] }
 0x245   : > { %8601 = vmatmul.mubr.msk.bf16.gmra.mrb[4].mxu0 %vm564_vm2, %v11847_v5 }
 0x246   : > { %8604 = vmatprep.mubr.msk.bf16.mxu0 %vm564_vm2, %v11829_v39  ;;  %8633 = vmatpush3.bf16.msra.mxu0 %v9604_v6  ;;  %v11852_v6 = vld [vmem:[#allocation21_spill] sm:$0xff] }
 0x247   : > { %8666 = vmatprep.subr.bf16.mxu0 %v9606_v10  ;;  %v9605_v39 = vld [vmem:[%s11556_s1 + $0xf8] sm:$0xff]  }
 0x24a   : > { %8127 = vmatmul.mubr.msk.bf16.gmra.mrb[24].mxu1 %vm564_vm2, %v11848_v30 }
 0x24b   : > { %8130 = vmatprep.mubr.msk.bf16.mxu1 %vm564_vm2, %v11849_v25 }
 0x24d   : > { %8605 = vmatmul.mubr.msk.bf16.gmra.mrb[8].mxu0 %vm564_vm2, %v11830_v0  ;;  %v11853_v0 = vld [vmem:[#allocation40_spill] sm:$0xff] }
 0x24e   : > { %8608 = vmatprep.mubr.msk.bf16.mxu0 %vm564_vm2, %v11850_v56  ;;  %v11854_v56 = vld [vmem:[#allocation41_spill] sm:$0xff] }
 0x252   : > { %8131 = vmatmul.mubr.msk.bf16.gmra.mrb[28].mxu1 %vm564_vm2, %v11851_v52 }
 0x253   : > { %8140 = vmatprep.mubr.msk.bf16.mxu1 %vm564_vm2, %v11841_v19  ;;  %v9607_v19 = vld [vmem:[%s11556_s1 + $0x100] sm:$0xff]  }
 0x255   : > { %8609 = vmatmul.mubr.msk.bf16.gmra.mrb[12].mxu0 %vm564_vm2, %v11852_v6 }
 0x256   : > { %8612 = vmatprep.mubr.msk.bf16.mxu0 %vm564_vm2, %v11836_v14 }
 0x25a   : > { %8141 = vmatmul.mubr.msk.bf16.vlgmr.msra.gmra.mrb[0].mxu1 %vm564_vm2, %v11853_v0  ;;  %v9609_v0 = vld [vmem:[%s11556_s1 + $0x108] sm:$0xff]  }
 0x25b   : > { %8173 = vmatpush3.bf16.msra.mxu1 %v9603_v28  ;;  %8144 = vmatprep.mubr.msk.bf16.mxu1 %vm564_vm2, %v11854_v56  ;;  %v11855_v56 = vld [vmem:[#allocation19_spill] sm:$0xff] }
 0x25c   : > { %8174 = vmatprep.subr.bf16.mxu1 %v9605_v39 }
 0x25d   : > { %8613 = vmatmul.mubr.msk.bf16.gmra.mrb[16].mxu0 %vm564_vm2, %v11837_v4 }
 0x25e   : > { %8616 = vmatprep.mubr.msk.bf16.mxu0 %vm564_vm2, %v11804_v8 }
 0x25f   : > { %8175 = vmatpush3.bf16.msra.mxu1 %v9605_v39  ;;  %v11856_v39 = vld [vmem:[#allocation2_spill] sm:$0xff] }
 0x260   : > { %8176 = vmatprep.subr.bf16.mxu1 %v9607_v19 }
 0x262   : > { %8145 = vmatmul.mubr.msk.bf16.gmra.mrb[4].mxu1 %vm564_vm2, %v11835_v16 }
 0x263   : > { %8148 = vmatprep.mubr.msk.bf16.mxu1 %vm564_vm2, %v10385_v32  ;;  %8177 = vmatpush3.bf16.msra.mxu1 %v9607_v19  ;;  %v9608_v19 = vld [vmem:[%s11556_s1 + $0x230] sm:$0xff]  }
 0x264   : > { %8210 = vmatprep.subr.bf16.mxu1 %v9609_v0 }
 0x265   : > { %8617 = vmatmul.mubr.msk.bf16.gmra.mrb[20].mxu0 %vm564_vm2, %v11805_v34 }
 0x266   : > { %8620 = vmatprep.mubr.msk.bf16.mxu0 %vm564_vm2, %v10733_v27 }
 0x26a   : > { %8149 = vmatmul.mubr.msk.bf16.gmra.mrb[8].mxu1 %vm564_vm2, %v10390_v2 }
 0x26b   : > { %8152 = vmatprep.mubr.msk.bf16.mxu1 %vm564_vm2, %v10409_v7 }
 0x26d   : > { %8621 = vmatmul.mubr.msk.bf16.gmra.mrb[24].mxu0 %vm564_vm2, %v11855_v56 }
 0x26e   : > { %8624 = vmatprep.mubr.msk.bf16.mxu0 %vm564_vm2, %v11856_v39 }
 0x272   : > { %8153 = vmatmul.mubr.msk.bf16.gmra.mrb[12].mxu1 %vm564_vm2, %v10414_v24 }
 0x273   : > { %8156 = vmatprep.mubr.msk.bf16.mxu1 %vm564_vm2, %v10432_v22 }
 0x275   : > { %8625 = vmatmul.mubr.msk.bf16.gmra.mrb[28].mxu0 %vm564_vm2, %v11856_v39 }
 0x276   : > { %8634 = vmatprep.mubr.msk.bf16.mxu0 %vm564_vm2, %v9799_v3  ;;  %v9610_v3 = vld [vmem:[%s11556_s1 + $0x238] sm:$0xff]  }
 0x27a   : > { %8157 = vmatmul.mubr.msk.bf16.gmra.mrb[16].mxu1 %vm564_vm2, %v10437_v48 }
 0x27b   : > { %8160 = vmatprep.mubr.msk.bf16.mxu1 %vm564_vm2, %v10453_v23 }
 0x27d   : > { %8635 = vmatmul.mubr.msk.bf16.vlgmr.msra.gmra.mrb[0].mxu0 %vm564_vm2, %v9826_v21  ;;  %v9612_v21 = vld [vmem:[%s11556_s1 + $0x240] sm:$0xff]  }
 0x27e   : > { %8667 = vmatpush3.bf16.msra.mxu0 %v9606_v10  ;;  %8638 = vmatprep.mubr.msk.bf16.mxu0 %vm564_vm2, %v9863_v50  ;;  %v11857_v50 = vld [vmem:[#allocation3_spill] sm:$0xff] }
 0x27f   : > { %8668 = vmatprep.subr.bf16.mxu0 %v9608_v19 }
 0x282   : > { %8161 = vmatmul.mubr.msk.bf16.gmra.mrb[20].mxu1 %vm564_vm2, %v10459_v55  ;;  %8669 = vmatpush3.bf16.msra.mxu0 %v9608_v19 }
 0x283   : > { %8164 = vmatprep.mubr.msk.bf16.mxu1 %vm564_vm2, %v10480_v44  ;;  %8670 = vmatprep.subr.bf16.mxu0 %v9610_v3 }
 0x285   : > { %8639 = vmatmul.mubr.msk.bf16.gmra.mrb[4].mxu0 %vm564_vm2, %v9881_v1  ;;  %v9611_v1 = vld [vmem:[%s11556_s1 + $0x110] sm:$0xff]  }
 0x286   : > { %8642 = vmatprep.mubr.msk.bf16.mxu0 %vm564_vm2, %v11774_v53  ;;  %8671 = vmatpush3.bf16.msra.mxu0 %v9610_v3  ;;  %v9613_v53 = vld [vmem:[%s11556_s1 + $0x118] sm:$0xff]  }
 0x287   : > { %8704 = vmatprep.subr.bf16.mxu0 %v9612_v21 }
 0x28a   : > { %8165 = vmatmul.mubr.msk.bf16.gmra.mrb[24].mxu1 %vm564_vm2, %v10485_v40 }
 0x28b   : > { %8168 = vmatprep.mubr.msk.bf16.mxu1 %vm564_vm2, %v10499_v18 }
 0x28d   : > { %8643 = vmatmul.mubr.msk.bf16.gmra.mrb[8].mxu0 %vm564_vm2, %v11775_v17  ;;  %v11858_v17 = vld [vmem:[#allocation4_spill] sm:$0xff] }
 0x28e   : > { %8646 = vmatprep.mubr.msk.bf16.mxu0 %vm564_vm2, %v10526_v49 }
 0x292   : > { %8169 = vmatmul.mubr.msk.bf16.gmra.mrb[28].mxu1 %vm564_vm2, %v11839_v42 }
 0x293   : > { %8178 = vmatprep.mubr.msk.bf16.mxu1 %vm564_vm2, %v11857_v50 }
 0x295   : > { %8647 = vmatmul.mubr.msk.bf16.gmra.mrb[12].mxu0 %vm564_vm2, %v10545_v58 }
 0x296   : > { %8650 = vmatprep.mubr.msk.bf16.mxu0 %vm564_vm2, %v10551_v61 }
 0x29a   : > { %8179 = vmatmul.mubr.msk.bf16.vlgmr.msra.gmra.mrb[0].mxu1 %vm564_vm2, %v11858_v17 }
 0x29b   : > { %8211 = vmatpush3.bf16.msra.mxu1 %v9609_v0  ;;  %8182 = vmatprep.mubr.msk.bf16.mxu1 %vm564_vm2, %v9762_v45  ;;  %v9616_v45 = vld [vmem:[%s11556_s1 + $0x120] sm:$0xff]  }
 0x29c   : > { %8212 = vmatprep.subr.bf16.mxu1 %v9611_v1 }
 0x29d   : > { %8651 = vmatmul.mubr.msk.bf16.gmra.mrb[16].mxu0 %vm564_vm2, %v10570_v20 }
 0x29e   : > { %8654 = vmatprep.mubr.msk.bf16.mxu0 %vm564_vm2, %v10575_v43 }
 0x29f   : > { %8213 = vmatpush3.bf16.msra.mxu1 %v9611_v1 }
 0x2a0   : > { %8214 = vmatprep.subr.bf16.mxu1 %v9613_v53 }
 0x2a2   : > { %8183 = vmatmul.mubr.msk.bf16.gmra.mrb[4].mxu1 %vm564_vm2, %v11812_v11  ;;  %v11859_v11 = vld [vmem:[#allocation22_spill] sm:$0xff] }
 0x2a3   : > { %8186 = vmatprep.mubr.msk.bf16.mxu1 %vm564_vm2, %v11813_v31  ;;  %8215 = vmatpush3.bf16.msra.mxu1 %v9613_v53  ;;  %v11860_v31 = vld [vmem:[#allocation43_spill] sm:$0xff] }
 0x2a4   : > { %8742 = vmatprep.subr.bf16.mxu1 %v9616_v45 }
 0x2a5   : > { %8655 = vmatmul.mubr.msk.bf16.gmra.mrb[20].mxu0 %vm564_vm2, %v10592_v29 }
 0x2a6   : > { %8658 = vmatprep.mubr.msk.bf16.mxu0 %vm564_vm2, %v10825_v15 }
 0x2aa   : > { %8187 = vmatmul.mubr.msk.bf16.gmra.mrb[8].mxu1 %vm564_vm2, %v9851_v41  ;;  %v9614_v41 = vld [vmem:[%s11556_s1 + $0x248] sm:$0xff]  }
 0x2ab   : > { %8190 = vmatprep.mubr.msk.bf16.mxu1 %vm564_vm2, %v9888_v13  ;;  %v11861_v13 = vld [vmem:[#allocation6_spill] sm:$0xff] }
 0x2ad   : > { %8659 = vmatmul.mubr.msk.bf16.gmra.mrb[24].mxu0 %vm564_vm2, %v11859_v11 }
 0x2ae   : > { %8662 = vmatprep.mubr.msk.bf16.mxu0 %vm564_vm2, %v11860_v31 }
 0x2b2   : > { %8191 = vmatmul.mubr.msk.bf16.gmra.mrb[12].mxu1 %vm564_vm2, %v9923_v12  ;;  %v9615_v12 = vld [vmem:[%s11556_s1 + $0x250] sm:$0xff]  }
 0x2b3   : > { %8194 = vmatprep.mubr.msk.bf16.mxu1 %vm564_vm2, %v9983_v46  ;;  %v11862_v46 = vld [vmem:[#allocation34_spill] sm:$0xff] }
 0x2b5   : > { %8663 = vmatmul.mubr.msk.bf16.gmra.mrb[28].mxu0 %vm564_vm2, %v11860_v31 }
 0x2b6   : > { %8672 = vmatprep.mubr.msk.bf16.mxu0 %vm564_vm2, %v11782_v26  ;;  %v11868_v26 = vld [vmem:[#allocation16_spill] sm:$0xff] }
 0x2ba   : > { %8195 = vmatmul.mubr.msk.bf16.gmra.mrb[16].mxu1 %vm564_vm2, %v9989_v62  ;;  %v11863_v62 = vld [vmem:[#allocation7_spill] sm:$0xff] }
 0x2bb   : > { %8198 = vmatprep.mubr.msk.bf16.mxu1 %vm564_vm2, %v10059_v9  ;;  %v11864_v9 = vld [vmem:[#allocation10_spill] sm:$0xff] }
 0x2bd   : > { %8673 = vmatmul.mubr.msk.bf16.vlgmr.msra.gmra.mrb[0].mxu0 %vm564_vm2, %v11783_v47  ;;  %v11869_v47 = vld [vmem:[#allocation39_spill] sm:$0xff] }
 0x2be   : > { %8705 = vmatpush3.bf16.msra.mxu0 %v9612_v21  ;;  %8676 = vmatprep.mubr.msk.bf16.mxu0 %vm564_vm2, %v11784_v51  ;;  %v11870_v51 = vld [vmem:[#allocation13_spill] sm:$0xff] }
 0x2bf   : > { %8706 = vmatprep.subr.bf16.mxu0 %v9614_v41 }
 0x2c2   : > { %8199 = vmatmul.mubr.msk.bf16.gmra.mrb[20].mxu1 %vm564_vm2, %v10065_v54  ;;  %8707 = vmatpush3.bf16.msra.mxu0 %v9614_v41  ;;  %v9617_v54 = vld [vmem:[%s11556_s1 + $0x128] sm:$0xff]  }
 0x2c3   : > { %8202 = vmatprep.mubr.msk.bf16.mxu1 %vm564_vm2, %v10123_v60  ;;  %8708 = vmatprep.subr.bf16.mxu0 %v9615_v12  ;;  %v11865_v60 = vld [vmem:[#allocation35_spill] sm:$0xff] }
 0x2c5   : > { %8677 = vmatmul.mubr.msk.bf16.gmra.mrb[4].mxu0 %vm564_vm2, %v11785_v57  ;;  %v11871_v57 = vld [vmem:[#allocation17_spill] sm:$0xff] }
 0x2c6   : > { %8680 = vmatprep.mubr.msk.bf16.mxu0 %vm564_vm2, %v11786_v33  ;;  %8709 = vmatpush3.bf16.msra.mxu0 %v9615_v12  ;;  %v11872_v33 = vld [vmem:[#allocation20_spill] sm:$0xff] }
 0x2ca   : > { %8203 = vmatmul.mubr.msk.bf16.gmra.mrb[24].mxu1 %vm564_vm2, %v10138_v59  ;;  %v9618_v59 = vld [vmem:[%s11556_s1 + $0x130] sm:$0xff]  }
 0x2cb   : > { %8206 = vmatprep.mubr.msk.bf16.mxu1 %vm564_vm2, %v10264_v35  ;;  %v11866_v35 = vld [vmem:[#allocation11_spill] sm:$0xff] }
 0x2cd   : > { %8681 = vmatmul.mubr.msk.bf16.gmra.mrb[8].mxu0 %vm564_vm2, %v11788_v38 }
 0x2ce   : > { %8684 = vmatprep.mubr.msk.bf16.mxu0 %vm564_vm2, %v11816_v63 }
 0x2d2   : > { %8207 = vmatmul.mubr.msk.bf16.gmra.mrb[28].mxu1 %vm564_vm2, %v10287_v36  ;;  %v11867_v36 = vld [vmem:[#allocation12_spill] sm:$0xff] }
 0x2d3   : > { %8216 = vmatprep.mubr.msk.bf16.mxu1 %vm564_vm2, %v11861_v13 }
 0x2d5   : > { %8685 = vmatmul.mubr.msk.bf16.gmra.mrb[12].mxu0 %vm564_vm2, %v11817_v37 }
 0x2d6   : > { %8688 = vmatprep.mubr.msk.bf16.mxu0 %vm564_vm2, %v11862_v46 }
 0x2da   : > { %8217 = vmatmul.mubr.msk.bf16.vlgmr.msra.gmra.mrb[0].mxu1 %vm564_vm2, %v11863_v62 }
 0x2db   : > { %8745 = vmatpush3.bf16.msra.mxu1 %v9616_v45  ;;  %8220 = vmatprep.mubr.msk.bf16.mxu1 %vm564_vm2, %v11864_v9 }
 0x2dc   : > { %8743 = vmatprep.subr.bf16.mxu1 %v9617_v54 }
 0x2dd   : > { %8689 = vmatmul.mubr.msk.bf16.gmra.mrb[16].mxu0 %vm564_vm2, %v11865_v60 }
 0x2de   : > { %8692 = vmatprep.mubr.msk.bf16.mxu0 %vm564_vm2, %v11848_v30 }
 0x2df   : > { %8746 = vmatpush3.bf16.msra.mxu1 %v9617_v54 }
 0x2e0   : > { %8744 = vmatprep.subr.bf16.mxu1 %v9618_v59 }
 0x2e2   : > { %8221 = vmatmul.mubr.msk.bf16.gmra.mrb[4].mxu1 %vm564_vm2, %v11866_v35 }
 0x2e3   : > { %8224 = vmatprep.mubr.msk.bf16.mxu1 %vm564_vm2, %v11867_v36  ;;  %8747 = vmatpush3.bf16.msra.mxu1 %v9618_v59 }
 0x2e5   : > { %8693 = vmatmul.mubr.msk.bf16.gmra.mrb[20].mxu0 %vm564_vm2, %v11849_v25 }
 0x2e6   : > { %8696 = vmatprep.mubr.msk.bf16.mxu0 %vm564_vm2, %v11851_v52 }
 0x2ea   : > { %8225 = vmatmul.mubr.msk.bf16.gmra.mrb[8].mxu1 %vm564_vm2, %v11847_v5 }
 0x2eb   : > { %8228 = vmatprep.mubr.msk.bf16.mxu1 %vm564_vm2, %v11868_v26 }
 0x2ed   : > { %8697 = vmatmul.mubr.msk.bf16.gmra.mrb[24].mxu0 %vm564_vm2, %v11869_v47 }
 0x2ee   : > { %8700 = vmatprep.mubr.msk.bf16.mxu0 %vm564_vm2, %v11870_v51 }
 0x2f2   : > { %8229 = vmatmul.mubr.msk.bf16.gmra.mrb[12].mxu1 %vm564_vm2, %v11871_v57 }
 0x2f3   : > { %8232 = vmatprep.mubr.msk.bf16.mxu1 %vm564_vm2, %v11872_v33 }
 0x2f5   : > { %8701 = vmatmul.mubr.msk.bf16.gmra.mrb[28].mxu0 %vm564_vm2, %v11870_v51 }
 0x2f6   : > { %8710 = vmatprep.mubr.msk.bf16.mxu0 %vm564_vm2, %v11835_v16  ;;  %v11873_v16 = vld [vmem:[#allocation45_spill] sm:$0xff] }
 0x2fa   : > { %8233 = vmatmul.mubr.msk.bf16.gmra.mrb[16].mxu1 %vm564_vm2, %v11852_v6 }
 0x2fb   : > { %8236 = vmatprep.mubr.msk.bf16.mxu1 %vm564_vm2, %v11836_v14 }
 0x2fd   : > { %8711 = vmatmul.mubr.msk.bf16.vlgmr.msra.gmra.mrb[0].mxu0 %vm564_vm2, %v10385_v32 }
 0x2fe   : > { %8714 = vmatprep.mubr.msk.bf16.mxu0 %vm564_vm2, %v10390_v2 }
 0x302   : > { %8237 = vmatmul.mubr.msk.bf16.gmra.mrb[20].mxu1 %vm564_vm2, %v11837_v4  ;;  %v11410_v4 = vld [vmem:[%s11558_s3] ss:$0 sm:$0xff] }
 0x303   : > { %8240 = vmatprep.mubr.msk.bf16.mxu1 %vm564_vm2, %v11804_v8 }
 0x305   : > { %8715 = vmatmul.mubr.msk.bf16.gmra.mrb[4].mxu0 %vm564_vm2, %v10409_v7 }
 0x306   : > { %8718 = vmatprep.mubr.msk.bf16.mxu0 %vm564_vm2, %v10414_v24 }
 0x30a   : > { %8241 = vmatmul.mubr.msk.bf16.gmra.mrb[24].mxu1 %vm564_vm2, %v11805_v34  ;;  %v11405_v34 = vld [vmem:[%s11557_s2] ss:$0 sm:$0xff] }
 0x30b   : > { %8244 = vmatprep.mubr.msk.bf16.mxu1 %vm564_vm2, %v10733_v27 }
 0x30d   : > { %8719 = vmatmul.mubr.msk.bf16.gmra.mrb[8].mxu0 %vm564_vm2, %v10432_v22 }
 0x30e   : > { %8722 = vmatprep.mubr.msk.bf16.mxu0 %vm564_vm2, %v10437_v48 }
 0x312   : > { %8245 = vmatmul.mubr.msk.bf16.gmra.mrb[28].mxu1 %vm564_vm2, %v11855_v56 }
 0x313   : > { %8270 = vmatprep.mubr.msk.bf16.mxu1 %vm564_vm2, %v10526_v49  ;;  %v11874_v49 = vld [vmem:[#allocation15_spill] sm:$0xff] }
 0x315   : > { %8723 = vmatmul.mubr.msk.bf16.gmra.mrb[12].mxu0 %vm564_vm2, %v10453_v23 }
 0x316   : > { %8726 = vmatprep.mubr.msk.bf16.mxu0 %vm564_vm2, %v10459_v55 }
 0x31a   : > { %8271 = vmatmul.mubr.msk.bf16.vlgmr.msra.gmra.mrb[16].mxu1 %vm564_vm2, %v10545_v58 }
 0x31b   : > { %8274 = vmatprep.mubr.msk.bf16.mxu1 %vm564_vm2, %v10551_v61 }
 0x31d   : > { %8727 = vmatmul.mubr.msk.bf16.gmra.mrb[16].mxu0 %vm564_vm2, %v10480_v44 }
 0x31e   : > { %8730 = vmatprep.mubr.msk.bf16.mxu0 %vm564_vm2, %v10485_v40 }
 0x322   : > { %8275 = vmatmul.mubr.msk.bf16.gmra.mrb[20].mxu1 %vm564_vm2, %v10570_v20 }
 0x323   : > { %8278 = vmatprep.mubr.msk.bf16.mxu1 %vm564_vm2, %v10575_v43 }
 0x325   : > { %8731 = vmatmul.mubr.msk.bf16.gmra.mrb[20].mxu0 %vm564_vm2, %v10499_v18 }
 0x326   : > { %8734 = vmatprep.mubr.msk.bf16.mxu0 %vm564_vm2, %v11839_v42 }
 0x32a   : > { %8279 = vmatmul.mubr.msk.bf16.gmra.mrb[24].mxu1 %vm564_vm2, %v10592_v29 }
 0x32b   : > { %8282 = vmatprep.mubr.msk.bf16.mxu1 %vm564_vm2, %v10825_v15 }
 0x32d   : > { %8735 = vmatmul.mubr.msk.bf16.gmra.mrb[24].mxu0 %vm564_vm2, %v11873_v16 }
 0x32e   : > { %8738 = vmatprep.mubr.msk.bf16.mxu0 %vm564_vm2, %v11874_v49 }
 0x332   : > { %8283 = vmatmul.mubr.msk.bf16.gmra.mrb[28].mxu1 %vm564_vm2, %v11859_v11 }
 0x335   : > { %8739 = vmatmul.mubr.msk.bf16.gmra.mrb[28].mxu0 %vm564_vm2, %v11874_v49 }
 0x3ad   : > { %v8218_v40 = vpop.f32.mrb[0].mxu1 }
 0x3ae   : > { %v3450_v43 = vpop.f32.mrb[1].mxu1 }
 0x3af   : > { %v8219_v32 = vpop.f32.mrb[2].mxu1 }
 0x3b0   : > { %v3453_v2 = vpop.f32.mrb[3].mxu1 }
 0x3b5   : > { %v8222_v7 = vpop.f32.mrb[4].mxu1 }
 0x3b6   : > { %v3466_v24 = vpop.f32.mrb[5].mxu1 }
 0x3b7   : > { %v8223_v22 = vpop.f32.mrb[6].mxu1 }
 0x3b8   : > { %v3469_v48 = vpop.f32.mrb[7].mxu1 }
 0x3bd   : > { %v8226_v23 = vpop.f32.mrb[8].mxu1 }
 0x3be   : > { %v3482_v55 = vpop.f32.mrb[9].mxu1 }
 0x3bf   : > { %v11390_v44 = vpop.f32.mrb[10].mxu1 }
 0x3c0   : > { %v11392_v18 = vpop.f32.mrb[11].mxu1 }
 0x3c5   : > { %v11394_v58 = vpop.f32.mrb[12].mxu1 }
 0x3c6   : > { %v11396_v61 = vpop.f32.mrb[13].mxu1 }
 0x3c7   : > { %v11398_v20 = vpop.f32.mrb[14].mxu1 }
 0x3c8   : > { %v11400_v29 = vpop.f32.mrb[15].mxu1 }
 0x3d0   : > { %v8712_v38 = vpop.f32.mrb[0].mxu0 }
 0x3d1   : > { %v8748_v8 = vadd.f32 %v8712_v38, %v8218_v40  ;;  %v6310_v27 = vpop.f32.mrb[1].mxu0 }
 0x3d2   : > { %v8749_v15 = vadd.f32 %v6310_v27, %v3450_v43  ;;  %v8713_v63 = vpop.f32.mrb[2].mxu0 }
 0x3d3   : > { %v6478_v37 = vmul.f32 %v8748_v8, %v11405_v34  ;;  %v8750_v14 = vadd.f32 %v8713_v63, %v8219_v32  ;;  %v6313_v42 = vpop.f32.mrb[3].mxu0 }
 0x3d4   : > { %v6476_v28 = vmul.f32 %v8749_v15, %v11405_v34  ;;  %v8751_v5 = vadd.f32 %v6313_v42, %v3453_v2 }
 0x3d5   : > { %v6517_v30 = vadd.f32 %v11410_v4, %v6478_v37  ;;  %v6479_v52 = vmul.f32 %v8750_v14, %v11405_v34 }
 0x3d6   : > { %v6515_v10 = vadd.f32 %v11410_v4, %v6476_v28  ;;  %v6477_v25 = vmul.f32 %v8751_v5, %v11405_v34 }
 0x3d7   : > { %v6549_v6 = vmax.f32 %v6517_v30, 0.0  ;;  %v6518_v0 = vadd.f32 %v11410_v4, %v6479_v52 }
 0x3d8   : > { %v6547_v56 = vmax.f32 %v6515_v10, 0.0  ;;  %v6516_v39 = vadd.f32 %v11410_v4, %v6477_v25  ;;  %v8716_v19 = vpop.f32.mrb[4].mxu0 }
 0x3d9   : > { %6582 = vst.msk [vmem:[%s11420_s14 + $0x10] sm:$0xff] %vm6579_vm6, %v6549_v6  ;;  %v6550_v3 = vmax.f32 %v6518_v0, 0.0  ;;  %v8752_v21 = vadd.f32 %v8716_v19, %v8222_v7  ;;  %v6326_v50 = vpop.f32.mrb[5].mxu0 }
 0x3da   : > { %6580 = vst.msk [vmem:[%s11420_s14] sm:$0xff] %vm6579_vm6, %v6547_v56  ;;  %v6548_v1 = vmax.f32 %v6516_v39, 0.0  ;;  %v8753_v17 = vadd.f32 %v6326_v50, %v3466_v24  ;;  %v8717_v53 = vpop.f32.mrb[6].mxu0 }
 0x3db   : > { %6583 = vst.msk [vmem:[%s11420_s14 + $0x18] sm:$0xff] %vm6579_vm6, %v6550_v3  ;;  %v6482_v45 = vmul.f32 %v8752_v21, %v11405_v34  ;;  %v8754_v11 = vadd.f32 %v8717_v53, %v8223_v22  ;;  %v6329_v31 = vpop.f32.mrb[7].mxu0 }
 0x3dc   : > { %6581 = vst.msk [vmem:[%s11420_s14 + $0x8] sm:$0xff] %vm6579_vm6, %v6548_v1  ;;  %v6480_v41 = vmul.f32 %v8753_v17, %v11405_v34  ;;  %v8755_v12 = vadd.f32 %v6329_v31, %v3469_v48 }
 0x3dd   : > { %v6521_v13 = vadd.f32 %v11410_v4, %v6482_v45  ;;  %v6483_v46 = vmul.f32 %v8754_v11, %v11405_v34 }
 0x3de   : > { %v6519_v62 = vadd.f32 %v11410_v4, %v6480_v41  ;;  %v6481_v9 = vmul.f32 %v8755_v12, %v11405_v34 }
 0x3df   : > { %v6553_v54 = vmax.f32 %v6521_v13, 0.0  ;;  %v6522_v60 = vadd.f32 %v11410_v4, %v6483_v46 }
 0x3e0   : > { %v6551_v59 = vmax.f32 %v6519_v62, 0.0  ;;  %v6520_v35 = vadd.f32 %v11410_v4, %v6481_v9  ;;  %v8720_v36 = vpop.f32.mrb[8].mxu0 }
 0x3e1   : > { %6586 = vst.msk [vmem:[%s11420_s14 + $0x30] sm:$0xff] %vm6579_vm6, %v6553_v54  ;;  %v6554_v26 = vmax.f32 %v6522_v60, 0.0  ;;  %v8756_v47 = vadd.f32 %v8720_v36, %v8226_v23  ;;  %v6342_v51 = vpop.f32.mrb[9].mxu0 }
 0x3e2   : > { %6584 = vst.msk [vmem:[%s11420_s14 + $0x20] sm:$0xff] %vm6579_vm6, %v6551_v59  ;;  %v6552_v57 = vmax.f32 %v6520_v35, 0.0  ;;  %v8757_v33 = vadd.f32 %v6342_v51, %v3482_v55  ;;  %v8721_v16 = vpop.f32.mrb[10].mxu0 }
 0x3e3   : > { %6587 = vst.msk [vmem:[%s11420_s14 + $0x38] sm:$0xff] %vm6579_vm6, %v6554_v26  ;;  %v6486_v49 = vmul.f32 %v8756_v47, %v11405_v34  ;;  %v8758_v40 = vadd.f32 %v8721_v16, %v11390_v44  ;;  %v6345_v43 = vpop.f32.mrb[11].mxu0 }
 0x3e4   : > { %6585 = vst.msk [vmem:[%s11420_s14 + $0x28] sm:$0xff] %vm6579_vm6, %v6552_v57  ;;  %v6484_v32 = vmul.f32 %v8757_v33, %v11405_v34  ;;  %v8759_v2 = vadd.f32 %v6345_v43, %v11392_v18 }
 0x3e5   : > { %v6525_v7 = vadd.f32 %v11410_v4, %v6486_v49  ;;  %v6487_v24 = vmul.f32 %v8758_v40, %v11405_v34 }
 0x3e6   : > { %v6523_v22 = vadd.f32 %v11410_v4, %v6484_v32  ;;  %v6485_v48 = vmul.f32 %v8759_v2, %v11405_v34 }
 0x3e7   : > { %v6557_v23 = vmax.f32 %v6525_v7, 0.0  ;;  %v6526_v55 = vadd.f32 %v11410_v4, %v6487_v24 }
 0x3e8   : > { %v6555_v44 = vmax.f32 %v6523_v22, 0.0  ;;  %v6524_v38 = vadd.f32 %v11410_v4, %v6485_v48  ;;  %v8724_v8 = vpop.f32.mrb[12].mxu0 }
 0x3e9   : > { %6590 = vst.msk [vmem:[%s11420_s14 + $0x50] sm:$0xff] %vm6579_vm6, %v6557_v23  ;;  %v6558_v18 = vmax.f32 %v6526_v55, 0.0  ;;  %v8760_v27 = vadd.f32 %v8724_v8, %v11394_v58  ;;  %v6358_v15 = vpop.f32.mrb[13].mxu0 }
 0x3ea   : > { %6588 = vst.msk [vmem:[%s11420_s14 + $0x40] sm:$0xff] %vm6579_vm6, %v6555_v44  ;;  %v6556_v63 = vmax.f32 %v6524_v38, 0.0  ;;  %v8761_v37 = vadd.f32 %v6358_v15, %v11396_v61  ;;  %v8725_v14 = vpop.f32.mrb[14].mxu0 }
 0x3eb   : > { %6591 = vst.msk [vmem:[%s11420_s14 + $0x58] sm:$0xff] %vm6579_vm6, %v6558_v18  ;;  %v6490_v42 = vmul.f32 %v8760_v27, %v11405_v34  ;;  %v8762_v28 = vadd.f32 %v8725_v14, %v11398_v20  ;;  %v6361_v5 = vpop.f32.mrb[15].mxu0 }
 0x3ec   : > { %6589 = vst.msk [vmem:[%s11420_s14 + $0x48] sm:$0xff] %vm6579_vm6, %v6556_v63  ;;  %v6488_v30 = vmul.f32 %v8761_v37, %v11405_v34  ;;  %v8763_v58 = vadd.f32 %v6361_v5, %v11400_v29 }
 0x3ed   : > { %v6529_v52 = vadd.f32 %v11410_v4, %v6490_v42  ;;  %v6491_v10 = vmul.f32 %v8762_v28, %v11405_v34  ;;  %v8272_v61 = vpop.f32.mrb[16].mxu1 }
 0x3ee   : > { %v6527_v25 = vadd.f32 %v11410_v4, %v6488_v30  ;;  %v6489_v6 = vmul.f32 %v8763_v58, %v11405_v34  ;;  %v3740_v0 = vpop.f32.mrb[17].mxu1 }
 0x3ef   : > { %v6561_v20 = vmax.f32 %v6529_v52, 0.0  ;;  %v6530_v56 = vadd.f32 %v11410_v4, %v6491_v10  ;;  %v8273_v39 = vpop.f32.mrb[18].mxu1 }
 0x3f0   : > { %v6559_v19 = vmax.f32 %v6527_v25, 0.0  ;;  %v6528_v29 = vadd.f32 %v11410_v4, %v6489_v6  ;;  %v8728_v3 = vpop.f32.mrb[16].mxu0  ;;  %v3743_v21 = vpop.f32.mrb[19].mxu1 }
 0x3f1   : > { %6594 = vst.msk [vmem:[%s11420_s14 + $0x70] sm:$0xff] %vm6579_vm6, %v6561_v20  ;;  %v6562_v50 = vmax.f32 %v6530_v56, 0.0  ;;  %v8764_v1 = vadd.f32 %v8728_v3, %v8272_v61  ;;  %v6374_v17 = vpop.f32.mrb[17].mxu0 }
 0x3f2   : > { %6592 = vst.msk [vmem:[%s11420_s14 + $0x60] sm:$0xff] %vm6579_vm6, %v6559_v19  ;;  %v6560_v53 = vmax.f32 %v6528_v29, 0.0  ;;  %v8765_v45 = vadd.f32 %v6374_v17, %v3740_v0  ;;  %v8729_v11 = vpop.f32.mrb[18].mxu0 }
 0x3f3   : > { %6595 = vst.msk [vmem:[%s11420_s14 + $0x78] sm:$0xff] %vm6579_vm6, %v6562_v50  ;;  %v6494_v31 = vmul.f32 %v8764_v1, %v11405_v34  ;;  %v8766_v41 = vadd.f32 %v8729_v11, %v8273_v39  ;;  %v6377_v12 = vpop.f32.mrb[19].mxu0 }
 0x3f4   : > { %6593 = vst.msk [vmem:[%s11420_s14 + $0x68] sm:$0xff] %vm6579_vm6, %v6560_v53  ;;  %v6492_v13 = vmul.f32 %v8765_v45, %v11405_v34  ;;  %v8767_v46 = vadd.f32 %v6377_v12, %v3743_v21 }
 0x3f5   : > { %v6533_v62 = vadd.f32 %v11410_v4, %v6494_v31  ;;  %v6495_v9 = vmul.f32 %v8766_v41, %v11405_v34  ;;  %v8276_v54 = vpop.f32.mrb[20].mxu1 }
 0x3f6   : > { %v6531_v60 = vadd.f32 %v11410_v4, %v6492_v13  ;;  %v6493_v59 = vmul.f32 %v8767_v46, %v11405_v34  ;;  %v3756_v35 = vpop.f32.mrb[21].mxu1 }
 0x3f7   : > { %v6565_v36 = vmax.f32 %v6533_v62, 0.0  ;;  %v6534_v26 = vadd.f32 %v11410_v4, %v6495_v9  ;;  %v8277_v47 = vpop.f32.mrb[22].mxu1 }
 0x3f8   : > { %v6563_v51 = vmax.f32 %v6531_v60, 0.0  ;;  %v6532_v57 = vadd.f32 %v11410_v4, %v6493_v59  ;;  %v8732_v33 = vpop.f32.mrb[20].mxu0  ;;  %v3759_v16 = vpop.f32.mrb[23].mxu1 }
 0x3f9   : > { %6598 = vst.msk [vmem:[%s11420_s14 + $0x90] sm:$0xff] %vm6579_vm6, %v6565_v36  ;;  %v6566_v49 = vmax.f32 %v6534_v26, 0.0  ;;  %v8768_v40 = vadd.f32 %v8732_v33, %v8276_v54  ;;  %v6390_v43 = vpop.f32.mrb[21].mxu0 }
 0x3fa   : > { %6596 = vst.msk [vmem:[%s11420_s14 + $0x80] sm:$0xff] %vm6579_vm6, %v6563_v51  ;;  %v6564_v32 = vmax.f32 %v6532_v57, 0.0  ;;  %v8769_v2 = vadd.f32 %v6390_v43, %v3756_v35  ;;  %v8733_v7 = vpop.f32.mrb[22].mxu0 }
 0x3fb   : > { %6599 = vst.msk [vmem:[%s11420_s14 + $0x98] sm:$0xff] %vm6579_vm6, %v6566_v49  ;;  %v6498_v24 = vmul.f32 %v8768_v40, %v11405_v34  ;;  %v8770_v22 = vadd.f32 %v8733_v7, %v8277_v47  ;;  %v6393_v48 = vpop.f32.mrb[23].mxu0 }
 0x3fc   : > { %6597 = vst.msk [vmem:[%s11420_s14 + $0x88] sm:$0xff] %vm6579_vm6, %v6564_v32  ;;  %v6496_v23 = vmul.f32 %v8769_v2, %v11405_v34  ;;  %v8771_v55 = vadd.f32 %v6393_v48, %v3759_v16 }
 0x3fd   : > { %v6537_v44 = vadd.f32 %v11410_v4, %v6498_v24  ;;  %v6499_v38 = vmul.f32 %v8770_v22, %v11405_v34  ;;  %v8280_v8 = vpop.f32.mrb[24].mxu1 }
 0x3fe   : > { %v6535_v18 = vadd.f32 %v11410_v4, %v6496_v23  ;;  %v6497_v27 = vmul.f32 %v8771_v55, %v11405_v34  ;;  %v3772_v15 = vpop.f32.mrb[25].mxu1 }
 0x3ff   : > { %v6569_v63 = vmax.f32 %v6537_v44, 0.0  ;;  %v6538_v37 = vadd.f32 %v11410_v4, %v6499_v38  ;;  %v8281_v14 = vpop.f32.mrb[26].mxu1 }
 0x400   : > { %v6567_v42 = vmax.f32 %v6535_v18, 0.0  ;;  %v6536_v28 = vadd.f32 %v11410_v4, %v6497_v27  ;;  %v8736_v5 = vpop.f32.mrb[24].mxu0  ;;  %v3775_v30 = vpop.f32.mrb[27].mxu1 }
 0x401   : > { %6602 = vst.msk [vmem:[%s11420_s14 + $0xb0] sm:$0xff] %vm6579_vm6, %v6569_v63  ;;  %v6570_v58 = vmax.f32 %v6538_v37, 0.0  ;;  %v8772_v52 = vadd.f32 %v8736_v5, %v8280_v8  ;;  %v6406_v10 = vpop.f32.mrb[25].mxu0 }
 0x402   : > { %6600 = vst.msk [vmem:[%s11420_s14 + $0xa0] sm:$0xff] %vm6579_vm6, %v6567_v42  ;;  %v6568_v61 = vmax.f32 %v6536_v28, 0.0  ;;  %v8773_v25 = vadd.f32 %v6406_v10, %v3772_v15  ;;  %v8737_v6 = vpop.f32.mrb[26].mxu0 }
 0x403   : > { %6603 = vst.msk [vmem:[%s11420_s14 + $0xb8] sm:$0xff] %vm6579_vm6, %v6570_v58  ;;  %v6502_v0 = vmul.f32 %v8772_v52, %v11405_v34  ;;  %v8774_v20 = vadd.f32 %v8737_v6, %v8281_v14  ;;  %v6409_v56 = vpop.f32.mrb[27].mxu0 }
 0x404   : > { %6601 = vst.msk [vmem:[%s11420_s14 + $0xa8] sm:$0xff] %vm6579_vm6, %v6568_v61  ;;  %v6500_v39 = vmul.f32 %v8773_v25, %v11405_v34  ;;  %v8775_v19 = vadd.f32 %v6409_v56, %v3775_v30 }
 0x405   : > { %v6541_v29 = vadd.f32 %v11410_v4, %v6502_v0  ;;  %v6503_v3 = vmul.f32 %v8774_v20, %v11405_v34  ;;  %v8284_v21 = vpop.f32.mrb[28].mxu1 }
 0x406   : > { %v6539_v50 = vadd.f32 %v11410_v4, %v6500_v39  ;;  %v6501_v1 = vmul.f32 %v8775_v19, %v11405_v34  ;;  %v3788_v17 = vpop.f32.mrb[29].mxu1 }
 0x407   : > { %v6573_v53 = vmax.f32 %v6541_v29, 0.0  ;;  %v6542_v45 = vadd.f32 %v11410_v4, %v6503_v3  ;;  %v8285_v11 = vpop.f32.mrb[30].mxu1 }
 0x408   : > { %v6571_v31 = vmax.f32 %v6539_v50, 0.0  ;;  %v6540_v41 = vadd.f32 %v11410_v4, %v6501_v1  ;;  %v8740_v12 = vpop.f32.mrb[28].mxu0  ;;  %v3791_v13 = vpop.f32.mrb[31].mxu1 }
 0x409   : > { %6606 = vst.msk [vmem:[%s11420_s14 + $0xd0] sm:$0xff] %vm6579_vm6, %v6573_v53  ;;  %v6574_v46 = vmax.f32 %v6542_v45, 0.0  ;;  %v8776_v62 = vadd.f32 %v8740_v12, %v8284_v21  ;;  %v6422_v9 = vpop.f32.mrb[29].mxu0 }
 0x40a   : > { %6604 = vst.msk [vmem:[%s11420_s14 + $0xc0] sm:$0xff] %vm6579_vm6, %v6571_v31  ;;  %v6572_v54 = vmax.f32 %v6540_v41, 0.0  ;;  %v8777_v60 = vadd.f32 %v6422_v9, %v3788_v17  ;;  %v8741_v59 = vpop.f32.mrb[30].mxu0 }
 0x40b   : > { %6607 = vst.msk [vmem:[%s11420_s14 + $0xd8] sm:$0xff] %vm6579_vm6, %v6574_v46  ;;  %v6506_v35 = vmul.f32 %v8776_v62, %v11405_v34  ;;  %v8778_v36 = vadd.f32 %v8741_v59, %v8285_v11  ;;  %v6425_v26 = vpop.f32.mrb[31].mxu0 }
 0x40c   : > { %6605 = vst.msk [vmem:[%s11420_s14 + $0xc8] sm:$0xff] %vm6579_vm6, %v6572_v54  ;;  %v6504_v47 = vmul.f32 %v8777_v60, %v11405_v34  ;;  %v8779_v51 = vadd.f32 %v6425_v26, %v3791_v13 }
 0x40d   : > { %v6545_v57 = vadd.f32 %v11410_v4, %v6506_v35  ;;  %v6507_v33 = vmul.f32 %v8778_v36, %v11405_v34 }
 0x40e   : > { %v6543_v16 = vadd.f32 %v11410_v4, %v6504_v47  ;;  %v6505_v49 = vmul.f32 %v8779_v51, %v11405_v34 }
 0x40f   : > { %v6577_v40 = vmax.f32 %v6545_v57, 0.0  ;;  %v6546_v43 = vadd.f32 %v11410_v4, %v6507_v33 }
 0x410   : > { %v6575_v32 = vmax.f32 %v6543_v16, 0.0  ;;  %v6544_v2 = vadd.f32 %v11410_v4, %v6505_v49 }
 0x411   : > { %6610 = vst.msk [vmem:[%s11420_s14 + $0xf0] sm:$0xff] %vm6579_vm6, %v6577_v40  ;;  %v6578_v7 = vmax.f32 %v6546_v43, 0.0 }
 0x412   : > { %6608 = vst.msk [vmem:[%s11420_s14 + $0xe0] sm:$0xff] %vm6579_vm6, %v6575_v32  ;;  %v6576_v24 = vmax.f32 %v6544_v2, 0.0 }
 0x413   : > { %6611 = vst.msk [vmem:[%s11420_s14 + $0xf8] sm:$0xff] %vm6579_vm6, %v6578_v7 }
 0x414   : > { %6609 = vst.msk [vmem:[%s11420_s14 + $0xe8] sm:$0xff] %vm6579_vm6, %v6576_v24 }
 0x415 PF: > { %s14_s15 = sadd.s32 1, %s9625_s15  }
 0x416   : > { %p11_p4 = scmp.ge.s32.totalorder %s14_s15, 4  }
 0x418   :  { %13 = sbr.rel (!%p11_p4) target bundleno = 1 (0x1), region = 90 }

// kernel: mixed_5b_forward.8
= control target key start
LH: loop header
LB: loop body
LE: loop exit
PB: predicated region body
PF: predicated region fallthrough
CT: control target
= control target key end

     0   :  { %s4571_s15 = smov 0   ;;  %s5481_s0 = inlined_call_operand.vmem [shape: bf16[2,16,16,128], index: 0, kind: input, shape index: {}]   ;;  %s5482_s1 = inlined_call_operand.vmem [shape: bf16[3,3,128,96], index: 1, kind: input, shape index: {}]   ;;  %s5483_s2 = inlined_call_operand.vmem [shape: f32[1,96], index: 2, kind: input, shape index: {}]   ;;  %s5484_s3 = inlined_call_operand.vmem [shape: f32[1,96], index: 3, kind: input, shape index: {}]   ;;  %s5485_s4 = inlined_call_operand.vmem [shape: f32[2,16,16,96], index: 4, kind: output, shape index: {}]  }
   0x1 LB: > { %s3281_s16 = sadd.s32 4294967295, %s4543_s15   ;;  %p3285_p0 = scmp.ge.s32.totalorder %s4543_s15, 1  ;;  %s4543_s15 = sphi %s4571_s15, %s14_s15  }
   0x2   : > { %p162_p1 = scmp.lt.s32.totalorder %s4543_s15, 3 }
   0x4   : > { %p163_p2 = pnand %p3285_p0, %p162_p1 }
   0x5   : > { %v4441_v0 = vld [vmem:[%s5482_s1 + $0x40] sm:$0xff] (!%p163_p2)   ;;  %v4443_v2 = vld [vmem:[%s5482_s1 + $0x48] sm:$0xff] (!%p163_p2)   ;;  %p188_p3 = scmp.lt.s32.totalorder (!%p163_p2), %s3281_s16, 1  ;;  %v4445_v4 = vld [vmem:[%s5482_s1 + $0x50] sm:$0xff] (!%p163_p2)   ;;  %v4545_v10 = vmov (!%p163_p2), 0   ;;  %vm464_vm0 = vcmask (!%p163_p2), 1040384  }
   0x6   : > { %166 = sbr.rel (%p163_p2) target bundleno = 543 (0x21f), region = 36  ;;  %v4442_v1 = vld [vmem:[%s5482_s1 + $0x100] sm:$0xff] (!%p163_p2)   ;;  %3728 = vmatprep.subr.bf16.mxu1 (!%p163_p2), %v4441_v0  ;;  %v4444_v3 = vld [vmem:[%s5482_s1 + $0x108] sm:$0xff] (!%p163_p2)   ;;  %v4446_v5 = vld [vmem:[%s5482_s1 + $0x110] sm:$0xff] (!%p163_p2)   ;;  %v314_v11 = vrot.slane (!%p163_p2), %v4545_v10, 7  ;;  %vm1193_vm4 = vcmask (!%p163_p2), 1046528  }
   0x7   : > { %3920 = vmatprep.subr.bf16.mxu0 (!%p163_p2), %v4442_v1  ;;  %3729 = vmatpush3.bf16.msra.mxu1 (!%p163_p2), %v4441_v0  ;;  %v4447_v6 = vld [vmem:[%s5482_s1 + $0x58] sm:$0xff] (!%p163_p2)   ;;  %v4449_v8 = vld [vmem:[%s5482_s1 + $0x60] sm:$0xff] (!%p163_p2)   ;;  %v4451_v12 = vld [vmem:[%s5482_s1 + $0x68] sm:$0xff] (!%p163_p2)   ;;  %vm465_vm1 = vsmask.f32 (!%p163_p2), 256  ;;  %vm3193_vm5 = vcmask (!%p163_p2), 785408  }
   0x8   : > { %3921 = vmatpush3.bf16.msra.mxu0 (!%p163_p2), %v4442_v1  ;;  %3730 = vmatprep.subr.bf16.mxu1 (!%p163_p2), %v4443_v2  ;;  %v4448_v7 = vld [vmem:[%s5482_s1 + $0x118] sm:$0xff] (!%p163_p2)   ;;  %v4450_v9 = vld [vmem:[%s5482_s1 + $0x120] sm:$0xff] (!%p163_p2)   ;;  %v4452_v13 = vld [vmem:[%s5482_s1 + $0x128] sm:$0xff] (!%p163_p2)   ;;  %vm517_vm3 = vsmask.f32 (!%p163_p2), 7424 }
   0x9   : > { %3922 = vmatprep.subr.bf16.mxu0 (!%p163_p2), %v4444_v3  ;;  %vm4623_vm2 = vmand (!%p163_p2), %vm464_vm0, %vm465_vm1  ;;  %v4453_v18 = vld [vmem:[%s5482_s1 + $0x70] sm:$0xff] (!%p163_p2)   ;;  %v4455_v30 = vld [vmem:[%s5482_s1 + $0x78] sm:$0xff] (!%p163_p2)  }
   0xa   : > { %v4630_v16 = vsel (!%p163_p2), %vm4623_vm2, 0, %v314_v11  ;;  %v4634_v17 = vsel (!%p163_p2), %vm4623_vm2, %v314_v11, 0  ;;  %v4454_v24 = vld [vmem:[%s5482_s1 + $0x130] sm:$0xff] (!%p163_p2)   ;;  %v4456_v38 = vld [vmem:[%s5482_s1 + $0x138] sm:$0xff] (!%p163_p2)   ;;  %v4458_v47 = vld [vmem:[%s5482_s1] sm:$0xff] (!%p163_p2)  }
   0xb   : > { %3731 = vmatpush3.bf16.msra.mxu1 (!%p163_p2), %v4443_v2  ;;  %v519_v19 = vshrl.u32 (!%p163_p2), %v4630_v16, 16  ;;  %v521_v20 = vshll.u32 (!%p163_p2), %v4630_v16, 16  ;;  %v526_v21 = vshll.u32 (!%p163_p2), %v4634_v17, 16  ;;  %v4460_v55 = vld [vmem:[%s5482_s1 + $0x140] sm:$0xff] (!%p163_p2)   ;;  %v4461_v62 = vld [vmem:[%s5482_s1 + $0x148] sm:$0xff] (!%p163_p2)   ;;  %v4505_v14 = vld [vmem:[%s5482_s1 + $0xb0] sm:$0xff] (!%p163_p2)  }
   0xc   : > { %3923 = vmatpush3.bf16.msra.mxu0 (!%p163_p2), %v4444_v3  ;;  %3732 = vmatprep.subr.bf16.mxu1 (!%p163_p2), %v4445_v4 }
   0xd   : > { %s5489_s16 = smov (!%p188_p3, %s3281_s16), 1  ;;  %3924 = vmatprep.subr.bf16.mxu0 %v4446_v5  ;;  %v523_v26 = vrot.slane %v521_v20, 1  ;;  %v528_v27 = vrot.slane %v526_v21, 1 }
   0xe   : > { %s3510_s7 = sshll.u32 %s5489_s16, 7  ;;  %s3511_s19 = sshll.u32 %s5489_s16, 8 }
   0xf   : > { %3733 = vmatpush3.bf16.msra.mxu1 %v4445_v4  ;;  %s4615_s14 = scalar_lea.vmem %s5481_s0, %s3510_s7  ;;  %v524_v32 = vor.u32 %v523_v26, %v519_v19  ;;  %s5346_s22 = scalar_lea.vmem %s5485_s4, %s3511_s19 }
  0x10   : > { %3925 = vmatpush3.bf16.msra.mxu0 %v4446_v5  ;;  %3734 = vmatprep.subr.bf16.mxu1 %v4447_v6  ;;  %v4457_v15 = vld [vmem:[%s4615_s14] sm:$0xff]   ;;  %v4459_v23 = vld [vmem:[%s4615_s14 + $0x8] sm:$0xff]   ;;  %v4462_v37 = vld [vmem:[%s4615_s14 + $0x10] sm:$0xff]  }
  0x11   : > { %3926 = vmatprep.subr.bf16.mxu0 %v4448_v7  ;;  %v319_v22 = vshrl.u32 %v4457_v15, 16  ;;  %v322_v25 = vshll.u32 %v4457_v15, 16  ;;  %v326_v29 = vshrl.u32 %v4459_v23, 16  ;;  %v329_v31 = vshll.u32 %v4459_v23, 16  ;;  %v4464_v43 = vld [vmem:[%s4615_s14 + $0x18] sm:$0xff]   ;;  %v4467_v5 = vld [vmem:[%s4615_s14 + $0x20] sm:$0xff]  }
  0x12   : > { %v4659_v39 = vsel %vm517_vm3, %v524_v32, %v528_v27  ;;  %v333_v49 = vshrl.u32 %v4462_v37, 16  ;;  %v336_v50 = vshll.u32 %v4462_v37, 16  ;;  %v340_v57 = vshrl.u32 %v4464_v43, 16  ;;  %v4469_v10 = vld [vmem:[%s4615_s14 + $0x28] sm:$0xff]  }
  0x13   : > { %3735 = vmatpush3.bf16.msra.mxu1 %v4447_v6  ;;  %v321_v28 = vrot.slane %v319_v22, 7  ;;  %v328_v35 = vrot.slane %v326_v29, 7  ;;  %3744 = vmatprep.mubr.bf16.mxu1 %v4659_v39  ;;  %v343_v58 = vshll.u32 %v4464_v43, 16  ;;  %v347_v21 = vshrl.u32 %v4467_v5, 16 }
  0x14   : > { %3927 = vmatpush3.bf16.msra.mxu0 %v4448_v7  ;;  %3736 = vmatprep.subr.bf16.mxu1 %v4449_v8  ;;  %v335_v56 = vrot.slane %v333_v49, 7  ;;  %v342_v1 = vrot.slane %v340_v57, 7  ;;  %v4463_v7 = vld [vmem:[%s5482_s1 + $0x8] sm:$0xff]   ;;  %v350_v22 = vshll.u32 %v4467_v5, 16  ;;  %v354_v26 = vshrl.u32 %v4469_v10, 16 }
  0x15   : > { %3928 = vmatprep.subr.bf16.mxu0 %v4450_v9  ;;  %v324_v33 = vor.u32 %v322_v25, %v321_v28  ;;  %v4651_v34 = vsel %vm4623_vm2, %v321_v28, 0  ;;  %v331_v41 = vor.u32 %v329_v31, %v328_v35  ;;  %v4667_v42 = vsel %vm4623_vm2, %v328_v35, 0  ;;  %v4465_v28 = vld [vmem:[%s5482_s1 + $0x150] sm:$0xff]   ;;  %v4466_v35 = vld [vmem:[%s5482_s1 + $0x158] sm:$0xff]  }
  0x16   : > { %v538_v36 = vshll.u32 %v4651_v34, 16  ;;  %v550_v46 = vshll.u32 %v4667_v42, 16  ;;  %v338_v63 = vor.u32 %v336_v50, %v335_v56  ;;  %v4691_v0 = vsel %vm4623_vm2, %v335_v56, 0  ;;  %v4474_v56 = vld [vmem:[%s4615_s14 + $0x38] sm:$0xff]  }
  0x17   : > { %3737 = vmatpush3.bf16.msra.mxu1 %v4449_v8  ;;  %v4663_v40 = vsel %vm4623_vm2, 0, %v324_v33  ;;  %v4679_v48 = vsel %vm4623_vm2, 0, %v331_v41  ;;  %v562_v4 = vshll.u32 %v4691_v0, 16  ;;  %v345_v8 = vor.u32 %v343_v58, %v342_v1 }
  0x18   : > { %3929 = vmatpush3.bf16.msra.mxu0 %v4450_v9  ;;  %3738 = vmatprep.subr.bf16.mxu1 %v4451_v12  ;;  %v531_v44 = vshrl.u32 %v4663_v40, 16  ;;  %v533_v45 = vshll.u32 %v4663_v40, 16  ;;  %v540_v52 = vrot.slane %v538_v36, 1  ;;  %v543_v53 = vshrl.u32 %v4679_v48, 16 }
  0x19   : > { %3930 = vmatprep.subr.bf16.mxu0 %v4452_v13  ;;  %v545_v54 = vshll.u32 %v4679_v48, 16  ;;  %v552_v61 = vrot.slane %v550_v46, 1  ;;  %v4698_v6 = vsel %vm4623_vm2, 0, %v338_v63  ;;  %v4705_v9 = vsel %vm4623_vm2, %v342_v1, 0  ;;  %v4473_v46 = vld [vmem:[%s5482_s1 + $0x18] sm:$0xff]  }
  0x1a   : > { %v535_v51 = vrot.slane %v533_v45, 1  ;;  %v564_v15 = vrot.slane %v562_v4, 1  ;;  %v4719_v19 = vsel %vm4623_vm2, 0, %v345_v8  ;;  %v574_v20 = vshll.u32 %v4705_v9, 16 }
  0x1b   : > { %3739 = vmatpush3.bf16.msra.mxu1 %v4451_v12  ;;  %v547_v60 = vrot.slane %v545_v54, 1  ;;  %v555_v12 = vshrl.u32 %v4698_v6, 16  ;;  %v569_v25 = vshll.u32 %v4719_v19, 16  ;;  %v349_v29 = vrot.slane %v347_v21, 7 }
  0x1c   : > { %3931 = vmatpush3.bf16.msra.mxu0 %v4452_v13  ;;  %3740 = vmatprep.subr.bf16.mxu1 %v4453_v18  ;;  %v536_v59 = vor.u32 %v535_v51, %v531_v44  ;;  %v557_v13 = vshll.u32 %v4698_v6, 16  ;;  %v576_v27 = vrot.slane %v574_v20, 1  ;;  %v356_v33 = vrot.slane %v354_v26, 7 }
  0x1d   : > { %3932 = vmatprep.subr.bf16.mxu0 %v4454_v24  ;;  %v548_v3 = vor.u32 %v547_v60, %v543_v53  ;;  %v571_v32 = vrot.slane %v569_v25, 1  ;;  %v352_v36 = vor.u32 %v350_v22, %v349_v29  ;;  %v4733_v37 = vsel %vm4623_vm2, %v349_v29, 0  ;;  %v4478_v22 = vld [vmem:[%s5482_s1 + $0x20] sm:$0xff]  }
  0x1e   : > { %v541_v2 = vsel %vm517_vm3, %v536_v59, %v540_v52  ;;  %v559_v23 = vrot.slane %v557_v13, 1  ;;  %v586_v44 = vshll.u32 %v4733_v37, 16  ;;  %v4750_v49 = vsel %vm4623_vm2, %v356_v33, 0 }
  0x1f   : > { %3741 = vmatpush3.bf16.msra.mxu1 %v4453_v18  ;;  %3936 = vmatprep.mubr.bf16.mxu0 %v541_v2  ;;  %v4709_v11 = vsel %vm517_vm3, %v548_v3, %v552_v61  ;;  %v4468_v18 = vld [vmem:[%s5482_s1 + $0x10] sm:$0xff]   ;;  %v1201_v52 = vrot.slane %v4667_v42, 1  ;;  %v598_v59 = vshll.u32 %v4750_v49, 16  ;;  %v368_v1 = vshrl.u32 %v4474_v56, 16  ;;  %v4470_v3 = vld [vmem:[%s5482_s1 + $0x160] sm:$0xff]  }
  0x20   : > { %3933 = vmatpush3.bf16.msra.mxu0 %v4454_v24  ;;  %3742 = vmatprep.subr.bf16.mxu1 %v4455_v30  ;;  %v567_v24 = vshrl.u32 %v4719_v19, 16  ;;  %v560_v31 = vor.u32 %v559_v23, %v555_v12  ;;  %v588_v57 = vrot.slane %v586_v44, 1  ;;  %v1197_v21 = vrot.slane %v4663_v40, 1  ;;  %v4480_v44 = vld [vmem:[%s4615_s14 + $0x48] sm:$0xff]  }
  0x21   : > { %3934 = vmatprep.subr.bf16.mxu0 %v4456_v38  ;;  %v370_v13 = vrot.slane %v368_v1, 7 }
  0x22   : > { %v4737_v41 = vsel %vm517_vm3, %v560_v31, %v564_v15  ;;  %v572_v43 = vor.u32 %v571_v32, %v567_v24  ;;  %v4477_v15 = vld [vmem:[%s4615_s14 + $0x40] sm:$0xff]  }
  0x23   : > { %3743 = vmatpush3.bf16.msra.mxu1 %v4455_v30  ;;  %v357_v30 = vshll.u32 %v4469_v10, 16  ;;  %v4797_v29 = vsel %vm4623_vm2, %v370_v13, 0 }
  0x24   : > { %3935 = vmatpush3.bf16.msra.mxu0 %v4456_v38  ;;  %3776 = vmatprep.subr.bf16.mxu1 %v4458_v47  ;;  %v4472_v38 = vld [vmem:[%s4615_s14 + $0x30] sm:$0xff]   ;;  %v4755_v53 = vsel %vm517_vm3, %v572_v43, %v576_v27  ;;  %v622_v32 = vshll.u32 %v4797_v29, 16  ;;  %v378_v43 = vshll.u32 %v4477_v15, 16 }
  0x25   : > { %3968 = vmatprep.subr.bf16.mxu0 %v4460_v55  ;;  %v359_v45 = vor.u32 %v357_v30, %v356_v33  ;;  %v361_v50 = vshrl.u32 %v4472_v38, 16  ;;  %v364_v51 = vshll.u32 %v4472_v38, 16  ;;  %v375_v33 = vshrl.u32 %v4477_v15, 16 }
  0x26   : > { %3745 = vmatmul.mubr.bf16.vlgmr.msra.gmra.mrb[0].mxu1 %v541_v2  ;;  %v600_v2 = vrot.slane %v598_v59, 1  ;;  %v1198_v38 = vrot.slane %v4651_v34, 1  ;;  %v4482_v34 = vld [vmem:[%s5482_s1 + $0x28] sm:$0xff]  }
  0x27   : > { %3937 = vmatmul.mubr.bf16.vlgmr.msra.gmra.mrb[0].mxu0 %v4709_v11  ;;  %3777 = vmatpush3.bf16.msra.mxu1 %v4458_v47  ;;  %v4746_v47 = vsel %vm4623_vm2, 0, %v352_v36  ;;  %v4764_v58 = vsel %vm4623_vm2, 0, %v359_v45  ;;  %v363_v60 = vrot.slane %v361_v50, 7  ;;  %v4475_v36 = vld [vmem:[%s5482_s1 + $0x170] sm:$0xff]  }
  0x28   : > { %3969 = vmatpush3.bf16.msra.mxu0 %v4460_v55  ;;  %3748 = vmatprep.mubr.bf16.mxu1 %v4709_v11  ;;  %v579_v54 = vshrl.u32 %v4746_v47, 16  ;;  %v581_v55 = vshll.u32 %v4746_v47, 16  ;;  %v593_v63 = vshll.u32 %v4764_v58, 16 }
  0x29   : > { %3970 = vmatprep.subr.bf16.mxu0 %v4461_v62  ;;  %3778 = vmatprep.subr.bf16.mxu1 %v4463_v7  ;;  %v366_v4 = vor.u32 %v364_v51, %v363_v60  ;;  %v4774_v5 = vsel %vm4623_vm2, %v363_v60, 0  ;;  %v1200_v51 = vrot.slane %v4679_v48, 1 }
  0x2a   : > { %3940 = vmatprep.mubr.bf16.mxu0 %v4737_v41  ;;  %v583_v61 = vrot.slane %v581_v55, 1  ;;  %v595_v10 = vrot.slane %v593_v63, 1  ;;  %v610_v12 = vshll.u32 %v4774_v5, 16  ;;  %v377_v55 = vrot.slane %v375_v33, 7 }
  0x2b   : > { %3779 = vmatpush3.bf16.msra.mxu1 %v4463_v7  ;;  %v371_v7 = vshll.u32 %v4474_v56, 16  ;;  %v4783_v20 = vsel %vm4623_vm2, 0, %v366_v4  ;;  %v382_v56 = vshrl.u32 %v4480_v44, 16 }
  0x2c   : > { %3971 = vmatpush3.bf16.msra.mxu0 %v4461_v62  ;;  %3780 = vmatprep.subr.bf16.mxu1 %v4468_v18  ;;  %v591_v62 = vshrl.u32 %v4764_v58, 16  ;;  %v584_v8 = vor.u32 %v583_v61, %v579_v54  ;;  %v603_v25 = vshrl.u32 %v4783_v20, 16  ;;  %v605_v26 = vshll.u32 %v4783_v20, 16  ;;  %v4481_v54 = vld [vmem:[%s4615_s14 + $0x50] sm:$0xff]  }
  0x2d   : > { %3972 = vmatprep.subr.bf16.mxu0 %v4465_v28  ;;  %v612_v27 = vrot.slane %v610_v12, 1  ;;  %v624_v61 = vrot.slane %v622_v32, 1  ;;  %v380_v63 = vor.u32 %v378_v43, %v377_v55  ;;  %v4829_v1 = vsel %vm4623_vm2, %v377_v55, 0  ;;  %v4476_v12 = vld [vmem:[%s5482_s1 + $0x178] sm:$0xff]  }
  0x2e   : > { %3749 = vmatmul.mubr.bf16.gmra.mrb[4].mxu1 %v4737_v41  ;;  %v4790_v23 = vsel %vm517_vm3, %v584_v8, %v588_v57  ;;  %v596_v24 = vor.u32 %v595_v10, %v591_v62  ;;  %v607_v31 = vrot.slane %v605_v26, 1  ;;  %v385_v57 = vshll.u32 %v4480_v44, 16 }
  0x2f   : > { %3941 = vmatmul.mubr.bf16.gmra.mrb[4].mxu0 %v4755_v53  ;;  %3752 = vmatprep.mubr.bf16.mxu1 %v4755_v53  ;;  %v1203_v62 = vrot.slane %v4698_v6, 1  ;;  %v634_v8 = vshll.u32 %v4829_v1, 16  ;;  %v392_v10 = vshll.u32 %v4481_v54, 16  ;;  %v1204_v26 = vrot.slane %v4691_v0, 1 }
  0x30   : > { %3973 = vmatpush3.bf16.msra.mxu0 %v4465_v28  ;;  %3781 = vmatpush3.bf16.msra.mxu1 %v4468_v18  ;;  %v4471_v18 = vld [vmem:[%s5482_s1 + $0x168] sm:$0xff]   ;;  %v373_v28 = vor.u32 %v371_v7, %v370_v13  ;;  %v4801_v30 = vsel %vm517_vm3, %v596_v24, %v600_v2  ;;  %v608_v45 = vor.u32 %v607_v31, %v603_v25  ;;  %v384_v2 = vrot.slane %v382_v56, 7  ;;  %v4485_v56 = vld [vmem:[%s4615_s14 + $0x60] sm:$0xff]  }
  0x31   : > { %3974 = vmatprep.subr.bf16.mxu0 %v4466_v35  ;;  %3782 = vmatprep.subr.bf16.mxu1 %v4473_v46  ;;  %v4832_v7 = vsel %vm1193_vm4, %v1197_v21, %v1198_v38  ;;  %v4840_v13 = vsel %vm4623_vm2, 0, %v380_v63  ;;  %v4484_v38 = vld [vmem:[%s4615_s14 + $0x58] sm:$0xff]   ;;  %v636_v44 = vrot.slane %v634_v8, 1  ;;  %v4896_v8 = vsel %vm1193_vm4, %v1203_v62, %v1204_v26 }
  0x32   : > { %3944 = vmatprep.mubr.bf16.mxu0 %v4790_v23  ;;  %v4823_v59 = vsel %vm517_vm3, %v608_v45, %v612_v27  ;;  %v387_v15 = vor.u32 %v385_v57, %v384_v2  ;;  %v627_v24 = vshrl.u32 %v4840_v13, 16  ;;  %v629_v25 = vshll.u32 %v4840_v13, 16  ;;  %v4486_v27 = vld [vmem:[%s5482_s1 + $0x30] sm:$0xff]  }
  0x33   : > { %v396_v63 = vshrl.u32 %v4484_v38, 16 }
  0x34   : > { %3975 = vmatpush3.bf16.msra.mxu0 %v4466_v35  ;;  %3783 = vmatpush3.bf16.msra.mxu1 %v4473_v46  ;;  %v4808_v35 = vsel %vm4623_vm2, 0, %v373_v28  ;;  %v4479_v28 = vld [vmem:[%s5482_s1 + $0x180] sm:$0xff]   ;;  %v4863_v31 = vsel %vm4623_vm2, 0, %v387_v15  ;;  %v631_v43 = vrot.slane %v629_v25, 1  ;;  %v4488_v15 = vld [vmem:[%s4615_s14 + $0x68] sm:$0xff]   ;;  %v406_v25 = vshll.u32 %v4485_v56, 16 }
  0x35   : > { %3976 = vmatprep.subr.bf16.mxu0 %v4470_v3  ;;  %3784 = vmatprep.subr.bf16.mxu1 %v4478_v22  ;;  %v615_v46 = vshrl.u32 %v4808_v35, 16  ;;  %v617_v50 = vshll.u32 %v4808_v35, 16  ;;  %v639_v45 = vshrl.u32 %v4863_v31, 16 }
  0x36   : > { %3753 = vmatmul.mubr.bf16.gmra.mrb[8].mxu1 %v4790_v23  ;;  %v632_v57 = vor.u32 %v631_v43, %v627_v24  ;;  %v403_v24 = vshrl.u32 %v4485_v56, 16  ;;  %v4487_v43 = vld [vmem:[%s5482_s1 + $0x190] sm:$0xff]  }
  0x37   : > { %3945 = vmatmul.mubr.bf16.gmra.mrb[8].mxu0 %v4801_v30  ;;  %3756 = vmatprep.mubr.bf16.mxu1 %v4801_v30  ;;  %v619_v60 = vrot.slane %v617_v50, 1  ;;  %v4877_v50 = vsel %vm1193_vm4, %v1200_v51, %v1201_v52  ;;  %v1207_v52 = vrot.slane %v4705_v9, 1  ;;  %v4483_v51 = vld [vmem:[%s5482_s1 + $0x188] sm:$0xff]   ;;  %v398_v9 = vrot.slane %v396_v63, 7 }
  0x38   : > { %3977 = vmatpush3.bf16.msra.mxu0 %v4470_v3  ;;  %3785 = vmatpush3.bf16.msra.mxu1 %v4478_v22  ;;  %v389_v3 = vshrl.u32 %v4481_v54, 16  ;;  %v1213_v63 = vrot.slane %v4750_v49, 1 }
  0x39   : > { %3978 = vmatprep.subr.bf16.mxu0 %v4471_v18  ;;  %3948 = vmatprep.mubr.bf16.mxu0 %v4823_v59  ;;  %v620_v4 = vor.u32 %v619_v60, %v615_v46  ;;  %v641_v46 = vshll.u32 %v4863_v31, 16 }
  0x3a   : > { %3786 = vmatprep.subr.bf16.mxu1 %v4482_v34  ;;  %v391_v21 = vrot.slane %v389_v3, 7  ;;  %v4893_v3 = vsel %vm517_vm3, %v632_v57, %v636_v44  ;;  %v4489_v44 = vld [vmem:[%s4615_s14 + $0x70] sm:$0xff]  }
  0x3b   : > { %v4848_v22 = vsel %vm517_vm3, %v620_v4, %v624_v61  ;;  %v1206_v61 = vrot.slane %v4719_v19, 1 }
  0x3c   : > { %3979 = vmatpush3.bf16.msra.mxu0 %v4471_v18  ;;  %3787 = vmatpush3.bf16.msra.mxu1 %v4482_v34  ;;  %v4844_v18 = vsel %vm4623_vm2, %v384_v2, 0  ;;  %v394_v0 = vor.u32 %v392_v10, %v391_v21  ;;  %v4868_v33 = vsel %vm4623_vm2, %v391_v21, 0  ;;  %v643_v34 = vrot.slane %v641_v46, 1 }
  0x3d   : > { %3980 = vmatprep.subr.bf16.mxu0 %v4475_v36  ;;  %v646_v32 = vshll.u32 %v4844_v18, 16  ;;  %3788 = vmatprep.subr.bf16.mxu1 %v4486_v27  ;;  %v399_v2 = vshll.u32 %v4484_v38, 16  ;;  %v405_v38 = vrot.slane %v403_v24, 7  ;;  %v1212_v46 = vrot.slane %v4764_v58, 1 }
  0x3e   : > { %3757 = vmatmul.mubr.bf16.gmra.mrb[12].mxu1 %v4823_v59  ;;  %v4881_v55 = vsel %vm4623_vm2, 0, %v394_v0  ;;  %v644_v4 = vor.u32 %v643_v34, %v639_v45  ;;  %v4909_v0 = vsel %vm4623_vm2, %v398_v9, 0  ;;  %v413_v34 = vshll.u32 %v4488_v15, 16 }
  0x3f   : > { %3949 = vmatmul.mubr.bf16.gmra.mrb[12].mxu0 %v4848_v22  ;;  %3760 = vmatprep.mubr.bf16.mxu1 %v4848_v22  ;;  %v648_v54 = vrot.slane %v646_v32, 1  ;;  %v653_v60 = vshll.u32 %v4881_v55, 16  ;;  %v651_v42 = vshrl.u32 %v4881_v55, 16  ;;  %v1210_v32 = vrot.slane %v4733_v37, 1 }
  0x40   : > { %3981 = vmatpush3.bf16.msra.mxu0 %v4475_v36  ;;  %3984 = vmatprep.mubr.bf16.mxu0 %v4832_v7  ;;  %v658_v36 = vshll.u32 %v4868_v33, 16  ;;  %v401_v26 = vor.u32 %v399_v2, %v398_v9  ;;  %v4917_v37 = vsel %vm1193_vm4, %v1206_v61, %v1207_v52  ;;  %v670_v45 = vshll.u32 %v4909_v0, 16 }
  0x41   : > { %3982 = vmatprep.subr.bf16.mxu0 %v4476_v12  ;;  %3789 = vmatpush3.bf16.msra.mxu1 %v4486_v27  ;;  %v655_v10 = vrot.slane %v653_v60, 1  ;;  %v4901_v27 = vsel %vm517_vm3, %v644_v4, %v648_v54  ;;  %v410_v54 = vshrl.u32 %v4488_v15, 16  ;;  %v4930_v57 = vsel %vm4623_vm2, %v405_v38, 0  ;;  %v4935_v60 = vld [vmem:[%s5482_s1 + $0x80] sm:$0xff]  }
  0x42   : > { %v660_v21 = vrot.slane %v658_v36, 1  ;;  %v4490_v36 = vld [vmem:[%s5482_s1 + $0x38] sm:$0xff]   ;;  %v4926_v56 = vsel %vm4623_vm2, 0, %v401_v26  ;;  %v672_v24 = vrot.slane %v670_v45, 1 }
  0x43   : > { %v656_v62 = vor.u32 %v655_v10, %v651_v42  ;;  %v663_v61 = vshrl.u32 %v4926_v56, 16  ;;  %v665_v42 = vshll.u32 %v4926_v56, 16  ;;  %3790 = vmatprep.subr.bf16.mxu1 %v4490_v36  ;;  %v682_v10 = vshll.u32 %v4930_v57, 16 }
  0x44   : > { %3983 = vmatpush3.bf16.msra.mxu0 %v4476_v12  ;;  %v1209_v12 = vrot.slane %v4746_v47, 1  ;;  %v412_v15 = vrot.slane %v410_v54, 7  ;;  %v420_v54 = vshll.u32 %v4489_v44, 16 }
  0x45   : > { %4016 = vmatprep.subr.bf16.mxu0 %v4479_v28  ;;  %v4944_v2 = vsel %vm517_vm3, %v656_v62, %v660_v21  ;;  %3791 = vmatpush3.bf16.msra.mxu1 %v4490_v36  ;;  %v667_v9 = vrot.slane %v665_v42, 1  ;;  %v417_v62 = vshrl.u32 %v4489_v44, 16  ;;  %v684_v36 = vrot.slane %v682_v10, 1 }
  0x46   : > { %3761 = vmatmul.mubr.bf16.gmra.mrb[16].mxu1 %v4893_v3  ;;  %v4940_v52 = vsel %vm1193_vm4, %v1209_v12, %v1210_v32  ;;  %3824 = vmatprep.subr.bf16.mxu1 %v4935_v60  ;;  %v415_v49 = vor.u32 %v413_v34, %v412_v15  ;;  %v4956_v21 = vsel %vm4623_vm2, %v412_v15, 0  ;;  %v1215_v32 = vrot.slane %v4783_v20, 1 }
  0x47   : > { %3985 = vmatmul.mubr.bf16.vlgmr.msra.gmra.mrb[0].mxu0 %v4877_v50  ;;  %3764 = vmatprep.mubr.bf16.mxu1 %v4901_v27  ;;  %v668_v26 = vor.u32 %v667_v9, %v663_v61  ;;  %v694_v45 = vshll.u32 %v4956_v21, 16  ;;  %v1216_v34 = vrot.slane %v4774_v5, 1  ;;  %v419_v42 = vrot.slane %v417_v62, 7  ;;  %v4493_v5 = vld [vmem:[%s5482_s1 + $0x1a0] sm:$0xff]  }
  0x48   : > { %4017 = vmatpush3.bf16.msra.mxu0 %v4479_v28  ;;  %3988 = vmatprep.mubr.bf16.mxu0 %v4896_v8  ;;  %v408_v28 = vor.u32 %v406_v25, %v405_v38 }
  0x49   : > { %4018 = vmatprep.subr.bf16.mxu0 %v4483_v51  ;;  %v4971_v15 = vsel %vm517_vm3, %v668_v26, %v672_v24  ;;  %v422_v10 = vor.u32 %v420_v54, %v419_v42  ;;  %v4993_v26 = vsel %vm1193_vm4, %v1212_v46, %v1213_v63 }
  0x4a   : > { %v4948_v4 = vsel %vm4623_vm2, 0, %v408_v28  ;;  %v4967_v28 = vsel %vm4623_vm2, 0, %v415_v49  ;;  %v696_v49 = vrot.slane %v694_v45, 1  ;;  %v4998_v45 = vsel %vm1193_vm4, %v1215_v32, %v1216_v34 }
  0x4b   : > { %v675_v25 = vshrl.u32 %v4948_v4, 16  ;;  %v677_v12 = vshll.u32 %v4948_v4, 16  ;;  %v687_v9 = vshrl.u32 %v4967_v28, 16  ;;  %v689_v44 = vshll.u32 %v4967_v28, 16 }
  0x4c   : > { %4019 = vmatpush3.bf16.msra.mxu0 %v4483_v51  ;;  %v4491_v51 = vld [vmem:[%s5482_s1 + $0x198] sm:$0xff]   ;;  %v1219_v34 = vrot.slane %v4797_v29, 1 }
  0x4d   : > { %4020 = vmatprep.subr.bf16.mxu0 %v4487_v43  ;;  %v679_v38 = vrot.slane %v677_v12, 1  ;;  %v4979_v12 = vsel %vm4623_vm2, %v419_v42, 0  ;;  %v691_v24 = vrot.slane %v689_v44, 1  ;;  %v1222_v44 = vrot.slane %v4829_v1, 1  ;;  %v4500_v29 = vld [vmem:[%s5482_s1 + $0x1b8] sm:$0xff]  }
  0x4e   : > { %3765 = vmatmul.mubr.bf16.gmra.mrb[20].mxu1 %v4944_v2  ;;  %v706_v62 = vshll.u32 %v4979_v12, 16  ;;  %v1224_v1 = vrot.slane %v4863_v31, 1 }
  0x4f   : > { %3989 = vmatmul.mubr.bf16.gmra.mrb[4].mxu0 %v4917_v37  ;;  %v680_v61 = vor.u32 %v679_v38, %v675_v25  ;;  %3768 = vmatprep.mubr.bf16.mxu1 %v4971_v15  ;;  %v4989_v25 = vsel %vm4623_vm2, 0, %v422_v10  ;;  %v692_v38 = vor.u32 %v691_v24, %v687_v9  ;;  %v1221_v9 = vrot.slane %v4840_v13, 1  ;;  %v4497_v10 = vld [vmem:[%s5482_s1 + $0x1b0] sm:$0xff]  }
  0x50   : > { %3992 = vmatprep.mubr.bf16.mxu0 %v4940_v52  ;;  %4021 = vmatpush3.bf16.msra.mxu0 %v4487_v43  ;;  %v699_v54 = vshrl.u32 %v4989_v25, 16  ;;  %v701_v42 = vshll.u32 %v4989_v25, 16  ;;  %v708_v63 = vrot.slane %v706_v62, 1 }
  0x51   : > { %4022 = vmatprep.subr.bf16.mxu0 %v4491_v51  ;;  %v4985_v43 = vsel %vm517_vm3, %v680_v61, %v684_v36  ;;  %v4495_v36 = vld [vmem:[%s5482_s1 + $0x1a8] sm:$0xff]   ;;  %v5005_v61 = vsel %vm517_vm3, %v692_v38, %v696_v49  ;;  %v5024_v62 = vsel %vm1193_vm4, %v1221_v9, %v1222_v44  ;;  %v1227_v38 = vrot.slane %v4881_v55, 1 }
  0x52   : > { %v703_v46 = vrot.slane %v701_v42, 1  ;;  %v5040_v42 = vld [vmem:[%s5482_s1 + $0x1c0] sm:$0xff]   ;;  %v1234_v9 = vrot.slane %v4930_v57, 1  ;;  %v1236_v57 = vrot.slane %v4967_v28, 1 }
  0x54   : > { %4023 = vmatpush3.bf16.msra.mxu0 %v4491_v51  ;;  %v704_v32 = vor.u32 %v703_v46, %v699_v54  ;;  %v1218_v51 = vrot.slane %v4808_v35, 1  ;;  %v1228_v54 = vrot.slane %v4868_v33, 1  ;;  %v4494_v46 = vld [vmem:[%s5482_s1 + $0x88] sm:$0xff]   ;;  %v1230_v33 = vrot.slane %v4926_v56, 1 }
  0x55   : > { %4024 = vmatprep.subr.bf16.mxu0 %v4493_v5 }
  0x56   : > { %3769 = vmatmul.mubr.bf16.gmra.mrb[24].mxu1 %v4985_v43  ;;  %v5018_v24 = vsel %vm517_vm3, %v704_v32, %v708_v63  ;;  %v5021_v49 = vsel %vm1193_vm4, %v1218_v51, %v1219_v34  ;;  %v4499_v63 = vld [vmem:[%s4615_s14 + $0x78] sm:$0xff]   ;;  %v4496_v32 = vld [vmem:[%s5482_s1 + $0x90] sm:$0xff]   ;;  %v1231_v51 = vrot.slane %v4909_v0, 1  ;;  %v1233_v34 = vrot.slane %v4948_v4, 1 }
  0x57   : > { %3993 = vmatmul.mubr.bf16.gmra.mrb[8].mxu0 %v4993_v26  ;;  %3772 = vmatprep.mubr.bf16.mxu1 %v5005_v61  ;;  %v424_v44 = vshrl.u32 %v4499_v63, 16  ;;  %v427_v0 = vshll.u32 %v4499_v63, 16 }
  0x58   : > { %3996 = vmatprep.mubr.bf16.mxu0 %v4998_v45  ;;  %4025 = vmatpush3.bf16.msra.mxu0 %v4493_v5  ;;  %v1225_v5 = vrot.slane %v4844_v18, 1  ;;  %v5049_v18 = vsel %vm1193_vm4, %v1227_v38, %v1228_v54  ;;  %v4501_v38 = vld [vmem:[%s5482_s1 + $0xa0] sm:$0xff]   ;;  %v1239_v54 = vrot.slane %v4989_v25, 1 }
  0x59   : > { %4026 = vmatprep.subr.bf16.mxu0 %v4495_v36 }
  0x5c   : > { %4027 = vmatpush3.bf16.msra.mxu0 %v4495_v36  ;;  %v5043_v36 = vsel %vm1193_vm4, %v1224_v1, %v1225_v5  ;;  %v426_v1 = vrot.slane %v424_v44, 7  ;;  %v1237_v5 = vrot.slane %v4956_v21, 1 }
  0x5d   : > { %4028 = vmatprep.subr.bf16.mxu0 %v4497_v10 }
  0x5e   : > { %3773 = vmatmul.mubr.bf16.gmra.mrb[28].mxu1 %v5018_v24  ;;  %v429_v63 = vor.u32 %v427_v0, %v426_v1  ;;  %v4504_v0 = vld [vmem:[%s5482_s1 + $0x1c8] sm:$0xff]  }
  0x5f   : > { %3997 = vmatmul.mubr.bf16.gmra.mrb[12].mxu0 %v5021_v49  ;;  %3792 = vmatprep.mubr.bf16.mxu1 %v4630_v16 }
  0x60   : > { %4000 = vmatprep.mubr.bf16.mxu0 %v5024_v62  ;;  %4029 = vmatpush3.bf16.msra.mxu0 %v4497_v10  ;;  %v4498_v10 = vld [vmem:[%s5482_s1 + $0x98] sm:$0xff]   ;;  %v5093_v21 = vsel %vm4623_vm2, 0, %v429_v63  ;;  %v4514_v63 = vld [vmem:[%s5482_s1 + $0x1f0] sm:$0xff]  }
  0x61   : > { %4030 = vmatprep.subr.bf16.mxu0 %v4500_v29 }
  0x64   : > { %4031 = vmatpush3.bf16.msra.mxu0 %v4500_v29  ;;  %v5072_v29 = vsel %vm1193_vm4, %v1233_v34, %v1234_v9  ;;  %v2047_v34 = vrot.slane %v5093_v21, 1 }
  0x65   : > { %4064 = vmatprep.subr.bf16.mxu0 %v5040_v42 }
  0x66   : > { %3793 = vmatmul.mubr.bf16.vlgmr.msra.gmra.mrb[0].mxu1 %v4663_v40 }
  0x67   : > { %4001 = vmatmul.mubr.bf16.gmra.mrb[16].mxu0 %v5043_v36  ;;  %3825 = vmatpush3.bf16.msra.mxu1 %v4935_v60  ;;  %v5066_v60 = vsel %vm1193_vm4, %v1230_v33, %v1231_v51  ;;  %v5086_v33 = vsel %vm1193_vm4, %v1236_v57, %v1237_v5  ;;  %v4506_v57 = vld [vmem:[%s5482_s1 + $0x1d0] sm:$0xff]   ;;  %v4508_v5 = vld [vmem:[%s5482_s1 + $0x1d8] sm:$0xff]  }
  0x68   : > { %3796 = vmatprep.mubr.bf16.mxu1 %v4679_v48  ;;  %4004 = vmatprep.mubr.bf16.mxu0 %v5049_v18 }
  0x69   : > { %3826 = vmatprep.subr.bf16.mxu1 %v4494_v46 }
  0x6b   : > { %3827 = vmatpush3.bf16.msra.mxu1 %v4494_v46  ;;  %v1240_v46 = vrot.slane %v4979_v12, 1  ;;  %v4503_v12 = vld [vmem:[%s5482_s1 + $0xa8] sm:$0xff]  }
  0x6c   : > { %3828 = vmatprep.subr.bf16.mxu1 %v4496_v32 }
  0x6d   : > { %v5089_v51 = vsel %vm1193_vm4, %v1239_v54, %v1240_v46  ;;  %v1194_v54 = vrot.slane %v4630_v16, 1  ;;  %v1195_v46 = vrot.slane %v4634_v17, 1  ;;  %v4518_v17 = vld [vmem:[%s5482_s1 + $0x200] sm:$0xff]  }
  0x6e   : > { %3797 = vmatmul.mubr.bf16.gmra.mrb[4].mxu1 %v4698_v6 }
  0x6f   : > { %4005 = vmatmul.mubr.bf16.gmra.mrb[20].mxu0 %v5066_v60  ;;  %3800 = vmatprep.mubr.bf16.mxu1 %v4719_v19 }
  0x70   : > { %4008 = vmatprep.mubr.bf16.mxu0 %v5072_v29  ;;  %3829 = vmatpush3.bf16.msra.mxu1 %v4496_v32  ;;  %v5097_v32 = vsel %vm4623_vm2, %v426_v1, 0  ;;  %v4509_v1 = vld [vmem:[%s5482_s1 + $0xc0] sm:$0xff]  }
  0x71   : > { %3830 = vmatprep.subr.bf16.mxu1 %v4498_v10  ;;  %v2048_v9 = vrot.slane %v5097_v32, 1 }
  0x73   : > { %v5112_v44 = vsel %vm1193_vm4, %v2047_v34, %v2048_v9  ;;  %v4516_v34 = vld [vmem:[%s5482_s1 + $0x1f8] sm:$0xff]   ;;  %v4511_v9 = vld [vmem:[%s5482_s1 + $0xc8] sm:$0xff]  }
  0x74   : > { %3831 = vmatpush3.bf16.msra.mxu1 %v4498_v10  ;;  %v4507_v10 = vld [vmem:[%s5482_s1 + $0xb8] sm:$0xff]  }
  0x75   : > { %3832 = vmatprep.subr.bf16.mxu1 %v4501_v38 }
  0x76   : > { %3801 = vmatmul.mubr.bf16.gmra.mrb[8].mxu1 %v4746_v47 }
  0x77   : > { %4009 = vmatmul.mubr.bf16.gmra.mrb[24].mxu0 %v5086_v33  ;;  %3804 = vmatprep.mubr.bf16.mxu1 %v4764_v58 }
  0x78   : > { %4012 = vmatprep.mubr.bf16.mxu0 %v5089_v51  ;;  %3833 = vmatpush3.bf16.msra.mxu1 %v4501_v38  ;;  %v4512_v38 = vld [vmem:[%s5482_s1 + $0x1e8] sm:$0xff]  }
  0x79   : > { %3834 = vmatprep.subr.bf16.mxu1 %v4503_v12 }
  0x7c   : > { %3835 = vmatpush3.bf16.msra.mxu1 %v4503_v12  ;;  %v5158_v12 = vsel %vm1193_vm4, %v1194_v54, %v1195_v46 }
  0x7d   : > { %3836 = vmatprep.subr.bf16.mxu1 %v4505_v14 }
  0x7e   : > { %3805 = vmatmul.mubr.bf16.gmra.mrb[12].mxu1 %v4783_v20 }
  0x7f   : > { %4013 = vmatmul.mubr.bf16.gmra.mrb[28].mxu0 %v5112_v44  ;;  %3808 = vmatprep.mubr.bf16.mxu1 %v4808_v35 }
  0x80   : > { %4032 = vmatprep.mubr.bf16.mxu0 %v4679_v48  ;;  %3837 = vmatpush3.bf16.msra.mxu1 %v4505_v14  ;;  %v4513_v14 = vld [vmem:[%s5482_s1 + $0xd0] sm:$0xff]  }
  0x81   : > { %3838 = vmatprep.subr.bf16.mxu1 %v4507_v10 }
  0x84   : > { %3839 = vmatpush3.bf16.msra.mxu1 %v4507_v10  ;;  %v4515_v10 = vld [vmem:[%s5482_s1 + $0xd8] sm:$0xff]  }
  0x85   : > { %3872 = vmatprep.subr.bf16.mxu1 %v4509_v1 }
  0x86   : > { %3809 = vmatmul.mubr.bf16.gmra.mrb[16].mxu1 %v4840_v13 }
  0x87   : > { %4033 = vmatmul.mubr.bf16.vlgmr.msra.gmra.mrb[0].mxu0 %v4698_v6  ;;  %3812 = vmatprep.mubr.bf16.mxu1 %v4863_v31 }
  0x88   : > { %4065 = vmatpush3.bf16.msra.mxu0 %v5040_v42  ;;  %4036 = vmatprep.mubr.bf16.mxu0 %v4719_v19  ;;  %v4510_v42 = vld [vmem:[%s5482_s1 + $0x1e0] sm:$0xff]  }
  0x89   : > { %4066 = vmatprep.subr.bf16.mxu0 %v4504_v0 }
  0x8c   : > { %4067 = vmatpush3.bf16.msra.mxu0 %v4504_v0  ;;  %v4521_v0 = vld [vmem:[%s5482_s1 + $0xf0] sm:$0xff]  }
  0x8d   : > { %4068 = vmatprep.subr.bf16.mxu0 %v4506_v57 }
  0x8e   : > { %3813 = vmatmul.mubr.bf16.gmra.mrb[20].mxu1 %v4881_v55 }
  0x8f   : > { %4037 = vmatmul.mubr.bf16.gmra.mrb[4].mxu0 %v4746_v47  ;;  %3816 = vmatprep.mubr.bf16.mxu1 %v4926_v56 }
  0x90   : > { %4040 = vmatprep.mubr.bf16.mxu0 %v4764_v58  ;;  %4069 = vmatpush3.bf16.msra.mxu0 %v4506_v57  ;;  %v4523_v57 = vld [vmem:[%s5482_s1 + $0xf8] sm:$0xff]  }
  0x91   : > { %4070 = vmatprep.subr.bf16.mxu0 %v4508_v5 }
  0x94   : > { %4071 = vmatpush3.bf16.msra.mxu0 %v4508_v5  ;;  %v4520_v5 = vld [vmem:[%s5482_s1 + $0x208] sm:$0xff]  }
  0x95   : > { %4072 = vmatprep.subr.bf16.mxu0 %v4510_v42 }
  0x96   : > { %3817 = vmatmul.mubr.bf16.gmra.mrb[24].mxu1 %v4948_v4 }
  0x97   : > { %4041 = vmatmul.mubr.bf16.gmra.mrb[8].mxu0 %v4783_v20  ;;  %3820 = vmatprep.mubr.bf16.mxu1 %v4967_v28 }
  0x98   : > { %4044 = vmatprep.mubr.bf16.mxu0 %v4808_v35  ;;  %4073 = vmatpush3.bf16.msra.mxu0 %v4510_v42  ;;  %v4529_v42 = vld [vmem:[%s5482_s1 + $0x100] sm:$0xff]  }
  0x99   : > { %4074 = vmatprep.subr.bf16.mxu0 %v4512_v38 }
  0x9c   : > { %4075 = vmatpush3.bf16.msra.mxu0 %v4512_v38 }
  0x9d   : > { %4076 = vmatprep.subr.bf16.mxu0 %v4514_v63 }
  0x9e   : > { %3821 = vmatmul.mubr.bf16.gmra.mrb[28].mxu1 %v4989_v25 }
  0x9f   : > { %4045 = vmatmul.mubr.bf16.gmra.mrb[12].mxu0 %v4840_v13  ;;  %3840 = vmatprep.mubr.bf16.mxu1 %v5158_v12 }
  0xa0   : > { %4048 = vmatprep.mubr.bf16.mxu0 %v4863_v31  ;;  %4077 = vmatpush3.bf16.msra.mxu0 %v4514_v63  ;;  %v4532_v63 = vld [vmem:[%s5482_s1 + $0x118] sm:$0xff]  }
  0xa1   : > { %4078 = vmatprep.subr.bf16.mxu0 %v4516_v34 }
  0xa4   : > { %4079 = vmatpush3.bf16.msra.mxu0 %v4516_v34 }
  0xa5   : > { %4112 = vmatprep.subr.bf16.mxu0 %v4518_v17 }
  0xa6   : > { %3841 = vmatmul.mubr.bf16.vlgmr.msra.gmra.mrb[0].mxu1 %v4832_v7  ;;  %v4517_v7 = vld [vmem:[%s5482_s1 + $0xe0] sm:$0xff]  }
  0xa7   : > { %4049 = vmatmul.mubr.bf16.gmra.mrb[16].mxu0 %v4881_v55  ;;  %3873 = vmatpush3.bf16.msra.mxu1 %v4509_v1  ;;  %v4519_v1 = vld [vmem:[%s5482_s1 + $0xe8] sm:$0xff]  }
  0xa8   : > { %3844 = vmatprep.mubr.bf16.mxu1 %v4877_v50  ;;  %4052 = vmatprep.mubr.bf16.mxu0 %v4926_v56 }
  0xa9   : > { %3874 = vmatprep.subr.bf16.mxu1 %v4511_v9 }
  0xab   : > { %3875 = vmatpush3.bf16.msra.mxu1 %v4511_v9 }
  0xac   : > { %3876 = vmatprep.subr.bf16.mxu1 %v4513_v14 }
  0xae   : > { %3845 = vmatmul.mubr.bf16.gmra.mrb[4].mxu1 %v4896_v8 }
  0xaf   : > { %4053 = vmatmul.mubr.bf16.gmra.mrb[20].mxu0 %v4948_v4  ;;  %3848 = vmatprep.mubr.bf16.mxu1 %v4917_v37 }
  0xb0   : > { %4056 = vmatprep.mubr.bf16.mxu0 %v4967_v28  ;;  %3877 = vmatpush3.bf16.msra.mxu1 %v4513_v14 }
  0xb1   : > { %3878 = vmatprep.subr.bf16.mxu1 %v4515_v10 }
  0xb4   : > { %3879 = vmatpush3.bf16.msra.mxu1 %v4515_v10 }
  0xb5   : > { %3880 = vmatprep.subr.bf16.mxu1 %v4517_v7 }
  0xb6   : > { %3849 = vmatmul.mubr.bf16.gmra.mrb[8].mxu1 %v4940_v52 }
  0xb7   : > { %4057 = vmatmul.mubr.bf16.gmra.mrb[24].mxu0 %v4989_v25  ;;  %3852 = vmatprep.mubr.bf16.mxu1 %v4993_v26 }
  0xb8   : > { %4060 = vmatprep.mubr.bf16.mxu0 %v5093_v21  ;;  %3881 = vmatpush3.bf16.msra.mxu1 %v4517_v7 }
  0xb9   : > { %3882 = vmatprep.subr.bf16.mxu1 %v4519_v1 }
  0xbc   : > { %3883 = vmatpush3.bf16.msra.mxu1 %v4519_v1 }
  0xbd   : > { %3884 = vmatprep.subr.bf16.mxu1 %v4521_v0 }
  0xbe   : > { %3853 = vmatmul.mubr.bf16.gmra.mrb[12].mxu1 %v4998_v45 }
  0xbf   : > { %4061 = vmatmul.mubr.bf16.gmra.mrb[28].mxu0 %v4630_v16  ;;  %3856 = vmatprep.mubr.bf16.mxu1 %v5021_v49  ;;  %v4522_v16 = vld [vmem:[%s5482_s1 + $0x210] sm:$0xff]  }
  0xc0   : > { %4080 = vmatprep.mubr.bf16.mxu0 %v4709_v11  ;;  %3885 = vmatpush3.bf16.msra.mxu1 %v4521_v0  ;;  %v4524_v11 = vld [vmem:[%s5482_s1 + $0x218] sm:$0xff]  }
  0xc1   : > { %3886 = vmatprep.subr.bf16.mxu1 %v4523_v57 }
  0xc4   : > { %3887 = vmatpush3.bf16.msra.mxu1 %v4523_v57 }
  0xc5   : > { %4160 = vmatprep.subr.bf16.mxu1 %v4529_v42 }
  0xc6   : > { %3857 = vmatmul.mubr.bf16.gmra.mrb[16].mxu1 %v5024_v62 }
  0xc7   : > { %4081 = vmatmul.mubr.bf16.vlgmr.msra.gmra.mrb[0].mxu0 %v4737_v41  ;;  %3860 = vmatprep.mubr.bf16.mxu1 %v5043_v36  ;;  %v4525_v41 = vld [vmem:[%s5482_s1 + $0x220] sm:$0xff]  }
  0xc8   : > { %4113 = vmatpush3.bf16.msra.mxu0 %v4518_v17  ;;  %4084 = vmatprep.mubr.bf16.mxu0 %v4755_v53  ;;  %v4526_v53 = vld [vmem:[%s5482_s1 + $0x228] sm:$0xff]  }
  0xc9   : > { %4114 = vmatprep.subr.bf16.mxu0 %v4520_v5 }
  0xcc   : > { %4115 = vmatpush3.bf16.msra.mxu0 %v4520_v5 }
  0xcd   : > { %4116 = vmatprep.subr.bf16.mxu0 %v4522_v16 }
  0xce   : > { %3861 = vmatmul.mubr.bf16.gmra.mrb[20].mxu1 %v5049_v18 }
  0xcf   : > { %4085 = vmatmul.mubr.bf16.gmra.mrb[4].mxu0 %v4790_v23  ;;  %3864 = vmatprep.mubr.bf16.mxu1 %v5066_v60  ;;  %v4527_v23 = vld [vmem:[%s5482_s1 + $0x230] sm:$0xff]  }
  0xd0   : > { %4088 = vmatprep.mubr.bf16.mxu0 %v4801_v30  ;;  %4117 = vmatpush3.bf16.msra.mxu0 %v4522_v16  ;;  %v4528_v30 = vld [vmem:[%s5482_s1 + $0x238] sm:$0xff]  }
  0xd1   : > { %4118 = vmatprep.subr.bf16.mxu0 %v4524_v11 }
  0xd4   : > { %4119 = vmatpush3.bf16.msra.mxu0 %v4524_v11 }
  0xd5   : > { %4120 = vmatprep.subr.bf16.mxu0 %v4525_v41 }
  0xd6   : > { %3865 = vmatmul.mubr.bf16.gmra.mrb[24].mxu1 %v5072_v29 }
  0xd7   : > { %4089 = vmatmul.mubr.bf16.gmra.mrb[8].mxu0 %v4823_v59  ;;  %3868 = vmatprep.mubr.bf16.mxu1 %v5086_v33  ;;  %v4530_v59 = vld [vmem:[%s5482_s1 + $0x108] sm:$0xff]  }
  0xd8   : > { %4092 = vmatprep.mubr.bf16.mxu0 %v4848_v22  ;;  %4121 = vmatpush3.bf16.msra.mxu0 %v4525_v41  ;;  %v4531_v22 = vld [vmem:[%s5482_s1 + $0x110] sm:$0xff]  }
  0xd9   : > { %4122 = vmatprep.subr.bf16.mxu0 %v4526_v53 }
  0xdc   : > { %4123 = vmatpush3.bf16.msra.mxu0 %v4526_v53 }
  0xdd   : > { %4124 = vmatprep.subr.bf16.mxu0 %v4527_v23 }
  0xde   : > { %3869 = vmatmul.mubr.bf16.gmra.mrb[28].mxu1 %v5089_v51 }
  0xdf   : > { %4093 = vmatmul.mubr.bf16.gmra.mrb[12].mxu0 %v4893_v3  ;;  %3888 = vmatprep.mubr.bf16.mxu1 %v4663_v40  ;;  %v1777_v40 = vshll.u32 %v5093_v21, 16 }
  0xe0   : > { %4096 = vmatprep.mubr.bf16.mxu0 %v4901_v27  ;;  %4125 = vmatpush3.bf16.msra.mxu0 %v4527_v23 }
  0xe1   : > { %4126 = vmatprep.subr.bf16.mxu0 %v4528_v30  ;;  %v1779_v38 = vrot.slane %v1777_v40, 1 }
  0xe4   : > { %4127 = vmatpush3.bf16.msra.mxu0 %v4528_v30 }
  0xe6   : > { %3889 = vmatmul.mubr.bf16.vlgmr.msra.gmra.mrb[0].mxu1 %v4679_v48  ;;  %v1775_v48 = vshrl.u32 %v5093_v21, 16 }
  0xe7   : > { %4097 = vmatmul.mubr.bf16.gmra.mrb[16].mxu0 %v4944_v2  ;;  %4168 = vmatpush3.bf16.msra.mxu1 %v4529_v42 }
  0xe8   : > { %3892 = vmatprep.mubr.bf16.mxu1 %v4698_v6  ;;  %4100 = vmatprep.mubr.bf16.mxu0 %v4971_v15  ;;  %v1782_v6 = vshll.u32 %v5097_v32, 16  ;;  %v1780_v54 = vor.u32 %v1779_v38, %v1775_v48  ;;  %v4535_v32 = vld [vmem:[%s5482_s1 + $0x130] sm:$0xff]  }
  0xe9   : > { %4161 = vmatprep.subr.bf16.mxu1 %v4530_v59 }
  0xea   : > { %v1784_v46 = vrot.slane %v1782_v6, 1 }
  0xeb   : > { %4169 = vmatpush3.bf16.msra.mxu1 %v4530_v59 }
  0xec   : > { %4162 = vmatprep.subr.bf16.mxu1 %v4531_v22  ;;  %v1785_v34 = vsel %vm517_vm3, %v1780_v54, %v1784_v46 }
  0xee   : > { %3893 = vmatmul.mubr.bf16.gmra.mrb[4].mxu1 %v4719_v19  ;;  %v4533_v19 = vld [vmem:[%s5482_s1 + $0x120] sm:$0xff]  }
  0xef   : > { %4101 = vmatmul.mubr.bf16.gmra.mrb[20].mxu0 %v4985_v43  ;;  %3896 = vmatprep.mubr.bf16.mxu1 %v4746_v47  ;;  %v4534_v47 = vld [vmem:[%s5482_s1 + $0x128] sm:$0xff]  }
  0xf0   : > { %4104 = vmatprep.mubr.bf16.mxu0 %v5005_v61  ;;  %4170 = vmatpush3.bf16.msra.mxu1 %v4531_v22 }
  0xf1   : > { %4163 = vmatprep.subr.bf16.mxu1 %v4532_v63 }
  0xf4   : > { %4171 = vmatpush3.bf16.msra.mxu1 %v4532_v63 }
  0xf5   : > { %4164 = vmatprep.subr.bf16.mxu1 %v4533_v19 }
  0xf6   : > { %3897 = vmatmul.mubr.bf16.gmra.mrb[8].mxu1 %v4764_v58  ;;  %v4536_v58 = vld [vmem:[%s5482_s1 + $0x138] sm:$0xff]  }
  0xf7   : > { %4105 = vmatmul.mubr.bf16.gmra.mrb[24].mxu0 %v5018_v24  ;;  %3900 = vmatprep.mubr.bf16.mxu1 %v4783_v20 }
  0xf8   : > { %4108 = vmatprep.mubr.bf16.mxu0 %v1785_v34  ;;  %4172 = vmatpush3.bf16.msra.mxu1 %v4533_v19 }
  0xf9   : > { %4165 = vmatprep.subr.bf16.mxu1 %v4534_v47 }
  0xfc   : > { %4173 = vmatpush3.bf16.msra.mxu1 %v4534_v47 }
  0xfd   : > { %4166 = vmatprep.subr.bf16.mxu1 %v4535_v32 }
  0xfe   : > { %3901 = vmatmul.mubr.bf16.gmra.mrb[12].mxu1 %v4808_v35 }
  0xff   : > { %4109 = vmatmul.mubr.bf16.gmra.mrb[28].mxu0 %v4659_v39  ;;  %3904 = vmatprep.mubr.bf16.mxu1 %v4840_v13 }
 0x100   : > { %4128 = vmatprep.mubr.bf16.mxu0 %v4877_v50  ;;  %4174 = vmatpush3.bf16.msra.mxu1 %v4535_v32 }
 0x101   : > { %4167 = vmatprep.subr.bf16.mxu1 %v4536_v58 }
 0x104   : > { %4175 = vmatpush3.bf16.msra.mxu1 %v4536_v58 }
 0x106   : > { %3905 = vmatmul.mubr.bf16.gmra.mrb[16].mxu1 %v4863_v31 }
 0x107   : > { %4129 = vmatmul.mubr.bf16.vlgmr.msra.gmra.mrb[0].mxu0 %v4896_v8  ;;  %3908 = vmatprep.mubr.bf16.mxu1 %v4881_v55 }
 0x108   : > { %4132 = vmatprep.mubr.bf16.mxu0 %v4917_v37 }
 0x10e   : > { %3909 = vmatmul.mubr.bf16.gmra.mrb[20].mxu1 %v4926_v56 }
 0x10f   : > { %4133 = vmatmul.mubr.bf16.gmra.mrb[4].mxu0 %v4940_v52  ;;  %3912 = vmatprep.mubr.bf16.mxu1 %v4948_v4 }
 0x110   : > { %4136 = vmatprep.mubr.bf16.mxu0 %v4993_v26 }
 0x116   : > { %3913 = vmatmul.mubr.bf16.gmra.mrb[24].mxu1 %v4967_v28 }
 0x117   : > { %4137 = vmatmul.mubr.bf16.gmra.mrb[8].mxu0 %v4998_v45  ;;  %3916 = vmatprep.mubr.bf16.mxu1 %v4989_v25  ;;  %v5336_v45 = vld [vmem:[%s5484_s3] ss:$0 sm:$0xff] }
 0x118   : > { %4140 = vmatprep.mubr.bf16.mxu0 %v5021_v49 }
 0x11e   : > { %3917 = vmatmul.mubr.bf16.gmra.mrb[28].mxu1 %v5093_v21 }
 0x11f   : > { %4141 = vmatmul.mubr.bf16.gmra.mrb[12].mxu0 %v5024_v62  ;;  %3952 = vmatprep.mubr.bf16.mxu1 %v4893_v3 }
 0x120   : > { %4144 = vmatprep.mubr.bf16.mxu0 %v5043_v36 }
 0x126   : > { %3953 = vmatmul.mubr.bf16.vlgmr.msra.gmra.mrb[16].mxu1 %v4901_v27 }
 0x127   : > { %4145 = vmatmul.mubr.bf16.gmra.mrb[16].mxu0 %v5049_v18  ;;  %3956 = vmatprep.mubr.bf16.mxu1 %v4944_v2 }
 0x128   : > { %4148 = vmatprep.mubr.bf16.mxu0 %v5066_v60 }
 0x12e   : > { %3957 = vmatmul.mubr.bf16.gmra.mrb[20].mxu1 %v4971_v15 }
 0x12f   : > { %4149 = vmatmul.mubr.bf16.gmra.mrb[20].mxu0 %v5072_v29  ;;  %3960 = vmatprep.mubr.bf16.mxu1 %v4985_v43  ;;  %v5331_v43 = vld [vmem:[%s5483_s2] ss:$0 sm:$0xff] }
 0x130   : > { %4152 = vmatprep.mubr.bf16.mxu0 %v5086_v33 }
 0x136   : > { %3961 = vmatmul.mubr.bf16.gmra.mrb[24].mxu1 %v5005_v61 }
 0x137   : > { %4153 = vmatmul.mubr.bf16.gmra.mrb[24].mxu0 %v5089_v51  ;;  %3964 = vmatprep.mubr.bf16.mxu1 %v5018_v24 }
 0x138   : > { %4156 = vmatprep.mubr.bf16.mxu0 %v5112_v44 }
 0x13e   : > { %3965 = vmatmul.mubr.bf16.gmra.mrb[28].mxu1 %v1785_v34 }
 0x13f   : > { %4157 = vmatmul.mubr.bf16.gmra.mrb[28].mxu0 %v5158_v12 }
 0x1b9   : > { %v3890_v39 = vpop.f32.mrb[0].mxu1 }
 0x1ba   : > { %v1615_v20 = vpop.f32.mrb[1].mxu1 }
 0x1bb   : > { %v3891_v35 = vpop.f32.mrb[2].mxu1 }
 0x1bc   : > { %v1618_v13 = vpop.f32.mrb[3].mxu1 }
 0x1c1   : > { %v3894_v31 = vpop.f32.mrb[4].mxu1 }
 0x1c2   : > { %v1631_v50 = vpop.f32.mrb[5].mxu1 }
 0x1c3   : > { %v3895_v55 = vpop.f32.mrb[6].mxu1 }
 0x1c4   : > { %v1634_v3 = vpop.f32.mrb[7].mxu1 }
 0x1c9   : > { %v3898_v8 = vpop.f32.mrb[8].mxu1 }
 0x1ca   : > { %v1647_v27 = vpop.f32.mrb[9].mxu1 }
 0x1cb   : > { %v5316_v37 = vpop.f32.mrb[10].mxu1 }
 0x1cc   : > { %v5318_v56 = vpop.f32.mrb[11].mxu1 }
 0x1d1   : > { %v5320_v52 = vpop.f32.mrb[12].mxu1 }
 0x1d2   : > { %v5322_v2 = vpop.f32.mrb[13].mxu1 }
 0x1d3   : > { %v5324_v4 = vpop.f32.mrb[14].mxu1 }
 0x1d4   : > { %v5326_v28 = vpop.f32.mrb[15].mxu1 }
 0x1da   : > { %v4130_v15 = vpop.f32.mrb[0].mxu0 }
 0x1db   : > { %v4176_v25 = vadd.f32 %v4130_v15, %v3890_v39  ;;  %v2924_v26 = vpop.f32.mrb[1].mxu0 }
 0x1dc   : > { %v4177_v61 = vadd.f32 %v2924_v26, %v1615_v20  ;;  %v4131_v24 = vpop.f32.mrb[2].mxu0 }
 0x1dd   : > { %v3092_v49 = vmul.f32 %v4176_v25, %v5331_v43  ;;  %v4178_v62 = vadd.f32 %v4131_v24, %v3891_v35  ;;  %v2927_v36 = vpop.f32.mrb[3].mxu0 }
 0x1de   : > { %v3090_v18 = vmul.f32 %v4177_v61, %v5331_v43  ;;  %v4179_v60 = vadd.f32 %v2927_v36, %v1618_v13 }
 0x1df   : > { %v3131_v29 = vadd.f32 %v5336_v45, %v3092_v49  ;;  %v3093_v33 = vmul.f32 %v4178_v62, %v5331_v43 }
 0x1e0   : > { %v3129_v51 = vadd.f32 %v5336_v45, %v3090_v18  ;;  %v3091_v21 = vmul.f32 %v4179_v60, %v5331_v43 }
 0x1e1   : > { %v3163_v44 = vmax.f32 %v3131_v29, 0.0  ;;  %v3132_v12 = vadd.f32 %v5336_v45, %v3093_v33 }
 0x1e2   : > { %v3161_v17 = vmax.f32 %v3129_v51, 0.0  ;;  %v3130_v9 = vadd.f32 %v5336_v45, %v3091_v21  ;;  %v4134_v14 = vpop.f32.mrb[4].mxu0 }
 0x1e3   : > { %3196 = vst.msk [vmem:[%s5346_s22 + $0x10] sm:$0xff] %vm3193_vm5, %v3163_v44  ;;  %v3164_v10 = vmax.f32 %v3132_v12, 0.0  ;;  %v4180_v7 = vadd.f32 %v4134_v14, %v3894_v31  ;;  %v2940_v1 = vpop.f32.mrb[5].mxu0 }
 0x1e4   : > { %3194 = vst.msk [vmem:[%s5346_s22] sm:$0xff] %vm3193_vm5, %v3161_v17  ;;  %v3162_v0 = vmax.f32 %v3130_v9, 0.0  ;;  %v4181_v57 = vadd.f32 %v2940_v1, %v1631_v50  ;;  %v4135_v5 = vpop.f32.mrb[6].mxu0 }
 0x1e5   : > { %3197 = vst.msk [vmem:[%s5346_s22 + $0x18] sm:$0xff] %vm3193_vm5, %v3164_v10  ;;  %v3096_v42 = vmul.f32 %v4180_v7, %v5331_v43  ;;  %v4182_v16 = vadd.f32 %v4135_v5, %v3895_v55  ;;  %v2943_v11 = vpop.f32.mrb[7].mxu0 }
 0x1e6   : > { %3195 = vst.msk [vmem:[%s5346_s22 + $0x8] sm:$0xff] %vm3193_vm5, %v3162_v0  ;;  %v3094_v41 = vmul.f32 %v4181_v57, %v5331_v43  ;;  %v4183_v53 = vadd.f32 %v2943_v11, %v1634_v3 }
 0x1e7   : > { %v3135_v23 = vadd.f32 %v5336_v45, %v3096_v42  ;;  %v3097_v30 = vmul.f32 %v4182_v16, %v5331_v43 }
 0x1e8   : > { %v3133_v59 = vadd.f32 %v5336_v45, %v3094_v41  ;;  %v3095_v40 = vmul.f32 %v4183_v53, %v5331_v43 }
 0x1e9   : > { %v3167_v22 = vmax.f32 %v3135_v23, 0.0  ;;  %v3136_v48 = vadd.f32 %v5336_v45, %v3097_v30 }
 0x1ea   : > { %v3165_v38 = vmax.f32 %v3133_v59, 0.0  ;;  %v3134_v6 = vadd.f32 %v5336_v45, %v3095_v40  ;;  %v4138_v54 = vpop.f32.mrb[8].mxu0 }
 0x1eb   : > { %3200 = vst.msk [vmem:[%s5346_s22 + $0x30] sm:$0xff] %vm3193_vm5, %v3167_v22  ;;  %v3168_v46 = vmax.f32 %v3136_v48, 0.0  ;;  %v4184_v63 = vadd.f32 %v4138_v54, %v3898_v8  ;;  %v2956_v34 = vpop.f32.mrb[9].mxu0 }
 0x1ec   : > { %3198 = vst.msk [vmem:[%s5346_s22 + $0x20] sm:$0xff] %vm3193_vm5, %v3165_v38  ;;  %v3166_v19 = vmax.f32 %v3134_v6, 0.0  ;;  %v4185_v47 = vadd.f32 %v2956_v34, %v1647_v27  ;;  %v4139_v32 = vpop.f32.mrb[10].mxu0 }
 0x1ed   : > { %3201 = vst.msk [vmem:[%s5346_s22 + $0x38] sm:$0xff] %vm3193_vm5, %v3168_v46  ;;  %v3100_v58 = vmul.f32 %v4184_v63, %v5331_v43  ;;  %v4186_v39 = vadd.f32 %v4139_v32, %v5316_v37  ;;  %v2959_v20 = vpop.f32.mrb[11].mxu0 }
 0x1ee   : > { %3199 = vst.msk [vmem:[%s5346_s22 + $0x28] sm:$0xff] %vm3193_vm5, %v3166_v19  ;;  %v3098_v35 = vmul.f32 %v4185_v47, %v5331_v43  ;;  %v4187_v13 = vadd.f32 %v2959_v20, %v5318_v56 }
 0x1ef   : > { %v3139_v31 = vadd.f32 %v5336_v45, %v3100_v58  ;;  %v3101_v50 = vmul.f32 %v4186_v39, %v5331_v43 }
 0x1f0   : > { %v3137_v55 = vadd.f32 %v5336_v45, %v3098_v35  ;;  %v3099_v3 = vmul.f32 %v4187_v13, %v5331_v43 }
 0x1f1   : > { %v3171_v8 = vmax.f32 %v3139_v31, 0.0  ;;  %v3140_v27 = vadd.f32 %v5336_v45, %v3101_v50 }
 0x1f2   : > { %v3169_v37 = vmax.f32 %v3137_v55, 0.0  ;;  %v3138_v15 = vadd.f32 %v5336_v45, %v3099_v3  ;;  %v4142_v25 = vpop.f32.mrb[12].mxu0 }
 0x1f3   : > { %3204 = vst.msk [vmem:[%s5346_s22 + $0x50] sm:$0xff] %vm3193_vm5, %v3171_v8  ;;  %v3172_v56 = vmax.f32 %v3140_v27, 0.0  ;;  %v4188_v26 = vadd.f32 %v4142_v25, %v5320_v52  ;;  %v2972_v61 = vpop.f32.mrb[13].mxu0 }
 0x1f4   : > { %3202 = vst.msk [vmem:[%s5346_s22 + $0x40] sm:$0xff] %vm3193_vm5, %v3169_v37  ;;  %v3170_v24 = vmax.f32 %v3138_v15, 0.0  ;;  %v4189_v49 = vadd.f32 %v2972_v61, %v5322_v2  ;;  %v4143_v62 = vpop.f32.mrb[14].mxu0 }
 0x1f5   : > { %3205 = vst.msk [vmem:[%s5346_s22 + $0x58] sm:$0xff] %vm3193_vm5, %v3172_v56  ;;  %v3104_v36 = vmul.f32 %v4188_v26, %v5331_v43  ;;  %v4190_v18 = vadd.f32 %v4143_v62, %v5324_v4  ;;  %v2975_v60 = vpop.f32.mrb[15].mxu0 }
 0x1f6   : > { %3203 = vst.msk [vmem:[%s5346_s22 + $0x48] sm:$0xff] %vm3193_vm5, %v3170_v24  ;;  %v3102_v29 = vmul.f32 %v4189_v49, %v5331_v43  ;;  %v4191_v52 = vadd.f32 %v2975_v60, %v5326_v28 }
 0x1f7   : > { %v3143_v33 = vadd.f32 %v5336_v45, %v3104_v36  ;;  %v3105_v2 = vmul.f32 %v4190_v18, %v5331_v43 }
 0x1f8   : > { %v3141_v51 = vadd.f32 %v5336_v45, %v3102_v29  ;;  %v3103_v21 = vmul.f32 %v4191_v52, %v5331_v43 }
 0x1f9   : > { %v3175_v44 = vmax.f32 %v3143_v33, 0.0  ;;  %v3144_v4 = vadd.f32 %v5336_v45, %v3105_v2  ;;  %v3954_v12 = vpop.f32.mrb[16].mxu1 }
 0x1fa   : > { %v3173_v17 = vmax.f32 %v3141_v51, 0.0  ;;  %v3142_v9 = vadd.f32 %v5336_v45, %v3103_v21  ;;  %v4146_v14 = vpop.f32.mrb[16].mxu0  ;;  %v1950_v28 = vpop.f32.mrb[17].mxu1 }
 0x1fb   : > { %3208 = vst.msk [vmem:[%s5346_s22 + $0x70] sm:$0xff] %vm3193_vm5, %v3175_v44  ;;  %v3176_v10 = vmax.f32 %v3144_v4, 0.0  ;;  %v4192_v7 = vadd.f32 %v4146_v14, %v3954_v12  ;;  %v2988_v1 = vpop.f32.mrb[17].mxu0  ;;  %v3955_v0 = vpop.f32.mrb[18].mxu1 }
 0x1fc   : > { %3206 = vst.msk [vmem:[%s5346_s22 + $0x60] sm:$0xff] %vm3193_vm5, %v3173_v17  ;;  %v3174_v57 = vmax.f32 %v3142_v9, 0.0  ;;  %v4193_v5 = vadd.f32 %v2988_v1, %v1950_v28  ;;  %v4147_v42 = vpop.f32.mrb[18].mxu0  ;;  %v1953_v16 = vpop.f32.mrb[19].mxu1 }
 0x1fd   : > { %3209 = vst.msk [vmem:[%s5346_s22 + $0x78] sm:$0xff] %vm3193_vm5, %v3176_v10  ;;  %v3108_v11 = vmul.f32 %v4192_v7, %v5331_v43  ;;  %v4194_v41 = vadd.f32 %v4147_v42, %v3955_v0  ;;  %v2991_v53 = vpop.f32.mrb[19].mxu0 }
 0x1fe   : > { %3207 = vst.msk [vmem:[%s5346_s22 + $0x68] sm:$0xff] %vm3193_vm5, %v3174_v57  ;;  %v3106_v23 = vmul.f32 %v4193_v5, %v5331_v43  ;;  %v4195_v30 = vadd.f32 %v2991_v53, %v1953_v16 }
 0x1ff   : > { %v3147_v59 = vadd.f32 %v5336_v45, %v3108_v11  ;;  %v3109_v40 = vmul.f32 %v4194_v41, %v5331_v43 }
 0x200   : > { %v3145_v22 = vadd.f32 %v5336_v45, %v3106_v23  ;;  %v3107_v48 = vmul.f32 %v4195_v30, %v5331_v43 }
 0x201   : > { %v3179_v38 = vmax.f32 %v3147_v59, 0.0  ;;  %v3148_v6 = vadd.f32 %v5336_v45, %v3109_v40  ;;  %v3958_v54 = vpop.f32.mrb[20].mxu1 }
 0x202   : > { %v3177_v46 = vmax.f32 %v3145_v22, 0.0  ;;  %v3146_v63 = vadd.f32 %v5336_v45, %v3107_v48  ;;  %v4150_v34 = vpop.f32.mrb[20].mxu0  ;;  %v1966_v19 = vpop.f32.mrb[21].mxu1 }
 0x203   : > { %3212 = vst.msk [vmem:[%s5346_s22 + $0x90] sm:$0xff] %vm3193_vm5, %v3179_v38  ;;  %v3180_v47 = vmax.f32 %v3148_v6, 0.0  ;;  %v4196_v32 = vadd.f32 %v4150_v34, %v3958_v54  ;;  %v3004_v58 = vpop.f32.mrb[21].mxu0  ;;  %v3959_v39 = vpop.f32.mrb[22].mxu1 }
 0x204   : > { %3210 = vst.msk [vmem:[%s5346_s22 + $0x80] sm:$0xff] %vm3193_vm5, %v3177_v46  ;;  %v3178_v20 = vmax.f32 %v3146_v63, 0.0  ;;  %v4197_v35 = vadd.f32 %v3004_v58, %v1966_v19  ;;  %v4151_v13 = vpop.f32.mrb[22].mxu0  ;;  %v1969_v31 = vpop.f32.mrb[23].mxu1 }
 0x205   : > { %3213 = vst.msk [vmem:[%s5346_s22 + $0x98] sm:$0xff] %vm3193_vm5, %v3180_v47  ;;  %v3112_v50 = vmul.f32 %v4196_v32, %v5331_v43  ;;  %v4198_v55 = vadd.f32 %v4151_v13, %v3959_v39  ;;  %v3007_v3 = vpop.f32.mrb[23].mxu0 }
 0x206   : > { %3211 = vst.msk [vmem:[%s5346_s22 + $0x88] sm:$0xff] %vm3193_vm5, %v3178_v20  ;;  %v3110_v8 = vmul.f32 %v4197_v35, %v5331_v43  ;;  %v4199_v27 = vadd.f32 %v3007_v3, %v1969_v31 }
 0x207   : > { %v3151_v37 = vadd.f32 %v5336_v45, %v3112_v50  ;;  %v3113_v15 = vmul.f32 %v4198_v55, %v5331_v43 }
 0x208   : > { %v3149_v25 = vadd.f32 %v5336_v45, %v3110_v8  ;;  %v3111_v56 = vmul.f32 %v4199_v27, %v5331_v43 }
 0x209   : > { %v3183_v26 = vmax.f32 %v3151_v37, 0.0  ;;  %v3152_v61 = vadd.f32 %v5336_v45, %v3113_v15  ;;  %v3962_v24 = vpop.f32.mrb[24].mxu1 }
 0x20a   : > { %v3181_v49 = vmax.f32 %v3149_v25, 0.0  ;;  %v3150_v62 = vadd.f32 %v5336_v45, %v3111_v56  ;;  %v4154_v36 = vpop.f32.mrb[24].mxu0  ;;  %v1982_v18 = vpop.f32.mrb[25].mxu1 }
 0x20b   : > { %3216 = vst.msk [vmem:[%s5346_s22 + $0xb0] sm:$0xff] %vm3193_vm5, %v3183_v26  ;;  %v3184_v60 = vmax.f32 %v3152_v61, 0.0  ;;  %v4200_v29 = vadd.f32 %v4154_v36, %v3962_v24  ;;  %v3020_v52 = vpop.f32.mrb[25].mxu0  ;;  %v3963_v33 = vpop.f32.mrb[26].mxu1 }
 0x20c   : > { %3214 = vst.msk [vmem:[%s5346_s22 + $0xa0] sm:$0xff] %vm3193_vm5, %v3181_v49  ;;  %v3182_v2 = vmax.f32 %v3150_v62, 0.0  ;;  %v4201_v51 = vadd.f32 %v3020_v52, %v1982_v18  ;;  %v4155_v21 = vpop.f32.mrb[26].mxu0  ;;  %v1985_v44 = vpop.f32.mrb[27].mxu1 }
 0x20d   : > { %3217 = vst.msk [vmem:[%s5346_s22 + $0xb8] sm:$0xff] %vm3193_vm5, %v3184_v60  ;;  %v3116_v4 = vmul.f32 %v4200_v29, %v5331_v43  ;;  %v4202_v12 = vadd.f32 %v4155_v21, %v3963_v33  ;;  %v3023_v17 = vpop.f32.mrb[27].mxu0 }
 0x20e   : > { %3215 = vst.msk [vmem:[%s5346_s22 + $0xa8] sm:$0xff] %vm3193_vm5, %v3182_v2  ;;  %v3114_v9 = vmul.f32 %v4201_v51, %v5331_v43  ;;  %v4203_v14 = vadd.f32 %v3023_v17, %v1985_v44 }
 0x20f   : > { %v3155_v28 = vadd.f32 %v5336_v45, %v3116_v4  ;;  %v3117_v10 = vmul.f32 %v4202_v12, %v5331_v43 }
 0x210   : > { %v3153_v7 = vadd.f32 %v5336_v45, %v3114_v9  ;;  %v3115_v1 = vmul.f32 %v4203_v14, %v5331_v43 }
 0x211   : > { %v3187_v0 = vmax.f32 %v3155_v28, 0.0  ;;  %v3156_v57 = vadd.f32 %v5336_v45, %v3117_v10  ;;  %v3966_v5 = vpop.f32.mrb[28].mxu1 }
 0x212   : > { %v3185_v42 = vmax.f32 %v3153_v7, 0.0  ;;  %v3154_v16 = vadd.f32 %v5336_v45, %v3115_v1  ;;  %v4158_v11 = vpop.f32.mrb[28].mxu0  ;;  %v1998_v41 = vpop.f32.mrb[29].mxu1 }
 0x213   : > { %3220 = vst.msk [vmem:[%s5346_s22 + $0xd0] sm:$0xff] %vm3193_vm5, %v3187_v0  ;;  %v3188_v53 = vmax.f32 %v3156_v57, 0.0  ;;  %v4204_v23 = vadd.f32 %v4158_v11, %v3966_v5  ;;  %v3036_v30 = vpop.f32.mrb[29].mxu0  ;;  %v3967_v59 = vpop.f32.mrb[30].mxu1 }
 0x214   : > { %3218 = vst.msk [vmem:[%s5346_s22 + $0xc0] sm:$0xff] %vm3193_vm5, %v3185_v42  ;;  %v3186_v40 = vmax.f32 %v3154_v16, 0.0  ;;  %v4205_v22 = vadd.f32 %v3036_v30, %v1998_v41  ;;  %v4159_v48 = vpop.f32.mrb[30].mxu0  ;;  %v2001_v38 = vpop.f32.mrb[31].mxu1 }
 0x215   : > { %3221 = vst.msk [vmem:[%s5346_s22 + $0xd8] sm:$0xff] %vm3193_vm5, %v3188_v53  ;;  %v3120_v6 = vmul.f32 %v4204_v23, %v5331_v43  ;;  %v4206_v54 = vadd.f32 %v4159_v48, %v3967_v59  ;;  %v3039_v46 = vpop.f32.mrb[31].mxu0 }
 0x216   : > { %3219 = vst.msk [vmem:[%s5346_s22 + $0xc8] sm:$0xff] %vm3193_vm5, %v3186_v40  ;;  %v3118_v63 = vmul.f32 %v4205_v22, %v5331_v43  ;;  %v4207_v34 = vadd.f32 %v3039_v46, %v2001_v38 }
 0x217   : > { %v3159_v19 = vadd.f32 %v5336_v45, %v3120_v6  ;;  %v3121_v47 = vmul.f32 %v4206_v54, %v5331_v43 }
 0x218   : > { %v3157_v32 = vadd.f32 %v5336_v45, %v3118_v63  ;;  %v3119_v58 = vmul.f32 %v4207_v34, %v5331_v43 }
 0x219   : > { %v3191_v39 = vmax.f32 %v3159_v19, 0.0  ;;  %v3160_v20 = vadd.f32 %v5336_v45, %v3121_v47 }
 0x21a   : > { %v3189_v35 = vmax.f32 %v3157_v32, 0.0  ;;  %v3158_v13 = vadd.f32 %v5336_v45, %v3119_v58 }
 0x21b   : > { %3224 = vst.msk [vmem:[%s5346_s22 + $0xf0] sm:$0xff] %vm3193_vm5, %v3191_v39  ;;  %v3192_v31 = vmax.f32 %v3160_v20, 0.0 }
 0x21c   : > { %3222 = vst.msk [vmem:[%s5346_s22 + $0xe0] sm:$0xff] %vm3193_vm5, %v3189_v35  ;;  %v3190_v50 = vmax.f32 %v3158_v13, 0.0 }
 0x21d   : > { %3225 = vst.msk [vmem:[%s5346_s22 + $0xf8] sm:$0xff] %vm3193_vm5, %v3192_v31 }
 0x21e   : > { %3223 = vst.msk [vmem:[%s5346_s22 + $0xe8] sm:$0xff] %vm3193_vm5, %v3190_v50 }
 0x21f PF: > { %s14_s15 = sadd.s32 1, %s4543_s15  }
 0x220   : > { %p11_p4 = scmp.ge.s32.totalorder %s14_s15, 4  }
 0x222   :  { %13 = sbr.rel (!%p11_p4) target bundleno = 1 (0x1), region = 74 }

</bundles_post_ra>
